<compile_context>
chip_gen: v5e
topology: v5e:2x2
jax: 0.10.0
libtpu: 0.0.40
codegen_flags: <defaults>
</compile_context>

<pallas_src>
import functools

import jax
import jax.numpy as jnp
from jax.experimental import pallas as pl
from jax.experimental.pallas import tpu as pltpu

HIDDEN = 1024          # conv1 output channels (fixed by the module)
BN_EPS = 1e-5
NORM_EPS = 1e-12       # F.normalize clamp_min eps
SOFTPLUS_THRESH = 20.0


def _spatial_attention_kernel(x_ref, w1_ref, b1_ref, w2_ref, b2_ref,
                              feat_ref, att_ref, *, mm_dtype):
    # x_ref : (C, TS)       activation tile (native dtype; cast here, in-kernel)
    # w1_ref: (HIDDEN, C)   BN-folded conv1 weight (whole array, VMEM resident)
    # b1_ref: (HIDDEN, 1)   BN-folded conv1 bias
    # w2_ref: (8, HIDDEN)   conv2 weight in row 0, rows 1..7 are zero
    # b2_ref: (1, 1)        conv2 bias
    # feat_ref: (HIDDEN, TS), att_ref: (1, TS)
    x = x_ref[...].astype(mm_dtype)

    # conv1 (1x1) + folded eval-mode BatchNorm:  hbn = W' x + b'   (MXU)
    hbn = jnp.dot(w1_ref[...], x,
                  preferred_element_type=jnp.float32) + b1_ref[...]

    # Channel reductions on the MXU (it is idle after conv1), not the VPU:
    #   sq = sum_c hbn_c^2          (F.normalize denominator)
    #   s  = sum_c w2_c relu(hbn_c) (conv2, 1024 -> 1)
    sq_rhs = (hbn * hbn).astype(mm_dtype)
    relu_rhs = jnp.maximum(hbn, 0.0).astype(mm_dtype)
    ones_lhs = jnp.ones((8, HIDDEN), dtype=mm_dtype)
    sq = jnp.dot(ones_lhs, sq_rhs,
                 preferred_element_type=jnp.float32)[0:1, :]          # (1, TS)
    s = jnp.dot(w2_ref[...], relu_rhs,
                preferred_element_type=jnp.float32)[0:1, :] + b2_ref[...]

    # Softplus(beta=1, threshold=20).
    att = jnp.where(s > SOFTPLUS_THRESH, s,
                    jnp.log1p(jnp.exp(jnp.minimum(s, SOFTPLUS_THRESH))))

    # Fuse F.normalize with the attention broadcast: only ONE (HIDDEN, TS)
    # multiply, no fmn temporary.
    inv_norm = jax.lax.rsqrt(jnp.maximum(sq, NORM_EPS * NORM_EPS))     # (1, TS)
    scale = att * inv_norm                                             # (1, TS)

    feat_ref[...] = (hbn * scale).astype(feat_ref.dtype)
    att_ref[...] = att.astype(att_ref.dtype)


def _round_up(x, m):
    return ((x + m - 1) // m) * m


def _cdiv(a, b):
    return -(-a // b)


def _pick_vmem_limit():
    """Scoped VMEM limit: ~3/4 of physical, capped at 96 MiB.

    v5e/v6e (128 MiB physical) -> 96 MiB; v7x (64 MiB physical) -> 48 MiB,
    leaving headroom for compiler-internal scratch (never the full 64 MiB)."""
    cap = 64 * 1024 * 1024
    try:
        info = pltpu.get_tpu_info()
        cap = getattr(info, "vmem_capacity_bytes", None) or cap
    except Exception:
        pass
    return min((cap * 3) // 4, 96 * 1024 * 1024)


def _tile_vmem_bytes(ts, c, x_bytes, mm_bytes, out_bytes):
    """Rough per-step VMEM footprint estimate for a spatial tile of width ts."""
    x_in = 2 * c * ts * x_bytes                       # double-buffered x tile
    x_cast = c * ts * mm_bytes if mm_bytes != x_bytes else 0
    w1 = HIDDEN * c * mm_bytes                        # resident weight
    hbn = HIDDEN * ts * 4                             # f32 conv1+BN result
    sq_rhs = HIDDEN * ts * mm_bytes                   # hbn^2 (MXU operand)
    relu = HIDDEN * ts * mm_bytes                     # relu(hbn) (MXU operand)
    feat = 2 * HIDDEN * ts * out_bytes                # double-buffered feat out
    margin = 2 * 1024 * 1024                          # att tiles, biases, scratch
    return x_in + x_cast + w1 + hbn + sq_rhs + relu + feat + margin


def _choose_tile(hw, batch, tile_s, bytes_fn, budget):
    """Largest 128-multiple spatial tile <= tile_s that fits the VMEM budget,
    shrunk (if possible) so the parallel grid has >= 2 steps (v7x: 2 TCs)."""
    cap = _round_up(hw, 128)
    ts = max(128, min(_round_up(tile_s, 128), cap))
    while ts > 128 and bytes_fn(ts) > budget:
        ts -= 128
    while ts > 128 and batch * _cdiv(hw, ts) < 2:
        ts -= 128
    return ts


@functools.partial(jax.jit, static_argnames=("tile_s", "use_bf16", "out_dtype"))
def spatial_attention2d(x_nchw, params, tile_s=1024, use_bf16=False,
                        out_dtype=jnp.float32):
    """Forward of SpatialAttention2d (eval-mode BatchNorm).

    use_bf16 is an explicit opt-in (bf16 MXU operands, f32 accumulation) for
    wide in_c; out_dtype lets v5e users halve the dominant feat HBM writeback.
    Returns (feat (B, 1024, H, W), att (B, 1, H, W) f32)."""
    B, C, H, W = x_nchw.shape
    HW = H * W
    mm_dtype = jnp.bfloat16 if use_bf16 else jnp.float32

    # Fold eval-mode BatchNorm (and the conv1 bias) into the conv1 weights:
    #   BN(W x + b) = (scale*W) x + (scale*(b - mean) + beta)
    scale = params["bn_gamma"] / jnp.sqrt(params["bn_var"] + BN_EPS)   # (HIDDEN,)
    w1f = (params["w1"] * scale[:, None]).astype(mm_dtype)             # (HIDDEN, C)
    b1f = (scale * (params["b1"] - params["bn_mean"]) + params["bn_beta"])
    b1f = b1f.reshape(HIDDEN, 1).astype(jnp.float32)
    # conv2 weight as row 0 of an (8, HIDDEN) LHS for the MXU reduction dot.
    w2_8 = jnp.zeros((8, HIDDEN), jnp.float32).at[0].set(
        params["w2"].reshape(HIDDEN)).astype(mm_dtype)
    b2c = params["b2"].reshape(1, 1).astype(jnp.float32)

    # NCHW -> (B, C, H*W): free reshape. No wrapper-side cast or pad of x
    # (that would cost a full extra HBM pass over the activation).
    x3 = x_nchw.reshape(B, C, HW)

    x_bytes = jnp.dtype(x_nchw.dtype).itemsize
    mm_bytes = jnp.dtype(mm_dtype).itemsize
    out_bytes = jnp.dtype(out_dtype).itemsize
    vmem_limit = _pick_vmem_limit()
    ts = _choose_tile(
        HW, B, tile_s,
        lambda t: _tile_vmem_bytes(t, C, x_bytes, mm_bytes, out_bytes),
        budget=int(vmem_limit * 0.9))

    grid = (B, _cdiv(HW, ts))
    # Whole-array VMEM-resident params: loaded once, no per-step double buffer.
    vmem_spec = pl.BlockSpec(memory_space=pltpu.MemorySpace.VMEM)

    feat3, att3 = pl.pallas_call(
        functools.partial(_spatial_attention_kernel, mm_dtype=mm_dtype),
        out_shape=(jax.ShapeDtypeStruct((B, HIDDEN, HW), out_dtype),
                   jax.ShapeDtypeStruct((B, 1, HW), jnp.float32)),
        grid_spec=pltpu.PrefetchScalarGridSpec(
            num_scalar_prefetch=0,
            grid=grid,
            in_specs=[
                pl.BlockSpec((None, C, ts), lambda b, j: (b, 0, j)),  # x tile
                vmem_spec,   # w1 (HIDDEN, C)
                vmem_spec,   # b1 (HIDDEN, 1)
                vmem_spec,   # w2 (8, HIDDEN)
                vmem_spec,   # b2 (1, 1)
            ],
            out_specs=[
                pl.BlockSpec((None, HIDDEN, ts), lambda b, j: (b, 0, j)),
                pl.BlockSpec((None, 1, ts), lambda b, j: (b, 0, j)),
            ],
        ),
        compiler_params=pltpu.CompilerParams(
            dimension_semantics=("parallel", "parallel"),
            vmem_limit_bytes=vmem_limit),
    )(x3, w1f, b1f, w2_8, b2c)

    feat = feat3.reshape(B, HIDDEN, H, W)
    att = att3.reshape(B, 1, H, W)
    return feat, att


def _reference(x, p):
    """Pure-JAX reference mirroring the PyTorch forward (eval-mode BN)."""
    B, C, H, W = x.shape
    hp = jax.lax.Precision.HIGHEST
    xf = x.reshape(B, C, H * W).astype(jnp.float32)
    h = jnp.einsum("oc,bcs->bos", p["w1"], xf, precision=hp) \
        + p["b1"][None, :, None]
    inv_std = 1.0 / jnp.sqrt(p["bn_var"] + BN_EPS)
    hbn = ((h - p["bn_mean"][None, :, None])
           * (p["bn_gamma"] * inv_std)[None, :, None]
           + p["bn_beta"][None, :, None])
    norm = jnp.sqrt(jnp.sum(hbn * hbn, axis=1, keepdims=True))
    fmn = hbn / jnp.maximum(norm, NORM_EPS)
    r = jnp.maximum(hbn, 0.0)
    s = jnp.einsum("oc,bcs->bos", p["w2"].reshape(1, HIDDEN), r, precision=hp) \
        + p["b2"].reshape(1, 1, 1)
    att = jnp.where(s > SOFTPLUS_THRESH, s,
                    jnp.log1p(jnp.exp(jnp.minimum(s, SOFTPLUS_THRESH))))
    feat = att * fmn
    return feat.reshape(B, HIDDEN, H, W), att.reshape(B, 1, H, W)


def _init_params(key, in_c):
    ks = jax.random.split(key, 8)
    # conv1: torch weight (1024, in_c, 1, 1) -> (1024, in_c)
    w1 = 0.1 * jax.random.normal(ks[0], (HIDDEN, in_c), jnp.float32)
    b1 = 0.1 * jax.random.normal(ks[1], (HIDDEN,), jnp.float32)
    # BatchNorm2d(1024) eval-mode params / running stats.
    bn_gamma = 1.0 + 0.1 * jax.random.normal(ks[2], (HIDDEN,), jnp.float32)
    bn_beta = 0.1 * jax.random.normal(ks[3], (HIDDEN,), jnp.float32)
    bn_mean = 0.05 * jax.random.normal(ks[4], (HIDDEN,), jnp.float32)
    bn_var = jnp.abs(0.5 * jax.random.normal(ks[5], (HIDDEN,), jnp.float32)) + 0.5
    # conv2: torch weight (1, 1024, 1, 1) -> (1024,)
    w2 = 0.05 * jax.random.normal(ks[6], (HIDDEN,), jnp.float32)
    b2 = 0.02 + 0.0 * jax.random.normal(ks[7], (1,), jnp.float32)
    return dict(w1=w1, b1=b1, bn_gamma=bn_gamma, bn_beta=bn_beta,
                bn_mean=bn_mean, bn_var=bn_var, w2=w2, b2=b2)


if __name__ == "__main__":
    key = jax.random.PRNGKey(0)
    kx, kp, kx2, kp2 = jax.random.split(key, 4)

    # Main check: small module-consistent shape, f32 MXU path.
    B, C, H, W = 2, 4, 16, 16
    x = jax.random.normal(kx, (B, C, H, W), jnp.float32)
    params = _init_params(kp, C)

    feat, att = spatial_attention2d(x, params)
    jax.block_until_ready((feat, att))

    feat_ref, att_ref = _reference(x, params)
    assert feat.shape == (B, HIDDEN, H, W) and att.shape == (B, 1, H, W)
    assert jnp.allclose(feat, feat_ref, atol=2e-3, rtol=2e-3)
    assert jnp.allclose(att, att_ref, atol=2e-3, rtol=2e-3)

    # Secondary check: wider in_c with explicit bf16 opt-in (looser tolerance).
    B2, C2, H2, W2 = 1, 256, 8, 16
    x2 = jax.random.normal(kx2, (B2, C2, H2, W2), jnp.float32)
    params2 = _init_params(kp2, C2)
    feat2, att2 = spatial_attention2d(x2, params2, use_bf16=True)
    jax.block_until_ready((feat2, att2))
    feat2_ref, att2_ref = _reference(x2, params2)
    assert feat2.shape == (B2, HIDDEN, H2, W2) and att2.shape == (B2, 1, H2, W2)
    assert jnp.allclose(feat2, feat2_ref, atol=2e-2, rtol=2e-2)
    assert jnp.allclose(att2, att2_ref, atol=2e-2, rtol=2e-2)

    print("KERNEL_OK")
</pallas_src>

<mosaic_0001>
module attributes {stable_mosaic.version = 11 : i64} {
  func.func @_spatial_attention_kernel(%arg0: i32, %arg1: i32, %arg2: memref<1x4x256xf32, #tpu.memory_space<vmem>>, %arg3: memref<1024x4xf32, #tpu.memory_space<vmem>>, %arg4: memref<1024x1xf32, #tpu.memory_space<vmem>>, %arg5: memref<8x1024xf32, #tpu.memory_space<vmem>>, %arg6: memref<1x1xf32, #tpu.memory_space<vmem>>, %arg7: memref<1x1024x256xf32, #tpu.memory_space<vmem>>, %arg8: memref<1x1x256xf32, #tpu.memory_space<vmem>>) attributes {dimension_semantics = [#tpu.dimension_semantics<parallel>, #tpu.dimension_semantics<parallel>], iteration_bounds = array<i64: 2, 1>, scalar_prefetch = 0 : i64, scratch_operands = 0 : i64, tpu.core_type = #tpu.core_type<tc>, window_params = [{transform_indices = @transform_0, window_bounds = array<i64: 1, 4, 256>}, {pipeline_mode = #tpu.pipeline_mode<synchronous>, transform_indices = @transform_1, window_bounds = array<i64: 1024, 4>}, {pipeline_mode = #tpu.pipeline_mode<synchronous>, transform_indices = @transform_2, window_bounds = array<i64: 1024, 1>}, {pipeline_mode = #tpu.pipeline_mode<synchronous>, transform_indices = @transform_3, window_bounds = array<i64: 8, 1024>}, {pipeline_mode = #tpu.pipeline_mode<synchronous>, transform_indices = @transform_4, window_bounds = array<i64: 1, 1>}, {transform_indices = @transform_5, window_bounds = array<i64: 1, 1024, 256>}, {transform_indices = @transform_6, window_bounds = array<i64: 1, 1, 256>}]} {
    %c0 = arith.constant 0 : index
    %c0_0 = arith.constant 0 : index
    %c0_1 = arith.constant 0 : index
    %0 = vector.load %arg2[%c0, %c0_0, %c0_1] : memref<1x4x256xf32, #tpu.memory_space<vmem>>, vector<1x4x256xf32>
    %1 = vector.shape_cast %0 : vector<1x4x256xf32> to vector<4x256xf32>
    %c0_2 = arith.constant 0 : index
    %c0_3 = arith.constant 0 : index
    %2 = vector.load %arg3[%c0_2, %c0_3] : memref<1024x4xf32, #tpu.memory_space<vmem>>, vector<1024x4xf32>
    %cst = arith.constant dense<0.000000e+00> : vector<1024x256xf32>
    %3 = tpu.matmul %2, %1, %cst {dimension_numbers = #tpu.dot_dimension_numbers<[1], [0], [0], [1], [0, 0, 1, 1], [], []>} : vector<1024x4xf32>, vector<4x256xf32>, vector<1024x256xf32> -> vector<1024x256xf32>
    %c0_4 = arith.constant 0 : index
    %c0_5 = arith.constant 0 : index
    %4 = vector.load %arg4[%c0_4, %c0_5] : memref<1024x1xf32, #tpu.memory_space<vmem>>, vector<1024x1xf32>
    %5 = vector.broadcast %4 : vector<1024x1xf32> to vector<1024x256xf32>
    %6 = arith.addf %3, %5 : vector<1024x256xf32>
    %7 = arith.mulf %6, %6 : vector<1024x256xf32>
    %cst_6 = arith.constant 0.000000e+00 : f32
    %8 = vector.broadcast %cst_6 : f32 to vector<1024x256xf32>
    %9 = arith.maximumf %6, %8 : vector<1024x256xf32>
    %cst_7 = arith.constant 1.000000e+00 : f32
    %10 = vector.broadcast %cst_7 : f32 to vector<8x1024xf32>
    %cst_8 = arith.constant dense<0.000000e+00> : vector<8x256xf32>
    %11 = tpu.matmul %10, %7, %cst_8 {dimension_numbers = #tpu.dot_dimension_numbers<[1], [0], [0], [1], [0, 0, 1, 1], [], []>} : vector<8x1024xf32>, vector<1024x256xf32>, vector<8x256xf32> -> vector<8x256xf32>
    %12 = vector.extract_strided_slice %11 {offsets = [0, 0], sizes = [1, 256], strides = [1, 1]} : vector<8x256xf32> to vector<1x256xf32>
    %c0_9 = arith.constant 0 : index
    %c0_10 = arith.constant 0 : index
    %13 = vector.load %arg5[%c0_9, %c0_10] : memref<8x1024xf32, #tpu.memory_space<vmem>>, vector<8x1024xf32>
    %cst_11 = arith.constant dense<0.000000e+00> : vector<8x256xf32>
    %14 = tpu.matmul %13, %9, %cst_11 {dimension_numbers = #tpu.dot_dimension_numbers<[1], [0], [0], [1], [0, 0, 1, 1], [], []>} : vector<8x1024xf32>, vector<1024x256xf32>, vector<8x256xf32> -> vector<8x256xf32>
    %15 = vector.extract_strided_slice %14 {offsets = [0, 0], sizes = [1, 256], strides = [1, 1]} : vector<8x256xf32> to vector<1x256xf32>
    %c0_12 = arith.constant 0 : index
    %c0_13 = arith.constant 0 : index
    %16 = vector.load %arg6[%c0_12, %c0_13] : memref<1x1xf32, #tpu.memory_space<vmem>>, vector<1x1xf32>
    %17 = vector.broadcast %16 : vector<1x1xf32> to vector<1x256xf32>
    %18 = arith.addf %15, %17 : vector<1x256xf32>
    %cst_14 = arith.constant 2.000000e+01 : f32
    %19 = vector.broadcast %cst_14 : f32 to vector<1x256xf32>
    %20 = arith.cmpf ogt, %18, %19 : vector<1x256xf32>
    %cst_15 = arith.constant 2.000000e+01 : f32
    %21 = vector.broadcast %cst_15 : f32 to vector<1x256xf32>
    %22 = arith.minimumf %18, %21 : vector<1x256xf32>
    %23 = math.exp %22 : vector<1x256xf32>
    %24 = math.log1p %23 : vector<1x256xf32>
    %25 = arith.select %20, %18, %24 : vector<1x256xi1>, vector<1x256xf32>
    %cst_16 = arith.constant 1.000000e-24 : f32
    %26 = vector.broadcast %cst_16 : f32 to vector<1x256xf32>
    %27 = arith.maximumf %12, %26 : vector<1x256xf32>
    %28 = math.rsqrt %27 : vector<1x256xf32>
    %29 = arith.mulf %25, %28 : vector<1x256xf32>
    %30 = vector.broadcast %29 : vector<1x256xf32> to vector<1024x256xf32>
    %31 = arith.mulf %6, %30 : vector<1024x256xf32>
    %c0_17 = arith.constant 0 : index
    %c0_18 = arith.constant 0 : index
    %c0_19 = arith.constant 0 : index
    %32 = vector.load %arg7[%c0_17, %c0_18, %c0_19] : memref<1x1024x256xf32, #tpu.memory_space<vmem>>, vector<1x1024x256xf32>
    %33 = vector.shape_cast %32 : vector<1x1024x256xf32> to vector<1024x256xf32>
    %34 = vector.shape_cast %31 : vector<1024x256xf32> to vector<1x1024x256xf32>
    tpu.vector_store %arg7[%c0_17, %c0_18, %c0_19], %34 {strides = array<i32>} : memref<1x1024x256xf32, #tpu.memory_space<vmem>>, vector<1x1024x256xf32>,
    %c0_20 = arith.constant 0 : index
    %c0_21 = arith.constant 0 : index
    %c0_22 = arith.constant 0 : index
    %35 = vector.load %arg8[%c0_20, %c0_21, %c0_22] : memref<1x1x256xf32, #tpu.memory_space<vmem>>, vector<1x1x256xf32>
    %36 = vector.shape_cast %35 : vector<1x1x256xf32> to vector<1x256xf32>
    %37 = vector.shape_cast %25 : vector<1x256xf32> to vector<1x1x256xf32>
    tpu.vector_store %arg8[%c0_20, %c0_21, %c0_22], %37 {strides = array<i32>} : memref<1x1x256xf32, #tpu.memory_space<vmem>>, vector<1x1x256xf32>,
    return
  }
  func.func @transform_0(%arg0: i32, %arg1: i32) -> (i32, i32, i32) {
    %c0_i32 = arith.constant 0 : i32
    %c0_i32_0 = arith.constant 0 : i32
    return %arg0, %c0_i32, %arg1 : i32, i32, i32
  }
  func.func @transform_1(%arg0: i32, %arg1: i32) -> (i32, i32) {
    %c0_i32 = arith.constant 0 : i32
    %c0_i32_0 = arith.constant 0 : i32
    %c0_i32_1 = arith.constant 0 : i32
    return %c0_i32, %c0_i32_0 : i32, i32
  }
  func.func @transform_2(%arg0: i32, %arg1: i32) -> (i32, i32) {
    %c0_i32 = arith.constant 0 : i32
    %c0_i32_0 = arith.constant 0 : i32
    %c0_i32_1 = arith.constant 0 : i32
    return %c0_i32, %c0_i32_0 : i32, i32
  }
  func.func @transform_3(%arg0: i32, %arg1: i32) -> (i32, i32) {
    %c0_i32 = arith.constant 0 : i32
    %c0_i32_0 = arith.constant 0 : i32
    %c0_i32_1 = arith.constant 0 : i32
    return %c0_i32, %c0_i32_0 : i32, i32
  }
  func.func @transform_4(%arg0: i32, %arg1: i32) -> (i32, i32) {
    %c0_i32 = arith.constant 0 : i32
    %c0_i32_0 = arith.constant 0 : i32
    %c0_i32_1 = arith.constant 0 : i32
    return %c0_i32, %c0_i32_0 : i32, i32
  }
  func.func @transform_5(%arg0: i32, %arg1: i32) -> (i32, i32, i32) {
    %c0_i32 = arith.constant 0 : i32
    %c0_i32_0 = arith.constant 0 : i32
    return %arg0, %c0_i32, %arg1 : i32, i32, i32
  }
  func.func @transform_6(%arg0: i32, %arg1: i32) -> (i32, i32, i32) {
    %c0_i32 = arith.constant 0 : i32
    %c0_i32_0 = arith.constant 0 : i32
    return %arg0, %c0_i32, %arg1 : i32, i32, i32
  }
}

</mosaic_0001>

<bundles_post_ra>
// kernel: spatial_attention2d.1
= control target key start
LH: loop header
LB: loop body
LE: loop exit
PB: predicated region body
PF: predicated region fallthrough
CT: control target
= control target key end

     0   :  { %s4665_s23 = smov 0   ;;  %s4667_s24 = smov 0   ;;  %s9063_s0 = inlined_call_operand.vmem [shape: f32[2,4,256], index: 0, kind: input, shape index: {}]   ;;  %s9064_s1 = inlined_call_operand.vmem [shape: f32[1024,4], index: 1, kind: input, shape index: {}]   ;;  %s9065_s2 = inlined_call_operand.vmem [shape: f32[1024,1], index: 2, kind: input, shape index: {}]   ;;  %s9066_s3 = inlined_call_operand.vmem [shape: f32[8,1024], index: 3, kind: input, shape index: {}]   ;;  %s9067_s4 = inlined_call_operand.<no memory space> [shape: f32[1,1], index: 4, kind: input, shape index: {}]   ;;  %s9068_s5 = inlined_call_operand.vmem [shape: f32[2,1024,256], index: 5, kind: output, shape index: {0}]   ;;  %s9069_s6 = inlined_call_operand.vmem [shape: f32[2,1,256], index: 6, kind: output, shape index: {1}]  }
   0x1   :  { %v12_v0 = vstv %s9067_s4  ;;  %s4669_s25 = smov 0  }
   0x2   :  { %13 = vst [vmem:[#allocation2] sm:$0x1] %v12_v0 }
   0x3 LB: > { %s31_s4 = sadd.s32 1, %s4619_s24  ;;  %p4289_p0 = scmp.ge.s32.totalorder %s4623_s25, 1  ;;  %s4623_s25 = sphi %s4669_s25, %s19_s25   ;;  %s4619_s24 = sphi %s4667_s24, %s10712_s24   ;;  %s4615_s23 = sphi %s4665_s23, %s10711_s23  }
   0x4   : > { %p33_p1 = scmp.ge.s32.totalorder %s31_s4, 2  ;;  %p240_p2 = scmp.lt.s32.totalorder %s4623_s25, 3 }
   0x6   : > { %s10714_s4 = smov (%p33_p1, %s31_s4), 0  ;;  %p241_p3 = pnand %p4289_p0, %p240_p2 }
   0x8   : > { %244 = sbr.rel (%p241_p3) target bundleno = 1689 (0x699), region = 40 }
   0xd   : > { %p287_p4 = scmp.lt.s32.totalorder %s4615_s23, 1  ;;  %v4625_v1 = vmov 0   ;;  %v444_v2 = vld [vmem:[%s9065_s2] sm:$0xff]  ;;  %v445_v4 = vld [vmem:[%s9065_s2 + $0x8] sm:$0xff]  ;;  %v446_v5 = vld [vmem:[%s9065_s2 + $0x10] sm:$0xff]  ;;  %vm1601_vm0 = vcmask 1043456  }
   0xe   : > { %4585 = vset.pattern.permute.xlu0 %v4625_v1  ;;  %4586 = vset.pattern.permute.xlu1 %v4625_v1  ;;  %v316_v6 = vld [vmem:[%s9064_s1] sm:$0xff]  ;;  %vm1216_vm1 = vcmask 31744   ;;  %v447_v9 = vld [vmem:[%s9065_s2 + $0x18] sm:$0xff]  ;;  %v317_v10 = vld [vmem:[%s9064_s1 + $0x8] sm:$0xff]  ;;  %vm4146_vm12 = vcmask 1040384  }
   0xf   : > { %s10716_s23 = smov (!%p287_p4, %s4615_s23), 1  ;;  %574 = vperm.xlu0 %4585, %v444_v2   ;;  %4587 = vset.pattern.permute.xlu2 %v4625_v1  ;;  %v318_v11 = vld [vmem:[%s9064_s1 + $0x10] sm:$0xff]  ;;  %v319_v12 = vld [vmem:[%s9064_s1 + $0x18] sm:$0xff]  ;;  %v320_v14 = vld [vmem:[%s9064_s1 + $0x20] sm:$0xff] }
  0x10   : > { %s4555_s28 = sshll.u32 %s10716_s23, 3  ;;  %584 = vperm.xlu1 %4586, %v446_v5   ;;  %v450_v13 = vld [vmem:[%s9065_s2 + $0x30] sm:$0xff]  ;;  %v448_v15 = vld [vmem:[%s9065_s2 + $0x20] sm:$0xff]  ;;  %v451_v16 = vld [vmem:[%s9065_s2 + $0x38] sm:$0xff]  ;;  %s4556_s11 = sshll.u32 %s10716_s23, 11 }
  0x11   : > { %s294_s7 = scalar_lea.vmem %s9063_s0, %s4555_s28  ;;  %594 = vperm.xlu2 %4587, %v448_v15   ;;  %v321_v17 = vld [vmem:[%s9064_s1 + $0x28] sm:$0xff]  ;;  %v322_v19 = vld [vmem:[%s9064_s1 + $0x30] sm:$0xff]  ;;  %v323_v21 = vld [vmem:[%s9064_s1 + $0x38] sm:$0xff]  ;;  %s8270_s14 = scalar_lea.vmem %s9068_s5, %s4556_s11 }
  0x12   : > { %v315_v3 = vld [vmem:[%s294_s7] sm:$0xff]  ;;  %v449_v18 = vld [vmem:[%s9065_s2 + $0x28] sm:$0xff]  ;;  %v454_v22 = vld [vmem:[%s9065_s2 + $0x50] sm:$0xff]  ;;  %s4294_s15 = sshll.u32 %s10716_s23, 1 }
  0x13   : > { %1213 = vst [vmem:[#allocation1] ss:$2 sm:$0xff] %v315_v3  ;;  %v453_v20 = vld [vmem:[%s9065_s2 + $0x48] sm:$0xff]  ;;  %v324_v23 = vld [vmem:[%s9064_s1 + $0x40] sm:$0xff]  ;;  %v326_v27 = vld [vmem:[%s9064_s1 + $0x50] sm:$0xff]  ;;  %s313_s18 = scalar_lea.vmem %s9069_s6, %s4294_s15 }
  0x14   : > { %v452_v24 = vld [vmem:[%s9065_s2 + $0x40] sm:$0xff]  ;;  %v325_v25 = vld [vmem:[%s9064_s1 + $0x48] sm:$0xff]  ;;  %v327_v29 = vld [vmem:[%s9064_s1 + $0x58] sm:$0xff] }
  0x15   : > { %v456_v26 = vld [vmem:[%s9065_s2 + $0x60] sm:$0xff]  ;;  %v457_v28 = vld [vmem:[%s9065_s2 + $0x68] sm:$0xff]  ;;  %v455_v30 = vld [vmem:[%s9065_s2 + $0x58] sm:$0xff] }
  0x16   : > { %v328_v31 = vld [vmem:[%s9064_s1 + $0x60] sm:$0xff]  ;;  %v459_v32 = vld [vmem:[%s9065_s2 + $0x78] sm:$0xff]  ;;  %v329_v33 = vld [vmem:[%s9064_s1 + $0x68] sm:$0xff] }
  0x17   : > { %579 = vperm.xlu0 %4585, %v445_v4   ;;  %v460_v34 = vld [vmem:[%s9065_s2 + $0x80] sm:$0xff]  ;;  %v330_v35 = vld [vmem:[%s9064_s1 + $0x70] sm:$0xff]  ;;  %v331_v37 = vld [vmem:[%s9064_s1 + $0x78] sm:$0xff] }
  0x18   : > { %589 = vperm.xlu1 %4586, %v447_v9   ;;  %v458_v36 = vld [vmem:[%s9065_s2 + $0x70] sm:$0xff]  ;;  %v332_v41 = vld [vmem:[%s9064_s1 + $0x80] sm:$0xff]  ;;  %v463_v42 = vld [vmem:[%s9065_s2 + $0x98] sm:$0xff] }
  0x19   : > { %599 = vperm.xlu2 %4587, %v449_v18   ;;  %v462_v38 = vld [vmem:[%s9065_s2 + $0x90] sm:$0xff]  ;;  %v333_v45 = vld [vmem:[%s9064_s1 + $0x88] sm:$0xff]  ;;  %v335_v53 = vld [vmem:[%s9064_s1 + $0x98] sm:$0xff] }
  0x1a   : > { %v1214_v7 = vld.sshfl [vmem:[#allocation1] sm:$0xff pattern:$0x75316420]  ;;  %v1215_v8 = vld.sshfl [vmem:[#allocation1 + $0x8] sm:$0xff pattern:$0x75316420] }
  0x1b   : > { %4295 = vmatpush.msk.msra.mxu0 %vm1601_vm0, %v1214_v7  ;;  %4424 = vmatpush.msk.msra.mxu1 %vm1601_vm0, %v1215_v8  ;;  %v461_v46 = vld [vmem:[%s9065_s2 + $0x88] sm:$0xff]  ;;  %v334_v49 = vld [vmem:[%s9064_s1 + $0x90] sm:$0xff]  ;;  %v336_v57 = vld [vmem:[%s9064_s1 + $0xa0] sm:$0xff] }
  0x1c   : > { %4296 = vmatmul.msk.f32.vlgmr.msra.gmra.mxu0 %vm1216_vm1, %v316_v6  ;;  %4425 = vmatmul.msk.f32.vlgmr.msra.gmra.mxu1 %vm1216_vm1, %v316_v6  ;;  %v465_v50 = vld [vmem:[%s9065_s2 + $0xa8] sm:$0xff]  ;;  %v466_v54 = vld [vmem:[%s9065_s2 + $0xb0] sm:$0xff]  ;;  %v464_v58 = vld [vmem:[%s9065_s2 + $0xa0] sm:$0xff] }
  0x1d   : > { %4558 = vmatpush.msk.msra.mxu3 %vm1601_vm0, %v1215_v8  ;;  %4557 = vmatpush.msk.msra.mxu2 %vm1601_vm0, %v1214_v7  ;;  %v337_v61 = vld [vmem:[%s9064_s1 + $0xa8] sm:$0xff]  ;;  %v468_v62 = vld [vmem:[%s9065_s2 + $0xc0] sm:$0xff]  ;;  %v338_v1 = vld [vmem:[%s9064_s1 + $0xb0] sm:$0xff] }
  0x1e   : > { %v469_v2 = vld [vmem:[%s9065_s2 + $0xc8] sm:$0xff]  ;;  %v339_v5 = vld [vmem:[%s9064_s1 + $0xb8] sm:$0xff]  ;;  %v340_v9 = vld [vmem:[%s9064_s1 + $0xc0] sm:$0xff] }
  0x1f   : > { %604 = vperm.xlu0 %4585, %v450_v13   ;;  %v467_v6 = vld [vmem:[%s9065_s2 + $0xb8] sm:$0xff]  ;;  %v341_v15 = vld [vmem:[%s9064_s1 + $0xc8] sm:$0xff]  ;;  %v412_v18 = vld [vmem:[%s9064_s1 + $0x300] sm:$0xff] }
  0x20   : > { %609 = vperm.xlu1 %4586, %v451_v16   ;;  %v475_v16 = vld [vmem:[%s9065_s2 + $0xf8] sm:$0xff]  ;;  %4392 = vmatmul.msk.f32.vlgmr.msra.gmra.mxu2 %vm1216_vm1, %v412_v18 }
  0x21   : > { %614 = vperm.xlu2 %4587, %v452_v24   ;;  %v470_v24 = vld [vmem:[%s9065_s2 + $0xd0] sm:$0xff] }
  0x24   : > { %4297 = vmatmul.msk.f32.gmra.mxu0 %vm1216_vm1, %v317_v10  ;;  %4426 = vmatmul.msk.f32.gmra.mxu1 %vm1216_vm1, %v317_v10  ;;  %v472_v10 = vld [vmem:[%s9065_s2 + $0xe0] sm:$0xff] }
  0x27   : > { %619 = vperm.xlu0 %4585, %v453_v20  }
  0x28   : > { %624 = vperm.xlu1 %4586, %v454_v22   ;;  %v474_v22 = vld [vmem:[%s9065_s2 + $0xf0] sm:$0xff] }
  0x29   : > { %629 = vperm.xlu2 %4587, %v455_v30  }
  0x2c   : > { %4298 = vmatmul.msk.f32.gmra.mxu0 %vm1216_vm1, %v318_v11  ;;  %4427 = vmatmul.msk.f32.gmra.mxu1 %vm1216_vm1, %v318_v11  ;;  %v471_v11 = vld [vmem:[%s9065_s2 + $0xd8] sm:$0xff] }
  0x2f   : > { %634 = vperm.xlu0 %4585, %v456_v26  }
  0x30   : > { %639 = vperm.xlu1 %4586, %v457_v28   ;;  %v413_v28 = vld [vmem:[%s9064_s1 + $0x308] sm:$0xff] }
  0x31   : > { %644 = vperm.xlu2 %4587, %v458_v36   ;;  %4393 = vmatmul.msk.f32.gmra.mxu2 %vm1216_vm1, %v413_v28 }
  0x34   : > { %4299 = vmatmul.msk.f32.gmra.mxu0 %vm1216_vm1, %v319_v12  ;;  %4428 = vmatmul.msk.f32.gmra.mxu1 %vm1216_vm1, %v319_v12  ;;  %v411_v12 = vld [vmem:[%s9064_s1 + $0x2f8] sm:$0xff] }
  0x35   : > { %4520 = vmatmul.msk.f32.vlgmr.msra.gmra.mxu3 %vm1216_vm1, %v411_v12  ;;  %v346_v12 = vld [vmem:[%s9064_s1 + $0xf0] sm:$0xff] }
  0x37   : > { %649 = vperm.xlu0 %4585, %v459_v32   ;;  %v477_v32 = vld [vmem:[%s9065_s2 + $0x108] sm:$0xff] }
  0x38   : > { %654 = vperm.xlu1 %4586, %v460_v34  }
  0x39   : > { %659 = vperm.xlu2 %4587, %v461_v46   ;;  %v484_v46 = vld [vmem:[%s9065_s2 + $0x140] sm:$0xff] }
  0x3c   : > { %4300 = vmatmul.msk.f32.gmra.mxu0 %vm1216_vm1, %v320_v14  ;;  %4429 = vmatmul.msk.f32.gmra.mxu1 %vm1216_vm1, %v320_v14 }
  0x3d   : > { %4521 = vmatmul.msk.f32.gmra.mxu3 %vm1216_vm1, %v412_v18  ;;  %v486_v18 = vld [vmem:[%s9065_s2 + $0x150] sm:$0xff] }
  0x3f   : > { %664 = vperm.xlu0 %4585, %v462_v38  }
  0x40   : > { %669 = vperm.xlu1 %4586, %v463_v42   ;;  %v344_v42 = vld [vmem:[%s9064_s1 + $0xe0] sm:$0xff] }
  0x41   : > { %674 = vperm.xlu2 %4587, %v464_v58   ;;  %v345_v58 = vld [vmem:[%s9064_s1 + $0xe8] sm:$0xff] }
  0x44   : > { %4301 = vmatmul.msk.f32.gmra.mxu0 %vm1216_vm1, %v321_v17  ;;  %4430 = vmatmul.msk.f32.gmra.mxu1 %vm1216_vm1, %v321_v17 }
  0x45   : > { %4522 = vmatmul.msk.f32.gmra.mxu3 %vm1216_vm1, %v413_v28 }
  0x47   : > { %679 = vperm.xlu0 %4585, %v465_v50  }
  0x48   : > { %684 = vperm.xlu1 %4586, %v466_v54  }
  0x49   : > { %689 = vperm.xlu2 %4587, %v467_v6  }
  0x4c   : > { %4302 = vmatmul.msk.f32.gmra.mxu0 %vm1216_vm1, %v322_v19  ;;  %4431 = vmatmul.msk.f32.gmra.mxu1 %vm1216_vm1, %v322_v19 }
  0x4f   : > { %694 = vperm.xlu0 %4585, %v468_v62   ;;  %v473_v62 = vld [vmem:[%s9065_s2 + $0xe8] sm:$0xff] }
  0x50   : > { %699 = vperm.xlu1 %4586, %v469_v2   ;;  %v487_v2 = vld [vmem:[%s9065_s2 + $0x158] sm:$0xff] }
  0x51   : > { %704 = vperm.xlu2 %4587, %v470_v24  }
  0x54   : > { %4303 = vmatmul.msk.f32.gmra.mxu0 %vm1216_vm1, %v323_v21  ;;  %4432 = vmatmul.msk.f32.gmra.mxu1 %vm1216_vm1, %v323_v21  ;;  %v342_v21 = vld [vmem:[%s9064_s1 + $0xd0] sm:$0xff] }
  0x57   : > { %709 = vperm.xlu0 %4585, %v471_v11  }
  0x58   : > { %714 = vperm.xlu1 %4586, %v472_v10  }
  0x59   : > { %719 = vperm.xlu2 %4587, %v473_v62   ;;  %v493_v62 = vld [vmem:[%s9065_s2 + $0x188] sm:$0xff] }
  0x5c   : > { %4304 = vmatmul.msk.f32.gmra.mxu0 %vm1216_vm1, %v324_v23  ;;  %4433 = vmatmul.msk.f32.gmra.mxu1 %vm1216_vm1, %v324_v23  ;;  %v478_v23 = vld [vmem:[%s9065_s2 + $0x110] sm:$0xff] }
  0x5f   : > { %724 = vperm.xlu0 %4585, %v474_v22  }
  0x60   : > { %729 = vperm.xlu1 %4586, %v475_v16   ;;  %v476_v16 = vld [vmem:[%s9065_s2 + $0x100] sm:$0xff] }
  0x61   : > { %734 = vperm.xlu2 %4587, %v476_v16   ;;  %v348_v16 = vld [vmem:[%s9064_s1 + $0x100] sm:$0xff] }
  0x64   : > { %4305 = vmatmul.msk.f32.gmra.mxu0 %vm1216_vm1, %v325_v25  ;;  %4434 = vmatmul.msk.f32.gmra.mxu1 %vm1216_vm1, %v325_v25 }
  0x67   : > { %739 = vperm.xlu0 %4585, %v477_v32   ;;  %v347_v32 = vld [vmem:[%s9064_s1 + $0xf8] sm:$0xff] }
  0x68   : > { %744 = vperm.xlu1 %4586, %v478_v23  }
  0x6b   : > { %v4975_v25 = vpop.permute.xlu2 %594 }
  0x6c   : > { %4306 = vmatmul.msk.f32.gmra.mxu0 %vm1216_vm1, %v326_v27  ;;  %4435 = vmatmul.msk.f32.gmra.mxu1 %vm1216_vm1, %v326_v27  ;;  %9633 = vst [vmem:[#allocation15_spill] sm:$0xff] %v4975_v25 }
  0x73   : > { %v5001_v34 = vpop.permute.xlu2 %599 }
  0x74   : > { %4307 = vmatmul.msk.f32.gmra.mxu0 %vm1216_vm1, %v327_v29  ;;  %4436 = vmatmul.msk.f32.gmra.mxu1 %vm1216_vm1, %v327_v29  ;;  %9637 = vst [vmem:[#allocation19_spill] sm:$0xff] %v5001_v34 }
  0x7c   : > { %4308 = vmatmul.msk.f32.gmra.mxu0 %vm1216_vm1, %v328_v31  ;;  %4437 = vmatmul.msk.f32.gmra.mxu1 %vm1216_vm1, %v328_v31  ;;  %v343_v31 = vld [vmem:[%s9064_s1 + $0xd8] sm:$0xff] }
  0x81   : > { %v4950_v17 = vpop.permute.xlu0 %574 }
  0x82   : > { %9631 = vst [vmem:[#allocation13_spill] sm:$0xff] %v4950_v17  ;;  %v4977_v26 = vpop.permute.xlu1 %584 }
  0x83   : > { %9634 = vst [vmem:[#allocation16_spill] sm:$0xff] %v4977_v26 }
  0x84   : > { %4309 = vmatmul.msk.f32.gmra.mxu0 %vm1216_vm1, %v329_v33  ;;  %4438 = vmatmul.msk.f32.gmra.mxu1 %vm1216_vm1, %v329_v33  ;;  %v481_v33 = vld [vmem:[%s9065_s2 + $0x128] sm:$0xff] }
  0x85   : > { %759 = vperm.xlu1 %4586, %v481_v33   ;;  %v417_v33 = vld [vmem:[%s9064_s1 + $0x328] sm:$0xff] }
  0x89   : > { %v4979_v27 = vpop.permute.xlu0 %579 }
  0x8a   : > { %9635 = vst [vmem:[#allocation17_spill] sm:$0xff] %v4979_v27  ;;  %v5005_v36 = vpop.permute.xlu1 %589 }
  0x8b   : > { %9639 = vst [vmem:[#allocation21_spill] sm:$0xff] %v5005_v36 }
  0x8c   : > { %4310 = vmatmul.msk.f32.gmra.mxu0 %vm1216_vm1, %v330_v35  ;;  %4439 = vmatmul.msk.f32.gmra.mxu1 %vm1216_vm1, %v330_v35 }
  0x8d   : > { %774 = vperm.xlu1 %4586, %v484_v46   ;;  %v489_v46 = vld [vmem:[%s9065_s2 + $0x168] sm:$0xff] }
  0x91   : > { %v5003_v35 = vpop.permute.xlu0 %604 }
  0x92   : > { %9638 = vst [vmem:[#allocation20_spill] sm:$0xff] %v5003_v35 }
  0x94   : > { %4311 = vmatmul.msk.f32.gmra.mxu0 %vm1216_vm1, %v331_v37  ;;  %4440 = vmatmul.msk.f32.gmra.mxu1 %vm1216_vm1, %v331_v37  ;;  %v414_v37 = vld [vmem:[%s9064_s1 + $0x310] sm:$0xff] }
  0x95   : > { %4394 = vmatmul.msk.f32.gmra.mxu2 %vm1216_vm1, %v414_v37  ;;  %4523 = vmatmul.msk.f32.gmra.mxu3 %vm1216_vm1, %v414_v37 }
  0x96   : > { %789 = vperm.xlu1 %4586, %v487_v2  }
  0x99   : > { %v4823_v39 = vpop.f32.mrf.mxu0  ;;  %v4825_v40 = vpop.f32.mrf.mxu1 }
  0x9a   : > { %9621 = vst [vmem:[#allocation3_spill] sm:$0xff] %v4825_v40  ;;  %v5029_v50 = vpop.permute.xlu0 %619 }
  0x9b   : > { %9642 = vst [vmem:[#allocation24_spill] sm:$0xff] %v5029_v50 }
  0x9c   : > { %4312 = vmatmul.msk.f32.gmra.mxu0 %vm1216_vm1, %v332_v41  ;;  %4441 = vmatmul.msk.f32.gmra.mxu1 %vm1216_vm1, %v332_v41 }
  0xa1   : > { %v4835_v43 = vpop.f32.mrf.mxu0  ;;  %v4837_v44 = vpop.f32.mrf.mxu1 }
  0xa2   : > { %9622 = vst [vmem:[#allocation4_spill] sm:$0xff] %v4837_v44  ;;  %v5056_v6 = vpop.permute.xlu0 %634 }
  0xa3   : > { %9646 = vst [vmem:[#allocation28_spill] sm:$0xff] %v5056_v6 }
  0xa4   : > { %4313 = vmatmul.msk.f32.gmra.mxu0 %vm1216_vm1, %v333_v45  ;;  %4442 = vmatmul.msk.f32.gmra.mxu1 %vm1216_vm1, %v333_v45  ;;  %v480_v45 = vld [vmem:[%s9065_s2 + $0x120] sm:$0xff] }
  0xa5   : > { %754 = vperm.xlu0 %4585, %v480_v45   ;;  %v479_v45 = vld [vmem:[%s9065_s2 + $0x118] sm:$0xff] }
  0xa6   : > { %749 = vperm.xlu2 %4587, %v479_v45  }
  0xa9   : > { %v4847_v47 = vpop.f32.mrf.mxu0  ;;  %v4849_v48 = vpop.f32.mrf.mxu1 }
  0xaa   : > { %9623 = vst [vmem:[#allocation5_spill] sm:$0xff] %v4849_v48  ;;  %v5083_v23 = vpop.permute.xlu0 %649 }
  0xab   : > { %9650 = vst [vmem:[#allocation32_spill] sm:$0xff] %v5083_v23 }
  0xac   : > { %4314 = vmatmul.msk.f32.gmra.mxu0 %vm1216_vm1, %v334_v49  ;;  %4443 = vmatmul.msk.f32.gmra.mxu1 %vm1216_vm1, %v334_v49  ;;  %v5027_v49 = vpop.permute.xlu2 %614 }
  0xad   : > { %9641 = vst [vmem:[#allocation23_spill] sm:$0xff] %v5027_v49 }
  0xb1   : > { %v4859_v51 = vpop.f32.mrf.mxu0  ;;  %v4861_v52 = vpop.f32.mrf.mxu1 }
  0xb2   : > { %9624 = vst [vmem:[#allocation6_spill] sm:$0xff] %v4861_v52 }
  0xb4   : > { %4315 = vmatmul.msk.f32.gmra.mxu0 %vm1216_vm1, %v335_v53  ;;  %4444 = vmatmul.msk.f32.gmra.mxu1 %vm1216_vm1, %v335_v53  ;;  %v5031_v53 = vpop.permute.xlu1 %609 }
  0xb5   : > { %9643 = vst [vmem:[#allocation25_spill] sm:$0xff] %v5031_v53 }
  0xb9   : > { %v4871_v55 = vpop.f32.mrf.mxu0  ;;  %v4873_v56 = vpop.f32.mrf.mxu1 }
  0xba   : > { %9625 = vst [vmem:[#allocation7_spill] sm:$0xff] %v4873_v56 }
  0xbc   : > { %4316 = vmatmul.msk.f32.gmra.mxu0 %vm1216_vm1, %v336_v57  ;;  %4445 = vmatmul.msk.f32.gmra.mxu1 %vm1216_vm1, %v336_v57 }
  0xc1   : > { %v4883_v59 = vpop.f32.mrf.mxu0  ;;  %v4885_v60 = vpop.f32.mrf.mxu1 }
  0xc2   : > { %9626 = vst [vmem:[#allocation8_spill] sm:$0xff] %v4885_v60 }
  0xc4   : > { %4317 = vmatmul.msk.f32.gmra.mxu0 %vm1216_vm1, %v337_v61  ;;  %4446 = vmatmul.msk.f32.gmra.mxu1 %vm1216_vm1, %v337_v61  ;;  %v415_v61 = vld [vmem:[%s9064_s1 + $0x318] sm:$0xff] }
  0xc5   : > { %4395 = vmatmul.msk.f32.gmra.mxu2 %vm1216_vm1, %v415_v61  ;;  %4524 = vmatmul.msk.f32.gmra.mxu3 %vm1216_vm1, %v415_v61 }
  0xc9   : > { %v4895_v63 = vpop.f32.mrf.mxu0  ;;  %v4897_v0 = vpop.f32.mrf.mxu1 }
  0xca   : > { %9627 = vst [vmem:[#allocation9_spill] sm:$0xff] %v4897_v0 }
  0xcc   : > { %4318 = vmatmul.msk.f32.gmra.mxu0 %vm1216_vm1, %v338_v1  ;;  %4447 = vmatmul.msk.f32.gmra.mxu1 %vm1216_vm1, %v338_v1  ;;  %v483_v1 = vld [vmem:[%s9065_s2 + $0x138] sm:$0xff] }
  0xcd   : > { %769 = vperm.xlu0 %4585, %v483_v1  }
  0xd1   : > { %v4907_v3 = vpop.f32.mrf.mxu0  ;;  %v4909_v4 = vpop.f32.mrf.mxu1 }
  0xd2   : > { %9628 = vst [vmem:[#allocation10_spill] sm:$0xff] %v4909_v4 }
  0xd4   : > { %4319 = vmatmul.msk.f32.gmra.mxu0 %vm1216_vm1, %v339_v5  ;;  %4448 = vmatmul.msk.f32.gmra.mxu1 %vm1216_vm1, %v339_v5  ;;  %v5054_v5 = vpop.permute.xlu2 %629 }
  0xd5   : > { %9645 = vst [vmem:[#allocation27_spill] sm:$0xff] %v5054_v5  ;;  %784 = vperm.xlu0 %4585, %v486_v18   ;;  %v492_v18 = vld [vmem:[%s9065_s2 + $0x180] sm:$0xff] }
  0xd9   : > { %v4919_v7 = vpop.f32.mrf.mxu0  ;;  %v4921_v8 = vpop.f32.mrf.mxu1 }
  0xda   : > { %9629 = vst [vmem:[#allocation11_spill] sm:$0xff] %v4921_v8  ;;  %v5168_v45 = vadd.f32 %v4919_v7, %v5027_v49  ;;  %v349_v7 = vld [vmem:[%s9064_s1 + $0x108] sm:$0xff] }
  0xdc   : > { %4320 = vmatmul.msk.f32.gmra.mxu0 %vm1216_vm1, %v340_v9  ;;  %4449 = vmatmul.msk.f32.gmra.mxu1 %vm1216_vm1, %v340_v9  ;;  %v5058_v9 = vpop.permute.xlu1 %624  ;;  %v5081_v22 = vpop.permute.xlu2 %644  ;;  %9661 = vst [vmem:[#allocation43_spill] sm:$0xff] %v5168_v45 }
  0xdd   : > { %9647 = vst [vmem:[#allocation29_spill] sm:$0xff] %v5058_v9  ;;  %799 = vperm.xlu0 %4585, %v489_v46  }
  0xde   : > { %9649 = vst [vmem:[#allocation31_spill] sm:$0xff] %v5081_v22 }
  0xe1   : > { %v4937_v13 = vpop.f32.mrf.mxu0  ;;  %v4939_v14 = vpop.f32.mrf.mxu1 }
  0xe2   : > { %9630 = vst [vmem:[#allocation12_spill] sm:$0xff] %v4939_v14 }
  0xe4   : > { %4321 = vmatmul.msk.f32.gmra.mxu0 %vm1216_vm1, %v341_v15  ;;  %4450 = vmatmul.msk.f32.gmra.mxu1 %vm1216_vm1, %v341_v15  ;;  %v416_v15 = vld [vmem:[%s9064_s1 + $0x320] sm:$0xff]  ;;  %v5085_v24 = vpop.permute.xlu1 %639 }
  0xe5   : > { %4396 = vmatmul.msk.f32.gmra.mxu2 %vm1216_vm1, %v416_v15  ;;  %4525 = vmatmul.msk.f32.gmra.mxu3 %vm1216_vm1, %v416_v15  ;;  %9651 = vst [vmem:[#allocation33_spill] sm:$0xff] %v5085_v24 }
  0xe6   : > { %814 = vperm.xlu0 %4585, %v492_v18   ;;  %v504_v18 = vld [vmem:[%s9065_s2 + $0x1e0] sm:$0xff] }
  0xe9   : > { %v4955_v19 = vpop.f32.mrf.mxu0  ;;  %v4957_v20 = vpop.f32.mrf.mxu1 }
  0xea   : > { %9632 = vst [vmem:[#allocation14_spill] sm:$0xff] %v4957_v20 }
  0xec   : > { %4322 = vmatmul.msk.f32.gmra.mxu0 %vm1216_vm1, %v342_v21  ;;  %4451 = vmatmul.msk.f32.gmra.mxu1 %vm1216_vm1, %v342_v21  ;;  %v490_v21 = vld [vmem:[%s9065_s2 + $0x170] sm:$0xff] }
  0xed   : > { %804 = vperm.xlu1 %4586, %v490_v21   ;;  %4397 = vmatmul.msk.f32.gmra.mxu2 %vm1216_vm1, %v417_v33  ;;  %v5150_v21 = vadd.f32 %v4955_v19, %v5058_v9 }
  0xee   : > { %4526 = vmatmul.msk.f32.gmra.mxu3 %vm1216_vm1, %v417_v33  ;;  %v5162_v33 = vadd.f32 %v4937_v13, %v5029_v50 }
  0xef   : > { %9659 = vst [vmem:[#allocation41_spill] sm:$0xff] %v5150_v21  ;;  %v2428_v46 = vmul.f32 %v5150_v21, %v5150_v21 }
  0xf0   : > { %9660 = vst [vmem:[#allocation42_spill] sm:$0xff] %v5162_v33 }
  0xf1   : > { %v4984_v29 = vpop.f32.mrf.mxu0  ;;  %v4986_v30 = vpop.f32.mrf.mxu1 }
  0xf2   : > { %9636 = vst [vmem:[#allocation18_spill] sm:$0xff] %v4986_v30 }
  0xf4   : > { %4323 = vmatmul.msk.f32.gmra.mxu0 %vm1216_vm1, %v343_v31  ;;  %4452 = vmatmul.msk.f32.gmra.mxu1 %vm1216_vm1, %v343_v31 }
  0xf5   : > { %819 = vperm.xlu1 %4586, %v493_v62  }
  0xf9   : > { %v5010_v38 = vpop.f32.mrf.mxu0  ;;  %v5012_v41 = vpop.f32.mrf.mxu1 }
  0xfa   : > { %9640 = vst [vmem:[#allocation22_spill] sm:$0xff] %v5012_v41  ;;  %v377_v41 = vld [vmem:[%s9064_s1 + $0x1e8] sm:$0xff] }
  0xfc   : > { %4324 = vmatmul.msk.f32.gmra.mxu0 %vm1216_vm1, %v344_v42  ;;  %4453 = vmatmul.msk.f32.gmra.mxu1 %vm1216_vm1, %v344_v42 }
 0x101   : > { %v1662_v54 = vpop.f32.mrf.mxu0  ;;  %v5033_v57 = vpop.f32.mrf.mxu1 }
 0x102   : > { %9644 = vst [vmem:[#allocation26_spill] sm:$0xff] %v5033_v57 }
 0x104   : > { %4325 = vmatmul.msk.f32.gmra.mxu0 %vm1216_vm1, %v345_v58  ;;  %4454 = vmatmul.msk.f32.gmra.mxu1 %vm1216_vm1, %v345_v58  ;;  %v5110_v58 = vadd.f32 %v1662_v54, %v5085_v24  ;;  %v5123_v54 = vadd.f32 %v5010_v38, %v5056_v6  ;;  %v418_v38 = vld [vmem:[%s9064_s1 + $0x330] sm:$0xff]  ;;  %v540_v6 = vld [vmem:[%s9065_s2 + $0x300] sm:$0xff] }
 0x105   : > { %4527 = vmatmul.msk.f32.gmra.mxu3 %vm1216_vm1, %v418_v38  ;;  %4398 = vmatmul.msk.f32.gmra.mxu2 %vm1216_vm1, %v418_v38  ;;  %v5197_v38 = vadd.f32 %v4895_v63, %v5003_v35 }
 0x106   : > { %9655 = vst [vmem:[#allocation37_spill] sm:$0xff] %v5110_v58  ;;  %v2434_v2 = vmul.f32 %v5110_v58, %v5110_v58  ;;  %v569_v58 = vld [vmem:[%s9065_s2 + $0x3e8] sm:$0xff] }
 0x107   : > { %9656 = vst [vmem:[#allocation38_spill] sm:$0xff] %v5123_v54 }
 0x108   : > { %9664 = vst [vmem:[#allocation46_spill] sm:$0xff] %v5197_v38 }
 0x109   : > { %v1665_v10 = vpop.f32.mrf.mxu0  ;;  %v5060_v11 = vpop.f32.mrf.mxu1 }
 0x10a   : > { %9648 = vst [vmem:[#allocation30_spill] sm:$0xff] %v5060_v11  ;;  %v5096_v37 = vadd.f32 %v1665_v10, %v5081_v22  ;;  %v5129_v10 = vadd.f32 %v4984_v29, %v5054_v5  ;;  %v482_v29 = vld [vmem:[%s9065_s2 + $0x130] sm:$0xff]  ;;  %v3568_v22 = vld [vmem:[#allocation2] sm:$0x1] }
 0x10b   : > { %764 = vperm.xlu2 %4587, %v482_v29   ;;  %v2424_v29 = vmul.f32 %v5168_v45, %v5168_v45 }
 0x10c   : > { %4326 = vmatmul.msk.f32.gmra.mxu0 %vm1216_vm1, %v346_v12  ;;  %4455 = vmatmul.msk.f32.gmra.mxu1 %vm1216_vm1, %v346_v12  ;;  %9653 = vst [vmem:[#allocation35_spill] sm:$0xff] %v5096_v37  ;;  %v2436_v1 = vmul.f32 %v5096_v37, %v5096_v37  ;;  %v2430_v19 = vmul.f32 %v5129_v10, %v5129_v10 }
 0x10d   : > { %9657 = vst [vmem:[#allocation39_spill] sm:$0xff] %v5129_v10 }
 0x111   : > { %v1668_v28 = vpop.f32.mrf.mxu0  ;;  %v5087_v31 = vpop.f32.mrf.mxu1 }
 0x112   : > { %9652 = vst [vmem:[#allocation34_spill] sm:$0xff] %v5087_v31  ;;  %v5099_v42 = vadd.f32 %v1668_v28, %v5083_v23  ;;  %v2432_v28 = vmul.f32 %v5123_v54, %v5123_v54  ;;  %v429_v54 = vld [vmem:[%s9064_s1 + $0x388] sm:$0xff]  ;;  %v379_v23 = vld [vmem:[%s9064_s1 + $0x1f8] sm:$0xff] }
 0x114   : > { %9654 = vst [vmem:[#allocation36_spill] sm:$0xff] %v5099_v42  ;;  %4327 = vmatmul.msk.f32.gmra.mxu0 %vm1216_vm1, %v347_v32  ;;  %4456 = vmatmul.msk.f32.gmra.mxu1 %vm1216_vm1, %v347_v32  ;;  %v2438_v61 = vmul.f32 %v5099_v42, %v5099_v42  ;;  %v507_v32 = vld [vmem:[%s9065_s2 + $0x1f8] sm:$0xff] }
 0x115   : > { %889 = vperm.xlu1 %4586, %v507_v32   ;;  %v5215_v32 = vadd.f32 %v4871_v55, %v4975_v25  ;;  %v350_v55 = vld [vmem:[%s9064_s1 + $0x110] sm:$0xff] }
 0x116   : > { %2920 = vmatpush.msrb.mxu2 %v2438_v61  ;;  %v5174_v61 = vadd.f32 %v4907_v3, %v5031_v53  ;;  %v485_v3 = vld [vmem:[%s9065_s2 + $0x148] sm:$0xff] }
 0x117   : > { %779 = vperm.xlu2 %4587, %v485_v3   ;;  %9666 = vst [vmem:[#allocation48_spill] sm:$0xff] %v5215_v32  ;;  %v505_v3 = vld [vmem:[%s9065_s2 + $0x1e8] sm:$0xff] }
 0x118   : > { %2921 = vmatpush.msrb.mxu2 %v2436_v1  ;;  %9662 = vst [vmem:[#allocation44_spill] sm:$0xff] %v5174_v61  ;;  %v2426_v1 = vmul.f32 %v5162_v33, %v5162_v33  ;;  %v2422_v63 = vmul.f32 %v5174_v61, %v5174_v61  ;;  %v534_v61 = vld [vmem:[%s9065_s2 + $0x2d0] sm:$0xff]  ;;  %v516_v33 = vld [vmem:[%s9065_s2 + $0x240] sm:$0xff] }
 0x119   : > { %v5131_v12 = vpop.f32.mrf.mxu0  ;;  %v5133_v15 = vpop.f32.mrf.mxu1 }
 0x11a   : > { %9658 = vst [vmem:[#allocation40_spill] sm:$0xff] %v5133_v15  ;;  %2922 = vmatpush.msrb.mxu2 %v2434_v2  ;;  %v419_v2 = vld [vmem:[%s9064_s1 + $0x338] sm:$0xff] }
 0x11b   : > { %4528 = vmatmul.msk.f32.gmra.mxu3 %vm1216_vm1, %v419_v2  ;;  %4399 = vmatmul.msk.f32.gmra.mxu2 %vm1216_vm1, %v419_v2  ;;  %v420_v2 = vld [vmem:[%s9064_s1 + $0x340] sm:$0xff] }
 0x11c   : > { %4328 = vmatmul.msk.f32.gmra.mxu0 %vm1216_vm1, %v348_v16  ;;  %4457 = vmatmul.msk.f32.gmra.mxu1 %vm1216_vm1, %v348_v16  ;;  %v495_v16 = vld [vmem:[%s9065_s2 + $0x198] sm:$0xff] }
 0x11d   : > { %2923 = vmatpush.msrb.mxu2 %v2432_v28  ;;  %v5208_v28 = vadd.f32 %v4883_v59, %v5001_v34  ;;  %829 = vperm.xlu0 %4585, %v495_v16   ;;  %v5221_v59 = vadd.f32 %v4859_v51, %v5005_v36  ;;  %v488_v51 = vld [vmem:[%s9065_s2 + $0x160] sm:$0xff]  ;;  %v5244_v16 = vadd.f32 %v4847_v47, %v4977_v26  ;;  %v531_v36 = vld [vmem:[%s9065_s2 + $0x2b8] sm:$0xff] }
 0x11e   : > { %874 = vperm.xlu1 %4586, %v504_v18   ;;  %v501_v18 = vld [vmem:[%s9065_s2 + $0x1c8] sm:$0xff] }
 0x11f   : > { %2924 = vmatpush.msrb.mxu2 %v2430_v19  ;;  %9665 = vst [vmem:[#allocation47_spill] sm:$0xff] %v5208_v28  ;;  %v2420_v19 = vmul.f32 %v5197_v38, %v5197_v38  ;;  %794 = vperm.xlu2 %4587, %v488_v51   ;;  %v2414_v47 = vmul.f32 %v5221_v59, %v5221_v59 }
 0x120   : > { %9667 = vst [vmem:[#allocation49_spill] sm:$0xff] %v5221_v59 }
 0x121   : > { %2925 = vmatpush.msrb.mxu2 %v2428_v46  ;;  %v5176_v13 = vpop.f32.mrf.mxu0  ;;  %v5178_v62 = vpop.f32.mrf.mxu1  ;;  %9669 = vst [vmem:[#allocation51_spill] sm:$0xff] %v5244_v16 }
 0x122   : > { %9663 = vst [vmem:[#allocation45_spill] sm:$0xff] %v5178_v62  ;;  %v521_v62 = vld [vmem:[%s9065_s2 + $0x268] sm:$0xff] }
 0x123   : > { %2926 = vmatpush.msrb.mxu2 %v2426_v1  ;;  %4529 = vmatmul.msk.f32.gmra.mxu3 %vm1216_vm1, %v420_v2 }
 0x124   : > { %4329 = vmatmul.msk.f32.gmra.mxu0 %vm1216_vm1, %v349_v7  ;;  %4458 = vmatmul.msk.f32.gmra.mxu1 %vm1216_vm1, %v349_v7  ;;  %v2418_v7 = vmul.f32 %v5208_v28, %v5208_v28  ;;  %v554_v28 = vld [vmem:[%s9065_s2 + $0x370] sm:$0xff] }
 0x125   : > { %2927 = vmatpush.msrb.mxu2 %v2424_v29  ;;  %v2416_v29 = vmul.f32 %v5215_v32, %v5215_v32  ;;  %879 = vperm.xlu0 %4585, %v505_v3   ;;  %v491_v3 = vld [vmem:[%s9065_s2 + $0x178] sm:$0xff] }
 0x126   : > { %4400 = vmatmul.msk.f32.gmra.mxu2 %vm1216_vm1, %v420_v2  ;;  %859 = vperm.xlu1 %4586, %v501_v18   ;;  %v351_v2 = vld [vmem:[%s9064_s1 + $0x118] sm:$0xff] }
 0x127   : > { %2928 = vmatpush.msrb.mxu2 %v2422_v63  ;;  %v5255_v63 = vadd.f32 %v4835_v43, %v4979_v27  ;;  %809 = vperm.xlu2 %4587, %v491_v3   ;;  %v352_v3 = vld [vmem:[%s9064_s1 + $0x120] sm:$0xff]  ;;  %v551_v27 = vld [vmem:[%s9065_s2 + $0x358] sm:$0xff] }
 0x129   : > { %2929 = vmatpush.msrb.mxu2 %v2420_v19  ;;  %v5223_v46 = vpop.f32.mrf.mxu0  ;;  %v5225_v1 = vpop.f32.mrf.mxu1  ;;  %9670 = vst [vmem:[#allocation52_spill] sm:$0xff] %v5255_v63  ;;  %v5262_v19 = vadd.f32 %v4823_v39, %v4950_v17  ;;  %v2410_v51 = vmul.f32 %v5255_v63, %v5255_v63  ;;  %v421_v39 = vld [vmem:[%s9064_s1 + $0x348] sm:$0xff]  ;;  %v430_v17 = vld [vmem:[%s9064_s1 + $0x390] sm:$0xff] }
 0x12a   : > { %9668 = vst [vmem:[#allocation50_spill] sm:$0xff] %v5225_v1 }
 0x12b   : > { %2930 = vmatpush.msrb.mxu2 %v2418_v7  ;;  %9671 = vst [vmem:[#allocation53_spill] sm:$0xff] %v5262_v19  ;;  %v2412_v7 = vmul.f32 %v5244_v16, %v5244_v16  ;;  %4530 = vmatmul.msk.f32.gmra.mxu3 %vm1216_vm1, %v421_v39  ;;  %v2408_v18 = vmul.f32 %v5262_v19, %v5262_v19  ;;  %v537_v16 = vld [vmem:[%s9065_s2 + $0x2e8] sm:$0xff] }
 0x12c   : > { %4330 = vmatmul.msk.f32.gmra.mxu0 %vm1216_vm1, %v350_v55  ;;  %4459 = vmatmul.msk.f32.gmra.mxu1 %vm1216_vm1, %v350_v55 }
 0x12d   : > { %2931 = vmatpush.msrb.mxu2 %v2416_v29  ;;  %v502_v29 = vld [vmem:[%s9065_s2 + $0x1d0] sm:$0xff] }
 0x12e   : > { %864 = vperm.xlu0 %4585, %v502_v29   ;;  %4401 = vmatmul.msk.f32.gmra.mxu2 %vm1216_vm1, %v421_v39  ;;  %v494_v29 = vld [vmem:[%s9065_s2 + $0x190] sm:$0xff]  ;;  %v499_v39 = vld [vmem:[%s9065_s2 + $0x1b8] sm:$0xff] }
 0x12f   : > { %2932 = vmatpush.msrb.mxu2 %v2414_v47  ;;  %v498_v47 = vld [vmem:[%s9065_s2 + $0x1b0] sm:$0xff]  ;;  %824 = vperm.xlu2 %4587, %v494_v29   ;;  %v353_v29 = vld [vmem:[%s9064_s1 + $0x128] sm:$0xff] }
 0x130   : > { %844 = vperm.xlu1 %4586, %v498_v47   ;;  %v523_v47 = vld [vmem:[%s9065_s2 + $0x278] sm:$0xff] }
 0x131   : > { %2933 = vmatpush.msrb.mxu2 %v2412_v7  ;;  %v5266_v55 = vpop.f32.mrf.mxu0  ;;  %v5268_v43 = vpop.f32.mrf.mxu1 }
 0x132   : > { %9672 = vst [vmem:[#allocation54_spill] sm:$0xff] %v5268_v43 }
 0x133   : > { %2934 = vmatpush.msrb.mxu2 %v2410_v51 }
 0x134   : > { %4331 = vmatmul.msk.f32.gmra.mxu0 %vm1216_vm1, %v351_v2  ;;  %4460 = vmatmul.msk.f32.gmra.mxu1 %vm1216_vm1, %v351_v2  ;;  %v422_v2 = vld [vmem:[%s9064_s1 + $0x350] sm:$0xff] }
 0x135   : > { %2935 = vmatpush.msrb.mxu2 %v2408_v18  ;;  %4531 = vmatmul.msk.f32.gmra.mxu3 %vm1216_vm1, %v422_v2  ;;  %v5310_v18 = vpop.permute.xlu0 %664 }
 0x136   : > { %9674 = vst [vmem:[#allocation56_spill] sm:$0xff] %v5310_v18  ;;  %849 = vperm.xlu0 %4585, %v499_v39   ;;  %4402 = vmatmul.msk.f32.gmra.mxu2 %vm1216_vm1, %v422_v2  ;;  %v506_v39 = vld [vmem:[%s9065_s2 + $0x1f0] sm:$0xff]  ;;  %v496_v2 = vld [vmem:[%s9065_s2 + $0x1a0] sm:$0xff] }
 0x137   : > { %884 = vperm.xlu2 %4587, %v506_v39   ;;  %v354_v39 = vld [vmem:[%s9064_s1 + $0x130] sm:$0xff] }
 0x138   : > { %969 = vperm.xlu1 %4586, %v523_v47  }
 0x139   : > { %v5293_v7 = vpop.f32.mrf.mxu0  ;;  %v5295_v51 = vpop.f32.mrf.mxu1 }
 0x13a   : > { %9673 = vst [vmem:[#allocation55_spill] sm:$0xff] %v5295_v51  ;;  %v555_v51 = vld [vmem:[%s9065_s2 + $0x378] sm:$0xff] }
 0x13c   : > { %4332 = vmatmul.msk.f32.gmra.mxu0 %vm1216_vm1, %v352_v3  ;;  %4461 = vmatmul.msk.f32.gmra.mxu1 %vm1216_vm1, %v352_v3  ;;  %v423_v3 = vld [vmem:[%s9064_s1 + $0x358] sm:$0xff] }
 0x13d   : > { %4532 = vmatmul.msk.f32.gmra.mxu3 %vm1216_vm1, %v423_v3  ;;  %v5335_v47 = vpop.permute.xlu0 %679 }
 0x13e   : > { %9676 = vst [vmem:[#allocation58_spill] sm:$0xff] %v5335_v47  ;;  %834 = vperm.xlu0 %4585, %v496_v2   ;;  %4403 = vmatmul.msk.f32.gmra.mxu2 %vm1216_vm1, %v423_v3  ;;  %v503_v2 = vld [vmem:[%s9065_s2 + $0x1d8] sm:$0xff] }
 0x13f   : > { %869 = vperm.xlu2 %4587, %v503_v2   ;;  %v355_v2 = vld [vmem:[%s9064_s1 + $0x138] sm:$0xff] }
 0x140   : > { %959 = vperm.xlu1 %4586, %v521_v62   ;;  %v539_v62 = vld [vmem:[%s9065_s2 + $0x2f8] sm:$0xff] }
 0x141   : > { %v5318_v15 = vpop.f32.mrf.mxu0  ;;  %v5320_v19 = vpop.f32.mrf.mxu1 }
 0x142   : > { %9675 = vst [vmem:[#allocation57_spill] sm:$0xff] %v5320_v19 }
 0x144   : > { %4333 = vmatmul.msk.f32.gmra.mxu0 %vm1216_vm1, %v353_v29  ;;  %4462 = vmatmul.msk.f32.gmra.mxu1 %vm1216_vm1, %v353_v29  ;;  %v424_v29 = vld [vmem:[%s9064_s1 + $0x360] sm:$0xff] }
 0x145   : > { %4533 = vmatmul.msk.f32.gmra.mxu3 %vm1216_vm1, %v424_v29  ;;  %v5362_v3 = vpop.permute.xlu0 %694 }
 0x146   : > { %9678 = vst [vmem:[#allocation60_spill] sm:$0xff] %v5362_v3  ;;  %1049 = vperm.xlu0 %4585, %v539_v62   ;;  %4404 = vmatmul.msk.f32.gmra.mxu2 %vm1216_vm1, %v424_v29  ;;  %v500_v62 = vld [vmem:[%s9065_s2 + $0x1c0] sm:$0xff] }
 0x147   : > { %854 = vperm.xlu2 %4587, %v500_v62   ;;  %v356_v62 = vld [vmem:[%s9064_s1 + $0x140] sm:$0xff] }
 0x148   : > { %1039 = vperm.xlu1 %4586, %v537_v16   ;;  %v520_v16 = vld [vmem:[%s9065_s2 + $0x260] sm:$0xff] }
 0x149   : > { %v5343_v63 = vpop.f32.mrf.mxu0  ;;  %v5345_v1 = vpop.f32.mrf.mxu1 }
 0x14a   : > { %9677 = vst [vmem:[#allocation59_spill] sm:$0xff] %v5345_v1 }
 0x14c   : > { %4334 = vmatmul.msk.f32.gmra.mxu0 %vm1216_vm1, %v354_v39  ;;  %4463 = vmatmul.msk.f32.gmra.mxu1 %vm1216_vm1, %v354_v39  ;;  %v425_v39 = vld [vmem:[%s9064_s1 + $0x368] sm:$0xff] }
 0x14d   : > { %4534 = vmatmul.msk.f32.gmra.mxu3 %vm1216_vm1, %v425_v39  ;;  %v5387_v29 = vpop.permute.xlu0 %709 }
 0x14e   : > { %9680 = vst [vmem:[#allocation62_spill] sm:$0xff] %v5387_v29  ;;  %954 = vperm.xlu0 %4585, %v520_v16   ;;  %4405 = vmatmul.msk.f32.gmra.mxu2 %vm1216_vm1, %v425_v39  ;;  %v497_v16 = vld [vmem:[%s9065_s2 + $0x1a8] sm:$0xff] }
 0x14f   : > { %839 = vperm.xlu2 %4587, %v497_v16   ;;  %v357_v16 = vld [vmem:[%s9064_s1 + $0x148] sm:$0xff] }
 0x150   : > { %1129 = vperm.xlu1 %4586, %v555_v51   ;;  %v536_v51 = vld [vmem:[%s9065_s2 + $0x2e0] sm:$0xff] }
 0x151   : > { %v5368_v43 = vpop.f32.mrf.mxu0  ;;  %v5370_v59 = vpop.f32.mrf.mxu1 }
 0x152   : > { %9679 = vst [vmem:[#allocation61_spill] sm:$0xff] %v5370_v59  ;;  %v5439_v59 = vpop.f32.mrf.mxu3 }
 0x153   : > { %9685 = vst [vmem:[#allocation67_spill] sm:$0xff] %v5439_v59  ;;  %v428_v59 = vld [vmem:[%s9064_s1 + $0x380] sm:$0xff] }
 0x154   : > { %4335 = vmatmul.msk.f32.gmra.mxu0 %vm1216_vm1, %v355_v2  ;;  %4464 = vmatmul.msk.f32.gmra.mxu1 %vm1216_vm1, %v355_v2  ;;  %v426_v2 = vld [vmem:[%s9064_s1 + $0x370] sm:$0xff] }
 0x155   : > { %4535 = vmatmul.msk.f32.gmra.mxu3 %vm1216_vm1, %v426_v2  ;;  %v5412_v39 = vpop.permute.xlu0 %724 }
 0x156   : > { %9682 = vst [vmem:[#allocation64_spill] sm:$0xff] %v5412_v39  ;;  %1034 = vperm.xlu0 %4585, %v536_v51   ;;  %4406 = vmatmul.msk.f32.gmra.mxu2 %vm1216_vm1, %v426_v2  ;;  %v522_v51 = vld [vmem:[%s9065_s2 + $0x270] sm:$0xff] }
 0x157   : > { %964 = vperm.xlu2 %4587, %v522_v51  }
 0x158   : > { %1124 = vperm.xlu1 %4586, %v554_v28   ;;  %v535_v28 = vld [vmem:[%s9065_s2 + $0x2d8] sm:$0xff] }
 0x159   : > { %v5393_v32 = vpop.f32.mrf.mxu0  ;;  %v5395_v19 = vpop.f32.mrf.mxu1 }
 0x15a   : > { %9681 = vst [vmem:[#allocation63_spill] sm:$0xff] %v5395_v19  ;;  %v5444_v19 = vpop.permute.xlu1 %654  ;;  %v5475_v21 = vpop.f32.mrf.mxu3 }
 0x15b   : > { %9686 = vst [vmem:[#allocation68_spill] sm:$0xff] %v5444_v19 }
 0x15c   : > { %4336 = vmatmul.msk.f32.gmra.mxu0 %vm1216_vm1, %v356_v62  ;;  %4465 = vmatmul.msk.f32.gmra.mxu1 %vm1216_vm1, %v356_v62  ;;  %v427_v62 = vld [vmem:[%s9064_s1 + $0x378] sm:$0xff]  ;;  %9691 = vst [vmem:[#allocation73_spill] sm:$0xff] %v5475_v21 }
 0x15d   : > { %4536 = vmatmul.msk.f32.gmra.mxu3 %vm1216_vm1, %v427_v62  ;;  %v5437_v2 = vpop.permute.xlu0 %739 }
 0x15e   : > { %9684 = vst [vmem:[#allocation66_spill] sm:$0xff] %v5437_v2  ;;  %1029 = vperm.xlu0 %4585, %v535_v28   ;;  %4407 = vmatmul.msk.f32.gmra.mxu2 %vm1216_vm1, %v427_v62  ;;  %v538_v28 = vld [vmem:[%s9065_s2 + $0x2f0] sm:$0xff] }
 0x15f   : > { %1044 = vperm.xlu2 %4587, %v538_v28  }
 0x160   : > { %1024 = vperm.xlu1 %4586, %v534_v61   ;;  %v517_v61 = vld [vmem:[%s9065_s2 + $0x248] sm:$0xff] }
 0x161   : > { %v5418_v1 = vpop.f32.mrf.mxu0  ;;  %v5420_v38 = vpop.f32.mrf.mxu1 }
 0x162   : > { %9683 = vst [vmem:[#allocation65_spill] sm:$0xff] %v5420_v38  ;;  %v5468_v38 = vpop.f32.mrf.mxu2  ;;  %v5509_v21 = vpop.f32.mrf.mxu3 }
 0x163   : > { %9689 = vst [vmem:[#allocation71_spill] sm:$0xff] %v5468_v38 }
 0x164   : > { %4337 = vmatmul.msk.f32.gmra.mxu0 %vm1216_vm1, %v357_v16  ;;  %4466 = vmatmul.msk.f32.gmra.mxu1 %vm1216_vm1, %v357_v16  ;;  %v358_v16 = vld [vmem:[%s9064_s1 + $0x150] sm:$0xff]  ;;  %9697 = vst [vmem:[#allocation79_spill] sm:$0xff] %v5509_v21 }
 0x165   : > { %4537 = vmatmul.msk.f32.gmra.mxu3 %vm1216_vm1, %v428_v59  ;;  %v5466_v62 = vpop.permute.xlu0 %754 }
 0x166   : > { %9688 = vst [vmem:[#allocation70_spill] sm:$0xff] %v5466_v62  ;;  %939 = vperm.xlu0 %4585, %v517_v61   ;;  %4408 = vmatmul.msk.f32.gmra.mxu2 %vm1216_vm1, %v428_v59  ;;  %v519_v61 = vld [vmem:[%s9065_s2 + $0x258] sm:$0xff]  ;;  %v5495_v59 = vpop.permute.xlu2 %659 }
 0x167   : > { %9693 = vst [vmem:[#allocation75_spill] sm:$0xff] %v5495_v59  ;;  %949 = vperm.xlu2 %4587, %v519_v61  }
 0x168   : > { %934 = vperm.xlu1 %4586, %v516_v33   ;;  %v570_v33 = vld [vmem:[%s9065_s2 + $0x3f0] sm:$0xff] }
 0x169   : > { %v5447_v45 = vpop.f32.mrf.mxu0  ;;  %v5449_v51 = vpop.f32.mrf.mxu1 }
 0x16a   : > { %9687 = vst [vmem:[#allocation69_spill] sm:$0xff] %v5449_v51  ;;  %v5473_v51 = vpop.permute.xlu1 %669  ;;  %v5542_v48 = vpop.f32.mrf.mxu3 }
 0x16b   : > { %9690 = vst [vmem:[#allocation72_spill] sm:$0xff] %v5473_v51 }
 0x16c   : > { %4338 = vmatmul.msk.f32.gmra.mxu0 %vm1216_vm1, %v358_v16  ;;  %4467 = vmatmul.msk.f32.gmra.mxu1 %vm1216_vm1, %v358_v16  ;;  %v359_v16 = vld [vmem:[%s9064_s1 + $0x158] sm:$0xff]  ;;  %9702 = vst [vmem:[#allocation84_spill] sm:$0xff] %v5542_v48 }
 0x16d   : > { %4538 = vmatmul.msk.f32.gmra.mxu3 %vm1216_vm1, %v429_v54  ;;  %v5506_v42 = vpop.permute.xlu0 %769 }
 0x16e   : > { %1204 = vperm.xlu0 %4585, %v570_v33   ;;  %9696 = vst [vmem:[#allocation78_spill] sm:$0xff] %v5506_v42  ;;  %4409 = vmatmul.msk.f32.gmra.mxu2 %vm1216_vm1, %v429_v54  ;;  %v518_v54 = vld [vmem:[%s9065_s2 + $0x250] sm:$0xff]  ;;  %v5528_v33 = vpop.permute.xlu2 %674 }
 0x16f   : > { %9699 = vst [vmem:[#allocation81_spill] sm:$0xff] %v5528_v33  ;;  %944 = vperm.xlu2 %4587, %v518_v54  }
 0x170   : > { %1199 = vperm.xlu1 %4586, %v569_v58   ;;  %v552_v58 = vld [vmem:[%s9065_s2 + $0x360] sm:$0xff] }
 0x171   : > { %v5478_v28 = vpop.f32.mrf.mxu0  ;;  %v5480_v10 = vpop.f32.mrf.mxu1 }
 0x172   : > { %9692 = vst [vmem:[#allocation74_spill] sm:$0xff] %v5480_v10  ;;  %v5499_v10 = vpop.f32.mrf.mxu2  ;;  %v5504_v37 = vpop.permute.xlu1 %684 }
 0x173   : > { %9694 = vst [vmem:[#allocation76_spill] sm:$0xff] %v5499_v10  ;;  %v5573_v25 = vpop.f32.mrf.mxu3 }
 0x174   : > { %4339 = vmatmul.msk.f32.gmra.mxu0 %vm1216_vm1, %v359_v16  ;;  %4468 = vmatmul.msk.f32.gmra.mxu1 %vm1216_vm1, %v359_v16  ;;  %9695 = vst [vmem:[#allocation77_spill] sm:$0xff] %v5504_v37  ;;  %v360_v16 = vld [vmem:[%s9064_s1 + $0x160] sm:$0xff] }
 0x175   : > { %4539 = vmatmul.msk.f32.gmra.mxu3 %vm1216_vm1, %v430_v17  ;;  %v5536_v44 = vpop.permute.xlu0 %784  ;;  %9707 = vst [vmem:[#allocation89_spill] sm:$0xff] %v5573_v25 }
 0x176   : > { %1114 = vperm.xlu0 %4585, %v552_v58   ;;  %9701 = vst [vmem:[#allocation83_spill] sm:$0xff] %v5536_v44  ;;  %4410 = vmatmul.msk.f32.gmra.mxu2 %vm1216_vm1, %v430_v17  ;;  %v431_v58 = vld [vmem:[%s9064_s1 + $0x398] sm:$0xff]  ;;  %v5559_v48 = vpop.permute.xlu2 %689 }
 0x177   : > { %v571_v17 = vld [vmem:[%s9065_s2 + $0x3f8] sm:$0xff]  ;;  %9704 = vst [vmem:[#allocation86_spill] sm:$0xff] %v5559_v48 }
 0x178   : > { %1109 = vperm.xlu1 %4586, %v551_v27   ;;  %v532_v27 = vld [vmem:[%s9065_s2 + $0x2c0] sm:$0xff]  ;;  %1209 = vperm.xlu2 %4587, %v571_v17  }
 0x179   : > { %v5511_v61 = vpop.f32.mrf.mxu0  ;;  %v5513_v40 = vpop.f32.mrf.mxu1 }
 0x17a   : > { %9698 = vst [vmem:[#allocation80_spill] sm:$0xff] %v5513_v40  ;;  %v5532_v40 = vpop.f32.mrf.mxu2  ;;  %v5534_v21 = vpop.permute.xlu1 %699 }
 0x17b   : > { %9700 = vst [vmem:[#allocation82_spill] sm:$0xff] %v5534_v21  ;;  %v5600_v0 = vpop.f32.mrf.mxu3 }
 0x17c   : > { %4340 = vmatmul.msk.f32.gmra.mxu0 %vm1216_vm1, %v360_v16  ;;  %4469 = vmatmul.msk.f32.gmra.mxu1 %vm1216_vm1, %v360_v16  ;;  %v361_v16 = vld [vmem:[%s9064_s1 + $0x168] sm:$0xff]  ;;  %9710 = vst [vmem:[#allocation92_spill] sm:$0xff] %v5600_v0  ;;  %v567_v0 = vld [vmem:[%s9065_s2 + $0x3d8] sm:$0xff] }
 0x17d   : > { %4540 = vmatmul.msk.f32.gmra.mxu3 %vm1216_vm1, %v431_v58  ;;  %v5565_v52 = vpop.permute.xlu0 %799 }
 0x17e   : > { %1014 = vperm.xlu0 %4585, %v532_v27   ;;  %9706 = vst [vmem:[#allocation88_spill] sm:$0xff] %v5565_v52  ;;  %4411 = vmatmul.msk.f32.gmra.mxu2 %vm1216_vm1, %v431_v58  ;;  %v432_v27 = vld [vmem:[%s9064_s1 + $0x3a0] sm:$0xff]  ;;  %v553_v58 = vld [vmem:[%s9065_s2 + $0x368] sm:$0xff]  ;;  %v5590_v25 = vpop.permute.xlu2 %704 }
 0x17f   : > { %9709 = vst [vmem:[#allocation91_spill] sm:$0xff] %v5590_v25 }
 0x180   : > { %1009 = vperm.xlu1 %4586, %v531_v36   ;;  %v514_v36 = vld [vmem:[%s9065_s2 + $0x230] sm:$0xff]  ;;  %1119 = vperm.xlu2 %4587, %v553_v58  }
 0x181   : > { %v1710_v54 = vpop.f32.mrf.mxu0  ;;  %v5544_v26 = vpop.f32.mrf.mxu1 }
 0x182   : > { %9703 = vst [vmem:[#allocation85_spill] sm:$0xff] %v5544_v26  ;;  %v5563_v26 = vpop.permute.xlu1 %714  ;;  %v5571_v56 = vpop.f32.mrf.mxu2 }
 0x183   : > { %9705 = vst [vmem:[#allocation87_spill] sm:$0xff] %v5563_v26 }
 0x184   : > { %4341 = vmatmul.msk.f32.gmra.mxu0 %vm1216_vm1, %v361_v16  ;;  %4470 = vmatmul.msk.f32.gmra.mxu1 %vm1216_vm1, %v361_v16  ;;  %v362_v16 = vld [vmem:[%s9064_s1 + $0x170] sm:$0xff] }
 0x185   : > { %4541 = vmatmul.msk.f32.gmra.mxu3 %vm1216_vm1, %v432_v27  ;;  %v5602_v35 = vpop.permute.xlu0 %814 }
 0x186   : > { %924 = vperm.xlu0 %4585, %v514_v36   ;;  %4412 = vmatmul.msk.f32.gmra.mxu2 %vm1216_vm1, %v432_v27  ;;  %9711 = vst [vmem:[#allocation93_spill] sm:$0xff] %v5602_v35  ;;  %v433_v27 = vld [vmem:[%s9064_s1 + $0x3a8] sm:$0xff]  ;;  %v5627_v8 = vpop.permute.xlu2 %719 }
 0x187   : > { %9716 = vst [vmem:[#allocation98_spill] sm:$0xff] %v5627_v8  ;;  %v5630_v49 = vadd.f32 %v1710_v54, %v5627_v8  ;;  %v5644_v54 = vpop.f32.mrf.mxu3 }
 0x188   : > { %9718 = vst [vmem:[#allocation100_spill] sm:$0xff] %v5644_v54  ;;  %v524_v54 = vld [vmem:[%s9065_s2 + $0x280] sm:$0xff] }
 0x189   : > { %v1713_v17 = vpop.f32.mrf.mxu0  ;;  %v5575_v60 = vpop.f32.mrf.mxu1  ;;  %9717 = vst [vmem:[#allocation99_spill] sm:$0xff] %v5630_v49 }
 0x18a   : > { %9708 = vst [vmem:[#allocation90_spill] sm:$0xff] %v5575_v60  ;;  %v513_v60 = vld [vmem:[%s9065_s2 + $0x228] sm:$0xff]  ;;  %v5598_v34 = vpop.f32.mrf.mxu2  ;;  %v5604_v4 = vpop.permute.xlu1 %729  ;;  %v5615_v36 = vadd.f32 %v1713_v17, %v5412_v39 }
 0x18b   : > { %919 = vperm.xlu1 %4586, %v513_v60   ;;  %9712 = vst [vmem:[#allocation94_spill] sm:$0xff] %v5604_v4 }
 0x18c   : > { %4342 = vmatmul.msk.f32.gmra.mxu0 %vm1216_vm1, %v362_v16  ;;  %4471 = vmatmul.msk.f32.gmra.mxu1 %vm1216_vm1, %v362_v16  ;;  %v363_v16 = vld [vmem:[%s9064_s1 + $0x178] sm:$0xff]  ;;  %9714 = vst [vmem:[#allocation96_spill] sm:$0xff] %v5615_v36  ;;  %v2468_v39 = vmul.f32 %v5615_v36, %v5615_v36 }
 0x18d   : > { %4542 = vmatmul.msk.f32.gmra.mxu3 %vm1216_vm1, %v433_v27 }
 0x18e   : > { %1189 = vperm.xlu0 %4585, %v567_v0   ;;  %4413 = vmatmul.msk.f32.gmra.mxu2 %vm1216_vm1, %v433_v27  ;;  %v2466_v0 = vmul.f32 %v5630_v49, %v5630_v49  ;;  %v5676_v49 = vadd.f32 %v5447_v45, %v5590_v25 }
 0x190   : > { %9723 = vst [vmem:[#allocation105_spill] sm:$0xff] %v5676_v49 }
 0x191   : > { %v1716_v58 = vpop.f32.mrf.mxu0  ;;  %v5606_v53 = vpop.f32.mrf.mxu1 }
 0x192   : > { %9713 = vst [vmem:[#allocation95_spill] sm:$0xff] %v5606_v53  ;;  %v5618_v60 = vadd.f32 %v1716_v58, %v5604_v4  ;;  %v533_v53 = vld [vmem:[%s9065_s2 + $0x2c8] sm:$0xff]  ;;  %v566_v58 = vld [vmem:[%s9065_s2 + $0x3d0] sm:$0xff] }
 0x193   : > { %1019 = vperm.xlu2 %4587, %v533_v53   ;;  %v5642_v53 = vpop.f32.mrf.mxu2  ;;  %1184 = vperm.xlu1 %4586, %v566_v58   ;;  %v434_v58 = vld [vmem:[%s9064_s1 + $0x3b0] sm:$0xff] }
 0x194   : > { %9715 = vst [vmem:[#allocation97_spill] sm:$0xff] %v5618_v60  ;;  %4343 = vmatmul.msk.f32.gmra.mxu0 %vm1216_vm1, %v363_v16  ;;  %4472 = vmatmul.msk.f32.gmra.mxu1 %vm1216_vm1, %v363_v16  ;;  %v2470_v17 = vmul.f32 %v5618_v60, %v5618_v60  ;;  %v5648_v16 = vadd.f32 %v5511_v61, %v5563_v26  ;;  %v5650_v60 = vpop.permute.xlu0 %829  ;;  %v364_v61 = vld [vmem:[%s9064_s1 + $0x180] sm:$0xff] }
 0x195   : > { %9720 = vst [vmem:[#allocation102_spill] sm:$0xff] %v5650_v60  ;;  %4543 = vmatmul.msk.f32.gmra.mxu3 %vm1216_vm1, %v434_v58  ;;  %v5688_v26 = vadd.f32 %v5418_v1, %v5534_v21 }
 0x196   : > { %2940 = vmatpush.msrb.mxu3 %v2470_v17  ;;  %9719 = vst [vmem:[#allocation101_spill] sm:$0xff] %v5648_v16  ;;  %v5656_v17 = vadd.f32 %v5478_v28, %v5387_v29  ;;  %v549_v28 = vld [vmem:[%s9065_s2 + $0x348] sm:$0xff]  ;;  %v2464_v29 = vmul.f32 %v5648_v16, %v5648_v16  ;;  %4414 = vmatmul.msk.f32.gmra.mxu2 %vm1216_vm1, %v434_v58 }
 0x197   : > { %9724 = vst [vmem:[#allocation106_spill] sm:$0xff] %v5688_v26  ;;  %1099 = vperm.xlu0 %4585, %v549_v28   ;;  %v2460_v16 = vmul.f32 %v5676_v49, %v5676_v49  ;;  %v435_v49 = vld [vmem:[%s9064_s1 + $0x3b8] sm:$0xff] }
 0x198   : > { %2941 = vmatpush.msrb.mxu3 %v2468_v39  ;;  %9721 = vst [vmem:[#allocation103_spill] sm:$0xff] %v5656_v17  ;;  %v515_v39 = vld [vmem:[%s9065_s2 + $0x238] sm:$0xff]  ;;  %v2462_v45 = vmul.f32 %v5656_v17, %v5656_v17  ;;  %v528_v17 = vld [vmem:[%s9065_s2 + $0x2a0] sm:$0xff] }
 0x199   : > { %v5658_v27 = vpop.f32.mrf.mxu0  ;;  %v5660_v36 = vpop.f32.mrf.mxu1 }
 0x19a   : > { %9722 = vst [vmem:[#allocation104_spill] sm:$0xff] %v5660_v36  ;;  %2942 = vmatpush.msrb.mxu3 %v2466_v0  ;;  %v548_v0 = vld [vmem:[%s9065_s2 + $0x340] sm:$0xff] }
 0x19b   : > { %929 = vperm.xlu2 %4587, %v515_v39   ;;  %v5693_v39 = vpop.f32.mrf.mxu3  ;;  %1094 = vperm.xlu1 %4586, %v548_v0   ;;  %v5703_v1 = vpop.f32.mrf.mxu2  ;;  %v568_v0 = vld [vmem:[%s9065_s2 + $0x3e0] sm:$0xff] }
 0x19c   : > { %4344 = vmatmul.msk.f32.gmra.mxu0 %vm1216_vm1, %v364_v61  ;;  %4473 = vmatmul.msk.f32.gmra.mxu1 %vm1216_vm1, %v364_v61  ;;  %9725 = vst [vmem:[#allocation107_spill] sm:$0xff] %v5693_v39  ;;  %v5697_v61 = vadd.f32 %v5393_v32, %v5362_v3  ;;  %v5701_v25 = vpop.permute.xlu0 %879  ;;  %v2458_v32 = vmul.f32 %v5688_v26, %v5688_v26 }
 0x19d   : > { %2943 = vmatpush.msrb.mxu3 %v2464_v29  ;;  %9727 = vst [vmem:[#allocation109_spill] sm:$0xff] %v5701_v25  ;;  %v5707_v29 = vadd.f32 %v5368_v43, %v5559_v48  ;;  %v529_v43 = vld [vmem:[%s9065_s2 + $0x2a8] sm:$0xff] }
 0x19e   : > { %9726 = vst [vmem:[#allocation108_spill] sm:$0xff] %v5697_v61  ;;  %v2456_v26 = vmul.f32 %v5697_v61, %v5697_v61  ;;  %4415 = vmatmul.msk.f32.gmra.mxu2 %vm1216_vm1, %v435_v49  ;;  %4544 = vmatmul.msk.f32.gmra.mxu3 %vm1216_vm1, %v435_v49  ;;  %v525_v48 = vld [vmem:[%s9065_s2 + $0x288] sm:$0xff] }
 0x19f   : > { %2944 = vmatpush.msrb.mxu3 %v2462_v45  ;;  %9728 = vst [vmem:[#allocation110_spill] sm:$0xff] %v5707_v29  ;;  %v365_v45 = vld [vmem:[%s9064_s1 + $0x188] sm:$0xff]  ;;  %999 = vperm.xlu0 %4585, %v529_v43  }
 0x1a1   : > { %2945 = vmatpush.msrb.mxu3 %v2460_v16  ;;  %v5709_v58 = vpop.f32.mrf.mxu0  ;;  %v5711_v28 = vpop.f32.mrf.mxu1  ;;  %v5726_v16 = vadd.f32 %v5343_v63, %v5504_v37  ;;  %v5740_v63 = vadd.f32 %v5318_v15, %v5335_v47 }
 0x1a2   : > { %9729 = vst [vmem:[#allocation111_spill] sm:$0xff] %v5711_v28 }
 0x1a3   : > { %9730 = vst [vmem:[#allocation112_spill] sm:$0xff] %v5726_v16  ;;  %2946 = vmatpush.msrb.mxu3 %v2458_v32  ;;  %1194 = vperm.xlu2 %4587, %v568_v0   ;;  %v2454_v32 = vmul.f32 %v5707_v29, %v5707_v29  ;;  %v5746_v0 = vpop.f32.mrf.mxu3  ;;  %v2452_v15 = vmul.f32 %v5726_v16, %v5726_v16  ;;  %v5769_v16 = vpop.f32.mrf.mxu2  ;;  %v436_v29 = vld [vmem:[%s9064_s1 + $0x3c0] sm:$0xff] }
 0x1a4   : > { %4345 = vmatmul.msk.f32.gmra.mxu0 %vm1216_vm1, %v365_v45  ;;  %4474 = vmatmul.msk.f32.gmra.mxu1 %vm1216_vm1, %v365_v45  ;;  %9731 = vst [vmem:[#allocation113_spill] sm:$0xff] %v5740_v63  ;;  %v5750_v45 = vadd.f32 %v5293_v7, %v5528_v33  ;;  %v5754_v61 = vpop.permute.xlu0 %864  ;;  %v2450_v7 = vmul.f32 %v5740_v63, %v5740_v63 }
 0x1a5   : > { %2947 = vmatpush.msrb.mxu3 %v2456_v26  ;;  %9732 = vst [vmem:[#allocation114_spill] sm:$0xff] %v5746_v0  ;;  %994 = vperm.xlu1 %4586, %v528_v17   ;;  %v5758_v26 = vadd.f32 %v5266_v55, %v5473_v51  ;;  %v550_v17 = vld [vmem:[%s9065_s2 + $0x350] sm:$0xff]  ;;  %v511_v55 = vld [vmem:[%s9065_s2 + $0x218] sm:$0xff] }
 0x1a6   : > { %9733 = vst [vmem:[#allocation115_spill] sm:$0xff] %v5750_v45  ;;  %v2448_v63 = vmul.f32 %v5750_v45, %v5750_v45  ;;  %v510_v51 = vld [vmem:[%s9065_s2 + $0x210] sm:$0xff]  ;;  %4416 = vmatmul.msk.f32.gmra.mxu2 %vm1216_vm1, %v436_v29  ;;  %4545 = vmatmul.msk.f32.gmra.mxu3 %vm1216_vm1, %v436_v29 }
 0x1a7   : > { %2948 = vmatpush.msrb.mxu3 %v2454_v32  ;;  %9734 = vst [vmem:[#allocation116_spill] sm:$0xff] %v5754_v61  ;;  %v366_v32 = vld [vmem:[%s9064_s1 + $0x190] sm:$0xff]  ;;  %909 = vperm.xlu0 %4585, %v511_v55  }
 0x1a8   : > { %9735 = vst [vmem:[#allocation117_spill] sm:$0xff] %v5758_v26 }
 0x1a9   : > { %2949 = vmatpush.msrb.mxu3 %v2452_v15  ;;  %v5760_v43 = vpop.f32.mrf.mxu0  ;;  %v5762_v49 = vpop.f32.mrf.mxu1  ;;  %v5779_v15 = vadd.f32 %v5223_v46, %v5310_v18  ;;  %v5793_v46 = vadd.f32 %v5176_v13, %v5495_v59 }
 0x1aa   : > { %9736 = vst [vmem:[#allocation118_spill] sm:$0xff] %v5762_v49  ;;  %v556_v49 = vld [vmem:[%s9065_s2 + $0x380] sm:$0xff] }
 0x1ab   : > { %9737 = vst [vmem:[#allocation119_spill] sm:$0xff] %v5779_v15  ;;  %2950 = vmatpush.msrb.mxu3 %v2450_v7  ;;  %1104 = vperm.xlu2 %4587, %v550_v17   ;;  %v2446_v7 = vmul.f32 %v5758_v26, %v5758_v26  ;;  %v5799_v17 = vpop.f32.mrf.mxu3  ;;  %v2444_v13 = vmul.f32 %v5779_v15, %v5779_v15  ;;  %v5818_v26 = vpop.f32.mrf.mxu2  ;;  %v563_v15 = vld [vmem:[%s9065_s2 + $0x3b8] sm:$0xff] }
 0x1ac   : > { %4346 = vmatmul.msk.f32.gmra.mxu0 %vm1216_vm1, %v366_v32  ;;  %4475 = vmatmul.msk.f32.gmra.mxu1 %vm1216_vm1, %v366_v32  ;;  %9738 = vst [vmem:[#allocation120_spill] sm:$0xff] %v5793_v46  ;;  %v5803_v32 = vadd.f32 %v5131_v12, %v5444_v19  ;;  %v5807_v45 = vpop.permute.xlu0 %849  ;;  %v2442_v29 = vmul.f32 %v5793_v46, %v5793_v46  ;;  %v367_v12 = vld [vmem:[%s9064_s1 + $0x198] sm:$0xff]  ;;  %v437_v46 = vld [vmem:[%s9064_s1 + $0x3c8] sm:$0xff] }
 0x1ad   : > { %2951 = vmatpush.msrb.mxu3 %v2448_v63  ;;  %9739 = vst [vmem:[#allocation121_spill] sm:$0xff] %v5799_v17  ;;  %904 = vperm.xlu1 %4586, %v510_v51   ;;  %v564_v51 = vld [vmem:[%s9065_s2 + $0x3c0] sm:$0xff] }
 0x1ae   : > { %9740 = vst [vmem:[#allocation122_spill] sm:$0xff] %v5803_v32  ;;  %4417 = vmatmul.msk.f32.gmra.mxu2 %vm1216_vm1, %v437_v46  ;;  %4546 = vmatmul.msk.f32.gmra.mxu3 %vm1216_vm1, %v437_v46  ;;  %v546_v46 = vld [vmem:[%s9065_s2 + $0x330] sm:$0xff] }
 0x1af   : > { %2952 = vmatpush.msrb.mxu3 %v2446_v7  ;;  %9741 = vst [vmem:[#allocation123_spill] sm:$0xff] %v5807_v45  ;;  %v530_v7 = vld [vmem:[%s9065_s2 + $0x2b0] sm:$0xff]  ;;  %1174 = vperm.xlu0 %4585, %v564_v51   ;;  %v512_v51 = vld [vmem:[%s9065_s2 + $0x220] sm:$0xff] }
 0x1b1   : > { %2953 = vmatpush.msrb.mxu3 %v2444_v13  ;;  %v5809_v63 = vpop.f32.mrf.mxu0  ;;  %v5811_v55 = vpop.f32.mrf.mxu1  ;;  %v2440_v13 = vmul.f32 %v5803_v32, %v5803_v32 }
 0x1b2   : > { %9742 = vst [vmem:[#allocation124_spill] sm:$0xff] %v5811_v55 }
 0x1b3   : > { %2954 = vmatpush.msrb.mxu3 %v2442_v29  ;;  %1004 = vperm.xlu2 %4587, %v530_v7   ;;  %v5838_v29 = vpop.f32.mrf.mxu3  ;;  %v5849_v59 = vpop.f32.mrf.mxu2 }
 0x1b4   : > { %4347 = vmatmul.msk.f32.gmra.mxu0 %vm1216_vm1, %v367_v12  ;;  %4476 = vmatmul.msk.f32.gmra.mxu1 %vm1216_vm1, %v367_v12  ;;  %9743 = vst [vmem:[#allocation125_spill] sm:$0xff] %v5838_v29  ;;  %v5840_v32 = vpop.permute.xlu0 %834  ;;  %v368_v12 = vld [vmem:[%s9064_s1 + $0x1a0] sm:$0xff]  ;;  %v542_v29 = vld [vmem:[%s9065_s2 + $0x310] sm:$0xff] }
 0x1b5   : > { %2955 = vmatpush.msrb.mxu3 %v2440_v13  ;;  %9744 = vst [vmem:[#allocation126_spill] sm:$0xff] %v5840_v32  ;;  %1169 = vperm.xlu1 %4586, %v563_v15   ;;  %v438_v15 = vld [vmem:[%s9064_s1 + $0x3d0] sm:$0xff]  ;;  %v545_v13 = vld [vmem:[%s9065_s2 + $0x328] sm:$0xff] }
 0x1b6   : > { %4418 = vmatmul.msk.f32.gmra.mxu2 %vm1216_vm1, %v438_v15  ;;  %4547 = vmatmul.msk.f32.gmra.mxu3 %vm1216_vm1, %v438_v15  ;;  %v526_v15 = vld [vmem:[%s9065_s2 + $0x290] sm:$0xff] }
 0x1b7   : > { %1084 = vperm.xlu0 %4585, %v546_v46   ;;  %v565_v46 = vld [vmem:[%s9065_s2 + $0x3c8] sm:$0xff] }
 0x1b9   : > { %v5842_v7 = vpop.f32.mrf.mxu0  ;;  %v5844_v19 = vpop.f32.mrf.mxu1 }
 0x1ba   : > { %9745 = vst [vmem:[#allocation127_spill] sm:$0xff] %v5844_v19 }
 0x1bb   : > { %914 = vperm.xlu2 %4587, %v512_v51   ;;  %v5867_v18 = vpop.f32.mrf.mxu3  ;;  %v5878_v37 = vpop.f32.mrf.mxu2 }
 0x1bc   : > { %4348 = vmatmul.msk.f32.gmra.mxu0 %vm1216_vm1, %v368_v12  ;;  %4477 = vmatmul.msk.f32.gmra.mxu1 %vm1216_vm1, %v368_v12  ;;  %9746 = vst [vmem:[#allocation128_spill] sm:$0xff] %v5867_v18  ;;  %v5869_v33 = vpop.permute.xlu0 %1049  ;;  %v369_v12 = vld [vmem:[%s9064_s1 + $0x1a8] sm:$0xff] }
 0x1bd   : > { %9747 = vst [vmem:[#allocation129_spill] sm:$0xff] %v5869_v33  ;;  %1079 = vperm.xlu1 %4586, %v545_v13   ;;  %v439_v13 = vld [vmem:[%s9064_s1 + $0x3d8] sm:$0xff]  ;;  %v5983_v33 = vpop.permute.xlu2 %734 }
 0x1be   : > { %4419 = vmatmul.msk.f32.gmra.mxu2 %vm1216_vm1, %v439_v13  ;;  %4548 = vmatmul.msk.f32.gmra.mxu3 %vm1216_vm1, %v439_v13  ;;  %v508_v13 = vld [vmem:[%s9065_s2 + $0x200] sm:$0xff]  ;;  %9757 = vst [vmem:[#allocation139_spill] sm:$0xff] %v5983_v33 }
 0x1bf   : > { %984 = vperm.xlu0 %4585, %v526_v15   ;;  %v547_v15 = vld [vmem:[%s9065_s2 + $0x338] sm:$0xff] }
 0x1c1   : > { %v5871_v47 = vpop.f32.mrf.mxu0  ;;  %v5876_v51 = vpop.f32.mrf.mxu1 }
 0x1c2   : > { %9748 = vst [vmem:[#allocation130_spill] sm:$0xff] %v5876_v51  ;;  %v6016_v51 = vpop.permute.xlu1 %744 }
 0x1c3   : > { %1179 = vperm.xlu2 %4587, %v565_v46   ;;  %v5896_v3 = vpop.f32.mrf.mxu3  ;;  %v5905_v46 = vpop.f32.mrf.mxu2  ;;  %9761 = vst [vmem:[#allocation143_spill] sm:$0xff] %v6016_v51 }
 0x1c4   : > { %4349 = vmatmul.msk.f32.gmra.mxu0 %vm1216_vm1, %v369_v12  ;;  %4478 = vmatmul.msk.f32.gmra.mxu1 %vm1216_vm1, %v369_v12  ;;  %9749 = vst [vmem:[#allocation131_spill] sm:$0xff] %v5896_v3  ;;  %v5898_v21 = vpop.permute.xlu0 %954  ;;  %v370_v12 = vld [vmem:[%s9064_s1 + $0x1b0] sm:$0xff] }
 0x1c5   : > { %979 = vperm.xlu1 %4586, %v525_v48   ;;  %v440_v48 = vld [vmem:[%s9064_s1 + $0x3e0] sm:$0xff] }
 0x1c6   : > { %4420 = vmatmul.msk.f32.gmra.mxu2 %vm1216_vm1, %v440_v48  ;;  %4549 = vmatmul.msk.f32.gmra.mxu3 %vm1216_vm1, %v440_v48  ;;  %v561_v48 = vld [vmem:[%s9065_s2 + $0x3a8] sm:$0xff] }
 0x1c7   : > { %894 = vperm.xlu0 %4585, %v508_v13   ;;  %v527_v13 = vld [vmem:[%s9065_s2 + $0x298] sm:$0xff] }
 0x1c9   : > { %v5900_v8 = vpop.f32.mrf.mxu0  ;;  %v5916_v4 = vpop.f32.mrf.mxu1 }
 0x1ca   : > { %9750 = vst [vmem:[#allocation132_spill] sm:$0xff] %v5916_v4  ;;  %v6046_v14 = vpop.permute.xlu1 %759 }
 0x1cb   : > { %1089 = vperm.xlu2 %4587, %v547_v15   ;;  %v5925_v39 = vpop.f32.mrf.mxu3  ;;  %v5934_v17 = vpop.f32.mrf.mxu2  ;;  %9766 = vst [vmem:[#allocation148_spill] sm:$0xff] %v6046_v14 }
 0x1cc   : > { %4350 = vmatmul.msk.f32.gmra.mxu0 %vm1216_vm1, %v370_v12  ;;  %4479 = vmatmul.msk.f32.gmra.mxu1 %vm1216_vm1, %v370_v12  ;;  %9751 = vst [vmem:[#allocation133_spill] sm:$0xff] %v5925_v39  ;;  %v5927_v0 = vpop.permute.xlu0 %1034  ;;  %v371_v12 = vld [vmem:[%s9064_s1 + $0x1b8] sm:$0xff] }
 0x1cd   : > { %9752 = vst [vmem:[#allocation134_spill] sm:$0xff] %v5927_v0  ;;  %974 = vperm.xlu1 %4586, %v524_v54   ;;  %v441_v54 = vld [vmem:[%s9064_s1 + $0x3e8] sm:$0xff] }
 0x1ce   : > { %4421 = vmatmul.msk.f32.gmra.mxu2 %vm1216_vm1, %v441_v54  ;;  %4550 = vmatmul.msk.f32.gmra.mxu3 %vm1216_vm1, %v441_v54  ;;  %v560_v54 = vld [vmem:[%s9065_s2 + $0x3a0] sm:$0xff] }
 0x1cf   : > { %1159 = vperm.xlu0 %4585, %v561_v48   ;;  %v509_v48 = vld [vmem:[%s9065_s2 + $0x208] sm:$0xff] }
 0x1d1   : > { %v5929_v15 = vpop.f32.mrf.mxu0  ;;  %v5950_v18 = vpop.f32.mrf.mxu1 }
 0x1d2   : > { %9753 = vst [vmem:[#allocation135_spill] sm:$0xff] %v5950_v18 }
 0x1d3   : > { %989 = vperm.xlu2 %4587, %v527_v13   ;;  %v5954_v3 = vpop.f32.mrf.mxu3  ;;  %v5963_v0 = vpop.f32.mrf.mxu2 }
 0x1d4   : > { %4351 = vmatmul.msk.f32.gmra.mxu0 %vm1216_vm1, %v371_v12  ;;  %4480 = vmatmul.msk.f32.gmra.mxu1 %vm1216_vm1, %v371_v12  ;;  %9754 = vst [vmem:[#allocation136_spill] sm:$0xff] %v5954_v3  ;;  %v5956_v39 = vpop.permute.xlu0 %1029  ;;  %v372_v12 = vld [vmem:[%s9064_s1 + $0x1c0] sm:$0xff]  ;;  %v558_v3 = vld [vmem:[%s9065_s2 + $0x390] sm:$0xff] }
 0x1d5   : > { %9755 = vst [vmem:[#allocation137_spill] sm:$0xff] %v5956_v39  ;;  %1064 = vperm.xlu1 %4586, %v542_v29   ;;  %v442_v29 = vld [vmem:[%s9064_s1 + $0x3f0] sm:$0xff] }
 0x1d6   : > { %4422 = vmatmul.msk.f32.gmra.mxu2 %vm1216_vm1, %v442_v29  ;;  %4551 = vmatmul.msk.f32.gmra.mxu3 %vm1216_vm1, %v442_v29  ;;  %v562_v29 = vld [vmem:[%s9065_s2 + $0x3b0] sm:$0xff] }
 0x1d7   : > { %1154 = vperm.xlu0 %4585, %v560_v54  }
 0x1d9   : > { %v5958_v13 = vpop.f32.mrf.mxu0 }
 0x1db   : > { %899 = vperm.xlu2 %4587, %v509_v48   ;;  %v5981_v39 = vpop.f32.mrf.mxu3  ;;  %v5987_v48 = vpop.f32.mrf.mxu1 }
 0x1dc   : > { %4352 = vmatmul.msk.f32.gmra.mxu0 %vm1216_vm1, %v372_v12  ;;  %4481 = vmatmul.msk.f32.gmra.mxu1 %vm1216_vm1, %v372_v12  ;;  %9756 = vst [vmem:[#allocation138_spill] sm:$0xff] %v5981_v39  ;;  %v5985_v36 = vpop.permute.xlu0 %939  ;;  %v373_v12 = vld [vmem:[%s9064_s1 + $0x1c8] sm:$0xff]  ;;  %v5994_v54 = vpop.f32.mrf.mxu2 }
 0x1dd   : > { %1144 = vperm.xlu1 %4586, %v558_v3   ;;  %9758 = vst [vmem:[#allocation140_spill] sm:$0xff] %v5987_v48  ;;  %v541_v39 = vld [vmem:[%s9065_s2 + $0x308] sm:$0xff]  ;;  %v443_v3 = vld [vmem:[%s9064_s1 + $0x3f8] sm:$0xff] }
 0x1de   : > { %4423 = vmatmul.msk.f32.gmra.mxu2 %vm1216_vm1, %v443_v3  ;;  %4552 = vmatmul.msk.f32.gmra.mxu3 %vm1216_vm1, %v443_v3  ;;  %v544_v3 = vld [vmem:[%s9065_s2 + $0x320] sm:$0xff] }
 0x1df   : > { %1059 = vperm.xlu0 %4585, %v541_v39  }
 0x1e1   : > { %v5989_v28 = vpop.f32.mrf.mxu0 }
 0x1e3   : > { %1164 = vperm.xlu2 %4587, %v562_v29   ;;  %v6012_v55 = vpop.f32.mrf.mxu3  ;;  %v6018_v29 = vpop.permute.xlu2 %749 }
 0x1e4   : > { %4353 = vmatmul.msk.f32.gmra.mxu0 %vm1216_vm1, %v373_v12  ;;  %4482 = vmatmul.msk.f32.gmra.mxu1 %vm1216_vm1, %v373_v12  ;;  %9759 = vst [vmem:[#allocation141_spill] sm:$0xff] %v6012_v55  ;;  %v6014_v19 = vpop.permute.xlu0 %1204  ;;  %v374_v12 = vld [vmem:[%s9064_s1 + $0x1d0] sm:$0xff]  ;;  %v6025_v39 = vpop.f32.mrf.mxu1 }
 0x1e5   : > { %9760 = vst [vmem:[#allocation142_spill] sm:$0xff] %v6014_v19  ;;  %1134 = vperm.xlu1 %4586, %v556_v49   ;;  %v6027_v18 = vpop.f32.mrf.mxu2  ;;  %v557_v49 = vld [vmem:[%s9065_s2 + $0x388] sm:$0xff] }
 0x1e6   : > { %9762 = vst [vmem:[#allocation144_spill] sm:$0xff] %v6018_v29 }
 0x1e7   : > { %9763 = vst [vmem:[#allocation145_spill] sm:$0xff] %v6025_v39  ;;  %1139 = vperm.xlu0 %4585, %v557_v49   ;;  %v375_v39 = vld [vmem:[%s9064_s1 + $0x1d8] sm:$0xff] }
 0x1e9   : > { %v6020_v4 = vpop.f32.mrf.mxu0 }
 0x1eb   : > { %1074 = vperm.xlu2 %4587, %v544_v3   ;;  %v6037_v19 = vpop.f32.mrf.mxu3  ;;  %v543_v3 = vld [vmem:[%s9065_s2 + $0x318] sm:$0xff] }
 0x1ec   : > { %4354 = vmatmul.msk.f32.gmra.mxu0 %vm1216_vm1, %v374_v12  ;;  %4483 = vmatmul.msk.f32.gmra.mxu1 %vm1216_vm1, %v374_v12  ;;  %9764 = vst [vmem:[#allocation146_spill] sm:$0xff] %v6037_v19  ;;  %v6039_v55 = vpop.permute.xlu0 %1114  ;;  %v6053_v12 = vpop.permute.xlu2 %764 }
 0x1ed   : > { %9765 = vst [vmem:[#allocation147_spill] sm:$0xff] %v6039_v55  ;;  %v6048_v50 = vpop.f32.mrf.mxu2  ;;  %v6055_v49 = vpop.f32.mrf.mxu1 }
 0x1ee   : > { %9767 = vst [vmem:[#allocation149_spill] sm:$0xff] %v6048_v50  ;;  %v376_v50 = vld [vmem:[%s9064_s1 + $0x1e0] sm:$0xff] }
 0x1ef   : > { %9768 = vst [vmem:[#allocation150_spill] sm:$0xff] %v6053_v12 }
 0x1f0   : > { %9769 = vst [vmem:[#allocation151_spill] sm:$0xff] %v6055_v49  ;;  %v6071_v49 = vpop.permute.xlu1 %774 }
 0x1f1   : > { %v6041_v48 = vpop.f32.mrf.mxu0  ;;  %9773 = vst [vmem:[#allocation155_spill] sm:$0xff] %v6071_v49 }
 0x1f3   : > { %1069 = vperm.xlu2 %4587, %v543_v3   ;;  %v6059_v19 = vpop.f32.mrf.mxu3  ;;  %v559_v3 = vld [vmem:[%s9065_s2 + $0x398] sm:$0xff] }
 0x1f4   : > { %4355 = vmatmul.msk.f32.gmra.mxu0 %vm1216_vm1, %v375_v39  ;;  %4484 = vmatmul.msk.f32.gmra.mxu1 %vm1216_vm1, %v375_v39  ;;  %9770 = vst [vmem:[#allocation152_spill] sm:$0xff] %v6059_v19  ;;  %v6061_v20 = vpop.permute.xlu0 %1014  ;;  %v6075_v39 = vpop.permute.xlu2 %779 }
 0x1f5   : > { %9771 = vst [vmem:[#allocation153_spill] sm:$0xff] %v6061_v20  ;;  %v6066_v30 = vpop.f32.mrf.mxu2  ;;  %v6077_v19 = vpop.f32.mrf.mxu1 }
 0x1f6   : > { %9772 = vst [vmem:[#allocation154_spill] sm:$0xff] %v6066_v30 }
 0x1f7   : > { %9774 = vst [vmem:[#allocation156_spill] sm:$0xff] %v6075_v39 }
 0x1f8   : > { %9775 = vst [vmem:[#allocation157_spill] sm:$0xff] %v6077_v19 }
 0x1f9   : > { %v1755_v9 = vpop.f32.mrf.mxu0 }
 0x1fb   : > { %1149 = vperm.xlu2 %4587, %v559_v3   ;;  %v6079_v20 = vpop.f32.mrf.mxu3 }
 0x1fc   : > { %4356 = vmatmul.msk.f32.gmra.mxu0 %vm1216_vm1, %v376_v50  ;;  %4485 = vmatmul.msk.f32.gmra.mxu1 %vm1216_vm1, %v376_v50  ;;  %9776 = vst [vmem:[#allocation158_spill] sm:$0xff] %v6079_v20  ;;  %v6081_v5 = vpop.permute.xlu0 %924  ;;  %v6093_v50 = vpop.permute.xlu1 %789 }
 0x1fd   : > { %v6086_v3 = vpop.f32.mrf.mxu2  ;;  %9778 = vst [vmem:[#allocation160_spill] sm:$0xff] %v6093_v50  ;;  %v6097_v19 = vpop.permute.xlu2 %794 }
 0x1fe   : > { %9777 = vst [vmem:[#allocation159_spill] sm:$0xff] %v6086_v3  ;;  %v6099_v57 = vpop.f32.mrf.mxu1  ;;  %v378_v3 = vld [vmem:[%s9064_s1 + $0x1f0] sm:$0xff] }
 0x1ff   : > { %9780 = vst [vmem:[#allocation162_spill] sm:$0xff] %v6097_v19 }
 0x200   : > { %9781 = vst [vmem:[#allocation163_spill] sm:$0xff] %v6099_v57 }
 0x201   : > { %v1758_v30 = vpop.f32.mrf.mxu0 }
 0x202   : > { %v6132_v38 = vadd.f32 %v1758_v30, %v5565_v52 }
 0x203   : > { %1054 = vperm.xlu2 %4587, %v540_v6   ;;  %v6095_v20 = vpop.f32.mrf.mxu3 }
 0x204   : > { %4357 = vmatmul.msk.f32.gmra.mxu0 %vm1216_vm1, %v377_v41  ;;  %4486 = vmatmul.msk.f32.gmra.mxu1 %vm1216_vm1, %v377_v41  ;;  %9779 = vst [vmem:[#allocation161_spill] sm:$0xff] %v6095_v20  ;;  %v6104_v11 = vpop.permute.xlu0 %1189  ;;  %v6112_v20 = vpop.permute.xlu1 %804  ;;  %v2498_v30 = vmul.f32 %v6132_v38, %v6132_v38 }
 0x205   : > { %9782 = vst [vmem:[#allocation164_spill] sm:$0xff] %v6104_v11  ;;  %v6106_v6 = vpop.f32.mrf.mxu2  ;;  %v6114_v57 = vpop.permute.xlu2 %809 }
 0x206   : > { %9783 = vst [vmem:[#allocation165_spill] sm:$0xff] %v6106_v6  ;;  %v6119_v11 = vpop.f32.mrf.mxu1 }
 0x207   : > { %9785 = vst [vmem:[#allocation167_spill] sm:$0xff] %v6112_v20 }
 0x208   : > { %9786 = vst [vmem:[#allocation168_spill] sm:$0xff] %v6119_v11 }
 0x209   : > { %v1761_v24 = vpop.f32.mrf.mxu0  ;;  %9791 = vst [vmem:[#allocation173_spill] sm:$0xff] %v6132_v38 }
 0x20a   : > { %v6122_v6 = vadd.f32 %v1761_v24, %v6112_v20 }
 0x20b   : > { %3571 = vperm.xlu2 %4587, %v3568_v22   ;;  %v6110_v41 = vpop.f32.mrf.mxu3 }
 0x20c   : > { %4358 = vmatmul.msk.f32.gmra.mxu0 %vm1216_vm1, %v378_v3  ;;  %4487 = vmatmul.msk.f32.gmra.mxu1 %vm1216_vm1, %v378_v3  ;;  %9784 = vst [vmem:[#allocation166_spill] sm:$0xff] %v6110_v41  ;;  %v6129_v41 = vpop.permute.xlu0 %1099  ;;  %v2500_v24 = vmul.f32 %v6122_v6, %v6122_v6 }
 0x20d   : > { %9787 = vst [vmem:[#allocation169_spill] sm:$0xff] %v6122_v6  ;;  %v6127_v3 = vpop.f32.mrf.mxu2 }
 0x20e   : > { %9789 = vst [vmem:[#allocation171_spill] sm:$0xff] %v6127_v3  ;;  %v6143_v3 = vadd.f32 %v1755_v9, %v6097_v19  ;;  %v6160_v9 = vadd.f32 %v6020_v4, %v5536_v44  ;;  %v6178_v4 = vadd.f32 %v5958_v13, %v6071_v49  ;;  %v381_v13 = vld [vmem:[%s9064_s1 + $0x208] sm:$0xff] }
 0x20f   : > { %9790 = vst [vmem:[#allocation172_spill] sm:$0xff] %v6129_v41 }
 0x210   : > { %9793 = vst [vmem:[#allocation175_spill] sm:$0xff] %v6143_v3 }
 0x211   : > { %v1764_v31 = vpop.f32.mrf.mxu0  ;;  %9796 = vst [vmem:[#allocation178_spill] sm:$0xff] %v6160_v9 }
 0x212   : > { %v6125_v22 = vadd.f32 %v1764_v31, %v6114_v57  ;;  %9800 = vst [vmem:[#allocation182_spill] sm:$0xff] %v6178_v4 }
 0x213   : > { %v6140_v31 = vpop.f32.mrf.mxu3 }
 0x214   : > { %9788 = vst [vmem:[#allocation170_spill] sm:$0xff] %v6125_v22  ;;  %v2502_v10 = vmul.f32 %v6125_v22, %v6125_v22  ;;  %4359 = vmatmul.msk.f32.gmra.mxu0 %vm1216_vm1, %v379_v23  ;;  %4488 = vmatmul.msk.f32.gmra.mxu1 %vm1216_vm1, %v379_v23  ;;  %v6149_v22 = vadd.f32 %v6041_v48, %v6093_v50  ;;  %v380_v23 = vld [vmem:[%s9064_s1 + $0x200] sm:$0xff]  ;;  %v6174_v38 = vpop.permute.xlu0 %999 }
 0x215   : > { %9792 = vst [vmem:[#allocation174_spill] sm:$0xff] %v6140_v31  ;;  %v6164_v31 = vpop.f32.mrf.mxu1  ;;  %v6170_v48 = vadd.f32 %v5989_v28, %v6075_v39  ;;  %v6186_v28 = vadd.f32 %v5929_v15, %v5506_v42  ;;  %v2488_v15 = vmul.f32 %v6178_v4, %v6178_v4 }
 0x216   : > { %2960 = vmatpush.msra.mxu2 %v2502_v10  ;;  %9794 = vst [vmem:[#allocation176_spill] sm:$0xff] %v6149_v22  ;;  %v6156_v10 = vpop.f32.mrf.mxu2 }
 0x217   : > { %9795 = vst [vmem:[#allocation177_spill] sm:$0xff] %v6156_v10 }
 0x218   : > { %2961 = vmatpush.msra.mxu2 %v2500_v24  ;;  %v2496_v24 = vmul.f32 %v6143_v3, %v6143_v3  ;;  %9797 = vst [vmem:[#allocation179_spill] sm:$0xff] %v6164_v31  ;;  %v2492_v3 = vmul.f32 %v6160_v9, %v6160_v9  ;;  %v6199_v9 = vadd.f32 %v5900_v8, %v6053_v12 }
 0x219   : > { %v6151_v11 = vpop.f32.mrf.mxu0  ;;  %9798 = vst [vmem:[#allocation180_spill] sm:$0xff] %v6170_v48  ;;  %v6215_v8 = vadd.f32 %v5842_v7, %v5466_v62  ;;  %v382_v7 = vld [vmem:[%s9064_s1 + $0x210] sm:$0xff] }
 0x21a   : > { %2962 = vmatpush.msra.mxu2 %v2498_v30  ;;  %v2494_v30 = vmul.f32 %v6149_v22, %v6149_v22  ;;  %9799 = vst [vmem:[#allocation181_spill] sm:$0xff] %v6174_v38 }
 0x21b   : > { %v6182_v6 = vpop.f32.mrf.mxu3  ;;  %9802 = vst [vmem:[#allocation184_spill] sm:$0xff] %v6186_v28 }
 0x21c   : > { %4360 = vmatmul.msk.f32.gmra.mxu0 %vm1216_vm1, %v380_v23  ;;  %4489 = vmatmul.msk.f32.gmra.mxu1 %vm1216_vm1, %v380_v23  ;;  %9801 = vst [vmem:[#allocation183_spill] sm:$0xff] %v6182_v6  ;;  %v2486_v6 = vmul.f32 %v6186_v28, %v6186_v28  ;;  %v6219_v4 = vpop.permute.xlu0 %909 }
 0x21d   : > { %2963 = vmatpush.msra.mxu2 %v2496_v24  ;;  %v2490_v24 = vmul.f32 %v6170_v48, %v6170_v48  ;;  %9804 = vst [vmem:[#allocation186_spill] sm:$0xff] %v6199_v9  ;;  %v6211_v48 = vpop.f32.mrf.mxu1 }
 0x21e   : > { %9806 = vst [vmem:[#allocation188_spill] sm:$0xff] %v6215_v8 }
 0x21f   : > { %2964 = vmatpush.msra.mxu2 %v2494_v30  ;;  %v6195_v30 = vpop.f32.mrf.mxu2 }
 0x220   : > { %9803 = vst [vmem:[#allocation185_spill] sm:$0xff] %v6195_v30 }
 0x221   : > { %2965 = vmatpush.msra.mxu2 %v2492_v3  ;;  %v6188_v23 = vpop.f32.mrf.mxu0  ;;  %v6207_v3 = vadd.f32 %v5871_v47, %v6046_v14  ;;  %v6223_v47 = vadd.f32 %v5809_v63, %v6018_v29  ;;  %v2480_v63 = vmul.f32 %v6215_v8, %v6215_v8 }
 0x223   : > { %2966 = vmatpush.msra.mxu2 %v2490_v24  ;;  %9805 = vst [vmem:[#allocation187_spill] sm:$0xff] %v6207_v3  ;;  %v2484_v24 = vmul.f32 %v6199_v9, %v6199_v9  ;;  %v6234_v28 = vpop.f32.mrf.mxu3  ;;  %v6238_v9 = vadd.f32 %v5760_v43, %v6016_v51  ;;  %v6252_v43 = vadd.f32 %v5658_v27, %v5983_v33 }
 0x224   : > { %4361 = vmatmul.msk.f32.gmra.mxu0 %vm1216_vm1, %v381_v13  ;;  %4490 = vmatmul.msk.f32.gmra.mxu1 %vm1216_vm1, %v381_v13  ;;  %9807 = vst [vmem:[#allocation189_spill] sm:$0xff] %v6223_v47 }
 0x225   : > { %2967 = vmatpush.msra.mxu2 %v2488_v15  ;;  %v2482_v15 = vmul.f32 %v6207_v3, %v6207_v3  ;;  %9809 = vst [vmem:[#allocation191_spill] sm:$0xff] %v6234_v28  ;;  %v2478_v28 = vmul.f32 %v6223_v47, %v6223_v47  ;;  %v6256_v8 = vpop.f32.mrf.mxu1  ;;  %v1175_v47 = vpop.permute.xlu0 %1174 }
 0x226   : > { %9810 = vst [vmem:[#allocation192_spill] sm:$0xff] %v6238_v9 }
 0x227   : > { %2968 = vmatpush.msra.mxu2 %v2486_v6  ;;  %v6232_v6 = vpop.f32.mrf.mxu2  ;;  %9812 = vst [vmem:[#allocation194_spill] sm:$0xff] %v6252_v43 }
 0x228   : > { %9808 = vst [vmem:[#allocation190_spill] sm:$0xff] %v6232_v6 }
 0x229   : > { %2969 = vmatpush.msra.mxu2 %v2484_v24  ;;  %v6225_v13 = vpop.f32.mrf.mxu0  ;;  %v6246_v24 = vadd.f32 %v5709_v58, %v5437_v2  ;;  %9813 = vst [vmem:[#allocation195_spill] sm:$0xff] %v6256_v8 }
 0x22b   : > { %2970 = vmatpush.msra.mxu2 %v2482_v15  ;;  %9811 = vst [vmem:[#allocation193_spill] sm:$0xff] %v6246_v24  ;;  %v2476_v15 = vmul.f32 %v6238_v9, %v6238_v9  ;;  %v2474_v58 = vmul.f32 %v6246_v24, %v6246_v24  ;;  %v2384_v27 = vpop.f32.mrf.mxu3  ;;  %v384_v24 = vld [vmem:[%s9064_s1 + $0x220] sm:$0xff] }
 0x22c   : > { %4362 = vmatmul.msk.f32.gmra.mxu0 %vm1216_vm1, %v382_v7  ;;  %4491 = vmatmul.msk.f32.gmra.mxu1 %vm1216_vm1, %v382_v7  ;;  %v6269_v8 = vadd.f32 %v2384_v27, %v1175_v47  ;;  %v386_v27 = vld [vmem:[%s9064_s1 + $0x230] sm:$0xff] }
 0x22d   : > { %2971 = vmatpush.msra.mxu2 %v2480_v63  ;;  %v383_v63 = vld [vmem:[%s9064_s1 + $0x218] sm:$0xff]  ;;  %v6278_v22 = vpop.f32.mrf.mxu1 }
 0x22e   : > { %9815 = vst [vmem:[#allocation197_spill] sm:$0xff] %v6269_v8  ;;  %v387_v8 = vld [vmem:[%s9064_s1 + $0x238] sm:$0xff] }
 0x22f   : > { %2972 = vmatpush.msra.mxu2 %v2478_v28  ;;  %v1983_v3 = vpop.f32.mrf.mxu2  ;;  %v2472_v28 = vmul.f32 %v6252_v43, %v6252_v43  ;;  %9816 = vst [vmem:[#allocation198_spill] sm:$0xff] %v6278_v22  ;;  %v6305_v43 = vpop.permute.xlu2 %824 }
 0x230   : > { %v6267_v9 = vadd.f32 %v1983_v3, %v1175_v47  ;;  %v385_v47 = vld [vmem:[%s9064_s1 + $0x228] sm:$0xff]  ;;  %9819 = vst [vmem:[#allocation201_spill] sm:$0xff] %v6305_v43 }
 0x231   : > { %2973 = vmatpush.msra.mxu2 %v2476_v15  ;;  %v6258_v7 = vpop.f32.mrf.mxu0 }
 0x232   : > { %9814 = vst [vmem:[#allocation196_spill] sm:$0xff] %v6267_v9 }
 0x233   : > { %2974 = vmatpush.msra.mxu2 %v2474_v58 }
 0x234   : > { %4363 = vmatmul.msk.f32.gmra.mxu0 %vm1216_vm1, %v383_v63  ;;  %4492 = vmatmul.msk.f32.gmra.mxu1 %vm1216_vm1, %v383_v63 }
 0x235   : > { %2975 = vmatpush.msra.mxu2 %v2472_v28  ;;  %v6287_v58 = vpop.f32.mrf.mxu1 }
 0x236   : > { %9817 = vst [vmem:[#allocation199_spill] sm:$0xff] %v6287_v58 }
 0x239   : > { %v6273_v15 = vpop.f32.mrf.mxu0 }
 0x23c   : > { %4364 = vmatmul.msk.f32.gmra.mxu0 %vm1216_vm1, %v384_v24  ;;  %4493 = vmatmul.msk.f32.gmra.mxu1 %vm1216_vm1, %v384_v24 }
 0x23d   : > { %v6298_v24 = vpop.f32.mrf.mxu1 }
 0x23e   : > { %9818 = vst [vmem:[#allocation200_spill] sm:$0xff] %v6298_v24  ;;  %v6318_v24 = vpop.permute.xlu2 %884 }
 0x23f   : > { %9822 = vst [vmem:[#allocation204_spill] sm:$0xff] %v6318_v24 }
 0x241   : > { %v6282_v3 = vpop.f32.mrf.mxu0 }
 0x244   : > { %4365 = vmatmul.msk.f32.gmra.mxu0 %vm1216_vm1, %v385_v47  ;;  %4494 = vmatmul.msk.f32.gmra.mxu1 %vm1216_vm1, %v385_v47  ;;  %v6309_v47 = vpop.permute.xlu1 %819 }
 0x245   : > { %9820 = vst [vmem:[#allocation202_spill] sm:$0xff] %v6309_v47  ;;  %v6311_v22 = vpop.f32.mrf.mxu1 }
 0x246   : > { %9821 = vst [vmem:[#allocation203_spill] sm:$0xff] %v6311_v22  ;;  %v6333_v30 = vpop.permute.xlu2 %869 }
 0x247   : > { %9825 = vst [vmem:[#allocation207_spill] sm:$0xff] %v6333_v30 }
 0x249   : > { %v6291_v63 = vpop.f32.mrf.mxu0 }
 0x24c   : > { %4366 = vmatmul.msk.f32.gmra.mxu0 %vm1216_vm1, %v386_v27  ;;  %4495 = vmatmul.msk.f32.gmra.mxu1 %vm1216_vm1, %v386_v27  ;;  %v388_v27 = vld [vmem:[%s9064_s1 + $0x240] sm:$0xff]  ;;  %v6327_v9 = vpop.permute.xlu1 %889 }
 0x24d   : > { %9823 = vst [vmem:[#allocation205_spill] sm:$0xff] %v6327_v9  ;;  %v6329_v22 = vpop.f32.mrf.mxu1 }
 0x24e   : > { %9824 = vst [vmem:[#allocation206_spill] sm:$0xff] %v6329_v22  ;;  %v6344_v22 = vpop.permute.xlu2 %854 }
 0x24f   : > { %9828 = vst [vmem:[#allocation210_spill] sm:$0xff] %v6344_v22 }
 0x251   : > { %v6300_v28 = vpop.f32.mrf.mxu0 }
 0x254   : > { %4367 = vmatmul.msk.f32.gmra.mxu0 %vm1216_vm1, %v387_v8  ;;  %4496 = vmatmul.msk.f32.gmra.mxu1 %vm1216_vm1, %v387_v8  ;;  %v389_v8 = vld [vmem:[%s9064_s1 + $0x248] sm:$0xff]  ;;  %v6338_v38 = vpop.permute.xlu1 %874 }
 0x255   : > { %9826 = vst [vmem:[#allocation208_spill] sm:$0xff] %v6338_v38  ;;  %v6340_v33 = vpop.f32.mrf.mxu1 }
 0x256   : > { %9827 = vst [vmem:[#allocation209_spill] sm:$0xff] %v6340_v33  ;;  %v6358_v62 = vpop.permute.xlu2 %839 }
 0x257   : > { %9831 = vst [vmem:[#allocation213_spill] sm:$0xff] %v6358_v62 }
 0x259   : > { %v6313_v58 = vpop.f32.mrf.mxu0 }
 0x25c   : > { %4368 = vmatmul.msk.f32.gmra.mxu0 %vm1216_vm1, %v388_v27  ;;  %4497 = vmatmul.msk.f32.gmra.mxu1 %vm1216_vm1, %v388_v27  ;;  %v390_v27 = vld [vmem:[%s9064_s1 + $0x250] sm:$0xff]  ;;  %v6351_v51 = vpop.permute.xlu1 %859 }
 0x25d   : > { %9829 = vst [vmem:[#allocation211_spill] sm:$0xff] %v6351_v51  ;;  %v6353_v29 = vpop.f32.mrf.mxu1 }
 0x25e   : > { %9830 = vst [vmem:[#allocation212_spill] sm:$0xff] %v6353_v29  ;;  %v393_v29 = vld [vmem:[%s9064_s1 + $0x268] sm:$0xff]  ;;  %v6369_v42 = vpop.permute.xlu2 %964 }
 0x261   : > { %v6322_v10 = vpop.f32.mrf.mxu0 }
 0x264   : > { %4369 = vmatmul.msk.f32.gmra.mxu0 %vm1216_vm1, %v389_v8  ;;  %4498 = vmatmul.msk.f32.gmra.mxu1 %vm1216_vm1, %v389_v8  ;;  %v391_v8 = vld [vmem:[%s9064_s1 + $0x258] sm:$0xff]  ;;  %v6362_v14 = vpop.permute.xlu1 %844 }
 0x265   : > { %9832 = vst [vmem:[#allocation214_spill] sm:$0xff] %v6362_v14  ;;  %v6364_v12 = vpop.f32.mrf.mxu1 }
 0x266   : > { %9833 = vst [vmem:[#allocation215_spill] sm:$0xff] %v6364_v12  ;;  %v6382_v12 = vpop.permute.xlu2 %1044 }
 0x269   : > { %v1797_v6 = vpop.f32.mrf.mxu0 }
 0x26c   : > { %4370 = vmatmul.msk.f32.gmra.mxu0 %vm1216_vm1, %v390_v27  ;;  %4499 = vmatmul.msk.f32.gmra.mxu1 %vm1216_vm1, %v390_v27  ;;  %v392_v27 = vld [vmem:[%s9064_s1 + $0x260] sm:$0xff]  ;;  %v6376_v39 = vpop.permute.xlu1 %969 }
 0x26d   : > { %v6378_v44 = vpop.f32.mrf.mxu1 }
 0x26e   : > { %9834 = vst [vmem:[#allocation216_spill] sm:$0xff] %v6378_v44 }
 0x271   : > { %v1800_v2 = vpop.f32.mrf.mxu0 }
 0x274   : > { %4371 = vmatmul.msk.f32.gmra.mxu0 %vm1216_vm1, %v391_v8  ;;  %4500 = vmatmul.msk.f32.gmra.mxu1 %vm1216_vm1, %v391_v8  ;;  %v6393_v31 = vpop.permute.xlu1 %959 }
 0x275   : > { %v6395_v44 = vpop.f32.mrf.mxu1 }
 0x276   : > { %9837 = vst [vmem:[#allocation219_spill] sm:$0xff] %v6395_v44  ;;  %v6414_v44 = vadd.f32 %v1800_v2, %v6333_v30  ;;  %v6430_v2 = vadd.f32 %v6322_v10, %v6351_v51  ;;  %v6446_v10 = vadd.f32 %v6300_v28, %v5807_v45 }
 0x278   : > { %9840 = vst [vmem:[#allocation222_spill] sm:$0xff] %v6414_v44 }
 0x279   : > { %v1803_v33 = vpop.f32.mrf.mxu0  ;;  %9842 = vst [vmem:[#allocation224_spill] sm:$0xff] %v6430_v2 }
 0x27a   : > { %9845 = vst [vmem:[#allocation227_spill] sm:$0xff] %v6446_v10 }
 0x27c   : > { %4372 = vmatmul.msk.f32.gmra.mxu0 %vm1216_vm1, %v392_v27  ;;  %4501 = vmatmul.msk.f32.gmra.mxu1 %vm1216_vm1, %v392_v27  ;;  %v394_v27 = vld [vmem:[%s9064_s1 + $0x270] sm:$0xff] }
 0x281   : > { %v1806_v8 = vpop.f32.mrf.mxu0 }
 0x282   : > { %v6398_v20 = vadd.f32 %v1806_v8, %v5701_v25 }
 0x284   : > { %4373 = vmatmul.msk.f32.gmra.mxu0 %vm1216_vm1, %v393_v29  ;;  %4502 = vmatmul.msk.f32.gmra.mxu1 %vm1216_vm1, %v393_v29  ;;  %v395_v29 = vld [vmem:[%s9064_s1 + $0x278] sm:$0xff]  ;;  %9838 = vst [vmem:[#allocation220_spill] sm:$0xff] %v6398_v20  ;;  %v2530_v8 = vmul.f32 %v6398_v20, %v6398_v20  ;;  %v6434_v20 = vpop.permute.xlu1 %1039 }
 0x289   : > { %v1809_v49 = vpop.f32.mrf.mxu0 }
 0x28a   : > { %v6388_v19 = vadd.f32 %v1809_v49, %v6318_v24  ;;  %v6409_v24 = vpop.permute.xlu2 %949 }
 0x28c   : > { %4374 = vmatmul.msk.f32.gmra.mxu0 %vm1216_vm1, %v394_v27  ;;  %4503 = vmatmul.msk.f32.gmra.mxu1 %vm1216_vm1, %v394_v27  ;;  %9835 = vst [vmem:[#allocation217_spill] sm:$0xff] %v6388_v19  ;;  %v2532_v49 = vmul.f32 %v6388_v19, %v6388_v19 }
 0x291   : > { %v1812_v50 = vpop.f32.mrf.mxu0 }
 0x292   : > { %v6391_v52 = vadd.f32 %v1812_v50, %v6327_v9  ;;  %v6407_v50 = vadd.f32 %v1803_v33, %v6338_v38  ;;  %v9275_v9 = vmov 1.0  }
 0x293   : > { %2936 = vmatmul.f32.vlgmr.msrb.gmra.mxu2 %v9275_v9  ;;  %2956 = vmatmul.f32.vlgmr.msrb.gmra.mxu3 %v9275_v9 }
 0x294   : > { %9836 = vst [vmem:[#allocation218_spill] sm:$0xff] %v6391_v52  ;;  %v2534_v27 = vmul.f32 %v6391_v52, %v6391_v52  ;;  %4375 = vmatmul.msk.f32.gmra.mxu0 %vm1216_vm1, %v395_v29  ;;  %4504 = vmatmul.msk.f32.gmra.mxu1 %vm1216_vm1, %v395_v29  ;;  %v396_v29 = vld [vmem:[%s9064_s1 + $0x280] sm:$0xff]  ;;  %v2528_v33 = vmul.f32 %v6407_v50, %v6407_v50 }
 0x295   : > { %9839 = vst [vmem:[#allocation221_spill] sm:$0xff] %v6407_v50  ;;  %v397_v50 = vld [vmem:[%s9064_s1 + $0x288] sm:$0xff] }
 0x296   : > { %2980 = vmatpush.msra.mxu3 %v2534_v27  ;;  %v6422_v27 = vadd.f32 %v1797_v6, %v5754_v61  ;;  %v6440_v6 = vadd.f32 %v6313_v58, %v6344_v22  ;;  %v6455_v58 = vpop.permute.xlu2 %944 }
 0x298   : > { %2981 = vmatpush.msra.mxu3 %v2532_v49  ;;  %9841 = vst [vmem:[#allocation223_spill] sm:$0xff] %v6422_v27  ;;  %v2526_v49 = vmul.f32 %v6414_v44, %v6414_v44  ;;  %v2522_v44 = vmul.f32 %v6430_v2, %v6430_v2  ;;  %v2520_v28 = vmul.f32 %v6440_v6, %v6440_v6 }
 0x299   : > { %v6416_v52 = vpop.f32.mrf.mxu0  ;;  %9844 = vst [vmem:[#allocation226_spill] sm:$0xff] %v6440_v6  ;;  %v2518_v2 = vmul.f32 %v6446_v10, %v6446_v10  ;;  %v6477_v6 = vpop.permute.xlu1 %1129 }
 0x29a   : > { %2982 = vmatpush.msra.mxu3 %v2530_v8  ;;  %v6436_v8 = vpop.f32.mrf.mxu1 }
 0x29b   : > { %9843 = vst [vmem:[#allocation225_spill] sm:$0xff] %v6436_v8  ;;  %2976 = vmatmul.f32.vlgmr.msra.gmra.mxu2 %v9275_v9 }
 0x29c   : > { %4376 = vmatmul.msk.f32.gmra.mxu0 %vm1216_vm1, %v396_v29  ;;  %4505 = vmatmul.msk.f32.gmra.mxu1 %vm1216_vm1, %v396_v29  ;;  %v2524_v29 = vmul.f32 %v6422_v27, %v6422_v27 }
 0x29d   : > { %2983 = vmatpush.msra.mxu3 %v2528_v33 }
 0x29f   : > { %2984 = vmatpush.msra.mxu3 %v2526_v49  ;;  %v6459_v49 = vadd.f32 %v6291_v63, %v6362_v14  ;;  %v6473_v63 = vadd.f32 %v6273_v15, %v5840_v32  ;;  %v398_v15 = vld [vmem:[%s9064_s1 + $0x290] sm:$0xff]  ;;  %v403_v32 = vld [vmem:[%s9064_s1 + $0x2b8] sm:$0xff] }
 0x2a1   : > { %2985 = vmatpush.msra.mxu3 %v2524_v29  ;;  %v6448_v33 = vpop.f32.mrf.mxu0  ;;  %9846 = vst [vmem:[#allocation228_spill] sm:$0xff] %v6459_v49  ;;  %v6467_v29 = vadd.f32 %v6282_v3, %v6358_v62  ;;  %v6483_v3 = vadd.f32 %v6258_v7, %v5650_v60  ;;  %v6498_v7 = vpop.permute.xlu2 %1209 }
 0x2a2   : > { %9848 = vst [vmem:[#allocation230_spill] sm:$0xff] %v6473_v63  ;;  %v6479_v27 = vpop.f32.mrf.mxu1 }
 0x2a3   : > { %2986 = vmatpush.msra.mxu3 %v2522_v44  ;;  %9847 = vst [vmem:[#allocation229_spill] sm:$0xff] %v6467_v29  ;;  %v2516_v44 = vmul.f32 %v6459_v49, %v6459_v49  ;;  %v2512_v49 = vmul.f32 %v6473_v63, %v6473_v63 }
 0x2a4   : > { %4377 = vmatmul.msk.f32.gmra.mxu0 %vm1216_vm1, %v397_v50  ;;  %4506 = vmatmul.msk.f32.gmra.mxu1 %vm1216_vm1, %v397_v50  ;;  %9849 = vst [vmem:[#allocation231_spill] sm:$0xff] %v6479_v27 }
 0x2a5   : > { %2987 = vmatpush.msra.mxu3 %v2520_v28  ;;  %9850 = vst [vmem:[#allocation232_spill] sm:$0xff] %v6483_v3  ;;  %v2514_v28 = vmul.f32 %v6467_v29, %v6467_v29  ;;  %v2510_v29 = vmul.f32 %v6483_v3, %v6483_v3 }
 0x2a6   : > { %9852 = vst [vmem:[#allocation234_spill] sm:$0xff] %v6498_v7  ;;  %v408_v7 = vld [vmem:[%s9064_s1 + $0x2e0] sm:$0xff] }
 0x2a7   : > { %2988 = vmatpush.msra.mxu3 %v2518_v2  ;;  %v6494_v2 = vadd.f32 %v6225_v13, %v6305_v43  ;;  %v6510_v13 = vadd.f32 %v6151_v11, %v5602_v35 }
 0x2a9   : > { %2989 = vmatpush.msra.mxu3 %v2516_v44  ;;  %v6485_v50 = vpop.f32.mrf.mxu0  ;;  %9851 = vst [vmem:[#allocation233_spill] sm:$0xff] %v6494_v2  ;;  %v6504_v44 = vadd.f32 %v6188_v23, %v6309_v47  ;;  %v399_v23 = vld [vmem:[%s9064_s1 + $0x298] sm:$0xff]  ;;  %v2504_v11 = vmul.f32 %v6510_v13, %v6510_v13 }
 0x2aa   : > { %9854 = vst [vmem:[#allocation236_spill] sm:$0xff] %v6510_v13  ;;  %v6523_v3 = vpop.f32.mrf.mxu1 }
 0x2ab   : > { %2990 = vmatpush.msra.mxu3 %v2514_v28  ;;  %9853 = vst [vmem:[#allocation235_spill] sm:$0xff] %v6504_v44  ;;  %v2508_v28 = vmul.f32 %v6494_v2, %v6494_v2 }
 0x2ac   : > { %4378 = vmatmul.msk.f32.gmra.mxu0 %vm1216_vm1, %v398_v15  ;;  %4507 = vmatmul.msk.f32.gmra.mxu1 %vm1216_vm1, %v398_v15  ;;  %v2506_v15 = vmul.f32 %v6504_v44, %v6504_v44  ;;  %9855 = vst [vmem:[#allocation237_spill] sm:$0xff] %v6523_v3  ;;  %v400_v44 = vld [vmem:[%s9064_s1 + $0x2a0] sm:$0xff] }
 0x2ad   : > { %2991 = vmatpush.msra.mxu3 %v2512_v49  ;;  %v6521_v49 = vpop.permute.xlu1 %1124 }
 0x2af   : > { %2992 = vmatpush.msra.mxu3 %v2510_v29  ;;  %v6529_v29 = vpop.permute.xlu2 %1119 }
 0x2b1   : > { %2993 = vmatpush.msra.mxu3 %v2508_v28  ;;  %v6514_v63 = vpop.f32.mrf.mxu0 }
 0x2b2   : > { %v6538_v10 = vpop.f32.mrf.mxu1 }
 0x2b3   : > { %2994 = vmatpush.msra.mxu3 %v2506_v15  ;;  %9857 = vst [vmem:[#allocation239_spill] sm:$0xff] %v6538_v10 }
 0x2b4   : > { %4379 = vmatmul.msk.f32.gmra.mxu0 %vm1216_vm1, %v399_v23  ;;  %4508 = vmatmul.msk.f32.gmra.mxu1 %vm1216_vm1, %v399_v23 }
 0x2b5   : > { %2995 = vmatpush.msra.mxu3 %v2504_v11  ;;  %v6536_v2 = vpop.permute.xlu1 %1024  ;;  %v401_v11 = vld [vmem:[%s9064_s1 + $0x2a8] sm:$0xff] }
 0x2b6   : > { %9856 = vst [vmem:[#allocation238_spill] sm:$0xff] %v6536_v2  ;;  %2996 = vmatmul.f32.vlgmr.msra.gmra.mxu3 %v9275_v9  ;;  %v410_v9 = vld [vmem:[%s9064_s1 + $0x2f0] sm:$0xff] }
 0x2b7   : > { %v6542_v15 = vpop.permute.xlu2 %1019 }
 0x2b8   : > { %9858 = vst [vmem:[#allocation240_spill] sm:$0xff] %v6542_v15 }
 0x2b9   : > { %v6531_v28 = vpop.f32.mrf.mxu0 }
 0x2ba   : > { %v6553_v19 = vpop.f32.mrf.mxu1 }
 0x2bb   : > { %9859 = vst [vmem:[#allocation241_spill] sm:$0xff] %v6553_v19 }
 0x2bc   : > { %4380 = vmatmul.msk.f32.gmra.mxu0 %vm1216_vm1, %v400_v44  ;;  %4509 = vmatmul.msk.f32.gmra.mxu1 %vm1216_vm1, %v400_v44  ;;  %v402_v44 = vld [vmem:[%s9064_s1 + $0x2b0] sm:$0xff] }
 0x2bd   : > { %v6551_v13 = vpop.permute.xlu1 %934 }
 0x2bf   : > { %v6560_v47 = vpop.permute.xlu2 %929 }
 0x2c1   : > { %v6544_v23 = vpop.f32.mrf.mxu0 }
 0x2c2   : > { %v6566_v60 = vpop.f32.mrf.mxu1 }
 0x2c3   : > { %9861 = vst [vmem:[#allocation243_spill] sm:$0xff] %v6566_v60 }
 0x2c4   : > { %4381 = vmatmul.msk.f32.gmra.mxu0 %vm1216_vm1, %v401_v11  ;;  %4510 = vmatmul.msk.f32.gmra.mxu1 %vm1216_vm1, %v401_v11 }
 0x2c5   : > { %v6564_v43 = vpop.permute.xlu1 %1199 }
 0x2c6   : > { %9860 = vst [vmem:[#allocation242_spill] sm:$0xff] %v6564_v43 }
 0x2c7   : > { %v6573_v62 = vpop.permute.xlu2 %1194 }
 0x2c8   : > { %9862 = vst [vmem:[#allocation244_spill] sm:$0xff] %v6573_v62 }
 0x2c9   : > { %v6555_v35 = vpop.f32.mrf.mxu0 }
 0x2ca   : > { %v6584_v22 = vpop.f32.mrf.mxu1 }
 0x2cb   : > { %9864 = vst [vmem:[#allocation246_spill] sm:$0xff] %v6584_v22 }
 0x2cc   : > { %4382 = vmatmul.msk.f32.gmra.mxu0 %vm1216_vm1, %v402_v44  ;;  %4511 = vmatmul.msk.f32.gmra.mxu1 %vm1216_vm1, %v402_v44  ;;  %v404_v44 = vld [vmem:[%s9064_s1 + $0x2c0] sm:$0xff] }
 0x2cd   : > { %v6582_v45 = vpop.permute.xlu1 %1109 }
 0x2ce   : > { %9863 = vst [vmem:[#allocation245_spill] sm:$0xff] %v6582_v45 }
 0x2cf   : > { %v6588_v51 = vpop.permute.xlu2 %1104 }
 0x2d0   : > { %9865 = vst [vmem:[#allocation247_spill] sm:$0xff] %v6588_v51 }
 0x2d1   : > { %v6568_v11 = vpop.f32.mrf.mxu0 }
 0x2d2   : > { %v6597_v30 = vpop.f32.mrf.mxu1 }
 0x2d3   : > { %9867 = vst [vmem:[#allocation249_spill] sm:$0xff] %v6597_v30 }
 0x2d4   : > { %4383 = vmatmul.msk.f32.gmra.mxu0 %vm1216_vm1, %v403_v32  ;;  %4512 = vmatmul.msk.f32.gmra.mxu1 %vm1216_vm1, %v403_v32  ;;  %v405_v32 = vld [vmem:[%s9064_s1 + $0x2c8] sm:$0xff] }
 0x2d5   : > { %v6595_v8 = vpop.permute.xlu1 %1009 }
 0x2d6   : > { %9866 = vst [vmem:[#allocation248_spill] sm:$0xff] %v6595_v8 }
 0x2d7   : > { %v6601_v27 = vpop.permute.xlu2 %1004 }
 0x2d8   : > { %9868 = vst [vmem:[#allocation250_spill] sm:$0xff] %v6601_v27 }
 0x2d9   : > { %v6577_v14 = vpop.f32.mrf.mxu0 }
 0x2da   : > { %v6610_v25 = vpop.f32.mrf.mxu1 }
 0x2db   : > { %9869 = vst [vmem:[#allocation251_spill] sm:$0xff] %v6610_v25 }
 0x2dc   : > { %4384 = vmatmul.msk.f32.gmra.mxu0 %vm1216_vm1, %v404_v44  ;;  %4513 = vmatmul.msk.f32.gmra.mxu1 %vm1216_vm1, %v404_v44  ;;  %v406_v44 = vld [vmem:[%s9064_s1 + $0x2d0] sm:$0xff] }
 0x2dd   : > { %v6608_v3 = vpop.permute.xlu1 %919 }
 0x2df   : > { %v6615_v19 = vpop.permute.xlu2 %914 }
 0x2e1   : > { %v6590_v61 = vpop.f32.mrf.mxu0 }
 0x2e2   : > { %v6623_v62 = vpop.f32.mrf.mxu1 }
 0x2e3   : > { %9871 = vst [vmem:[#allocation253_spill] sm:$0xff] %v6623_v62 }
 0x2e4   : > { %4385 = vmatmul.msk.f32.gmra.mxu0 %vm1216_vm1, %v405_v32  ;;  %4514 = vmatmul.msk.f32.gmra.mxu1 %vm1216_vm1, %v405_v32  ;;  %v407_v32 = vld [vmem:[%s9064_s1 + $0x2d8] sm:$0xff] }
 0x2e7   : > { %v6628_v60 = vpop.permute.xlu2 %1179 }
 0x2e8   : > { %9872 = vst [vmem:[#allocation254_spill] sm:$0xff] %v6628_v60 }
 0x2e9   : > { %v1845_v38 = vpop.f32.mrf.mxu0 }
 0x2ea   : > { %v6639_v30 = vpop.f32.mrf.mxu1 }
 0x2eb   : > { %9874 = vst [vmem:[#allocation256_spill] sm:$0xff] %v6639_v30 }
 0x2ec   : > { %4386 = vmatmul.msk.f32.gmra.mxu0 %vm1216_vm1, %v406_v44  ;;  %4515 = vmatmul.msk.f32.gmra.mxu1 %vm1216_vm1, %v406_v44  ;;  %v6621_v44 = vpop.permute.xlu1 %1184 }
 0x2ed   : > { %9870 = vst [vmem:[#allocation252_spill] sm:$0xff] %v6621_v44  ;;  %v409_v44 = vld [vmem:[%s9064_s1 + $0x2e8] sm:$0xff] }
 0x2ef   : > { %v6643_v60 = vpop.permute.xlu2 %1089 }
 0x2f0   : > { %9875 = vst [vmem:[#allocation257_spill] sm:$0xff] %v6643_v60 }
 0x2f1   : > { %v1848_v10 = vpop.f32.mrf.mxu0 }
 0x2f2   : > { %v6650_v27 = vpop.f32.mrf.mxu1 }
 0x2f3   : > { %9877 = vst [vmem:[#allocation259_spill] sm:$0xff] %v6650_v27  ;;  %v4600_v27 = vld [vmem:[%s9064_s1 + $0x2f8] sm:$0xff] }
 0x2f4   : > { %4387 = vmatmul.msk.f32.gmra.mxu0 %vm1216_vm1, %v407_v32  ;;  %4516 = vmatmul.msk.f32.gmra.mxu1 %vm1216_vm1, %v407_v32  ;;  %v6637_v22 = vpop.permute.xlu1 %1094 }
 0x2f5   : > { %9873 = vst [vmem:[#allocation255_spill] sm:$0xff] %v6637_v22 }
 0x2f7   : > { %v6654_v62 = vpop.permute.xlu2 %989 }
 0x2f8   : > { %9878 = vst [vmem:[#allocation260_spill] sm:$0xff] %v6654_v62  ;;  %v6681_v62 = vadd.f32 %v1848_v10, %v6409_v24 }
 0x2f9   : > { %v1851_v43 = vpop.f32.mrf.mxu0 }
 0x2fa   : > { %9884 = vst [vmem:[#allocation266_spill] sm:$0xff] %v6681_v62  ;;  %v2558_v10 = vmul.f32 %v6681_v62, %v6681_v62 }
 0x2fc   : > { %4388 = vmatmul.msk.f32.gmra.mxu0 %vm1216_vm1, %v408_v7  ;;  %4517 = vmatmul.msk.f32.gmra.mxu1 %vm1216_vm1, %v408_v7  ;;  %v6648_v25 = vpop.permute.xlu1 %994 }
 0x2fd   : > { %9876 = vst [vmem:[#allocation258_spill] sm:$0xff] %v6648_v25 }
 0x301   : > { %v1854_v32 = vpop.f32.mrf.mxu0 }
 0x302   : > { %v6663_v15 = vadd.f32 %v1854_v32, %v6393_v31  ;;  %v6678_v32 = vpop.permute.xlu0 %1084 }
 0x303   : > { %9883 = vst [vmem:[#allocation265_spill] sm:$0xff] %v6678_v32 }
 0x304   : > { %4389 = vmatmul.msk.f32.gmra.mxu0 %vm1216_vm1, %v409_v44  ;;  %4518 = vmatmul.msk.f32.gmra.mxu1 %vm1216_vm1, %v409_v44  ;;  %9881 = vst [vmem:[#allocation263_spill] sm:$0xff] %v6663_v15 }
 0x309   : > { %v1857_v7 = vpop.f32.mrf.mxu0 }
 0x30a   : > { %v6657_v44 = vadd.f32 %v1857_v7, %v6369_v42  ;;  %v6674_v7 = vadd.f32 %v1851_v43, %v5898_v21  ;;  %v6690_v43 = vadd.f32 %v1845_v38, %v6455_v58  ;;  %v6716_v62 = vpop.permute.xlu0 %984 }
 0x30c   : > { %4390 = vmatmul.msk.f32.gmra.mxu0 %vm1216_vm1, %v410_v9  ;;  %4519 = vmatmul.msk.f32.gmra.mxu1 %vm1216_vm1, %v410_v9  ;;  %9879 = vst [vmem:[#allocation261_spill] sm:$0xff] %v6657_v44  ;;  %v6671_v9 = vpop.permute.xlu1 %904  ;;  %v2556_v38 = vmul.f32 %v6690_v43, %v6690_v43 }
 0x30d   : > { %9882 = vst [vmem:[#allocation264_spill] sm:$0xff] %v6674_v7 }
 0x30e   : > { %9885 = vst [vmem:[#allocation267_spill] sm:$0xff] %v6690_v43 }
 0x311   : > { %v1860_v8 = vpop.f32.mrf.mxu0 }
 0x312   : > { %v6660_v30 = vadd.f32 %v1860_v8, %v6376_v39  ;;  %v2564_v8 = vmul.f32 %v6657_v44, %v6657_v44  ;;  %v6696_v44 = vadd.f32 %v6590_v61, %v5985_v36 }
 0x314   : > { %9880 = vst [vmem:[#allocation262_spill] sm:$0xff] %v6660_v30  ;;  %v2566_v25 = vmul.f32 %v6660_v30, %v6660_v30  ;;  %4391 = vmatmul.msk.f32.gmra.mxu0 %vm1216_vm1, %v4600_v27  ;;  %v2562_v30 = vmul.f32 %v6663_v15, %v6663_v15  ;;  %v6687_v27 = vpop.permute.xlu2 %899  ;;  %v2554_v61 = vmul.f32 %v6696_v44, %v6696_v44 }
 0x315   : > { %9886 = vst [vmem:[#allocation268_spill] sm:$0xff] %v6696_v44  ;;  %v6734_v44 = vadd.f32 %v6531_v28, %v6615_v19  ;;  %v6752_v28 = vadd.f32 %v6485_v50, %v6671_v9 }
 0x316   : > { %3000 = vmatpush.msrb.mxu2 %v2566_v25  ;;  %v2560_v25 = vmul.f32 %v6674_v7, %v6674_v7  ;;  %v6710_v7 = vadd.f32 %v6568_v11, %v6560_v47  ;;  %v6728_v11 = vadd.f32 %v6544_v23, %v6608_v3 }
 0x317   : > { %9893 = vst [vmem:[#allocation275_spill] sm:$0xff] %v6734_v44 }
 0x318   : > { %3001 = vmatpush.msrb.mxu2 %v2564_v8  ;;  %v6702_v8 = vadd.f32 %v6577_v14, %v6551_v13  ;;  %9889 = vst [vmem:[#allocation271_spill] sm:$0xff] %v6710_v7  ;;  %v6720_v14 = vadd.f32 %v6555_v35, %v6081_v5  ;;  %v2546_v23 = vmul.f32 %v6728_v11, %v6728_v11 }
 0x319   : > { %v6685_v2 = vpop.f32.mrf.mxu0  ;;  %9892 = vst [vmem:[#allocation274_spill] sm:$0xff] %v6728_v11 }
 0x31a   : > { %3002 = vmatpush.msrb.mxu2 %v2562_v30  ;;  %9887 = vst [vmem:[#allocation269_spill] sm:$0xff] %v6702_v8  ;;  %v6706_v30 = vpop.permute.xlu1 %1169  ;;  %v2548_v35 = vmul.f32 %v6720_v14, %v6720_v14 }
 0x31b   : > { %9888 = vst [vmem:[#allocation270_spill] sm:$0xff] %v6706_v30 }
 0x31c   : > { %3003 = vmatpush.msrb.mxu2 %v2560_v25  ;;  %9890 = vst [vmem:[#allocation272_spill] sm:$0xff] %v6720_v14  ;;  %v6724_v43 = vpop.permute.xlu2 %1164  ;;  %v6756_v14 = vpop.permute.xlu0 %894 }
 0x31d   : > { %9891 = vst [vmem:[#allocation273_spill] sm:$0xff] %v6724_v43  ;;  %v6768_v50 = vadd.f32 %v6416_v52, %v6756_v14 }
 0x31e   : > { %3004 = vmatpush.msrb.mxu2 %v2558_v10  ;;  %v2552_v10 = vmul.f32 %v6702_v8, %v6702_v8  ;;  %v6742_v8 = vadd.f32 %v6514_v63, %v6219_v4  ;;  %9896 = vst [vmem:[#allocation278_spill] sm:$0xff] %v6752_v28  ;;  %v6760_v63 = vadd.f32 %v6448_v33, %v6687_v27 }
 0x31f   : > { %9899 = vst [vmem:[#allocation281_spill] sm:$0xff] %v6768_v50 }
 0x320   : > { %3005 = vmatpush.msrb.mxu2 %v2556_v38  ;;  %v2550_v38 = vmul.f32 %v6710_v7, %v6710_v7  ;;  %9894 = vst [vmem:[#allocation276_spill] sm:$0xff] %v6742_v8  ;;  %v2538_v33 = vmul.f32 %v6760_v63, %v6760_v63 }
 0x321   : > { %v6714_v25 = vpop.f32.mrf.mxu0  ;;  %9897 = vst [vmem:[#allocation279_spill] sm:$0xff] %v6760_v63 }
 0x322   : > { %3006 = vmatpush.msrb.mxu2 %v2554_v61  ;;  %v6738_v61 = vpop.f32.mrf.mxu1  ;;  %v6748_v7 = vpop.permute.xlu1 %1079 }
 0x323   : > { %9895 = vst [vmem:[#allocation277_spill] sm:$0xff] %v6748_v7 }
 0x324   : > { %3007 = vmatpush.msrb.mxu2 %v2552_v10  ;;  %v6764_v11 = vpop.permute.xlu2 %1074 }
 0x325   : > { %9898 = vst [vmem:[#allocation280_spill] sm:$0xff] %v6764_v11 }
 0x326   : > { %3008 = vmatpush.msrb.mxu2 %v2550_v38  ;;  %v2544_v38 = vmul.f32 %v6734_v44, %v6734_v44  ;;  %v6774_v44 = vadd.f32 %v6027_v18, %v6477_v6  ;;  %v6790_v18 = vadd.f32 %v5963_v0, %v6529_v29  ;;  %v6807_v0 = vadd.f32 %v5905_v46, %v6582_v45 }
 0x327   : > { %v6823_v46 = vadd.f32 %v5849_v59, %v6129_v41  ;;  %v6839_v59 = vadd.f32 %v5769_v16, %v6643_v60  ;;  %v6857_v16 = vadd.f32 %v5642_v53, %v6748_v7 }
 0x328   : > { %3009 = vmatpush.msrb.mxu2 %v2548_v35  ;;  %v2542_v35 = vmul.f32 %v6742_v8, %v6742_v8  ;;  %9900 = vst [vmem:[#allocation282_spill] sm:$0xff] %v6774_v44 }
 0x329   : > { %v6746_v10 = vpop.f32.mrf.mxu0  ;;  %9902 = vst [vmem:[#allocation284_spill] sm:$0xff] %v6790_v18  ;;  %v2610_v53 = vmul.f32 %v6857_v16, %v6857_v16 }
 0x32a   : > { %3010 = vmatpush.msrb.mxu2 %v2546_v23  ;;  %v2540_v23 = vmul.f32 %v6752_v28, %v6752_v28  ;;  %v6782_v8 = vpop.f32.mrf.mxu1  ;;  %v6794_v63 = vpop.permute.xlu1 %979  ;;  %9906 = vst [vmem:[#allocation287_spill] sm:$0xff] %v6807_v0 }
 0x32b   : > { %v6802_v28 = vpop.permute.xlu0 %1159  ;;  %9909 = vst [vmem:[#allocation290_spill] sm:$0xff] %v6823_v46 }
 0x32c   : > { %3011 = vmatpush.msrb.mxu2 %v2544_v38  ;;  %v6780_v38 = vadd.f32 %v5994_v54, %v6521_v49  ;;  %v6798_v54 = vadd.f32 %v5934_v17, %v6039_v55  ;;  %9904 = vst [vmem:[#allocation286_spill] sm:$0xff] %v6802_v28  ;;  %v6815_v17 = vadd.f32 %v5878_v37, %v6588_v51 }
 0x32d   : > { %v6831_v37 = vadd.f32 %v5818_v26, %v6637_v22  ;;  %9911 = vst [vmem:[#allocation292_spill] sm:$0xff] %v6839_v59  ;;  %v6847_v26 = vadd.f32 %v5703_v1, %v6678_v32  ;;  %v6863_v1 = vadd.f32 %v5598_v34, %v6764_v11  ;;  %v9945_v11 = vld [vmem:[#allocation12_spill] sm:$0xff] }
 0x32e   : > { %3012 = vmatpush.msrb.mxu2 %v2542_v35  ;;  %9901 = vst [vmem:[#allocation283_spill] sm:$0xff] %v6780_v38  ;;  %v2536_v35 = vmul.f32 %v6768_v50, %v6768_v50  ;;  %v9905_v50 = vmov 1.0  }
 0x32f   : > { %9903 = vst [vmem:[#allocation285_spill] sm:$0xff] %v6798_v54 }
 0x330   : > { %3013 = vmatpush.msrb.mxu2 %v2540_v23  ;;  %v2630_v23 = vmul.f32 %v6774_v44, %v6774_v44  ;;  %v6811_v44 = vpop.permute.xlu2 %1069  ;;  %9908 = vst [vmem:[#allocation289_spill] sm:$0xff] %v6815_v17 }
 0x331   : > { %v6784_v52 = vpop.f32.mrf.mxu0  ;;  %9907 = vst [vmem:[#allocation288_spill] sm:$0xff] %v6811_v44 }
 0x332   : > { %3014 = vmatpush.msrb.mxu2 %v2538_v33  ;;  %v2628_v33 = vmul.f32 %v6780_v38, %v6780_v38  ;;  %v2624_v38 = vmul.f32 %v6798_v54, %v6798_v54  ;;  %9910 = vst [vmem:[#allocation291_spill] sm:$0xff] %v6831_v37  ;;  %v6835_v15 = vpop.permute.xlu1 %974 }
 0x333   : > { %v6843_v54 = vpop.permute.xlu0 %1154  ;;  %9913 = vst [vmem:[#allocation294_spill] sm:$0xff] %v6847_v26 }
 0x334   : > { %3015 = vmatpush.msrb.mxu2 %v2536_v35  ;;  %v2626_v35 = vmul.f32 %v6790_v18, %v6790_v18  ;;  %v2622_v18 = vmul.f32 %v6807_v0, %v6807_v0  ;;  %9912 = vst [vmem:[#allocation293_spill] sm:$0xff] %v6843_v54 }
 0x335   : > { %3016 = vmatmul.f32.vlgmr.msrb.gmra.mxu2 %v9905_v50  ;;  %9915 = vst [vmem:[#allocation296_spill] sm:$0xff] %v6857_v16 }
 0x336   : > { %3040 = vmatpush.msra.mxu2 %v2630_v23  ;;  %9916 = vst [vmem:[#allocation297_spill] sm:$0xff] %v6863_v1 }
 0x338   : > { %3041 = vmatpush.msra.mxu2 %v2628_v33  ;;  %v6825_v33 = vpop.f32.mrf.mxu1  ;;  %v6853_v0 = vpop.permute.xlu2 %1149 }
 0x339   : > { %v6817_v23 = vpop.f32.mrf.mxu0  ;;  %9914 = vst [vmem:[#allocation295_spill] sm:$0xff] %v6853_v0 }
 0x33a   : > { %3042 = vmatpush.msra.mxu2 %v2626_v35  ;;  %v2620_v35 = vmul.f32 %v6815_v17, %v6815_v17  ;;  %v2616_v17 = vmul.f32 %v6831_v37, %v6831_v37  ;;  %v6871_v37 = vadd.f32 %v5571_v56, %v6811_v44  ;;  %v9921_v56 = vld [vmem:[#allocation76_spill] sm:$0xff] }
 0x33c   : > { %3043 = vmatpush.msra.mxu2 %v2624_v38  ;;  %v2618_v38 = vmul.f32 %v6823_v46, %v6823_v46  ;;  %9917 = vst [vmem:[#allocation298_spill] sm:$0xff] %v6871_v37  ;;  %v2606_v16 = vmul.f32 %v6871_v37, %v6871_v37  ;;  %v9929_v37 = vld [vmem:[#allocation31_spill] sm:$0xff] }
 0x33e   : > { %3044 = vmatpush.msra.mxu2 %v2622_v18 }
 0x340   : > { %3045 = vmatpush.msra.mxu2 %v2620_v35  ;;  %v2614_v35 = vmul.f32 %v6839_v59, %v6839_v59  ;;  %v6865_v46 = vpop.f32.mrf.mxu1  ;;  %v6893_v0 = vpop.permute.xlu2 %1054 }
 0x341   : > { %v6849_v18 = vpop.f32.mrf.mxu0  ;;  %9923 = vst [vmem:[#allocation302_spill] sm:$0xff] %v6893_v0 }
 0x342   : > { %3046 = vmatpush.msra.mxu2 %v2618_v38  ;;  %v2612_v38 = vmul.f32 %v6847_v26, %v6847_v26  ;;  %v6885_v26 = vpop.permute.xlu0 %1059 }
 0x343   : > { %9920 = vst [vmem:[#allocation301_spill] sm:$0xff] %v6885_v26 }
 0x344   : > { %3047 = vmatpush.msra.mxu2 %v2616_v17  ;;  %v6875_v17 = vpop.permute.xlu1 %1064 }
 0x345   : > { %9918 = vst [vmem:[#allocation299_spill] sm:$0xff] %v6875_v17  ;;  %v6879_v34 = vadd.f32 %v5532_v40, %v6875_v17  ;;  %v9924_v40 = vld [vmem:[#allocation71_spill] sm:$0xff]  ;;  %v9927_v17 = vld [vmem:[#allocation34_spill] sm:$0xff] }
 0x346   : > { %3048 = vmatpush.msra.mxu2 %v2614_v35  ;;  %v2608_v35 = vmul.f32 %v6863_v1, %v6863_v1  ;;  %v6897_v54 = vadd.f32 %v9924_v40, %v6893_v0  ;;  %v9926_v1 = vld [vmem:[#allocation32_spill] sm:$0xff]  ;;  %v9933_v0 = vld [vmem:[#allocation26_spill] sm:$0xff] }
 0x347   : > { %9919 = vst [vmem:[#allocation300_spill] sm:$0xff] %v6879_v34  ;;  %v6903_v28 = vadd.f32 %v9927_v17, %v9926_v1 }
 0x348   : > { %3049 = vmatpush.msra.mxu2 %v2612_v38  ;;  %v6889_v38 = vadd.f32 %v9921_v56, %v6885_v26  ;;  %9925 = vst [vmem:[#allocation71_spill] sm:$0xff] %v6897_v54  ;;  %v6905_v56 = vpop.f32.mrf.mxu1  ;;  %v9930_v26 = vld [vmem:[#allocation30_spill] sm:$0xff] }
 0x349   : > { %v6881_v59 = vpop.f32.mrf.mxu0  ;;  %9928 = vst [vmem:[#allocation32_spill] sm:$0xff] %v6903_v28  ;;  %v6911_v44 = vadd.f32 %v9930_v26, %v9929_v37  ;;  %v2439_v17 = vmul.f32 %v6903_v28, %v6903_v28  ;;  %v9938_v26 = vld [vmem:[#allocation27_spill] sm:$0xff] }
 0x34a   : > { %3050 = vmatpush.msra.mxu2 %v2610_v53  ;;  %9922 = vst [vmem:[#allocation76_spill] sm:$0xff] %v6889_v38  ;;  %v2604_v53 = vmul.f32 %v6879_v34, %v6879_v34  ;;  %v9932_v34 = vld [vmem:[#allocation33_spill] sm:$0xff] }
 0x34b   : > { %9931 = vst [vmem:[#allocation34_spill] sm:$0xff] %v6911_v44  ;;  %v6919_v1 = vadd.f32 %v9933_v0, %v9932_v34  ;;  %v2437_v37 = vmul.f32 %v6911_v44, %v6911_v44  ;;  %v9941_v34 = vld [vmem:[#allocation29_spill] sm:$0xff]  ;;  %v9944_v44 = vld [vmem:[#allocation24_spill] sm:$0xff] }
 0x34c   : > { %3051 = vmatpush.msra.mxu2 %v2608_v35  ;;  %v2602_v35 = vmul.f32 %v6889_v38, %v6889_v38  ;;  %v9936_v38 = vld [vmem:[#allocation22_spill] sm:$0xff] }
 0x34d   : > { %9934 = vst [vmem:[#allocation31_spill] sm:$0xff] %v6919_v1  ;;  %v2435_v0 = vmul.f32 %v6919_v1, %v6919_v1  ;;  %v9948_v1 = vld [vmem:[#allocation11_spill] sm:$0xff] }
 0x34e   : > { %3052 = vmatpush.msra.mxu2 %v2606_v16  ;;  %v2600_v16 = vmul.f32 %v6897_v54, %v6897_v54 }
 0x350   : > { %3053 = vmatpush.msra.mxu2 %v2604_v53  ;;  %v9935_v53 = vld [vmem:[#allocation28_spill] sm:$0xff] }
 0x351   : > { %v6913_v40 = vpop.f32.mrf.mxu0  ;;  %v6925_v43 = vadd.f32 %v9936_v38, %v9935_v53 }
 0x352   : > { %3054 = vmatpush.msra.mxu2 %v2602_v35  ;;  %v9939_v35 = vld [vmem:[#allocation18_spill] sm:$0xff] }
 0x353   : > { %9937 = vst [vmem:[#allocation30_spill] sm:$0xff] %v6925_v43  ;;  %v6932_v54 = vadd.f32 %v9939_v35, %v9938_v26  ;;  %v2433_v38 = vmul.f32 %v6925_v43, %v6925_v43  ;;  %v6948_v26 = vadd.f32 %v9945_v11, %v9944_v44  ;;  %v9947_v35 = vld [vmem:[#allocation23_spill] sm:$0xff]  ;;  %v9951_v43 = vld [vmem:[#allocation10_spill] sm:$0xff]  ;;  %v9953_v11 = vld [vmem:[#allocation20_spill] sm:$0xff] }
 0x354   : > { %3055 = vmatpush.msra.mxu2 %v2600_v16  ;;  %v9942_v16 = vld [vmem:[#allocation14_spill] sm:$0xff] }
 0x355   : > { %3056 = vmatmul.f32.vlgmr.msra.gmra.mxu2 %v9905_v50  ;;  %9940 = vst [vmem:[#allocation33_spill] sm:$0xff] %v6932_v54  ;;  %v6938_v28 = vadd.f32 %v9942_v16, %v9941_v34  ;;  %v6954_v34 = vadd.f32 %v9948_v1, %v9947_v35  ;;  %v9950_v16 = vld [vmem:[#allocation25_spill] sm:$0xff]  ;;  %v2427_v44 = vmul.f32 %v6948_v26, %v6948_v26  ;;  %v9956_v35 = vld [vmem:[#allocation19_spill] sm:$0xff] }
 0x356   : > { %3080 = vmatpush.msrb.mxu2 %v2439_v17  ;;  %v6942_v17 = vpop.f32.mrf.mxu1  ;;  %9946 = vst [vmem:[#allocation28_spill] sm:$0xff] %v6948_v26  ;;  %v6960_v30 = vadd.f32 %v9951_v43, %v9950_v16  ;;  %v9959_v16 = vld [vmem:[#allocation15_spill] sm:$0xff] }
 0x357   : > { %9943 = vst [vmem:[#allocation26_spill] sm:$0xff] %v6938_v28  ;;  %v2425_v1 = vmul.f32 %v6954_v34, %v6954_v34  ;;  %v9960_v26 = vld [vmem:[#allocation7_spill] sm:$0xff] }
 0x358   : > { %3081 = vmatpush.msrb.mxu2 %v2437_v37  ;;  %v2431_v37 = vmul.f32 %v6932_v54, %v6932_v54  ;;  %9949 = vst [vmem:[#allocation22_spill] sm:$0xff] %v6954_v34  ;;  %v2423_v43 = vmul.f32 %v6960_v30, %v6960_v30  ;;  %v9963_v34 = vld [vmem:[#allocation6_spill] sm:$0xff] }
 0x359   : > { %v6944_v53 = vpop.f32.mrf.mxu0  ;;  %9952 = vst [vmem:[#allocation27_spill] sm:$0xff] %v6960_v30 }
 0x35a   : > { %3082 = vmatpush.msrb.mxu2 %v2435_v0  ;;  %v2429_v0 = vmul.f32 %v6938_v28, %v6938_v28  ;;  %v9957_v28 = vld [vmem:[#allocation8_spill] sm:$0xff] }
 0x35b   : > { %v6974_v54 = vadd.f32 %v9957_v28, %v9956_v35  ;;  %v9966_v35 = vld [vmem:[#allocation5_spill] sm:$0xff] }
 0x35c   : > { %3083 = vmatpush.msrb.mxu2 %v2433_v38  ;;  %v9954_v38 = vld [vmem:[#allocation9_spill] sm:$0xff] }
 0x35d   : > { %v6966_v7 = vadd.f32 %v9954_v38, %v9953_v11  ;;  %9958 = vst [vmem:[#allocation29_spill] sm:$0xff] %v6974_v54  ;;  %v6982_v11 = vadd.f32 %v9960_v26, %v9959_v16  ;;  %v9962_v38 = vld [vmem:[#allocation21_spill] sm:$0xff]  ;;  %v2419_v28 = vmul.f32 %v6974_v54, %v6974_v54 }
 0x35e   : > { %3084 = vmatpush.msrb.mxu2 %v2431_v37  ;;  %v6988_v32 = vadd.f32 %v9963_v34, %v9962_v38  ;;  %v9968_v16 = vld [vmem:[#allocation17_spill] sm:$0xff]  ;;  %v9972_v38 = vld [vmem:[#allocation3_spill] sm:$0xff] }
 0x35f   : > { %9955 = vst [vmem:[#allocation18_spill] sm:$0xff] %v6966_v7  ;;  %v2417_v26 = vmul.f32 %v6982_v11, %v6982_v11 }
 0x360   : > { %3085 = vmatpush.msrb.mxu2 %v2429_v0  ;;  %v6978_v0 = vpop.f32.mrf.mxu1  ;;  %9961 = vst [vmem:[#allocation14_spill] sm:$0xff] %v6982_v11  ;;  %v2415_v34 = vmul.f32 %v6988_v32, %v6988_v32  ;;  %v9983_v11 = vld [vmem:[#allocation163_spill] sm:$0xff] }
 0x361   : > { %v6970_v37 = vpop.f32.mrf.mxu0  ;;  %9964 = vst [vmem:[#allocation24_spill] sm:$0xff] %v6988_v32 }
 0x362   : > { %3086 = vmatpush.msrb.mxu2 %v2427_v44  ;;  %v2421_v44 = vmul.f32 %v6966_v7, %v6966_v7  ;;  %v9969_v7 = vld [vmem:[#allocation4_spill] sm:$0xff] }
 0x363   : > { %v7002_v60 = vadd.f32 %v9969_v7, %v9968_v16  ;;  %v9976_v16 = vld [vmem:[#allocation179_spill] sm:$0xff] }
 0x364   : > { %3087 = vmatpush.msrb.mxu2 %v2425_v1  ;;  %v9965_v1 = vld [vmem:[#allocation16_spill] sm:$0xff] }
 0x365   : > { %v6994_v30 = vadd.f32 %v9966_v35, %v9965_v1  ;;  %9970 = vst [vmem:[#allocation23_spill] sm:$0xff] %v7002_v60  ;;  %v7014_v1 = vadd.f32 %v6211_v48, %v6114_v57  ;;  %v2411_v7 = vmul.f32 %v7002_v60, %v7002_v60  ;;  %v7030_v48 = vpop.f32.mrf.mxu2  ;;  %v9982_v60 = vld [vmem:[#allocation162_spill] sm:$0xff] }
 0x366   : > { %3088 = vmatpush.msrb.mxu2 %v2423_v43  ;;  %9981 = vst [vmem:[#allocation9_spill] sm:$0xff] %v7030_v48 }
 0x367   : > { %9967 = vst [vmem:[#allocation12_spill] sm:$0xff] %v6994_v30  ;;  %v2503_v57 = vmul.f32 %v7014_v1, %v7014_v1 }
 0x368   : > { %3089 = vmatpush.msrb.mxu2 %v2421_v44  ;;  %v9971_v44 = vld [vmem:[#allocation13_spill] sm:$0xff]  ;;  %9974 = vst [vmem:[#allocation25_spill] sm:$0xff] %v7014_v1  ;;  %v2258_v35 = vpop.f32.mrf.mxu1 }
 0x369   : > { %v6998_v43 = vpop.f32.mrf.mxu0  ;;  %v7008_v54 = vadd.f32 %v9972_v38, %v9971_v44  ;;  %v9978_v44 = vld [vmem:[#allocation88_spill] sm:$0xff] }
 0x36a   : > { %3090 = vmatpush.msrb.mxu2 %v2419_v28  ;;  %v2413_v28 = vmul.f32 %v6994_v30, %v6994_v30  ;;  %v9979_v38 = vld [vmem:[#allocation168_spill] sm:$0xff] }
 0x36b   : > { %9973 = vst [vmem:[#allocation11_spill] sm:$0xff] %v7008_v54  ;;  %v7026_v30 = vadd.f32 %v9979_v38, %v9978_v44  ;;  %v9986_v44 = vld [vmem:[#allocation157_spill] sm:$0xff] }
 0x36c   : > { %3091 = vmatpush.msrb.mxu2 %v2417_v26  ;;  %v9975_v26 = vld [vmem:[#allocation167_spill] sm:$0xff] }
 0x36d   : > { %v7020_v32 = vadd.f32 %v9976_v16, %v9975_v26  ;;  %9980 = vst [vmem:[#allocation20_spill] sm:$0xff] %v7026_v30  ;;  %v7036_v26 = vadd.f32 %v9983_v11, %v9982_v60  ;;  %v9985_v16 = vld [vmem:[#allocation160_spill] sm:$0xff]  ;;  %v2499_v1 = vmul.f32 %v7026_v30, %v7026_v30 }
 0x36e   : > { %3092 = vmatpush.msrb.mxu2 %v2415_v34  ;;  %v2409_v34 = vmul.f32 %v7008_v54, %v7008_v54  ;;  %v7043_v38 = vadd.f32 %v9986_v44, %v9985_v16  ;;  %v9988_v54 = vld [vmem:[#allocation83_spill] sm:$0xff]  ;;  %v9995_v44 = vld [vmem:[#allocation140_spill] sm:$0xff] }
 0x36f   : > { %9977 = vst [vmem:[#allocation10_spill] sm:$0xff] %v7020_v32  ;;  %v2497_v11 = vmul.f32 %v7036_v26, %v7036_v26  ;;  %v9994_v16 = vld [vmem:[#allocation155_spill] sm:$0xff] }
 0x370   : > { %3093 = vmatpush.msrb.mxu2 %v2413_v28  ;;  %9984 = vst [vmem:[#allocation19_spill] sm:$0xff] %v7036_v26  ;;  %v2261_v60 = vpop.f32.mrf.mxu1  ;;  %v7061_v30 = vadd.f32 %v9995_v44, %v9994_v16  ;;  %v9999_v26 = vld [vmem:[#allocation135_spill] sm:$0xff]  ;;  %v10005_v44 = vld [vmem:[#allocation130_spill] sm:$0xff] }
 0x371   : > { %v7032_v28 = vpop.f32.mrf.mxu0  ;;  %9987 = vst [vmem:[#allocation8_spill] sm:$0xff] %v7043_v38 }
 0x372   : > { %3094 = vmatpush.msrb.mxu2 %v2411_v7  ;;  %v2501_v7 = vmul.f32 %v7020_v32, %v7020_v32  ;;  %v9992_v32 = vld [vmem:[#allocation145_spill] sm:$0xff]  ;;  %9996 = vst [vmem:[#allocation21_spill] sm:$0xff] %v7061_v30  ;;  %v2489_v16 = vmul.f32 %v7061_v30, %v7061_v30 }
 0x374   : > { %3095 = vmatpush.msrb.mxu2 %v2409_v34  ;;  %v9989_v34 = vld [vmem:[#allocation151_spill] sm:$0xff] }
 0x375   : > { %3096 = vmatmul.f32.vlgmr.msrb.gmra.mxu2 %v9905_v50  ;;  %v7049_v48 = vadd.f32 %v9989_v34, %v9988_v54  ;;  %v7063_v54 = vpop.f32.mrf.mxu2  ;;  %v9998_v34 = vld [vmem:[#allocation78_spill] sm:$0xff] }
 0x376   : > { %3120 = vmatpush.msra.mxu2 %v2503_v57  ;;  %v9991_v57 = vld [vmem:[#allocation156_spill] sm:$0xff]  ;;  %9997 = vst [vmem:[#allocation6_spill] sm:$0xff] %v7063_v54  ;;  %v7069_v51 = vadd.f32 %v9999_v26, %v9998_v34  ;;  %v10008_v34 = vld [vmem:[#allocation70_spill] sm:$0xff] }
 0x377   : > { %9990 = vst [vmem:[#allocation15_spill] sm:$0xff] %v7049_v48  ;;  %v7055_v22 = vadd.f32 %v9992_v32, %v9991_v57  ;;  %v10002_v57 = vld [vmem:[#allocation132_spill] sm:$0xff] }
 0x378   : > { %3121 = vmatpush.msra.mxu2 %v2501_v7  ;;  %v2495_v7 = vmul.f32 %v7043_v38, %v7043_v38  ;;  %10000 = vst [vmem:[#allocation16_spill] sm:$0xff] %v7069_v51 }
 0x379   : > { %9993 = vst [vmem:[#allocation7_spill] sm:$0xff] %v7055_v22  ;;  %v1899_v41 = vpop.f32.mrf.mxu0  ;;  %v2491_v32 = vmul.f32 %v7055_v22, %v7055_v22  ;;  %v10009_v22 = vld [vmem:[#allocation127_spill] sm:$0xff] }
 0x37a   : > { %3122 = vmatpush.msra.mxu2 %v2499_v1  ;;  %v2493_v1 = vmul.f32 %v7049_v48, %v7049_v48  ;;  %v7083_v48 = vpop.f32.mrf.mxu1  ;;  %v7089_v45 = vadd.f32 %v10009_v22, %v10008_v34  ;;  %v10019_v34 = vld [vmem:[#allocation111_spill] sm:$0xff] }
 0x37b   : > { %10007 = vst [vmem:[#allocation4_spill] sm:$0xff] %v7083_v48 }
 0x37c   : > { %3123 = vmatpush.msra.mxu2 %v2497_v11  ;;  %v10001_v11 = vld [vmem:[#allocation150_spill] sm:$0xff]  ;;  %10010 = vst [vmem:[#allocation13_spill] sm:$0xff] %v7089_v45  ;;  %v2481_v22 = vmul.f32 %v7089_v45, %v7089_v45 }
 0x37d   : > { %v7075_v38 = vadd.f32 %v10002_v57, %v10001_v11  ;;  %v10011_v11 = vld [vmem:[#allocation144_spill] sm:$0xff] }
 0x37e   : > { %3124 = vmatpush.msra.mxu2 %v2495_v7  ;;  %v10004_v7 = vld [vmem:[#allocation148_spill] sm:$0xff] }
 0x37f   : > { %10003 = vst [vmem:[#allocation5_spill] sm:$0xff] %v7075_v38  ;;  %v7081_v54 = vadd.f32 %v10005_v44, %v10004_v7  ;;  %v10012_v57 = vld [vmem:[#allocation124_spill] sm:$0xff]  ;;  %v7097_v7 = vpop.f32.mrf.mxu2  ;;  %v10015_v44 = vld [vmem:[#allocation143_spill] sm:$0xff] }
 0x380   : > { %3125 = vmatpush.msra.mxu2 %v2493_v1  ;;  %v2487_v1 = vmul.f32 %v7069_v51, %v7069_v51  ;;  %v7095_v30 = vadd.f32 %v10012_v57, %v10011_v11  ;;  %10014 = vst [vmem:[#allocation167_spill] sm:$0xff] %v7097_v7  ;;  %v10016_v51 = vld [vmem:[#allocation118_spill] sm:$0xff]  ;;  %v10021_v57 = vld [vmem:[#allocation139_spill] sm:$0xff]  ;;  %v10022_v7 = vld [vmem:[#allocation104_spill] sm:$0xff] }
 0x381   : > { %10006 = vst [vmem:[#allocation17_spill] sm:$0xff] %v7081_v54  ;;  %v1902_v26 = vpop.f32.mrf.mxu0  ;;  %v7103_v48 = vadd.f32 %v10016_v51, %v10015_v44 }
 0x382   : > { %3126 = vmatpush.msra.mxu2 %v2491_v32  ;;  %v2485_v32 = vmul.f32 %v7075_v38, %v7075_v38  ;;  %10013 = vst [vmem:[#allocation3_spill] sm:$0xff] %v7095_v30  ;;  %v7117_v55 = vpop.f32.mrf.mxu1 }
 0x383   : > { %10017 = vst [vmem:[#allocation179_spill] sm:$0xff] %v7103_v48  ;;  %v2477_v51 = vmul.f32 %v7103_v48, %v7103_v48 }
 0x384   : > { %3127 = vmatpush.msra.mxu2 %v2489_v16  ;;  %v2483_v16 = vmul.f32 %v7081_v54, %v7081_v54  ;;  %v7115_v54 = vadd.f32 %v10022_v7, %v10021_v57 }
 0x386   : > { %3128 = vmatpush.msra.mxu2 %v2487_v1  ;;  %v10018_v1 = vld [vmem:[#allocation66_spill] sm:$0xff]  ;;  %10023 = vst [vmem:[#allocation168_spill] sm:$0xff] %v7115_v54  ;;  %v2473_v7 = vmul.f32 %v7115_v54, %v7115_v54 }
 0x387   : > { %v7109_v38 = vadd.f32 %v10019_v34, %v10018_v1  ;;  %v7129_v1 = vpop.f32.mrf.mxu2  ;;  %v7135_v34 = vadd.f32 %v6978_v0, %v6393_v31  ;;  %v7154_v0 = vadd.f32 %v6905_v56, %v6409_v24 }
 0x388   : > { %3129 = vmatpush.msra.mxu2 %v2485_v32  ;;  %v2479_v32 = vmul.f32 %v7095_v30, %v7095_v30 }
 0x389   : > { %10020 = vst [vmem:[#allocation88_spill] sm:$0xff] %v7109_v38  ;;  %v1905_v11 = vpop.f32.mrf.mxu0  ;;  %v2475_v44 = vmul.f32 %v7109_v38, %v7109_v38 }
 0x38a   : > { %3130 = vmatpush.msra.mxu2 %v2483_v16  ;;  %v7122_v16 = vadd.f32 %v2261_v60, %v6376_v39  ;;  %10026 = vst [vmem:[#allocation160_spill] sm:$0xff] %v7135_v34 }
 0x38b   : > { %10031 = vst [vmem:[#allocation156_spill] sm:$0xff] %v7154_v0 }
 0x38c   : > { %3131 = vmatpush.msra.mxu2 %v2481_v22  ;;  %10024 = vst [vmem:[#allocation162_spill] sm:$0xff] %v7122_v16  ;;  %v7127_v22 = vadd.f32 %v2258_v35, %v6369_v42  ;;  %v2567_v39 = vmul.f32 %v7122_v16, %v7122_v16  ;;  %v7144_v42 = vadd.f32 %v1905_v11, %v6382_v12  ;;  %v10029_v35 = vld [vmem:[#allocation129_spill] sm:$0xff] }
 0x38d   : > { %v7165_v11 = vadd.f32 %v6865_v46, %v6455_v58  ;;  %v2559_v46 = vmul.f32 %v7154_v0, %v7154_v0  ;;  %v10145_v0 = vld [vmem:[#allocation79_spill] sm:$0xff] }
 0x38e   : > { %3132 = vmatpush.msra.mxu2 %v2479_v32  ;;  %10025 = vst [vmem:[#allocation163_spill] sm:$0xff] %v7127_v22  ;;  %v7141_v32 = vadd.f32 %v6942_v17, %v5898_v21  ;;  %v2565_v31 = vmul.f32 %v7127_v22, %v7127_v22  ;;  %v2563_v17 = vmul.f32 %v7135_v34, %v7135_v34 }
 0x38f   : > { %10028 = vst [vmem:[#allocation83_spill] sm:$0xff] %v7144_v42  ;;  %v2596_v24 = vmul.f32 %v7144_v42, %v7144_v42 }
 0x390   : > { %3133 = vmatpush.msra.mxu2 %v2477_v51  ;;  %10027 = vst [vmem:[#allocation157_spill] sm:$0xff] %v7141_v32  ;;  %v7157_v51 = vadd.f32 %v1902_v26, %v6434_v20  ;;  %v2561_v56 = vmul.f32 %v7141_v32, %v7141_v32  ;;  %v7178_v26 = vadd.f32 %v6825_v33, %v5985_v36  ;;  %v10040_v36 = vld [vmem:[#allocation238_spill] sm:$0xff] }
 0x391   : > { %v1908_v60 = vpop.f32.mrf.mxu0  ;;  %10033 = vst [vmem:[#allocation155_spill] sm:$0xff] %v7165_v11  ;;  %v7196_v33 = vadd.f32 %v6998_v43, %v10040_v36 }
 0x392   : > { %3134 = vmatpush.msra.mxu2 %v2475_v44  ;;  %v7147_v57 = vadd.f32 %v1908_v60, %v10029_v35  ;;  %10032 = vst [vmem:[#allocation145_spill] sm:$0xff] %v7157_v51  ;;  %v7167_v44 = vpop.f32.mrf.mxu1  ;;  %v10037_v60 = vld [vmem:[#allocation137_spill] sm:$0xff]  ;;  %v2555_v43 = vmul.f32 %v7178_v26, %v7178_v26 }
 0x393   : > { %10036 = vst [vmem:[#allocation78_spill] sm:$0xff] %v7178_v26  ;;  %v7182_v58 = vadd.f32 %v7032_v28, %v10037_v60  ;;  %v10132_v26 = vld [vmem:[#allocation288_spill] sm:$0xff] }
 0x394   : > { %3135 = vmatpush.msra.mxu2 %v2473_v7  ;;  %10030 = vst [vmem:[#allocation151_spill] sm:$0xff] %v7147_v57  ;;  %v2598_v21 = vmul.f32 %v7147_v57, %v7147_v57  ;;  %v10034_v7 = vld [vmem:[#allocation134_spill] sm:$0xff] }
 0x395   : > { %3136 = vmatmul.f32.vlgmr.msra.gmra.mxu2 %v9905_v50  ;;  %10038 = vst [vmem:[#allocation135_spill] sm:$0xff] %v7182_v58 }
 0x396   : > { %3160 = vmatpush.msrb.mxu2 %v2567_v39  ;;  %v7170_v39 = vadd.f32 %v1899_v41, %v10034_v7  ;;  %3020 = vmatpush.msrb.mxu3 %v2598_v21  ;;  %v2594_v41 = vmul.f32 %v7157_v51, %v7157_v51  ;;  %v7192_v21 = vadd.f32 %v6782_v8, %v6551_v13 }
 0x397   : > { %10041 = vst [vmem:[#allocation132_spill] sm:$0xff] %v7196_v33  ;;  %v2590_v8 = vmul.f32 %v7182_v58, %v7182_v58 }
 0x398   : > { %3161 = vmatpush.msrb.mxu2 %v2565_v31  ;;  %10035 = vst [vmem:[#allocation140_spill] sm:$0xff] %v7170_v39  ;;  %3021 = vmatpush.msrb.mxu3 %v2596_v24  ;;  %v7188_v31 = vpop.f32.mrf.mxu2  ;;  %v2592_v28 = vmul.f32 %v7170_v39, %v7170_v39  ;;  %v7204_v24 = vadd.f32 %v6738_v61, %v6560_v47  ;;  %v10047_v39 = vld [vmem:[#allocation153_spill] sm:$0xff] }
 0x399   : > { %10039 = vst [vmem:[#allocation150_spill] sm:$0xff] %v7192_v21  ;;  %v7220_v47 = vadd.f32 %v6944_v53, %v10047_v39  ;;  %v2588_v61 = vmul.f32 %v7196_v33, %v7196_v33 }
 0x39a   : > { %3162 = vmatpush.msrb.mxu2 %v2563_v17  ;;  %3022 = vmatpush.msrb.mxu3 %v2594_v41  ;;  %v2557_v17 = vmul.f32 %v7165_v11, %v7165_v11  ;;  %10042 = vst [vmem:[#allocation148_spill] sm:$0xff] %v7204_v24  ;;  %v10045_v41 = vld [vmem:[#allocation259_spill] sm:$0xff]  ;;  %v7230_v58 = vpop.f32.mrf.mxu1 }
 0x39b   : > { %10048 = vst [vmem:[#allocation127_spill] sm:$0xff] %v7220_v47 }
 0x39c   : > { %3163 = vmatpush.msrb.mxu2 %v2561_v56  ;;  %v10043_v56 = vld [vmem:[#allocation240_spill] sm:$0xff]  ;;  %3023 = vmatpush.msrb.mxu3 %v2592_v28 }
 0x39d   : > { %v7208_v13 = vadd.f32 %v6970_v37, %v10043_v56  ;;  %v2553_v37 = vmul.f32 %v7192_v21, %v7192_v21  ;;  %v10049_v28 = vld [vmem:[#allocation256_spill] sm:$0xff]  ;;  %v10059_v21 = vld [vmem:[#allocation181_spill] sm:$0xff] }
 0x39e   : > { %3164 = vmatpush.msrb.mxu2 %v2559_v46  ;;  %v7216_v46 = vadd.f32 %v10045_v41, %v6081_v5  ;;  %3024 = vmatpush.msrb.mxu3 %v2590_v8  ;;  %v10051_v5 = vld [vmem:[#allocation248_spill] sm:$0xff]  ;;  %v2551_v8 = vmul.f32 %v7204_v24, %v7204_v24 }
 0x39f   : > { %10044 = vst [vmem:[#allocation130_spill] sm:$0xff] %v7208_v13  ;;  %v7234_v41 = vadd.f32 %v6913_v40, %v10051_v5  ;;  %v2586_v53 = vmul.f32 %v7208_v13, %v7208_v13  ;;  %v2584_v40 = vmul.f32 %v7220_v47, %v7220_v47  ;;  %v10057_v13 = vld [vmem:[#allocation251_spill] sm:$0xff]  ;;  %v10063_v47 = vld [vmem:[#allocation258_spill] sm:$0xff] }
 0x3a0   : > { %3165 = vmatpush.msrb.mxu2 %v2557_v17  ;;  %10046 = vst [vmem:[#allocation70_spill] sm:$0xff] %v7216_v46  ;;  %v7228_v17 = vadd.f32 %v10049_v28, %v6608_v3  ;;  %3025 = vmatpush.msrb.mxu3 %v2588_v61  ;;  %v10055_v3 = vld [vmem:[#allocation250_spill] sm:$0xff]  ;;  %v2549_v61 = vmul.f32 %v7216_v46, %v7216_v46 }
 0x3a1   : > { %10052 = vst [vmem:[#allocation124_spill] sm:$0xff] %v7234_v41  ;;  %v7246_v28 = vadd.f32 %v6881_v59, %v10055_v3  ;;  %v7254_v24 = vadd.f32 %v10057_v13, %v6219_v4  ;;  %v2582_v59 = vmul.f32 %v7234_v41, %v7234_v41  ;;  %v7270_v4 = vadd.f32 %v6817_v23, %v10063_v47  ;;  %v10067_v41 = vld [vmem:[#allocation260_spill] sm:$0xff] }
 0x3a2   : > { %3166 = vmatpush.msrb.mxu2 %v2555_v43  ;;  %10050 = vst [vmem:[#allocation144_spill] sm:$0xff] %v7228_v17  ;;  %v10053_v43 = vld [vmem:[#allocation253_spill] sm:$0xff]  ;;  %3026 = vmatpush.msrb.mxu3 %v2586_v53  ;;  %v2547_v53 = vmul.f32 %v7228_v17, %v7228_v17 }
 0x3a3   : > { %v7242_v33 = vadd.f32 %v10053_v43, %v6615_v19  ;;  %10056 = vst [vmem:[#allocation118_spill] sm:$0xff] %v7246_v28  ;;  %v7258_v19 = vadd.f32 %v6849_v18, %v10059_v21  ;;  %v2580_v18 = vmul.f32 %v7246_v28, %v7246_v28  ;;  %v7292_v28 = vpop.f32.mrf.mxu1 }
 0x3a4   : > { %3167 = vmatpush.msrb.mxu2 %v2553_v37  ;;  %v2001_v37 = vpop.f32.mrf.mxu2  ;;  %10058 = vst [vmem:[#allocation66_spill] sm:$0xff] %v7254_v24  ;;  %3027 = vmatpush.msrb.mxu3 %v2584_v40  ;;  %v10065_v40 = vld [vmem:[#allocation246_spill] sm:$0xff] }
 0x3a5   : > { %10054 = vst [vmem:[#allocation143_spill] sm:$0xff] %v7242_v33  ;;  %v2545_v13 = vmul.f32 %v7242_v33, %v7242_v33  ;;  %v2578_v23 = vmul.f32 %v7258_v19, %v7258_v19  ;;  %v10116_v33 = vld [vmem:[#allocation107_spill] sm:$0xff] }
 0x3a6   : > { %3168 = vmatpush.msrb.mxu2 %v2551_v8  ;;  %10060 = vst [vmem:[#allocation111_spill] sm:$0xff] %v7258_v19  ;;  %v10061_v8 = vld [vmem:[#allocation249_spill] sm:$0xff]  ;;  %3028 = vmatpush.msrb.mxu3 %v2582_v59  ;;  %v2543_v59 = vmul.f32 %v7254_v24, %v7254_v24 }
 0x3a7   : > { %v7266_v43 = vadd.f32 %v10061_v8, %v6671_v9  ;;  %10064 = vst [vmem:[#allocation104_spill] sm:$0xff] %v7270_v4  ;;  %v7282_v9 = vadd.f32 %v6784_v52, %v10067_v41  ;;  %v2576_v52 = vmul.f32 %v7270_v4, %v7270_v4 }
 0x3a8   : > { %3169 = vmatpush.msrb.mxu2 %v2549_v61  ;;  %v7278_v61 = vadd.f32 %v10065_v40, %v6687_v27  ;;  %3029 = vmatpush.msrb.mxu3 %v2580_v18  ;;  %v7296_v27 = vadd.f32 %v6746_v10, %v6716_v62 }
 0x3a9   : > { %10062 = vst [vmem:[#allocation139_spill] sm:$0xff] %v7266_v43  ;;  %v2541_v18 = vmul.f32 %v7266_v43, %v7266_v43  ;;  %v2574_v10 = vmul.f32 %v7282_v9, %v7282_v9 }
 0x3aa   : > { %3170 = vmatpush.msrb.mxu2 %v2547_v53  ;;  %10066 = vst [vmem:[#allocation129_spill] sm:$0xff] %v7278_v61  ;;  %v10069_v53 = vld [vmem:[#allocation243_spill] sm:$0xff]  ;;  %3030 = vmatpush.msrb.mxu3 %v2578_v23  ;;  %v2539_v23 = vmul.f32 %v7278_v61, %v7278_v61 }
 0x3ab   : > { %10068 = vst [vmem:[#allocation134_spill] sm:$0xff] %v7282_v9  ;;  %v7290_v8 = vadd.f32 %v10069_v53, %v6756_v14  ;;  %v7308_v14 = vadd.f32 %v6714_v25, %v6794_v63  ;;  %v2572_v25 = vmul.f32 %v7296_v27, %v7296_v27  ;;  %v10080_v9 = vld [vmem:[#allocation234_spill] sm:$0xff]  ;;  %v7355_v61 = vpop.f32.mrf.mxu1 }
 0x3ac   : > { %3171 = vmatpush.msrb.mxu2 %v2545_v13  ;;  %10071 = vst [vmem:[#allocation238_spill] sm:$0xff] %v7296_v27  ;;  %v10072_v13 = vld [vmem:[#allocation141_spill] sm:$0xff]  ;;  %3031 = vmatpush.msrb.mxu3 %v2576_v52  ;;  %v2004_v4 = vpop.f32.mrf.mxu2 }
 0x3ad   : > { %10070 = vst [vmem:[#allocation137_spill] sm:$0xff] %v7290_v8  ;;  %v7304_v40 = vadd.f32 %v10072_v13, %v6477_v6  ;;  %v7320_v6 = vadd.f32 %v6685_v2, %v6835_v15  ;;  %v2537_v52 = vmul.f32 %v7290_v8, %v7290_v8  ;;  %v7335_v2 = vadd.f32 %v2004_v4, %v10080_v9  ;;  %v10083_v27 = vld [vmem:[#allocation133_spill] sm:$0xff] }
 0x3ae   : > { %3172 = vmatpush.msrb.mxu2 %v2543_v59  ;;  %10074 = vst [vmem:[#allocation259_spill] sm:$0xff] %v7308_v14  ;;  %v10075_v59 = vld [vmem:[#allocation138_spill] sm:$0xff]  ;;  %3032 = vmatpush.msrb.mxu3 %v2574_v10  ;;  %v2570_v10 = vmul.f32 %v7308_v14, %v7308_v14 }
 0x3af   : > { %10073 = vst [vmem:[#allocation240_spill] sm:$0xff] %v7304_v40  ;;  %v7316_v53 = vadd.f32 %v10075_v59, %v6521_v49  ;;  %v2631_v49 = vmul.f32 %v7304_v40, %v7304_v40  ;;  %v7332_v59 = vpop.f32.mrf.mxu3  ;;  %v2568_v4 = vmul.f32 %v7320_v6, %v7320_v6 }
 0x3b0   : > { %3173 = vmatpush.msrb.mxu2 %v2541_v18  ;;  %10077 = vst [vmem:[#allocation256_spill] sm:$0xff] %v7320_v6  ;;  %v10078_v18 = vld [vmem:[#allocation136_spill] sm:$0xff]  ;;  %3033 = vmatpush.msrb.mxu3 %v2572_v25  ;;  %v10087_v25 = vld [vmem:[#allocation245_spill] sm:$0xff] }
 0x3b1   : > { %10076 = vst [vmem:[#allocation153_spill] sm:$0xff] %v7316_v53  ;;  %v7328_v13 = vadd.f32 %v10078_v18, %v6529_v29  ;;  %v2629_v29 = vmul.f32 %v7316_v53, %v7316_v53  ;;  %v10085_v18 = vld [vmem:[#allocation142_spill] sm:$0xff]  ;;  %v10093_v6 = vld [vmem:[#allocation128_spill] sm:$0xff] }
 0x3b2   : > { %3174 = vmatpush.msrb.mxu2 %v2539_v23  ;;  %10081 = vst [vmem:[#allocation253_spill] sm:$0xff] %v7335_v2  ;;  %v10082_v23 = vld [vmem:[#allocation147_spill] sm:$0xff]  ;;  %v7346_v40 = vadd.f32 %v2001_v37, %v10085_v18  ;;  %3034 = vmatpush.msrb.mxu3 %v2570_v10  ;;  %v2662_v10 = vmul.f32 %v7335_v2, %v7335_v2  ;;  %v10097_v2 = vld [vmem:[#allocation172_spill] sm:$0xff] }
 0x3b3   : > { %10079 = vst [vmem:[#allocation248_spill] sm:$0xff] %v7328_v13  ;;  %v7341_v8 = vadd.f32 %v10083_v27, %v10082_v23  ;;  %v2627_v27 = vmul.f32 %v7328_v13, %v7328_v13  ;;  %v10092_v23 = vld [vmem:[#allocation247_spill] sm:$0xff] }
 0x3b4   : > { %3175 = vmatpush.msrb.mxu2 %v2537_v52  ;;  %10086 = vst [vmem:[#allocation251_spill] sm:$0xff] %v7346_v40  ;;  %v10088_v52 = vld [vmem:[#allocation131_spill] sm:$0xff]  ;;  %3035 = vmatpush.msrb.mxu3 %v2568_v4  ;;  %v7367_v53 = vadd.f32 %v10093_v6, %v10092_v23  ;;  %v10098_v4 = vld [vmem:[#allocation125_spill] sm:$0xff] }
 0x3b5   : > { %10084 = vst [vmem:[#allocation250_spill] sm:$0xff] %v7341_v8  ;;  %3176 = vmatmul.f32.vlgmr.msrb.gmra.mxu2 %v9905_v50  ;;  %v7353_v14 = vadd.f32 %v10088_v52, %v10087_v25  ;;  %3036 = vmatmul.f32.vlgmr.msrb.gmra.mxu3 %v9905_v50  ;;  %v10095_v25 = vld [vmem:[#allocation244_spill] sm:$0xff]  ;;  %v7380_v13 = vadd.f32 %v10098_v4, %v10097_v2  ;;  %v10101_v23 = vld [vmem:[#allocation167_spill] sm:$0xff]  ;;  %v10107_v4 = vld [vmem:[#allocation6_spill] sm:$0xff] }
 0x3b6   : > { %3200 = vmatpush.msra.mxu2 %v2631_v49  ;;  %v10090_v49 = vld [vmem:[#allocation242_spill] sm:$0xff]  ;;  %10094 = vst [vmem:[#allocation258_spill] sm:$0xff] %v7367_v53  ;;  %v7374_v52 = vadd.f32 %v7129_v1, %v10095_v25  ;;  %3060 = vmatpush.msra.mxu3 %v2662_v10  ;;  %v10103_v10 = vld [vmem:[#allocation255_spill] sm:$0xff]  ;;  %v2621_v2 = vmul.f32 %v7367_v53, %v7367_v53 }
 0x3b7   : > { %10089 = vst [vmem:[#allocation181_spill] sm:$0xff] %v7353_v14  ;;  %v7361_v37 = vadd.f32 %v7188_v31, %v10090_v49  ;;  %v2660_v31 = vmul.f32 %v7346_v40, %v7346_v40  ;;  %v2623_v6 = vmul.f32 %v7353_v14, %v7353_v14  ;;  %v7400_v14 = vpop.f32.mrf.mxu3 }
 0x3b8   : > { %3201 = vmatpush.msra.mxu2 %v2629_v29  ;;  %v2625_v29 = vmul.f32 %v7341_v8, %v7341_v8  ;;  %10096 = vst [vmem:[#allocation246_spill] sm:$0xff] %v7374_v52  ;;  %v10104_v8 = vld [vmem:[#allocation121_spill] sm:$0xff] }
 0x3b9   : > { %10091 = vst [vmem:[#allocation249_spill] sm:$0xff] %v7361_v37  ;;  %3061 = vmatpush.msra.mxu3 %v2660_v31  ;;  %v2658_v1 = vmul.f32 %v7361_v37, %v7361_v37  ;;  %v7392_v43 = vadd.f32 %v10104_v8, %v10103_v10  ;;  %v2656_v31 = vmul.f32 %v7374_v52, %v7374_v52  ;;  %v10110_v37 = vld [vmem:[#allocation114_spill] sm:$0xff]  ;;  %v10113_v10 = vld [vmem:[#allocation9_spill] sm:$0xff]  ;;  %v7420_v52 = vpop.f32.mrf.mxu1 }
 0x3ba   : > { %3202 = vmatpush.msra.mxu2 %v2627_v27  ;;  %10099 = vst [vmem:[#allocation260_spill] sm:$0xff] %v7380_v13  ;;  %v10100_v27 = vld [vmem:[#allocation164_spill] sm:$0xff]  ;;  %v2619_v8 = vmul.f32 %v7380_v13, %v7380_v13 }
 0x3bb   : > { %v7386_v19 = vadd.f32 %v10101_v23, %v10100_v27  ;;  %10105 = vst [vmem:[#allocation141_spill] sm:$0xff] %v7392_v43  ;;  %3062 = vmatpush.msra.mxu3 %v2658_v1  ;;  %v10109_v23 = vld [vmem:[#allocation257_spill] sm:$0xff] }
 0x3bc   : > { %3203 = vmatpush.msra.mxu2 %v2625_v29  ;;  %v10106_v29 = vld [vmem:[#allocation252_spill] sm:$0xff]  ;;  %v7406_v24 = vadd.f32 %v10110_v37, %v10109_v23  ;;  %v10115_v1 = vld [vmem:[#allocation265_spill] sm:$0xff]  ;;  %v2617_v37 = vmul.f32 %v7392_v43, %v7392_v43 }
 0x3bd   : > { %10102 = vst [vmem:[#allocation243_spill] sm:$0xff] %v7386_v19  ;;  %v7398_v40 = vadd.f32 %v10107_v4, %v10106_v29  ;;  %3063 = vmatpush.msra.mxu3 %v2656_v31  ;;  %v2654_v4 = vmul.f32 %v7386_v19, %v7386_v19  ;;  %v7418_v17 = vadd.f32 %v10116_v33, %v10115_v1  ;;  %v10118_v23 = vld [vmem:[#allocation277_spill] sm:$0xff]  ;;  %v10121_v33 = vld [vmem:[#allocation270_spill] sm:$0xff]  ;;  %v10125_v43 = vld [vmem:[#allocation92_spill] sm:$0xff] }
 0x3be   : > { %3204 = vmatpush.msra.mxu2 %v2623_v6  ;;  %10111 = vst [vmem:[#allocation136_spill] sm:$0xff] %v7406_v24  ;;  %v10112_v6 = vld [vmem:[#allocation254_spill] sm:$0xff]  ;;  %v2615_v19 = vmul.f32 %v7406_v24, %v7406_v24 }
 0x3bf   : > { %10108 = vst [vmem:[#allocation138_spill] sm:$0xff] %v7398_v40  ;;  %v7412_v53 = vadd.f32 %v10113_v10, %v10112_v6  ;;  %3064 = vmatpush.msra.mxu3 %v2654_v4  ;;  %v10119_v10 = vld [vmem:[#allocation100_spill] sm:$0xff]  ;;  %v10122_v1 = vld [vmem:[#allocation190_spill] sm:$0xff] }
 0x3c0   : > { %3205 = vmatpush.msra.mxu2 %v2621_v2  ;;  %10117 = vst [vmem:[#allocation147_spill] sm:$0xff] %v7418_v17  ;;  %v2652_v2 = vmul.f32 %v7398_v40, %v7398_v40  ;;  %v7428_v31 = vadd.f32 %v10119_v10, %v10118_v23  ;;  %v7434_v13 = vadd.f32 %v10122_v1, %v10121_v33  ;;  %v10124_v4 = vld [vmem:[#allocation280_spill] sm:$0xff]  ;;  %v7442_v40 = vpop.permute.xlu1 %1144  ;;  %v10128_v23 = vld [vmem:[#allocation273_spill] sm:$0xff] }
 0x3c1   : > { %10114 = vst [vmem:[#allocation234_spill] sm:$0xff] %v7412_v53  ;;  %v7440_v46 = vadd.f32 %v10125_v43, %v10124_v4  ;;  %v10129_v10 = vld [vmem:[#allocation185_spill] sm:$0xff]  ;;  %v10131_v1 = vld [vmem:[#allocation196_spill] sm:$0xff] }
 0x3c2   : > { %3206 = vmatpush.msra.mxu2 %v2619_v8  ;;  %10120 = vst [vmem:[#allocation133_spill] sm:$0xff] %v7428_v31  ;;  %3065 = vmatpush.msra.mxu3 %v2652_v2  ;;  %v2650_v8 = vmul.f32 %v7412_v53, %v7412_v53  ;;  %v7448_v24 = vadd.f32 %v10129_v10, %v10128_v23  ;;  %v10133_v53 = vld [vmem:[#allocation89_spill] sm:$0xff]  ;;  %v10138_v10 = vld [vmem:[#allocation299_spill] sm:$0xff] }
 0x3c3   : > { %10123 = vst [vmem:[#allocation142_spill] sm:$0xff] %v7434_v13  ;;  %v2648_v2 = vmul.f32 %v10131_v1, %v10131_v1  ;;  %v7454_v51 = vadd.f32 %v10133_v53, %v10132_v26  ;;  %v2611_v43 = vmul.f32 %v7428_v31, %v7428_v31  ;;  %v10136_v4 = vld [vmem:[#allocation177_spill] sm:$0xff]  ;;  %v10139_v1 = vld [vmem:[#allocation84_spill] sm:$0xff]  ;;  %v2609_v26 = vmul.f32 %v7440_v46, %v7440_v46 }
 0x3c4   : > { %3207 = vmatpush.msra.mxu2 %v2617_v37  ;;  %10126 = vst [vmem:[#allocation245_spill] sm:$0xff] %v7440_v46  ;;  %v2613_v37 = vmul.f32 %v7418_v17, %v7418_v17  ;;  %3066 = vmatpush.msra.mxu3 %v2650_v8  ;;  %v7462_v17 = vpop.f32.mrf.mxu3  ;;  %v2646_v8 = vmul.f32 %v7434_v13, %v7434_v13  ;;  %v10141_v53 = vld [vmem:[#allocation293_spill] sm:$0xff]  ;;  %v7482_v13 = vpop.f32.mrf.mxu1 }
 0x3c5   : > { %10127 = vst [vmem:[#allocation131_spill] sm:$0xff] %v7442_v40  ;;  %v7468_v42 = vadd.f32 %v10139_v1, %v10138_v10  ;;  %v2607_v1 = vmul.f32 %v7454_v51, %v7454_v51  ;;  %v10148_v10 = vld [vmem:[#allocation165_spill] sm:$0xff] }
 0x3c6   : > { %3208 = vmatpush.msra.mxu2 %v2615_v19  ;;  %10130 = vst [vmem:[#allocation242_spill] sm:$0xff] %v7448_v24  ;;  %v10135_v19 = vld [vmem:[#allocation286_spill] sm:$0xff]  ;;  %3067 = vmatpush.msra.mxu3 %v2648_v2  ;;  %v10144_v2 = vld [vmem:[#allocation301_spill] sm:$0xff] }
 0x3c7   : > { %10134 = vst [vmem:[#allocation247_spill] sm:$0xff] %v7454_v51  ;;  %v7460_v11 = vadd.f32 %v10136_v4, %v10135_v19  ;;  %v2644_v4 = vmul.f32 %v7448_v24, %v7448_v24  ;;  %v7480_v57 = vadd.f32 %v10145_v0, %v10144_v2  ;;  %v10151_v24 = vld [vmem:[#allocation73_spill] sm:$0xff]  ;;  %v7496_v0 = vpop.permute.xlu0 %1139  ;;  %v10154_v2 = vld [vmem:[#allocation159_spill] sm:$0xff]  ;;  %v10260_v19 = vld [vmem:[#allocation212_spill] sm:$0xff] }
 0x3c8   : > { %3209 = vmatpush.msra.mxu2 %v2613_v37  ;;  %10140 = vst [vmem:[#allocation244_spill] sm:$0xff] %v7468_v42  ;;  %v10142_v37 = vld [vmem:[#allocation171_spill] sm:$0xff]  ;;  %3068 = vmatpush.msra.mxu3 %v2646_v8  ;;  %v7502_v51 = vadd.f32 %v10154_v2, %v7442_v40  ;;  %v10159_v2 = vld [vmem:[#allocation36_spill] sm:$0xff] }
 0x3c9   : > { %10137 = vst [vmem:[#allocation128_spill] sm:$0xff] %v7460_v11  ;;  %v7474_v31 = vadd.f32 %v10142_v37, %v10141_v53  ;;  %v2642_v8 = vmul.f32 %v7460_v11, %v7460_v11  ;;  %v10150_v37 = vld [vmem:[#allocation302_spill] sm:$0xff] }
 0x3ca   : > { %3210 = vmatpush.msra.mxu2 %v2611_v43  ;;  %10146 = vst [vmem:[#allocation125_spill] sm:$0xff] %v7480_v57  ;;  %v10147_v43 = vld [vmem:[#allocation295_spill] sm:$0xff]  ;;  %3069 = vmatpush.msra.mxu3 %v2644_v4  ;;  %v7494_v32 = vadd.f32 %v10151_v24, %v10150_v37  ;;  %v2603_v24 = vmul.f32 %v7480_v57, %v7480_v57  ;;  %v10157_v37 = vld [vmem:[#allocation154_spill] sm:$0xff] }
 0x3cb   : > { %10143 = vst [vmem:[#allocation172_spill] sm:$0xff] %v7474_v31  ;;  %v7488_v46 = vadd.f32 %v10148_v10, %v10147_v43  ;;  %v2640_v4 = vmul.f32 %v7474_v31, %v7474_v31  ;;  %v7506_v10 = vpop.permute.xlu1 %1134  ;;  %v2694_v31 = vmax.f32 %v10159_v2, 0.0  ;;  %v10163_v57 = vld [vmem:[#allocation95_spill] sm:$0xff] }
 0x3cc   : > { %3211 = vmatpush.msra.mxu2 %v2609_v26  ;;  %10152 = vst [vmem:[#allocation167_spill] sm:$0xff] %v7494_v32  ;;  %v2605_v26 = vmul.f32 %v7468_v42, %v7468_v42  ;;  %3070 = vmatpush.msra.mxu3 %v2642_v8  ;;  %v2601_v8 = vmul.f32 %v7494_v32, %v7494_v32  ;;  %v7519_v42 = vpop.f32.mrf.mxu3  ;;  %v10165_v2 = vld [vmem:[#allocation35_spill] sm:$0xff]  ;;  %v7534_v22 = vpop.f32.mrf.mxu1 }
 0x3cd   : > { %10149 = vst [vmem:[#allocation164_spill] sm:$0xff] %v7488_v46  ;;  %v2638_v11 = vmul.f32 %v7488_v46, %v7488_v46  ;;  %v2692_v32 = vmax.f32 %v10165_v2, 0.0 }
 0x3ce   : > { %10153 = vst [vmem:[#allocation255_spill] sm:$0xff] %v7496_v0  ;;  %3212 = vmatpush.msra.mxu2 %v2607_v1  ;;  %v7512_v1 = vadd.f32 %v10157_v37, %v7496_v0  ;;  %3071 = vmatpush.msra.mxu3 %v2640_v4  ;;  %v2636_v37 = vmul.f32 %v7502_v51, %v7502_v51  ;;  %v10162_v4 = vld [vmem:[#allocation94_spill] sm:$0xff] }
 0x3cf   : > { %10155 = vst [vmem:[#allocation121_spill] sm:$0xff] %v7502_v51  ;;  %v7529_v46 = vadd.f32 %v10163_v57, %v10162_v4  ;;  %v10171_v4 = vld [vmem:[#allocation85_spill] sm:$0xff]  ;;  %v10173_v51 = vld [vmem:[#allocation38_spill] sm:$0xff] }
 0x3d0   : > { %10156 = vst [vmem:[#allocation252_spill] sm:$0xff] %v7506_v10  ;;  %3213 = vmatpush.msra.mxu2 %v2605_v26  ;;  %v10160_v26 = vld [vmem:[#allocation149_spill] sm:$0xff]  ;;  %3072 = vmatpush.msra.mxu3 %v2638_v11  ;;  %v10166_v11 = vld [vmem:[#allocation64_spill] sm:$0xff]  ;;  %v2688_v54 = vmax.f32 %v10173_v51, 0.0 }
 0x3d1   : > { %10158 = vst [vmem:[#allocation6_spill] sm:$0xff] %v7512_v1  ;;  %v7523_v34 = vadd.f32 %v10160_v26, %v7506_v10  ;;  %v10167_v26 = vld [vmem:[#allocation90_spill] sm:$0xff]  ;;  %v2471_v2 = vmul.f32 %v7529_v46, %v7529_v46  ;;  %v10183_v51 = vld [vmem:[#allocation69_spill] sm:$0xff] }
 0x3d2   : > { %3214 = vmatpush.msra.mxu2 %v2603_v24  ;;  %10164 = vst [vmem:[#allocation114_spill] sm:$0xff] %v7529_v46  ;;  %3073 = vmatpush.msra.mxu3 %v2636_v37  ;;  %v2634_v24 = vmul.f32 %v7512_v1, %v7512_v1  ;;  %v7539_v16 = vadd.f32 %v10167_v26, %v10166_v11  ;;  %v10170_v37 = vld [vmem:[#allocation98_spill] sm:$0xff] }
 0x3d3   : > { %10161 = vst [vmem:[#allocation257_spill] sm:$0xff] %v7523_v34  ;;  %v2632_v57 = vmul.f32 %v7523_v34, %v7523_v34  ;;  %v7546_v1 = vadd.f32 %v10171_v4, %v10170_v37  ;;  %v10177_v37 = vld [vmem:[#allocation39_spill] sm:$0xff]  ;;  %v10179_v34 = vld [vmem:[#allocation74_spill] sm:$0xff] }
 0x3d4   : > { %3215 = vmatpush.msra.mxu2 %v2601_v8  ;;  %10168 = vst [vmem:[#allocation254_spill] sm:$0xff] %v7539_v16  ;;  %3074 = vmatpush.msra.mxu3 %v2634_v24  ;;  %v10169_v8 = vld [vmem:[#allocation37_spill] sm:$0xff]  ;;  %v10174_v24 = vld [vmem:[#allocation87_spill] sm:$0xff]  ;;  %v2469_v26 = vmul.f32 %v7539_v16, %v7539_v16  ;;  %v2686_v4 = vmax.f32 %v10177_v37, 0.0  ;;  %v7575_v37 = vpop.f32.mrf.mxu1 }
 0x3d5   : > { %3216 = vmatmul.f32.vlgmr.msra.gmra.mxu2 %v9905_v50  ;;  %10172 = vst [vmem:[#allocation9_spill] sm:$0xff] %v7546_v1  ;;  %v10187_v16 = vld [vmem:[#allocation65_spill] sm:$0xff] }
 0x3d6   : > { %3248 = vmatpush.msrb.mxu2 %v2694_v31  ;;  %v2690_v31 = vmax.f32 %v10169_v8, 0.0  ;;  %3075 = vmatpush.msra.mxu3 %v2632_v57  ;;  %v10178_v8 = vld [vmem:[#allocation62_spill] sm:$0xff]  ;;  %v7563_v57 = vpop.f32.mrf.mxu3 }
 0x3d7   : > { %3076 = vmatmul.f32.vlgmr.msra.gmra.mxu3 %v9905_v50  ;;  %v7561_v46 = vadd.f32 %v10179_v34, %v10178_v8  ;;  %v10185_v34 = vld [vmem:[#allocation42_spill] sm:$0xff] }
 0x3d8   : > { %3249 = vmatpush.msrb.mxu2 %v2692_v32  ;;  %v10175_v32 = vld [vmem:[#allocation80_spill] sm:$0xff]  ;;  %3100 = vmatpush.msrb.mxu3 %v2471_v2  ;;  %v10182_v2 = vld [vmem:[#allocation91_spill] sm:$0xff]  ;;  %v2682_v8 = vmax.f32 %v10185_v34, 0.0 }
 0x3d9   : > { %v7554_v11 = vadd.f32 %v10175_v32, %v10174_v24  ;;  %10180 = vst [vmem:[#allocation107_spill] sm:$0xff] %v7561_v46  ;;  %v10181_v24 = vld [vmem:[#allocation41_spill] sm:$0xff]  ;;  %v7570_v38 = vadd.f32 %v10183_v51, %v10182_v2  ;;  %v10189_v51 = vld [vmem:[#allocation43_spill] sm:$0xff]  ;;  %v10193_v34 = vld [vmem:[#allocation44_spill] sm:$0xff] }
 0x3da   : > { %3250 = vmatpush.msrb.mxu2 %v2690_v31  ;;  %3101 = vmatpush.msrb.mxu3 %v2469_v26  ;;  %v2467_v31 = vmul.f32 %v7546_v1, %v7546_v1  ;;  %v2684_v32 = vmax.f32 %v10181_v24, 0.0  ;;  %v10186_v26 = vld [vmem:[#allocation82_spill] sm:$0xff]  ;;  %v2680_v2 = vmax.f32 %v10189_v51, 0.0  ;;  %v10191_v24 = vld [vmem:[#allocation63_spill] sm:$0xff] }
 0x3db   : > { %10176 = vst [vmem:[#allocation265_spill] sm:$0xff] %v7554_v11  ;;  %v7579_v48 = vadd.f32 %v10187_v16, %v10186_v26  ;;  %v10194_v16 = vld [vmem:[#allocation86_spill] sm:$0xff]  ;;  %v10195_v26 = vld [vmem:[#allocation61_spill] sm:$0xff] }
 0x3dc   : > { %3251 = vmatpush.msrb.mxu2 %v2688_v54  ;;  %10184 = vst [vmem:[#allocation277_spill] sm:$0xff] %v7570_v38  ;;  %3102 = vmatpush.msrb.mxu3 %v2467_v31  ;;  %v2465_v54 = vmul.f32 %v7554_v11, %v7554_v11  ;;  %v10190_v31 = vld [vmem:[#allocation60_spill] sm:$0xff]  ;;  %v2678_v11 = vmax.f32 %v10193_v34, 0.0  ;;  %v10197_v51 = vld [vmem:[#allocation46_spill] sm:$0xff]  ;;  %v10203_v34 = vld [vmem:[#allocation57_spill] sm:$0xff] }
 0x3dd   : > { %10188 = vst [vmem:[#allocation100_spill] sm:$0xff] %v7579_v48  ;;  %v7586_v1 = vadd.f32 %v10191_v24, %v10190_v31  ;;  %v10198_v24 = vld [vmem:[#allocation77_spill] sm:$0xff]  ;;  %v10199_v31 = vld [vmem:[#allocation59_spill] sm:$0xff] }
 0x3de   : > { %3252 = vmatpush.msrb.mxu2 %v2686_v4  ;;  %3103 = vmatpush.msrb.mxu3 %v2465_v54  ;;  %v2463_v4 = vmul.f32 %v7561_v46, %v7561_v46  ;;  %v7593_v54 = vadd.f32 %v10195_v26, %v10194_v16  ;;  %v2676_v46 = vmax.f32 %v10197_v51, 0.0  ;;  %v7602_v30 = vpop.f32.mrf.mxu3  ;;  %v10201_v16 = vld [vmem:[#allocation47_spill] sm:$0xff]  ;;  %v7614_v51 = vpop.f32.mrf.mxu1 }
 0x3df   : > { %10192 = vst [vmem:[#allocation270_spill] sm:$0xff] %v7586_v1  ;;  %v2674_v26 = vmax.f32 %v10201_v16, 0.0  ;;  %v10211_v16 = vld [vmem:[#allocation54_spill] sm:$0xff] }
 0x3e0   : > { %3253 = vmatpush.msrb.mxu2 %v2684_v32  ;;  %3104 = vmatpush.msrb.mxu3 %v2463_v4  ;;  %v2461_v32 = vmul.f32 %v7570_v38, %v7570_v38  ;;  %10196 = vst [vmem:[#allocation190_spill] sm:$0xff] %v7593_v54  ;;  %v7600_v4 = vadd.f32 %v10199_v31, %v10198_v24  ;;  %v10205_v24 = vld [vmem:[#allocation48_spill] sm:$0xff] }
 0x3e1   : > { %v2672_v31 = vmax.f32 %v10205_v24, 0.0  ;;  %v10213_v24 = vld [vmem:[#allocation51_spill] sm:$0xff] }
 0x3e2   : > { %3254 = vmatpush.msrb.mxu2 %v2682_v8  ;;  %3105 = vmatpush.msrb.mxu3 %v2461_v32  ;;  %v2459_v8 = vmul.f32 %v7579_v48, %v7579_v48  ;;  %10200 = vst [vmem:[#allocation280_spill] sm:$0xff] %v7600_v4  ;;  %v10202_v32 = vld [vmem:[#allocation58_spill] sm:$0xff]  ;;  %v10207_v48 = vld [vmem:[#allocation55_spill] sm:$0xff] }
 0x3e3   : > { %v7609_v38 = vadd.f32 %v10203_v34, %v10202_v32  ;;  %v10209_v34 = vld [vmem:[#allocation49_spill] sm:$0xff] }
 0x3e4   : > { %3255 = vmatpush.msrb.mxu2 %v2680_v2  ;;  %3106 = vmatpush.msrb.mxu3 %v2459_v8  ;;  %v2457_v2 = vmul.f32 %v7586_v1, %v7586_v1  ;;  %v10206_v8 = vld [vmem:[#allocation81_spill] sm:$0xff]  ;;  %v2670_v32 = vmax.f32 %v10209_v34, 0.0  ;;  %v10217_v34 = vld [vmem:[#allocation52_spill] sm:$0xff] }
 0x3e5   : > { %10204 = vst [vmem:[#allocation92_spill] sm:$0xff] %v7609_v38  ;;  %v7618_v45 = vadd.f32 %v10207_v48, %v10206_v8  ;;  %v10214_v48 = vld [vmem:[#allocation56_spill] sm:$0xff]  ;;  %v10215_v8 = vld [vmem:[#allocation50_spill] sm:$0xff] }
 0x3e6   : > { %3256 = vmatpush.msrb.mxu2 %v2678_v11  ;;  %3107 = vmatpush.msrb.mxu3 %v2457_v2  ;;  %v2455_v11 = vmul.f32 %v7593_v54, %v7593_v54  ;;  %v10210_v2 = vld [vmem:[#allocation72_spill] sm:$0xff]  ;;  %v2668_v54 = vmax.f32 %v10213_v24, 0.0  ;;  %v7641_v10 = vpop.f32.mrf.mxu3 }
 0x3e7   : > { %10208 = vst [vmem:[#allocation185_spill] sm:$0xff] %v7618_v45  ;;  %v7625_v1 = vadd.f32 %v10211_v16, %v10210_v2  ;;  %v10218_v16 = vld [vmem:[#allocation75_spill] sm:$0xff]  ;;  %v10219_v2 = vld [vmem:[#allocation45_spill] sm:$0xff] }
 0x3e8   : > { %3257 = vmatpush.msrb.mxu2 %v2676_v46  ;;  %3108 = vmatpush.msrb.mxu3 %v2455_v11  ;;  %v2453_v46 = vmul.f32 %v7600_v4, %v7600_v4  ;;  %v7632_v11 = vadd.f32 %v10215_v8, %v10214_v48  ;;  %v2666_v4 = vmax.f32 %v10217_v34, 0.0  ;;  %v10221_v48 = vld [vmem:[#allocation53_spill] sm:$0xff] }
 0x3e9   : > { %10212 = vst [vmem:[#allocation288_spill] sm:$0xff] %v7625_v1  ;;  %v2664_v8 = vmax.f32 %v10221_v48, 0.0 }
 0x3ea   : > { %3258 = vmatpush.msrb.mxu2 %v2674_v26  ;;  %3109 = vmatpush.msrb.mxu3 %v2453_v46  ;;  %v2451_v26 = vmul.f32 %v7609_v38, %v7609_v38  ;;  %10216 = vst [vmem:[#allocation89_spill] sm:$0xff] %v7632_v11  ;;  %v7639_v46 = vadd.f32 %v10219_v2, %v10218_v16  ;;  %v2937_v38 = vpop.f32.mrf.mxu2  ;;  %v10226_v2 = vld [vmem:[#allocation205_spill] sm:$0xff] }
 0x3eb   : > { %v2445_v16 = vmul.f32 %v7632_v11, %v7632_v11  ;;  %v10236_v11 = vld [vmem:[#allocation237_spill] sm:$0xff] }
 0x3ec   : > { %3259 = vmatpush.msrb.mxu2 %v2672_v31  ;;  %3110 = vmatpush.msrb.mxu3 %v2451_v26  ;;  %v2449_v31 = vmul.f32 %v7618_v45, %v7618_v45  ;;  %10220 = vst [vmem:[#allocation177_spill] sm:$0xff] %v7639_v46  ;;  %v10222_v26 = vld [vmem:[#allocation170_spill] sm:$0xff]  ;;  %v10223_v45 = vld [vmem:[#allocation68_spill] sm:$0xff] }
 0x3ed   : > { %v2758_v24 = vmax.f32 %v10222_v26, 0.0  ;;  %v7663_v26 = vld [vmem:[%s9066_s3] sm:$0xff] }
 0x3ee   : > { %3260 = vmatpush.msrb.mxu2 %v2670_v32  ;;  %3111 = vmatpush.msrb.mxu3 %v2449_v31  ;;  %v2447_v32 = vmul.f32 %v7625_v1, %v7625_v1  ;;  %v10227_v31 = vld [vmem:[#allocation241_spill] sm:$0xff]  ;;  %v7657_v1 = vpop.f32.mrf.mxu1  ;;  %10230 = vst [vmem:[#allocation171_spill] sm:$0xff] %v7663_v26 }
 0x3ef   : > { %v7655_v34 = vadd.f32 %v10227_v31, %v10226_v2  ;;  %v10234_v2 = vld [vmem:[#allocation173_spill] sm:$0xff] }
 0x3f0   : > { %3261 = vmatpush.msrb.mxu2 %v2668_v54  ;;  %v10224_v54 = vld [vmem:[#allocation40_spill] sm:$0xff]  ;;  %3112 = vmatpush.msrb.mxu3 %v2447_v32 }
 0x3f1   : > { %v7649_v0 = vadd.f32 %v10224_v54, %v10223_v45  ;;  %10228 = vst [vmem:[#allocation84_spill] sm:$0xff] %v7655_v34  ;;  %v2443_v45 = vmul.f32 %v7639_v46, %v7639_v46  ;;  %v10231_v32 = vld [vmem:[#allocation204_spill] sm:$0xff]  ;;  %v10238_v46 = vld [vmem:[#allocation175_spill] sm:$0xff] }
 0x3f2   : > { %3262 = vmatpush.msrb.mxu2 %v2666_v4  ;;  %v10229_v4 = vld [vmem:[#allocation169_spill] sm:$0xff]  ;;  %3113 = vmatpush.msrb.mxu3 %v2445_v16  ;;  %v2535_v16 = vmul.f32 %v7655_v34, %v7655_v34  ;;  %v2977_v34 = vpop.f32.mrf.mxu2 }
 0x3f3   : > { %10225 = vst [vmem:[#allocation299_spill] sm:$0xff] %v7649_v0  ;;  %v2756_v48 = vmax.f32 %v10229_v4, 0.0  ;;  %v2441_v31 = vmul.f32 %v7649_v0, %v7649_v0  ;;  %v10235_v4 = vld [vmem:[#allocation109_spill] sm:$0xff] }
 0x3f4   : > { %3263 = vmatpush.msrb.mxu2 %v2664_v8  ;;  %v10232_v8 = vld [vmem:[#allocation239_spill] sm:$0xff]  ;;  %3114 = vmatpush.msrb.mxu3 %v2443_v45  ;;  %v7677_v40 = vadd.f32 %v10236_v11, %v10235_v4  ;;  %v10244_v0 = vld [vmem:[#allocation225_spill] sm:$0xff] }
 0x3f5   : > { %3264 = vmatmul.f32.vlgmr.msrb.gmra.mxu2 %v7663_v26  ;;  %v7670_v54 = vadd.f32 %v10232_v8, %v10231_v32  ;;  %v2752_v26 = vmax.f32 %v10238_v46, 0.0  ;;  %v2957_v32 = vpop.f32.mrf.mxu3  ;;  %v10239_v8 = vld [vmem:[#allocation208_spill] sm:$0xff] }
 0x3f6   : > { %3288 = vmatpush.msra.mxu2 %v2758_v24  ;;  %v2754_v24 = vmax.f32 %v10234_v2, 0.0  ;;  %10237 = vst [vmem:[#allocation79_spill] sm:$0xff] %v7677_v40  ;;  %3115 = vmatpush.msrb.mxu3 %v2441_v31  ;;  %v10242_v2 = vld [vmem:[#allocation176_spill] sm:$0xff]  ;;  %v2958_v4 = vadd.f32 %v2957_v32, %v2937_v38  ;;  %v2531_v31 = vmul.f32 %v7677_v40, %v7677_v40  ;;  %v7701_v38 = vpop.f32.mrf.mxu1 }
 0x3f7   : > { %10233 = vst [vmem:[#allocation301_spill] sm:$0xff] %v7670_v54  ;;  %v2533_v45 = vmul.f32 %v7670_v54, %v7670_v54  ;;  %v2750_v11 = vmax.f32 %v10242_v2, 0.0  ;;  %3116 = vmatmul.f32.vlgmr.msrb.gmra.mxu3 %v9905_v50  ;;  %v10247_v54 = vld [vmem:[#allocation116_spill] sm:$0xff] }
 0x3f8   : > { %3289 = vmatpush.msra.mxu2 %v2756_v48  ;;  %v10240_v48 = vld [vmem:[#allocation231_spill] sm:$0xff]  ;;  %3140 = vmatpush.msra.mxu3 %v2535_v16  ;;  %v10246_v16 = vld [vmem:[#allocation178_spill] sm:$0xff]  ;;  %v10252_v2 = vld [vmem:[#allocation216_spill] sm:$0xff] }
 0x3f9   : > { %v7684_v43 = vadd.f32 %v10240_v48, %v10239_v8  ;;  %v2748_v8 = vmax.f32 %v10246_v16, 0.0  ;;  %v2978_v48 = vadd.f32 %v2977_v34, %v2958_v4 }
 0x3fa   : > { %3290 = vmatpush.msra.mxu2 %v2754_v24  ;;  %v10243_v24 = vld [vmem:[#allocation207_spill] sm:$0xff]  ;;  %3141 = vmatpush.msra.mxu3 %v2533_v45 }
 0x3fb   : > { %10241 = vst [vmem:[#allocation165_spill] sm:$0xff] %v7684_v43  ;;  %v7692_v46 = vadd.f32 %v10244_v0, %v10243_v24  ;;  %v2529_v32 = vmul.f32 %v7684_v43, %v7684_v43  ;;  %v10250_v0 = vld [vmem:[#allocation180_spill] sm:$0xff]  ;;  %v10251_v24 = vld [vmem:[#allocation211_spill] sm:$0xff] }
 0x3fc   : > { %3291 = vmatpush.msra.mxu2 %v2752_v26  ;;  %v10248_v26 = vld [vmem:[#allocation219_spill] sm:$0xff]  ;;  %3142 = vmatpush.msra.mxu3 %v2531_v31  ;;  %v2746_v45 = vmax.f32 %v10250_v0, 0.0  ;;  %v7708_v40 = vadd.f32 %v10252_v2, %v10251_v24  ;;  %v10258_v0 = vld [vmem:[#allocation184_spill] sm:$0xff] }
 0x3fd   : > { %10245 = vst [vmem:[#allocation302_spill] sm:$0xff] %v7692_v46  ;;  %v7699_v53 = vadd.f32 %v10248_v26, %v10247_v54  ;;  %v2527_v34 = vmul.f32 %v7692_v46, %v7692_v46  ;;  %v10254_v54 = vld [vmem:[#allocation182_spill] sm:$0xff]  ;;  %v2997_v4 = vpop.f32.mrf.mxu3  ;;  %v10256_v31 = vld [vmem:[#allocation215_spill] sm:$0xff]  ;;  %v2742_v2 = vmax.f32 %v10258_v0, 0.0 }
 0x3fe   : > { %3292 = vmatpush.msra.mxu2 %v2750_v11  ;;  %10253 = vst [vmem:[#allocation159_spill] sm:$0xff] %v7708_v40  ;;  %3143 = vmatpush.msra.mxu3 %v2529_v32  ;;  %v2744_v11 = vmax.f32 %v10254_v54, 0.0  ;;  %v10255_v26 = vld [vmem:[#allocation210_spill] sm:$0xff]  ;;  %v2998_v24 = vadd.f32 %v2997_v4, %v2978_v48  ;;  %v3017_v32 = vpop.f32.mrf.mxu2  ;;  %v10259_v43 = vld [vmem:[#allocation123_spill] sm:$0xff]  ;;  %v10267_v4 = vld [vmem:[#allocation213_spill] sm:$0xff] }
 0x3ff   : > { %10249 = vst [vmem:[#allocation73_spill] sm:$0xff] %v7699_v53  ;;  %v7715_v16 = vadd.f32 %v10256_v31, %v10255_v26  ;;  %v7722_v46 = vadd.f32 %v10260_v19, %v10259_v43  ;;  %v10262_v26 = vld [vmem:[#allocation186_spill] sm:$0xff]  ;;  %v10266_v19 = vld [vmem:[#allocation187_spill] sm:$0xff] }
 0x400   : > { %3293 = vmatpush.msra.mxu2 %v2748_v8  ;;  %3144 = vmatpush.msra.mxu3 %v2527_v34  ;;  %v2525_v8 = vmul.f32 %v7699_v53, %v7699_v53  ;;  %v2740_v31 = vmax.f32 %v10262_v26, 0.0  ;;  %v7727_v34 = vadd.f32 %v3017_v32, %v2998_v24  ;;  %v10263_v54 = vld [vmem:[#allocation214_spill] sm:$0xff]  ;;  %v10264_v53 = vld [vmem:[#allocation209_spill] sm:$0xff]  ;;  %v2738_v43 = vmax.f32 %v10266_v19, 0.0  ;;  %v10270_v32 = vld [vmem:[#allocation188_spill] sm:$0xff] }
 0x401   : > { %10257 = vst [vmem:[#allocation154_spill] sm:$0xff] %v7715_v16  ;;  %v2521_v48 = vmul.f32 %v7715_v16, %v7715_v16  ;;  %v2519_v24 = vmul.f32 %v7722_v46, %v7722_v46  ;;  %v10273_v19 = vld [vmem:[#allocation189_spill] sm:$0xff]  ;;  %v10275_v16 = vld [vmem:[#allocation200_spill] sm:$0xff] }
 0x402   : > { %3294 = vmatpush.msra.mxu2 %v2746_v45  ;;  %10261 = vst [vmem:[#allocation149_spill] sm:$0xff] %v7722_v46  ;;  %3145 = vmatpush.msra.mxu3 %v2525_v8  ;;  %v2523_v45 = vmul.f32 %v7708_v40, %v7708_v40  ;;  %v10268_v8 = vld [vmem:[#allocation206_spill] sm:$0xff]  ;;  %v10285_v40 = vld [vmem:[#allocation195_spill] sm:$0xff] }
 0x403   : > { %v7738_v0 = vadd.f32 %v10268_v8, %v10267_v4  ;;  %v2734_v4 = vmax.f32 %v10273_v19, 0.0  ;;  %v10274_v8 = vld [vmem:[#allocation102_spill] sm:$0xff]  ;;  %v10279_v19 = vld [vmem:[#allocation193_spill] sm:$0xff] }
 0x404   : > { %3295 = vmatpush.msra.mxu2 %v2744_v11  ;;  %v7731_v11 = vadd.f32 %v10264_v53, %v10263_v54  ;;  %3146 = vmatpush.msra.mxu3 %v2523_v45  ;;  %v2736_v53 = vmax.f32 %v10270_v32, 0.0  ;;  %v10271_v54 = vld [vmem:[#allocation126_spill] sm:$0xff]  ;;  %v10272_v45 = vld [vmem:[#allocation203_spill] sm:$0xff]  ;;  %v10276_v32 = vld [vmem:[#allocation192_spill] sm:$0xff] }
 0x405   : > { %10269 = vst [vmem:[#allocation95_spill] sm:$0xff] %v7738_v0  ;;  %v7745_v26 = vadd.f32 %v10272_v45, %v10271_v54  ;;  %v2732_v46 = vmax.f32 %v10276_v32, 0.0  ;;  %v10277_v54 = vld [vmem:[#allocation201_spill] sm:$0xff]  ;;  %v10278_v45 = vld [vmem:[#allocation199_spill] sm:$0xff]  ;;  %v10282_v32 = vld [vmem:[#allocation194_spill] sm:$0xff] }
 0x406   : > { %3296 = vmatpush.msra.mxu2 %v2742_v2  ;;  %10265 = vst [vmem:[#allocation94_spill] sm:$0xff] %v7731_v11  ;;  %v2303_v2 = vpop.f32.mrf.mxu1  ;;  %3147 = vmatpush.msra.mxu3 %v2521_v48  ;;  %v7752_v48 = vadd.f32 %v10275_v16, %v10274_v8  ;;  %v10280_v16 = vld [vmem:[#allocation202_spill] sm:$0xff] }
 0x407   : > { %v10281_v8 = vld [vmem:[#allocation198_spill] sm:$0xff] }
 0x408   : > { %3297 = vmatpush.msra.mxu2 %v2740_v31  ;;  %3148 = vmatpush.msra.mxu3 %v2519_v24  ;;  %v2517_v31 = vmul.f32 %v7731_v11, %v7731_v11  ;;  %v7759_v24 = vadd.f32 %v10278_v45, %v10277_v54  ;;  %v2730_v11 = vmax.f32 %v10279_v19, 0.0  ;;  %v10283_v54 = vld [vmem:[#allocation262_spill] sm:$0xff] }
 0x409   : > { %v2822_v45 = vmax.f32 %v10283_v54, 0.0  ;;  %v7786_v54 = vld [vmem:[%s9066_s3 + $0x10] sm:$0xff] }
 0x40a   : > { %3298 = vmatpush.msra.mxu2 %v2738_v43  ;;  %3149 = vmatpush.msra.mxu3 %v2517_v31  ;;  %v2515_v43 = vmul.f32 %v7738_v0, %v7738_v0  ;;  %v7766_v31 = vadd.f32 %v10281_v8, %v10280_v16  ;;  %v2728_v0 = vmax.f32 %v10282_v32, 0.0  ;;  %v2509_v19 = vmul.f32 %v7759_v24, %v7759_v24  ;;  %v10367_v32 = vld [vmem:[#allocation23_spill] sm:$0xff] }
 0x40c   : > { %3299 = vmatpush.msra.mxu2 %v2736_v53  ;;  %3150 = vmatpush.msra.mxu3 %v2515_v43  ;;  %v2513_v53 = vmul.f32 %v7745_v26, %v7745_v26  ;;  %v10284_v43 = vld [vmem:[#allocation93_spill] sm:$0xff] }
 0x40d   : > { %v7774_v23 = vadd.f32 %v10285_v40, %v10284_v43  ;;  %v2507_v40 = vmul.f32 %v7766_v31, %v7766_v31 }
 0x40e   : > { %3300 = vmatpush.msra.mxu2 %v2734_v4  ;;  %3151 = vmatpush.msra.mxu3 %v2513_v53  ;;  %v2511_v4 = vmul.f32 %v7752_v48, %v7752_v48  ;;  %v10286_v53 = vld [vmem:[#allocation67_spill] sm:$0xff] }
 0x40f   : > { %v7780_v16 = vadd.f32 %v10286_v53, %v10029_v35  ;;  %v10288_v35 = vld [vmem:[#allocation263_spill] sm:$0xff]  ;;  %v10289_v53 = vld [vmem:[#allocation264_spill] sm:$0xff] }
 0x410   : > { %3301 = vmatpush.msra.mxu2 %v2732_v46  ;;  %v2306_v46 = vpop.f32.mrf.mxu1  ;;  %3152 = vmatpush.msra.mxu3 %v2511_v4  ;;  %v2818_v4 = vmax.f32 %v10288_v35, 0.0 }
 0x411   : > { %v2599_v43 = vmul.f32 %v7780_v16, %v7780_v16 }
 0x412   : > { %3302 = vmatpush.msra.mxu2 %v2730_v11  ;;  %v10287_v11 = vld [vmem:[#allocation261_spill] sm:$0xff]  ;;  %3153 = vmatpush.msra.mxu3 %v2509_v19  ;;  %v7800_v19 = vadd.f32 %v2303_v2, %v6434_v20  ;;  %v7813_v20 = vadd.f32 %v7657_v1, %v10037_v60  ;;  %v7827_v60 = vadd.f32 %v7575_v37, %v10043_v56 }
 0x413   : > { %v2820_v8 = vmax.f32 %v10287_v11, 0.0  ;;  %v2816_v11 = vmax.f32 %v10289_v53, 0.0  ;;  %v7841_v56 = vadd.f32 %v7482_v13, %v10051_v5  ;;  %v7855_v5 = vadd.f32 %v7355_v61, %v10059_v21 }
 0x414   : > { %3303 = vmatpush.msra.mxu2 %v2728_v0  ;;  %v7792_v0 = vadd.f32 %v2306_v46, %v6382_v12  ;;  %3154 = vmatpush.msra.mxu3 %v2507_v40  ;;  %v7805_v12 = vadd.f32 %v7701_v38, %v10034_v7  ;;  %v2595_v2 = vmul.f32 %v7800_v19, %v7800_v19  ;;  %v10291_v7 = vld [vmem:[#allocation267_spill] sm:$0xff] }
 0x415   : > { %3304 = vmatmul.f32.vlgmr.msra.gmra.mxu2 %v7786_v54  ;;  %v2812_v38 = vmax.f32 %v10291_v7, 0.0  ;;  %v2591_v1 = vmul.f32 %v7813_v20, %v7813_v20  ;;  %v2587_v37 = vmul.f32 %v7827_v60, %v7827_v60  ;;  %v2583_v13 = vmul.f32 %v7841_v56, %v7841_v56 }
 0x416   : > { %3328 = vmatpush.msrb.mxu2 %v2822_v45  ;;  %v2505_v45 = vmul.f32 %v7774_v23, %v7774_v23  ;;  %v2597_v46 = vmul.f32 %v7792_v0, %v7792_v0  ;;  %v7869_v21 = vadd.f32 %v7230_v58, %v10067_v41  ;;  %v2579_v61 = vmul.f32 %v7855_v5, %v7855_v5 }
 0x417   : > { %v7883_v58 = vadd.f32 %v7117_v55, %v6794_v63  ;;  %v10304_v55 = vld [vmem:[#allocation283_spill] sm:$0xff] }
 0x418   : > { %3329 = vmatpush.msrb.mxu2 %v2820_v8  ;;  %3155 = vmatpush.msra.mxu3 %v2505_v45  ;;  %v10290_v8 = vld [vmem:[#allocation266_spill] sm:$0xff]  ;;  %v10292_v45 = vld [vmem:[#allocation268_spill] sm:$0xff]  ;;  %v2575_v41 = vmul.f32 %v7869_v21, %v7869_v21  ;;  %v2884_v63 = vmax.f32 %v10304_v55, 0.0 }
 0x419   : > { %v2814_v40 = vmax.f32 %v10290_v8, 0.0  ;;  %3156 = vmatmul.f32.vlgmr.msra.gmra.mxu3 %v9905_v50  ;;  %v10340_v8 = vld [vmem:[#allocation152_spill] sm:$0xff] }
 0x41a   : > { %3330 = vmatpush.msrb.mxu2 %v2818_v4  ;;  %3180 = vmatpush.msrb.mxu3 %v2599_v43  ;;  %v7820_v4 = vadd.f32 %v7614_v51, %v10040_v36  ;;  %v2810_v43 = vmax.f32 %v10292_v45, 0.0  ;;  %v7834_v36 = vadd.f32 %v7534_v22, %v10047_v39  ;;  %v7848_v22 = vadd.f32 %v7420_v52, %v10055_v3  ;;  %v10349_v45 = vld [vmem:[#allocation26_spill] sm:$0xff] }
 0x41b   : > { %v7862_v3 = vadd.f32 %v7292_v28, %v10063_v47  ;;  %v7876_v47 = vadd.f32 %v7167_v44, %v6716_v62  ;;  %v10302_v62 = vld [vmem:[#allocation282_spill] sm:$0xff] }
 0x41c   : > { %3331 = vmatpush.msrb.mxu2 %v2816_v11  ;;  %3181 = vmatpush.msrb.mxu3 %v2597_v46  ;;  %v2593_v11 = vmul.f32 %v7805_v12, %v7805_v12  ;;  %v10293_v46 = vld [vmem:[#allocation269_spill] sm:$0xff]  ;;  %v2589_v51 = vmul.f32 %v7820_v4, %v7820_v4  ;;  %v2585_v39 = vmul.f32 %v7834_v36, %v7834_v36  ;;  %v2886_v44 = vmax.f32 %v10302_v62, 0.0 }
 0x41d   : > { %v2581_v52 = vmul.f32 %v7848_v22, %v7848_v22  ;;  %v2577_v28 = vmul.f32 %v7862_v3, %v7862_v3  ;;  %v7933_v62 = vadd.f32 %v7462_v17, %v10100_v27  ;;  %v10316_v27 = vld [vmem:[#allocation291_spill] sm:$0xff] }
 0x41e   : > { %3332 = vmatpush.msrb.mxu2 %v2814_v40  ;;  %3182 = vmatpush.msrb.mxu3 %v2595_v2  ;;  %v2808_v40 = vmax.f32 %v10293_v46, 0.0  ;;  %v10294_v2 = vld [vmem:[#allocation271_spill] sm:$0xff] }
 0x41f   : > { %10313 = vst [vmem:[#allocation87_spill] sm:$0xff] %v7933_v62  ;;  %v10350_v46 = vld [vmem:[#allocation99_spill] sm:$0xff] }
 0x420   : > { %3333 = vmatpush.msrb.mxu2 %v2812_v38  ;;  %3183 = vmatpush.msrb.mxu3 %v2593_v11  ;;  %v2806_v38 = vmax.f32 %v10294_v2, 0.0  ;;  %v10295_v11 = vld [vmem:[#allocation272_spill] sm:$0xff]  ;;  %v2722_v2 = vmax.f32 %v10350_v46, 0.0 }
 0x422   : > { %3334 = vmatpush.msrb.mxu2 %v2810_v43  ;;  %3184 = vmatpush.msrb.mxu3 %v2591_v1  ;;  %v2804_v43 = vmax.f32 %v10295_v11, 0.0  ;;  %v10296_v1 = vld [vmem:[#allocation274_spill] sm:$0xff]  ;;  %v10352_v11 = vld [vmem:[#allocation101_spill] sm:$0xff] }
 0x424   : > { %3335 = vmatpush.msrb.mxu2 %v2808_v40  ;;  %3185 = vmatpush.msrb.mxu3 %v2589_v51  ;;  %v2802_v40 = vmax.f32 %v10296_v1, 0.0  ;;  %v10297_v51 = vld [vmem:[#allocation275_spill] sm:$0xff] }
 0x426   : > { %3336 = vmatpush.msrb.mxu2 %v2806_v38  ;;  %3186 = vmatpush.msrb.mxu3 %v2587_v37  ;;  %v2800_v38 = vmax.f32 %v10297_v51, 0.0  ;;  %v10298_v37 = vld [vmem:[#allocation276_spill] sm:$0xff] }
 0x428   : > { %3337 = vmatpush.msrb.mxu2 %v2804_v43  ;;  %3187 = vmatpush.msrb.mxu3 %v2585_v39  ;;  %v2798_v43 = vmax.f32 %v10298_v37, 0.0  ;;  %v10299_v39 = vld [vmem:[#allocation278_spill] sm:$0xff] }
 0x429   : > { %v10358_v37 = vld [vmem:[#allocation106_spill] sm:$0xff] }
 0x42a   : > { %3338 = vmatpush.msrb.mxu2 %v2802_v40  ;;  %3188 = vmatpush.msrb.mxu3 %v2583_v13  ;;  %v2796_v40 = vmax.f32 %v10299_v39, 0.0  ;;  %v10300_v13 = vld [vmem:[#allocation279_spill] sm:$0xff] }
 0x42c   : > { %3339 = vmatpush.msrb.mxu2 %v2800_v38  ;;  %3189 = vmatpush.msrb.mxu3 %v2581_v52  ;;  %v2794_v38 = vmax.f32 %v10300_v13, 0.0  ;;  %v10301_v52 = vld [vmem:[#allocation281_spill] sm:$0xff]  ;;  %v10363_v13 = vld [vmem:[#allocation24_spill] sm:$0xff] }
 0x42e   : > { %3340 = vmatpush.msrb.mxu2 %v2798_v43  ;;  %3190 = vmatpush.msrb.mxu3 %v2579_v61  ;;  %v2792_v43 = vmax.f32 %v10301_v52, 0.0  ;;  %v10303_v61 = vld [vmem:[#allocation4_spill] sm:$0xff] }
 0x42f   : > { %v7891_v35 = vadd.f32 %v10303_v61, %v6835_v15  ;;  %v7905_v15 = vld [vmem:[%s9066_s3 + $0x20] sm:$0xff]  ;;  %v10365_v52 = vld [vmem:[#allocation12_spill] sm:$0xff] }
 0x430   : > { %3341 = vmatpush.msrb.mxu2 %v2796_v40  ;;  %3191 = vmatpush.msrb.mxu3 %v2577_v28  ;;  %v2573_v40 = vmul.f32 %v7876_v47, %v7876_v47  ;;  %v7898_v28 = vadd.f32 %v7641_v10, %v10080_v9  ;;  %v10308_v10 = vld [vmem:[#allocation285_spill] sm:$0xff] }
 0x431   : > { %v2569_v9 = vmul.f32 %v7891_v35, %v7891_v35 }
 0x432   : > { %3342 = vmatpush.msrb.mxu2 %v2794_v38  ;;  %3192 = vmatpush.msrb.mxu3 %v2575_v41  ;;  %10305 = vst [vmem:[#allocation64_spill] sm:$0xff] %v7898_v28  ;;  %v2571_v38 = vmul.f32 %v7883_v58, %v7883_v58  ;;  %v10306_v41 = vld [vmem:[#allocation284_spill] sm:$0xff] }
 0x433   : > { %v2882_v61 = vmax.f32 %v10306_v41, 0.0 }
 0x434   : > { %3343 = vmatpush.msrb.mxu2 %v2792_v43  ;;  %3193 = vmatpush.msrb.mxu3 %v2573_v40  ;;  %v7910_v43 = vadd.f32 %v7602_v30, %v10085_v18  ;;  %v7918_v40 = vadd.f32 %v7563_v57, %v10090_v49  ;;  %v10310_v30 = vld [vmem:[#allocation287_spill] sm:$0xff]  ;;  %v10312_v49 = vld [vmem:[#allocation289_spill] sm:$0xff] }
 0x435   : > { %3344 = vmatmul.f32.vlgmr.msrb.gmra.mxu2 %v7905_v15  ;;  %v2878_v18 = vmax.f32 %v10310_v30, 0.0  ;;  %v2876_v57 = vmax.f32 %v10312_v49, 0.0  ;;  %v10324_v30 = vld [vmem:[#allocation197_spill] sm:$0xff] }
 0x436   : > { %3368 = vmatpush.msra.mxu2 %v2886_v44  ;;  %10307 = vst [vmem:[#allocation90_spill] sm:$0xff] %v7910_v43  ;;  %3194 = vmatpush.msrb.mxu3 %v2571_v38  ;;  %v2880_v44 = vmax.f32 %v10308_v10, 0.0  ;;  %v7926_v38 = vadd.f32 %v7519_v42, %v10095_v25  ;;  %v7940_v42 = vadd.f32 %v7400_v14, %v10106_v29  ;;  %v10320_v10 = vld [vmem:[#allocation191_spill] sm:$0xff]  ;;  %v10325_v49 = vld [vmem:[#allocation297_spill] sm:$0xff] }
 0x437   : > { %10309 = vst [vmem:[#allocation98_spill] sm:$0xff] %v7918_v40  ;;  %v2655_v14 = vmul.f32 %v7933_v62, %v7933_v62 }
 0x438   : > { %3369 = vmatpush.msra.mxu2 %v2884_v63  ;;  %v2663_v63 = vmul.f32 %v7898_v28, %v7898_v28  ;;  %3195 = vmatpush.msrb.mxu3 %v2569_v9  ;;  %10311 = vst [vmem:[#allocation85_spill] sm:$0xff] %v7926_v38  ;;  %v2659_v9 = vmul.f32 %v7918_v40, %v7918_v40 }
 0x439   : > { %3196 = vmatmul.f32.vlgmr.msrb.gmra.mxu3 %v9905_v50  ;;  %10315 = vst [vmem:[#allocation80_spill] sm:$0xff] %v7940_v42  ;;  %v2657_v25 = vmul.f32 %v7926_v38, %v7926_v38 }
 0x43a   : > { %3370 = vmatpush.msra.mxu2 %v2882_v61  ;;  %3220 = vmatpush.msra.mxu3 %v2663_v63  ;;  %v2661_v61 = vmul.f32 %v7910_v43, %v7910_v43  ;;  %v3037_v63 = vpop.f32.mrf.mxu3 }
 0x43b   : > { %v3038_v17 = vadd.f32 %v3037_v63, %v7727_v34  ;;  %v2653_v34 = vmul.f32 %v7940_v42, %v7940_v42 }
 0x43c   : > { %3371 = vmatpush.msra.mxu2 %v2880_v44  ;;  %3221 = vmatpush.msra.mxu3 %v2661_v61  ;;  %v10314_v44 = vld [vmem:[#allocation290_spill] sm:$0xff]  ;;  %v2872_v61 = vmax.f32 %v10316_v27, 0.0 }
 0x43d   : > { %v2874_v55 = vmax.f32 %v10314_v44, 0.0  ;;  %v2864_v44 = vmax.f32 %v10325_v49, 0.0  ;;  %v10328_v27 = vld [vmem:[#allocation298_spill] sm:$0xff]  ;;  %v10334_v49 = vld [vmem:[#allocation76_spill] sm:$0xff] }
 0x43e   : > { %3372 = vmatpush.msra.mxu2 %v2878_v18  ;;  %3222 = vmatpush.msra.mxu3 %v2659_v9  ;;  %v3057_v18 = vpop.f32.mrf.mxu2  ;;  %v10318_v9 = vld [vmem:[#allocation292_spill] sm:$0xff] }
 0x43f   : > { %v7952_v29 = vadd.f32 %v3057_v18, %v3038_v17  ;;  %v2870_v41 = vmax.f32 %v10318_v9, 0.0  ;;  %v10322_v17 = vld [vmem:[#allocation273_spill] sm:$0xff]  ;;  %v2862_v9 = vmax.f32 %v10328_v27, 0.0  ;;  %v2858_v27 = vmax.f32 %v10334_v49, 0.0  ;;  %v10343_v49 = vld [vmem:[#allocation34_spill] sm:$0xff] }
 0x440   : > { %3373 = vmatpush.msra.mxu2 %v2876_v57  ;;  %v7948_v57 = vadd.f32 %v7332_v59, %v10112_v6  ;;  %3223 = vmatpush.msra.mxu3 %v2657_v25  ;;  %v7960_v59 = vadd.f32 %v10320_v10, %v10121_v33  ;;  %v10321_v25 = vld [vmem:[#allocation296_spill] sm:$0xff]  ;;  %v10326_v33 = vld [vmem:[#allocation286_spill] sm:$0xff] }
 0x441   : > { %v2866_v18 = vmax.f32 %v10321_v25, 0.0  ;;  %v10327_v10 = vld [vmem:[#allocation174_spill] sm:$0xff] }
 0x442   : > { %3374 = vmatpush.msra.mxu2 %v2874_v55  ;;  %10317 = vst [vmem:[#allocation62_spill] sm:$0xff] %v7948_v57  ;;  %3224 = vmatpush.msra.mxu3 %v2655_v14  ;;  %v10319_v55 = vld [vmem:[#allocation294_spill] sm:$0xff]  ;;  %v2651_v6 = vmul.f32 %v7948_v57, %v7948_v57 }
 0x443   : > { %v2868_v63 = vmax.f32 %v10319_v55, 0.0  ;;  %v10331_v55 = vld [vmem:[#allocation300_spill] sm:$0xff] }
 0x444   : > { %3375 = vmatpush.msra.mxu2 %v2872_v61  ;;  %3225 = vmatpush.msra.mxu3 %v2653_v34  ;;  %v10323_v61 = vld [vmem:[#allocation183_spill] sm:$0xff]  ;;  %v7974_v34 = vadd.f32 %v10327_v10, %v10326_v33  ;;  %v2860_v25 = vmax.f32 %v10331_v55, 0.0  ;;  %v10333_v10 = vld [vmem:[#allocation161_spill] sm:$0xff] }
 0x445   : > { %v7967_v14 = vadd.f32 %v10323_v61, %v10322_v17  ;;  %v10329_v17 = vld [vmem:[#allocation293_spill] sm:$0xff]  ;;  %v10330_v61 = vld [vmem:[#allocation166_spill] sm:$0xff]  ;;  %v10332_v33 = vld [vmem:[#allocation295_spill] sm:$0xff] }
 0x446   : > { %3376 = vmatpush.msra.mxu2 %v2870_v41  ;;  %3226 = vmatpush.msra.mxu3 %v2651_v6  ;;  %v2649_v41 = vmul.f32 %v10324_v30, %v10324_v30  ;;  %v7981_v6 = vadd.f32 %v10330_v61, %v10329_v17  ;;  %v10335_v17 = vld [vmem:[#allocation131_spill] sm:$0xff]  ;;  %v10336_v61 = vld [vmem:[#allocation158_spill] sm:$0xff] }
 0x447   : > { %v10337_v55 = vld [vmem:[#allocation71_spill] sm:$0xff] }
 0x448   : > { %3377 = vmatpush.msra.mxu2 %v2868_v63  ;;  %3227 = vmatpush.msra.mxu3 %v2649_v41  ;;  %v2647_v63 = vmul.f32 %v7960_v59, %v7960_v59  ;;  %v7988_v41 = vadd.f32 %v10333_v10, %v10332_v33  ;;  %v2856_v53 = vmax.f32 %v10337_v55, 0.0  ;;  %v10338_v33 = vld [vmem:[#allocation32_spill] sm:$0xff] }
 0x449   : > { %v2695_v10 = vmax.f32 %v10338_v33, 0.0  ;;  %v2693_v33 = vmax.f32 %v10343_v49, 0.0 }
 0x44a   : > { %3378 = vmatpush.msra.mxu2 %v2866_v18  ;;  %3228 = vmatpush.msra.mxu3 %v2647_v63  ;;  %v2645_v18 = vmul.f32 %v7967_v14, %v7967_v14  ;;  %v7995_v63 = vadd.f32 %v10336_v61, %v10335_v17  ;;  %v10341_v17 = vld [vmem:[#allocation252_spill] sm:$0xff]  ;;  %v10342_v61 = vld [vmem:[#allocation146_spill] sm:$0xff] }
 0x44c   : > { %3379 = vmatpush.msra.mxu2 %v2864_v44  ;;  %3229 = vmatpush.msra.mxu3 %v2645_v18  ;;  %v2643_v44 = vmul.f32 %v7974_v34, %v7974_v34  ;;  %v10339_v18 = vld [vmem:[#allocation255_spill] sm:$0xff] }
 0x44d   : > { %v8003_v7 = vadd.f32 %v10340_v8, %v10339_v18 }
 0x44e   : > { %3380 = vmatpush.msra.mxu2 %v2862_v9  ;;  %3230 = vmatpush.msra.mxu3 %v2643_v44  ;;  %v2641_v9 = vmul.f32 %v7981_v6, %v7981_v6  ;;  %v8009_v44 = vadd.f32 %v10342_v61, %v10341_v17  ;;  %v10346_v61 = vld [vmem:[#allocation97_spill] sm:$0xff] }
 0x44f   : > { %v2635_v8 = vmul.f32 %v8003_v7, %v8003_v7 }
 0x450   : > { %3381 = vmatpush.msra.mxu2 %v2860_v25  ;;  %3231 = vmatpush.msra.mxu3 %v2641_v9  ;;  %v2639_v25 = vmul.f32 %v7988_v41, %v7988_v41  ;;  %v10344_v9 = vld [vmem:[#allocation31_spill] sm:$0xff] }
 0x451   : > { %v2691_v18 = vmax.f32 %v10344_v9, 0.0  ;;  %v10348_v9 = vld [vmem:[#allocation96_spill] sm:$0xff] }
 0x452   : > { %3382 = vmatpush.msra.mxu2 %v2858_v27  ;;  %3232 = vmatpush.msra.mxu3 %v2639_v25  ;;  %v2637_v27 = vmul.f32 %v7995_v63, %v7995_v63  ;;  %v10345_v25 = vld [vmem:[#allocation30_spill] sm:$0xff]  ;;  %v2724_v55 = vmax.f32 %v10348_v9, 0.0  ;;  %v10370_v9 = vld [vmem:[#allocation25_spill] sm:$0xff] }
 0x453   : > { %v2689_v17 = vmax.f32 %v10345_v25, 0.0 }
 0x454   : > { %3383 = vmatpush.msra.mxu2 %v2856_v53  ;;  %3233 = vmatpush.msra.mxu3 %v2637_v27  ;;  %v8020_v53 = vld [vmem:[%s9066_s3 + $0x30] sm:$0xff]  ;;  %v2726_v27 = vmax.f32 %v10346_v61, 0.0 }
 0x455   : > { %3384 = vmatmul.f32.vlgmr.msra.gmra.mxu2 %v8020_v53  ;;  %v10369_v61 = vld [vmem:[#allocation11_spill] sm:$0xff] }
 0x456   : > { %3408 = vmatpush.msrb.mxu2 %v2695_v10  ;;  %3234 = vmatpush.msra.mxu3 %v2635_v8  ;;  %v2633_v10 = vmul.f32 %v8009_v44, %v8009_v44  ;;  %v2685_v8 = vmax.f32 %v10349_v45, 0.0 }
 0x458   : > { %3409 = vmatpush.msrb.mxu2 %v2693_v33  ;;  %3235 = vmatpush.msra.mxu3 %v2633_v10  ;;  %v10347_v33 = vld [vmem:[#allocation33_spill] sm:$0xff]  ;;  %v2720_v10 = vmax.f32 %v10352_v11, 0.0  ;;  %v10374_v11 = vld [vmem:[#allocation171_spill] sm:$0xff] }
 0x459   : > { %v2687_v49 = vmax.f32 %v10347_v33, 0.0  ;;  %3236 = vmatmul.f32.vlgmr.msra.gmra.mxu3 %v9905_v50  ;;  %v10353_v33 = vld [vmem:[#allocation22_spill] sm:$0xff] }
 0x45a   : > { %3410 = vmatpush.msrb.mxu2 %v2691_v18  ;;  %3268 = vmatpush.msrb.mxu3 %v2726_v27  ;;  %v10351_v18 = vld [vmem:[#allocation28_spill] sm:$0xff]  ;;  %v2681_v1 = vmax.f32 %v10353_v33, 0.0  ;;  %v10359_v33 = vld [vmem:[#allocation29_spill] sm:$0xff] }
 0x45b   : > { %v2683_v25 = vmax.f32 %v10351_v18, 0.0  ;;  %v2675_v39 = vmax.f32 %v10359_v33, 0.0  ;;  %v10366_v33 = vld [vmem:[#allocation113_spill] sm:$0xff] }
 0x45c   : > { %3411 = vmatpush.msrb.mxu2 %v2689_v17  ;;  %3269 = vmatpush.msrb.mxu3 %v2724_v55  ;;  %v3077_v17 = vpop.f32.mrf.mxu3  ;;  %v10355_v55 = vld [vmem:[#allocation27_spill] sm:$0xff] }
 0x45d   : > { %v8036_v50 = vadd.f32 %v3077_v17, %v7952_v29  ;;  %v2679_v45 = vmax.f32 %v10355_v55, 0.0  ;;  %v10360_v29 = vld [vmem:[#allocation108_spill] sm:$0xff]  ;;  %v10361_v17 = vld [vmem:[#allocation14_spill] sm:$0xff] }
 0x45e   : > { %3412 = vmatpush.msrb.mxu2 %v2687_v49  ;;  %3270 = vmatpush.msrb.mxu3 %v2722_v2  ;;  %v10354_v49 = vld [vmem:[#allocation103_spill] sm:$0xff]  ;;  %v10357_v2 = vld [vmem:[#allocation18_spill] sm:$0xff] }
 0x45f   : > { %v2718_v27 = vmax.f32 %v10354_v49, 0.0  ;;  %v2677_v18 = vmax.f32 %v10357_v2, 0.0  ;;  %v10362_v55 = vld [vmem:[#allocation110_spill] sm:$0xff]  ;;  %v10364_v2 = vld [vmem:[#allocation112_spill] sm:$0xff] }
 0x460   : > { %3413 = vmatpush.msrb.mxu2 %v2685_v8  ;;  %3271 = vmatpush.msrb.mxu3 %v2720_v10  ;;  %v10356_v8 = vld [vmem:[#allocation105_spill] sm:$0xff]  ;;  %v2712_v10 = vmax.f32 %v10360_v29, 0.0  ;;  %v10378_v49 = vld [vmem:[#allocation122_spill] sm:$0xff] }
 0x461   : > { %v2716_v51 = vmax.f32 %v10356_v8, 0.0 }
 0x462   : > { %3414 = vmatpush.msrb.mxu2 %v2683_v25  ;;  %3272 = vmatpush.msrb.mxu3 %v2718_v27  ;;  %v2714_v25 = vmax.f32 %v10358_v37, 0.0  ;;  %v2710_v27 = vmax.f32 %v10362_v55, 0.0  ;;  %v10385_v37 = vld [vmem:[#allocation221_spill] sm:$0xff] }
 0x463   : > { %v2784_v29 = vmax.f32 %v10385_v37, 0.0  ;;  %v10386_v55 = vld [vmem:[#allocation21_spill] sm:$0xff] }
 0x464   : > { %3415 = vmatpush.msrb.mxu2 %v2681_v1  ;;  %3273 = vmatpush.msrb.mxu3 %v2716_v51  ;;  %v2673_v1 = vmax.f32 %v10361_v17, 0.0  ;;  %v2708_v51 = vmax.f32 %v10364_v2, 0.0  ;;  %v10368_v17 = vld [vmem:[#allocation115_spill] sm:$0xff] }
 0x466   : > { %3416 = vmatpush.msrb.mxu2 %v2679_v45  ;;  %3274 = vmatpush.msrb.mxu3 %v2714_v25  ;;  %v2671_v45 = vmax.f32 %v10363_v13, 0.0  ;;  %v2706_v25 = vmax.f32 %v10366_v33, 0.0  ;;  %v2759_v13 = vmax.f32 %v10370_v9, 0.0  ;;  %v10377_v9 = vld [vmem:[#allocation19_spill] sm:$0xff] }
 0x468   : > { %3417 = vmatpush.msrb.mxu2 %v2677_v18  ;;  %3275 = vmatpush.msrb.mxu3 %v2712_v10  ;;  %v2669_v18 = vmax.f32 %v10365_v52, 0.0  ;;  %v2704_v10 = vmax.f32 %v10368_v17, 0.0  ;;  %v10373_v52 = vld [vmem:[#allocation119_spill] sm:$0xff] }
 0x46a   : > { %3418 = vmatpush.msrb.mxu2 %v2675_v39  ;;  %3276 = vmatpush.msrb.mxu3 %v2710_v27  ;;  %v2667_v39 = vmax.f32 %v10367_v32, 0.0  ;;  %v10371_v27 = vld [vmem:[#allocation117_spill] sm:$0xff] }
 0x46b   : > { %v2702_v46 = vmax.f32 %v10371_v27, 0.0 }
 0x46c   : > { %3419 = vmatpush.msrb.mxu2 %v2673_v1  ;;  %3277 = vmatpush.msrb.mxu3 %v2708_v51  ;;  %v2665_v1 = vmax.f32 %v10369_v61, 0.0 }
 0x46e   : > { %3420 = vmatpush.msrb.mxu2 %v2671_v45  ;;  %3278 = vmatpush.msrb.mxu3 %v2706_v25  ;;  %v10372_v45 = vld [vmem:[#allocation10_spill] sm:$0xff]  ;;  %v10375_v25 = vld [vmem:[#allocation20_spill] sm:$0xff] }
 0x46f   : > { %v2757_v51 = vmax.f32 %v10372_v45, 0.0  ;;  %v2755_v32 = vmax.f32 %v10375_v25, 0.0  ;;  %v10382_v25 = vld [vmem:[#allocation15_spill] sm:$0xff] }
 0x470   : > { %3421 = vmatpush.msrb.mxu2 %v2669_v18  ;;  %3279 = vmatpush.msrb.mxu3 %v2704_v10  ;;  %v2700_v18 = vmax.f32 %v10373_v52, 0.0  ;;  %v2753_v10 = vmax.f32 %v10377_v9, 0.0  ;;  %v10383_v9 = vld [vmem:[#allocation220_spill] sm:$0xff] }
 0x472   : > { %3422 = vmatpush.msrb.mxu2 %v2667_v39  ;;  %3280 = vmatpush.msrb.mxu3 %v2702_v46  ;;  %v10376_v39 = vld [vmem:[#allocation120_spill] sm:$0xff] }
 0x473   : > { %v2698_v61 = vmax.f32 %v10376_v39, 0.0  ;;  %v10380_v46 = vld [vmem:[#allocation8_spill] sm:$0xff] }
 0x474   : > { %3423 = vmatpush.msrb.mxu2 %v2665_v1  ;;  %3281 = vmatpush.msrb.mxu3 %v2700_v18  ;;  %v2696_v1 = vmax.f32 %v10378_v49, 0.0  ;;  %v2751_v45 = vmax.f32 %v10380_v46, 0.0  ;;  %v10381_v18 = vld [vmem:[#allocation217_spill] sm:$0xff]  ;;  %v10384_v46 = vld [vmem:[#allocation7_spill] sm:$0xff] }
 0x475   : > { %3424 = vmatmul.f32.vlgmr.msrb.gmra.mxu2 %v10374_v11  ;;  %v8068_v11 = vld [vmem:[%s9066_s3 + $0x8] sm:$0xff] }
 0x476   : > { %3448 = vmatpush.msra.mxu2 %v2759_v13  ;;  %3282 = vmatpush.msrb.mxu3 %v2698_v61  ;;  %v10379_v13 = vld [vmem:[#allocation218_spill] sm:$0xff]  ;;  %v2749_v61 = vmax.f32 %v10382_v25, 0.0 }
 0x477   : > { %v2790_v8 = vmax.f32 %v10379_v13, 0.0  ;;  %v2747_v13 = vmax.f32 %v10384_v46, 0.0 }
 0x478   : > { %3449 = vmatpush.msra.mxu2 %v2757_v51  ;;  %v3097_v51 = vpop.f32.mrf.mxu2  ;;  %3283 = vmatpush.msrb.mxu3 %v2696_v1  ;;  %v2745_v1 = vmax.f32 %v10386_v55, 0.0 }
 0x479   : > { %3284 = vmatmul.f32.vlgmr.msrb.gmra.mxu3 %v8068_v11 }
 0x47a   : > { %3450 = vmatpush.msra.mxu2 %v2755_v32  ;;  %3308 = vmatpush.msra.mxu3 %v2790_v8  ;;  %v2788_v32 = vmax.f32 %v10381_v18, 0.0  ;;  %v10387_v8 = vld [vmem:[#allocation222_spill] sm:$0xff]  ;;  %v3117_v2 = vpop.f32.mrf.mxu3 }
 0x47b   : > { %v2782_v18 = vmax.f32 %v10387_v8, 0.0  ;;  %v3118_v33 = vadd.f32 %v3117_v2, %v3097_v51  ;;  %v10394_v2 = vld [vmem:[#allocation13_spill] sm:$0xff] }
 0x47c   : > { %3451 = vmatpush.msra.mxu2 %v2753_v10  ;;  %3309 = vmatpush.msra.mxu3 %v2788_v32  ;;  %v2786_v10 = vmax.f32 %v10383_v9, 0.0  ;;  %v10389_v32 = vld [vmem:[#allocation223_spill] sm:$0xff]  ;;  %v2737_v51 = vmax.f32 %v10394_v2, 0.0  ;;  %v10401_v2 = vld [vmem:[#allocation230_spill] sm:$0xff] }
 0x47d   : > { %v2780_v9 = vmax.f32 %v10389_v32, 0.0  ;;  %v10400_v32 = vld [vmem:[#allocation88_spill] sm:$0xff] }
 0x47e   : > { %3452 = vmatpush.msra.mxu2 %v2751_v45  ;;  %3310 = vmatpush.msra.mxu3 %v2786_v10  ;;  %v10388_v45 = vld [vmem:[#allocation16_spill] sm:$0xff] }
 0x47f   : > { %v2743_v25 = vmax.f32 %v10388_v45, 0.0 }
 0x480   : > { %3453 = vmatpush.msra.mxu2 %v2749_v61  ;;  %3311 = vmatpush.msra.mxu3 %v2784_v29  ;;  %v10390_v61 = vld [vmem:[#allocation5_spill] sm:$0xff]  ;;  %v3137_v10 = vpop.f32.mrf.mxu2 }
 0x481   : > { %v2741_v46 = vmax.f32 %v10390_v61, 0.0  ;;  %v8081_v17 = vadd.f32 %v3137_v10, %v3118_v33  ;;  %v10392_v29 = vld [vmem:[#allocation17_spill] sm:$0xff]  ;;  %v10396_v61 = vld [vmem:[#allocation3_spill] sm:$0xff]  ;;  %v10397_v33 = vld [vmem:[#allocation228_spill] sm:$0xff] }
 0x482   : > { %3454 = vmatpush.msra.mxu2 %v2747_v13  ;;  %3312 = vmatpush.msra.mxu3 %v2782_v18  ;;  %v10391_v13 = vld [vmem:[#allocation224_spill] sm:$0xff]  ;;  %v2739_v37 = vmax.f32 %v10392_v29, 0.0  ;;  %v10395_v18 = vld [vmem:[#allocation227_spill] sm:$0xff]  ;;  %v2735_v8 = vmax.f32 %v10396_v61, 0.0  ;;  %v10399_v29 = vld [vmem:[#allocation229_spill] sm:$0xff] }
 0x483   : > { %v2778_v55 = vmax.f32 %v10391_v13, 0.0  ;;  %v10398_v10 = vld [vmem:[#allocation179_spill] sm:$0xff]  ;;  %v10402_v13 = vld [vmem:[#allocation168_spill] sm:$0xff] }
 0x484   : > { %3455 = vmatpush.msra.mxu2 %v2745_v1  ;;  %3313 = vmatpush.msra.mxu3 %v2780_v9  ;;  %v10393_v1 = vld [vmem:[#allocation226_spill] sm:$0xff]  ;;  %v2772_v9 = vmax.f32 %v10397_v33, 0.0  ;;  %v10410_v33 = vld [vmem:[#allocation236_spill] sm:$0xff] }
 0x485   : > { %v2776_v45 = vmax.f32 %v10393_v1, 0.0  ;;  %v10403_v1 = vld [vmem:[#allocation162_spill] sm:$0xff] }
 0x486   : > { %3456 = vmatpush.msra.mxu2 %v2743_v25  ;;  %3314 = vmatpush.msra.mxu3 %v2778_v55  ;;  %v2774_v25 = vmax.f32 %v10395_v18, 0.0  ;;  %v2770_v55 = vmax.f32 %v10399_v29, 0.0  ;;  %v2823_v61 = vmax.f32 %v10403_v1, 0.0  ;;  %v10409_v1 = vld [vmem:[#allocation157_spill] sm:$0xff] }
 0x488   : > { %3457 = vmatpush.msra.mxu2 %v2741_v46  ;;  %3315 = vmatpush.msra.mxu3 %v2776_v45  ;;  %v2733_v46 = vmax.f32 %v10398_v10, 0.0  ;;  %v2768_v45 = vmax.f32 %v10401_v2, 0.0  ;;  %v10406_v10 = vld [vmem:[#allocation233_spill] sm:$0xff] }
 0x48a   : > { %3458 = vmatpush.msra.mxu2 %v2739_v37  ;;  %3316 = vmatpush.msra.mxu3 %v2774_v25  ;;  %v2731_v37 = vmax.f32 %v10400_v32, 0.0  ;;  %v10404_v25 = vld [vmem:[#allocation232_spill] sm:$0xff] }
 0x48b   : > { %v2766_v18 = vmax.f32 %v10404_v25, 0.0  ;;  %v10417_v25 = vld [vmem:[#allocation140_spill] sm:$0xff] }
 0x48c   : > { %3459 = vmatpush.msra.mxu2 %v2737_v51  ;;  %3317 = vmatpush.msra.mxu3 %v2772_v9  ;;  %v2729_v51 = vmax.f32 %v10402_v13, 0.0 }
 0x48e   : > { %3460 = vmatpush.msra.mxu2 %v2735_v8  ;;  %3318 = vmatpush.msra.mxu3 %v2770_v55  ;;  %v10405_v8 = vld [vmem:[#allocation163_spill] sm:$0xff]  ;;  %v10407_v55 = vld [vmem:[#allocation160_spill] sm:$0xff] }
 0x48f   : > { %v2821_v9 = vmax.f32 %v10405_v8, 0.0  ;;  %v2819_v32 = vmax.f32 %v10407_v55, 0.0 }
 0x490   : > { %3461 = vmatpush.msra.mxu2 %v2733_v46  ;;  %3319 = vmatpush.msra.mxu3 %v2768_v45  ;;  %v2764_v46 = vmax.f32 %v10406_v10, 0.0  ;;  %v2817_v45 = vmax.f32 %v10409_v1, 0.0  ;;  %v10420_v10 = vld [vmem:[#allocation148_spill] sm:$0xff] }
 0x492   : > { %3462 = vmatpush.msra.mxu2 %v2731_v37  ;;  %3320 = vmatpush.msra.mxu3 %v2766_v18  ;;  %v10408_v37 = vld [vmem:[#allocation235_spill] sm:$0xff]  ;;  %v8108_v18 = vld [vmem:[%s9066_s3 + $0x18] sm:$0xff] }
 0x493   : > { %v2762_v13 = vmax.f32 %v10408_v37, 0.0  ;;  %v2807_v37 = vmax.f32 %v10420_v10, 0.0  ;;  %v10426_v10 = vld [vmem:[#allocation143_spill] sm:$0xff] }
 0x494   : > { %3463 = vmatpush.msra.mxu2 %v2729_v51  ;;  %3321 = vmatpush.msra.mxu3 %v2764_v46  ;;  %v2760_v51 = vmax.f32 %v10410_v33, 0.0  ;;  %v10413_v46 = vld [vmem:[#allocation83_spill] sm:$0xff]  ;;  %v2801_v27 = vmax.f32 %v10426_v10, 0.0  ;;  %v10433_v10 = vld [vmem:[#allocation104_spill] sm:$0xff] }
 0x495   : > { %3464 = vmatmul.f32.vlgmr.msra.gmra.mxu2 %v7786_v54  ;;  %v10412_v54 = vld [vmem:[#allocation156_spill] sm:$0xff]  ;;  %v2852_v8 = vmax.f32 %v10413_v46, 0.0 }
 0x496   : > { %3488 = vmatpush.msrb.mxu2 %v2823_v61  ;;  %3322 = vmatpush.msra.mxu3 %v2762_v13  ;;  %v10411_v61 = vld [vmem:[#allocation151_spill] sm:$0xff]  ;;  %v10415_v13 = vld [vmem:[#allocation145_spill] sm:$0xff] }
 0x497   : > { %v2854_v29 = vmax.f32 %v10411_v61, 0.0  ;;  %v2850_v1 = vmax.f32 %v10415_v13, 0.0  ;;  %v10416_v61 = vld [vmem:[#allocation78_spill] sm:$0xff] }
 0x498   : > { %3489 = vmatpush.msrb.mxu2 %v2821_v9  ;;  %v2815_v9 = vmax.f32 %v10412_v54, 0.0  ;;  %3323 = vmatpush.msra.mxu3 %v2760_v51  ;;  %v2811_v2 = vmax.f32 %v10416_v61, 0.0  ;;  %v10418_v54 = vld [vmem:[#allocation150_spill] sm:$0xff] }
 0x499   : > { %3324 = vmatmul.f32.vlgmr.msra.gmra.mxu3 %v8108_v18  ;;  %v2809_v51 = vmax.f32 %v10418_v54, 0.0 }
 0x49a   : > { %3490 = vmatpush.msrb.mxu2 %v2819_v32  ;;  %3348 = vmatpush.msrb.mxu3 %v2854_v29  ;;  %v10414_v32 = vld [vmem:[#allocation155_spill] sm:$0xff] }
 0x49b   : > { %v2813_v55 = vmax.f32 %v10414_v32, 0.0  ;;  %v10419_v29 = vld [vmem:[#allocation135_spill] sm:$0xff]  ;;  %v3177_v32 = vpop.f32.mrf.mxu2 }
 0x49c   : > { %3491 = vmatpush.msrb.mxu2 %v2817_v45  ;;  %3349 = vmatpush.msrb.mxu3 %v2852_v8  ;;  %v2848_v45 = vmax.f32 %v10417_v25, 0.0  ;;  %v2846_v46 = vmax.f32 %v10419_v29, 0.0 }
 0x49e   : > { %3492 = vmatpush.msrb.mxu2 %v2815_v9  ;;  %3350 = vmatpush.msrb.mxu3 %v2850_v1  ;;  %v3157_v9 = vpop.f32.mrf.mxu3  ;;  %v10422_v1 = vld [vmem:[#allocation70_spill] sm:$0xff] }
 0x49f   : > { %v3158_v8 = vadd.f32 %v3157_v9, %v8081_v17  ;;  %v2805_v61 = vmax.f32 %v10422_v1, 0.0  ;;  %v10427_v17 = vld [vmem:[#allocation124_spill] sm:$0xff]  ;;  %v10431_v1 = vld [vmem:[#allocation111_spill] sm:$0xff] }
 0x4a0   : > { %3493 = vmatpush.msrb.mxu2 %v2813_v55  ;;  %3351 = vmatpush.msrb.mxu3 %v2848_v45  ;;  %v10421_v55 = vld [vmem:[#allocation132_spill] sm:$0xff] }
 0x4a1   : > { %v2844_v13 = vmax.f32 %v10421_v55, 0.0  ;;  %v3178_v25 = vadd.f32 %v3177_v32, %v3158_v8  ;;  %v10424_v45 = vld [vmem:[#allocation144_spill] sm:$0xff]  ;;  %v10429_v32 = vld [vmem:[#allocation118_spill] sm:$0xff]  ;;  %v10430_v8 = vld [vmem:[#allocation139_spill] sm:$0xff] }
 0x4a2   : > { %3494 = vmatpush.msrb.mxu2 %v2811_v2  ;;  %3352 = vmatpush.msrb.mxu3 %v2846_v46  ;;  %v10423_v2 = vld [vmem:[#allocation130_spill] sm:$0xff]  ;;  %v2803_v29 = vmax.f32 %v10424_v45, 0.0  ;;  %v2838_v46 = vmax.f32 %v10427_v17, 0.0  ;;  %v10432_v45 = vld [vmem:[#allocation129_spill] sm:$0xff]  ;;  %v10442_v17 = vld [vmem:[#allocation256_spill] sm:$0xff] }
 0x4a3   : > { %v2842_v54 = vmax.f32 %v10423_v2, 0.0  ;;  %v10434_v55 = vld [vmem:[#allocation137_spill] sm:$0xff]  ;;  %v10435_v2 = vld [vmem:[#allocation240_spill] sm:$0xff] }
 0x4a4   : > { %3495 = vmatpush.msrb.mxu2 %v2809_v51  ;;  %3353 = vmatpush.msrb.mxu3 %v2844_v13  ;;  %v10425_v51 = vld [vmem:[#allocation127_spill] sm:$0xff]  ;;  %v2836_v13 = vmax.f32 %v10429_v32, 0.0 }
 0x4a5   : > { %v2840_v33 = vmax.f32 %v10425_v51, 0.0 }
 0x4a6   : > { %3496 = vmatpush.msrb.mxu2 %v2807_v37  ;;  %3354 = vmatpush.msrb.mxu3 %v2842_v54  ;;  %v10428_v37 = vld [vmem:[#allocation66_spill] sm:$0xff]  ;;  %v2834_v54 = vmax.f32 %v10431_v1, 0.0  ;;  %v10448_v1 = vld [vmem:[#allocation249_spill] sm:$0xff] }
 0x4a7   : > { %v2799_v9 = vmax.f32 %v10428_v37, 0.0  ;;  %v2887_v37 = vmax.f32 %v10435_v2, 0.0  ;;  %v10441_v2 = vld [vmem:[#allocation250_spill] sm:$0xff] }
 0x4a8   : > { %3497 = vmatpush.msrb.mxu2 %v2805_v61  ;;  %3355 = vmatpush.msrb.mxu3 %v2840_v33  ;;  %v2797_v61 = vmax.f32 %v10430_v8, 0.0  ;;  %v2832_v33 = vmax.f32 %v10433_v10, 0.0  ;;  %v10438_v8 = vld [vmem:[#allocation238_spill] sm:$0xff]  ;;  %v2914_v10 = vmax.f32 %v10448_v1, 0.0 }
 0x4aa   : > { %3498 = vmatpush.msrb.mxu2 %v2803_v29  ;;  %3356 = vmatpush.msrb.mxu3 %v2838_v46  ;;  %v2795_v29 = vmax.f32 %v10432_v45, 0.0  ;;  %v10436_v46 = vld [vmem:[#allocation134_spill] sm:$0xff] }
 0x4ab   : > { %v2830_v51 = vmax.f32 %v10436_v46, 0.0 }
 0x4ac   : > { %3499 = vmatpush.msrb.mxu2 %v2801_v27  ;;  %3357 = vmatpush.msrb.mxu3 %v2836_v13  ;;  %v2793_v27 = vmax.f32 %v10434_v55, 0.0 }
 0x4ae   : > { %3500 = vmatpush.msrb.mxu2 %v2799_v9  ;;  %3358 = vmatpush.msrb.mxu3 %v2834_v54  ;;  %v10437_v9 = vld [vmem:[#allocation153_spill] sm:$0xff]  ;;  %v10439_v54 = vld [vmem:[#allocation248_spill] sm:$0xff] }
 0x4af   : > { %v2885_v13 = vmax.f32 %v10437_v9, 0.0  ;;  %v2883_v45 = vmax.f32 %v10439_v54, 0.0 }
 0x4b0   : > { %3501 = vmatpush.msrb.mxu2 %v2797_v61  ;;  %3359 = vmatpush.msrb.mxu3 %v2832_v33  ;;  %v2828_v61 = vmax.f32 %v10438_v8, 0.0  ;;  %v2881_v33 = vmax.f32 %v10441_v2, 0.0  ;;  %v10447_v2 = vld [vmem:[#allocation260_spill] sm:$0xff]  ;;  %v3217_v8 = vpop.f32.mrf.mxu2 }
 0x4b1   : > { %v2875_v32 = vmax.f32 %v10447_v2, 0.0 }
 0x4b2   : > { %3502 = vmatpush.msrb.mxu2 %v2795_v29  ;;  %3360 = vmatpush.msrb.mxu3 %v2830_v51  ;;  %v10440_v29 = vld [vmem:[#allocation259_spill] sm:$0xff] }
 0x4b3   : > { %v2826_v55 = vmax.f32 %v10440_v29, 0.0  ;;  %v8147_v51 = vld [vmem:[%s9066_s3 + $0x28] sm:$0xff] }
 0x4b4   : > { %3503 = vmatpush.msrb.mxu2 %v2793_v27  ;;  %3361 = vmatpush.msrb.mxu3 %v2828_v61  ;;  %v2824_v27 = vmax.f32 %v10442_v17, 0.0 }
 0x4b5   : > { %3504 = vmatmul.f32.vlgmr.msrb.gmra.mxu2 %v7905_v15 }
 0x4b6   : > { %3528 = vmatpush.msra.mxu2 %v2887_v37  ;;  %3362 = vmatpush.msrb.mxu3 %v2826_v55  ;;  %v10443_v37 = vld [vmem:[#allocation181_spill] sm:$0xff]  ;;  %v10446_v55 = vld [vmem:[#allocation251_spill] sm:$0xff] }
 0x4b7   : > { %v2879_v15 = vmax.f32 %v10443_v37, 0.0  ;;  %v2916_v54 = vmax.f32 %v10446_v55, 0.0  ;;  %v10452_v55 = vld [vmem:[#allocation243_spill] sm:$0xff] }
 0x4b8   : > { %3529 = vmatpush.msra.mxu2 %v2885_v13  ;;  %v10444_v13 = vld [vmem:[#allocation253_spill] sm:$0xff]  ;;  %3363 = vmatpush.msrb.mxu3 %v2824_v27 }
 0x4b9   : > { %v2918_v9 = vmax.f32 %v10444_v13, 0.0  ;;  %3364 = vmatmul.f32.vlgmr.msrb.gmra.mxu3 %v8147_v51  ;;  %v10450_v13 = vld [vmem:[#allocation246_spill] sm:$0xff] }
 0x4ba   : > { %3530 = vmatpush.msra.mxu2 %v2883_v45  ;;  %v10445_v45 = vld [vmem:[#allocation258_spill] sm:$0xff]  ;;  %v2912_v27 = vmax.f32 %v10450_v13, 0.0 }
 0x4bb   : > { %v2877_v61 = vmax.f32 %v10445_v45, 0.0  ;;  %3388 = vmatpush.msra.mxu3 %v2918_v9  ;;  %v10451_v45 = vld [vmem:[#allocation136_spill] sm:$0xff]  ;;  %v10456_v13 = vld [vmem:[#allocation234_spill] sm:$0xff] }
 0x4bc   : > { %3531 = vmatpush.msra.mxu2 %v2881_v33  ;;  %v10449_v33 = vld [vmem:[#allocation141_spill] sm:$0xff]  ;;  %v3197_v46 = vpop.f32.mrf.mxu3  ;;  %v2871_v9 = vmax.f32 %v10451_v45, 0.0  ;;  %v2906_v17 = vmax.f32 %v10456_v13, 0.0  ;;  %v10461_v45 = vld [vmem:[#allocation244_spill] sm:$0xff] }
 0x4bd   : > { %3389 = vmatpush.msra.mxu3 %v2916_v54  ;;  %v2873_v37 = vmax.f32 %v10449_v33, 0.0  ;;  %v10453_v54 = vld [vmem:[#allocation147_spill] sm:$0xff] }
 0x4be   : > { %3532 = vmatpush.msra.mxu2 %v2879_v15  ;;  %v3198_v15 = vadd.f32 %v3197_v46, %v3178_v25  ;;  %v2869_v2 = vmax.f32 %v10453_v54, 0.0  ;;  %v10457_v25 = vld [vmem:[#allocation245_spill] sm:$0xff]  ;;  %v10462_v54 = vld [vmem:[#allocation242_spill] sm:$0xff] }
 0x4bf   : > { %3390 = vmatpush.msra.mxu3 %v2914_v10  ;;  %v10455_v10 = vld [vmem:[#allocation133_spill] sm:$0xff]  ;;  %v2865_v46 = vmax.f32 %v10457_v25, 0.0  ;;  %v10464_v25 = vld [vmem:[#allocation128_spill] sm:$0xff] }
 0x4c0   : > { %3533 = vmatpush.msra.mxu2 %v2877_v61  ;;  %v2910_v61 = vmax.f32 %v10452_v55, 0.0  ;;  %v3218_v29 = vadd.f32 %v3217_v8, %v3198_v15  ;;  %v2867_v33 = vmax.f32 %v10455_v10, 0.0  ;;  %v10459_v8 = vld [vmem:[#allocation247_spill] sm:$0xff]  ;;  %v10463_v10 = vld [vmem:[#allocation125_spill] sm:$0xff] }
 0x4c1   : > { %3391 = vmatpush.msra.mxu3 %v2912_v27  ;;  %v2863_v15 = vmax.f32 %v10459_v8, 0.0  ;;  %v10465_v55 = vld [vmem:[#allocation167_spill] sm:$0xff]  ;;  %v10466_v8 = vld [vmem:[#allocation172_spill] sm:$0xff] }
 0x4c2   : > { %3534 = vmatpush.msra.mxu2 %v2875_v32  ;;  %v10454_v32 = vld [vmem:[#allocation138_spill] sm:$0xff] }
 0x4c3   : > { %3392 = vmatpush.msra.mxu3 %v2910_v61  ;;  %v2908_v1 = vmax.f32 %v10454_v32, 0.0 }
 0x4c4   : > { %3535 = vmatpush.msra.mxu2 %v2873_v37  ;;  %v10458_v37 = vld [vmem:[#allocation196_spill] sm:$0xff] }
 0x4c5   : > { %3393 = vmatpush.msra.mxu3 %v2908_v1  ;;  %v2904_v27 = vmax.f32 %v10458_v37, 0.0  ;;  %v2900_v1 = vmax.f32 %v10462_v54, 0.0  ;;  %v10475_v54 = vld [vmem:[#allocation107_spill] sm:$0xff] }
 0x4c6   : > { %3536 = vmatpush.msra.mxu2 %v2871_v9  ;;  %v10460_v9 = vld [vmem:[#allocation142_spill] sm:$0xff] }
 0x4c7   : > { %3394 = vmatpush.msra.mxu3 %v2906_v17  ;;  %v2902_v61 = vmax.f32 %v10460_v9, 0.0  ;;  %v2898_v17 = vmax.f32 %v10464_v25, 0.0  ;;  %v2719_v25 = vmax.f32 %v10475_v54, 0.0  ;;  %v10483_v54 = vld [vmem:[#allocation288_spill] sm:$0xff] }
 0x4c8   : > { %3537 = vmatpush.msra.mxu2 %v2869_v2  ;;  %v2861_v2 = vmax.f32 %v10461_v45, 0.0  ;;  %v10469_v45 = vld [vmem:[#allocation6_spill] sm:$0xff] }
 0x4c9   : > { %3395 = vmatpush.msra.mxu3 %v2904_v27  ;;  %v2896_v27 = vmax.f32 %v10466_v8, 0.0  ;;  %v10477_v8 = vld [vmem:[#allocation100_spill] sm:$0xff] }
 0x4ca   : > { %3538 = vmatpush.msra.mxu2 %v2867_v33  ;;  %v2859_v33 = vmax.f32 %v10463_v10, 0.0  ;;  %v10470_v10 = vld [vmem:[#allocation257_spill] sm:$0xff] }
 0x4cb   : > { %3396 = vmatpush.msra.mxu3 %v2902_v61  ;;  %v10468_v61 = vld [vmem:[#allocation121_spill] sm:$0xff] }
 0x4cc   : > { %3539 = vmatpush.msra.mxu2 %v2865_v46  ;;  %v2857_v46 = vmax.f32 %v10465_v55, 0.0 }
 0x4cd   : > { %3397 = vmatpush.msra.mxu3 %v2900_v1  ;;  %v2890_v1 = vmax.f32 %v10469_v45, 0.0 }
 0x4ce   : > { %3540 = vmatpush.msra.mxu2 %v2863_v15  ;;  %v10467_v15 = vld [vmem:[#allocation164_spill] sm:$0xff] }
 0x4cf   : > { %3398 = vmatpush.msra.mxu3 %v2898_v17  ;;  %v2894_v32 = vmax.f32 %v10467_v15, 0.0  ;;  %v8182_v17 = vld [vmem:[%s9066_s3 + $0x38] sm:$0xff] }
 0x4d0   : > { %3541 = vmatpush.msra.mxu2 %v2861_v2  ;;  %v2892_v2 = vmax.f32 %v10468_v61, 0.0 }
 0x4d1   : > { %3399 = vmatpush.msra.mxu3 %v2896_v27 }
 0x4d2   : > { %3542 = vmatpush.msra.mxu2 %v2859_v33  ;;  %v2888_v33 = vmax.f32 %v10470_v10, 0.0 }
 0x4d3   : > { %3400 = vmatpush.msra.mxu3 %v2894_v32 }
 0x4d4   : > { %3543 = vmatpush.msra.mxu2 %v2857_v46  ;;  %v10471_v46 = vld [vmem:[#allocation114_spill] sm:$0xff] }
 0x4d5   : > { %3544 = vmatmul.f32.vlgmr.msra.gmra.mxu2 %v8020_v53  ;;  %3401 = vmatpush.msra.mxu3 %v2892_v2  ;;  %v2727_v27 = vmax.f32 %v10471_v46, 0.0  ;;  %v10472_v53 = vld [vmem:[#allocation254_spill] sm:$0xff]  ;;  %v10473_v2 = vld [vmem:[#allocation9_spill] sm:$0xff] }
 0x4d6   : > { %v2725_v32 = vmax.f32 %v10472_v53, 0.0  ;;  %v2723_v55 = vmax.f32 %v10473_v2, 0.0  ;;  %v10476_v46 = vld [vmem:[#allocation277_spill] sm:$0xff]  ;;  %v10478_v53 = vld [vmem:[#allocation270_spill] sm:$0xff] }
 0x4d7   : > { %3402 = vmatpush.msra.mxu3 %v2890_v1  ;;  %v10474_v1 = vld [vmem:[#allocation265_spill] sm:$0xff]  ;;  %v10479_v2 = vld [vmem:[#allocation190_spill] sm:$0xff] }
 0x4d8   : > { %v2721_v13 = vmax.f32 %v10474_v1, 0.0  ;;  %v10480_v1 = vld [vmem:[#allocation280_spill] sm:$0xff] }
 0x4d9   : > { %3403 = vmatpush.msra.mxu3 %v2888_v33  ;;  %v2717_v33 = vmax.f32 %v10476_v46, 0.0  ;;  %v2709_v15 = vmax.f32 %v10480_v1, 0.0  ;;  %v10484_v46 = vld [vmem:[#allocation89_spill] sm:$0xff] }
 0x4da   : > { %3404 = vmatmul.f32.vlgmr.msra.gmra.mxu3 %v8182_v17 }
 0x4db   : > { %3428 = vmatpush.msrb.mxu3 %v2727_v27  ;;  %v2715_v27 = vmax.f32 %v10477_v8, 0.0  ;;  %v10485_v8 = vld [vmem:[#allocation177_spill] sm:$0xff] }
 0x4dc   : > { %v3237_v37 = vpop.f32.mrf.mxu3 }
 0x4dd   : > { %3429 = vmatpush.msrb.mxu3 %v2725_v32  ;;  %v8189_v9 = vadd.f32 %v3237_v37, %v3218_v29  ;;  %v2713_v32 = vmax.f32 %v10478_v53, 0.0  ;;  %v10481_v29 = vld [vmem:[#allocation92_spill] sm:$0xff]  ;;  %v10482_v37 = vld [vmem:[#allocation185_spill] sm:$0xff]  ;;  %v10486_v53 = vld [vmem:[#allocation299_spill] sm:$0xff] }
 0x4df   : > { %3430 = vmatpush.msrb.mxu3 %v2723_v55  ;;  %v2711_v55 = vmax.f32 %v10479_v2, 0.0  ;;  %v10487_v2 = vld [vmem:[#allocation84_spill] sm:$0xff] }
 0x4e0   : > { %v2791_v1 = vmax.f32 %v10487_v2, 0.0  ;;  %v10493_v2 = vld [vmem:[#allocation159_spill] sm:$0xff] }
 0x4e1   : > { %3431 = vmatpush.msrb.mxu3 %v2721_v13  ;;  %v2707_v13 = vmax.f32 %v10481_v29, 0.0 }
 0x4e3   : > { %3432 = vmatpush.msrb.mxu3 %v2719_v25  ;;  %v2705_v25 = vmax.f32 %v10482_v37, 0.0 }
 0x4e5   : > { %3433 = vmatpush.msrb.mxu3 %v2717_v33  ;;  %v2703_v33 = vmax.f32 %v10483_v54, 0.0 }
 0x4e7   : > { %3434 = vmatpush.msrb.mxu3 %v2715_v27  ;;  %v2701_v27 = vmax.f32 %v10484_v46, 0.0 }
 0x4e9   : > { %3435 = vmatpush.msrb.mxu3 %v2713_v32  ;;  %v2699_v32 = vmax.f32 %v10485_v8, 0.0 }
 0x4eb   : > { %3436 = vmatpush.msrb.mxu3 %v2711_v55  ;;  %v2697_v55 = vmax.f32 %v10486_v53, 0.0 }
 0x4ed   : > { %3437 = vmatpush.msrb.mxu3 %v2709_v15  ;;  %v10488_v15 = vld [vmem:[#allocation301_spill] sm:$0xff] }
 0x4ef   : > { %3438 = vmatpush.msrb.mxu3 %v2707_v13  ;;  %v2789_v13 = vmax.f32 %v10488_v15, 0.0 }
 0x4f1   : > { %3439 = vmatpush.msrb.mxu3 %v2705_v25  ;;  %v10489_v25 = vld [vmem:[#allocation79_spill] sm:$0xff] }
 0x4f2   : > { %v2787_v29 = vmax.f32 %v10489_v25, 0.0  ;;  %v10496_v25 = vld [vmem:[#allocation94_spill] sm:$0xff] }
 0x4f3   : > { %3440 = vmatpush.msrb.mxu3 %v2703_v33  ;;  %v10490_v33 = vld [vmem:[#allocation165_spill] sm:$0xff] }
 0x4f4   : > { %v2785_v37 = vmax.f32 %v10490_v33, 0.0  ;;  %v10497_v33 = vld [vmem:[#allocation95_spill] sm:$0xff] }
 0x4f5   : > { %3441 = vmatpush.msrb.mxu3 %v2701_v27  ;;  %v10491_v27 = vld [vmem:[#allocation302_spill] sm:$0xff] }
 0x4f6   : > { %v2783_v54 = vmax.f32 %v10491_v27, 0.0  ;;  %v2855_v27 = vmax.f32 %v7780_v16, 0.0 }
 0x4f7   : > { %3442 = vmatpush.msrb.mxu3 %v2699_v32  ;;  %v10492_v32 = vld [vmem:[#allocation73_spill] sm:$0xff] }
 0x4f8   : > { %v2781_v46 = vmax.f32 %v10492_v32, 0.0 }
 0x4f9   : > { %3443 = vmatpush.msrb.mxu3 %v2697_v55  ;;  %v2779_v55 = vmax.f32 %v10493_v2, 0.0 }
 0x4fa   : > { %3444 = vmatmul.f32.vlgmr.msrb.gmra.mxu3 %v8068_v11  ;;  %v10495_v11 = vld [vmem:[#allocation149_spill] sm:$0xff] }
 0x4fb   : > { %3468 = vmatpush.msra.mxu3 %v2791_v1  ;;  %v10494_v1 = vld [vmem:[#allocation154_spill] sm:$0xff] }
 0x4fc   : > { %v2777_v15 = vmax.f32 %v10494_v1, 0.0 }
 0x4fd   : > { %3469 = vmatpush.msra.mxu3 %v2789_v13  ;;  %v2775_v13 = vmax.f32 %v10495_v11, 0.0 }
 0x4ff   : > { %3470 = vmatpush.msra.mxu3 %v2787_v29  ;;  %v2773_v29 = vmax.f32 %v10496_v25, 0.0 }
 0x501   : > { %3471 = vmatpush.msra.mxu3 %v2785_v37  ;;  %v2771_v37 = vmax.f32 %v10497_v33, 0.0 }
 0x503   : > { %3472 = vmatpush.msra.mxu3 %v2783_v54  ;;  %v2769_v54 = vmax.f32 %v7745_v26, 0.0 }
 0x505   : > { %3473 = vmatpush.msra.mxu3 %v2781_v46  ;;  %v2767_v46 = vmax.f32 %v7752_v48, 0.0 }
 0x507   : > { %3474 = vmatpush.msra.mxu3 %v2779_v55  ;;  %v2765_v55 = vmax.f32 %v7759_v24, 0.0 }
 0x509   : > { %3475 = vmatpush.msra.mxu3 %v2777_v15  ;;  %v2763_v15 = vmax.f32 %v7766_v31, 0.0 }
 0x50b   : > { %3476 = vmatpush.msra.mxu3 %v2775_v13  ;;  %v2761_v13 = vmax.f32 %v7774_v23, 0.0 }
 0x50d   : > { %3477 = vmatpush.msra.mxu3 %v2773_v29  ;;  %v2853_v29 = vmax.f32 %v7792_v0, 0.0 }
 0x50f   : > { %3478 = vmatpush.msra.mxu3 %v2771_v37  ;;  %v2851_v37 = vmax.f32 %v7800_v19, 0.0 }
 0x511   : > { %3479 = vmatpush.msra.mxu3 %v2769_v54  ;;  %v2849_v54 = vmax.f32 %v7805_v12, 0.0 }
 0x513   : > { %3480 = vmatpush.msra.mxu3 %v2767_v46  ;;  %v2847_v46 = vmax.f32 %v7813_v20, 0.0 }
 0x515   : > { %3481 = vmatpush.msra.mxu3 %v2765_v55  ;;  %v2845_v55 = vmax.f32 %v7820_v4, 0.0 }
 0x517   : > { %3482 = vmatpush.msra.mxu3 %v2763_v15  ;;  %v2843_v15 = vmax.f32 %v7827_v60, 0.0 }
 0x519   : > { %3483 = vmatpush.msra.mxu3 %v2761_v13  ;;  %v2837_v13 = vmax.f32 %v7848_v22, 0.0 }
 0x51a   : > { %3484 = vmatmul.f32.vlgmr.msra.gmra.mxu3 %v8108_v18  ;;  %v2839_v18 = vmax.f32 %v7841_v56, 0.0 }
 0x51b   : > { %3508 = vmatpush.msrb.mxu3 %v2855_v27  ;;  %v2841_v27 = vmax.f32 %v7834_v36, 0.0 }
 0x51d   : > { %3509 = vmatpush.msrb.mxu3 %v2853_v29  ;;  %v2835_v29 = vmax.f32 %v7855_v5, 0.0 }
 0x51f   : > { %3510 = vmatpush.msrb.mxu3 %v2851_v37  ;;  %v2833_v37 = vmax.f32 %v7862_v3, 0.0 }
 0x521   : > { %3511 = vmatpush.msrb.mxu3 %v2849_v54  ;;  %v2831_v54 = vmax.f32 %v7869_v21, 0.0 }
 0x523   : > { %3512 = vmatpush.msrb.mxu3 %v2847_v46  ;;  %v2829_v46 = vmax.f32 %v7876_v47, 0.0 }
 0x525   : > { %3513 = vmatpush.msrb.mxu3 %v2845_v55  ;;  %v2827_v55 = vmax.f32 %v7883_v58, 0.0 }
 0x527   : > { %3514 = vmatpush.msrb.mxu3 %v2843_v15  ;;  %v2825_v15 = vmax.f32 %v7891_v35, 0.0 }
 0x529   : > { %3515 = vmatpush.msrb.mxu3 %v2841_v27  ;;  %v2919_v27 = vmax.f32 %v7898_v28, 0.0 }
 0x52b   : > { %3516 = vmatpush.msrb.mxu3 %v2839_v18  ;;  %v2917_v18 = vmax.f32 %v7910_v43, 0.0 }
 0x52d   : > { %3517 = vmatpush.msrb.mxu3 %v2837_v13  ;;  %v2915_v13 = vmax.f32 %v7918_v40, 0.0 }
 0x52f   : > { %3518 = vmatpush.msrb.mxu3 %v2835_v29  ;;  %v3265_v29 = vpop.f32.mrf.mxu2 }
 0x531   : > { %3519 = vmatpush.msrb.mxu3 %v2833_v37  ;;  %v2913_v37 = vmax.f32 %v7926_v38, 0.0 }
 0x533   : > { %3520 = vmatpush.msrb.mxu3 %v2831_v54  ;;  %v2911_v54 = vmax.f32 %v7933_v62, 0.0 }
 0x535   : > { %3521 = vmatpush.msrb.mxu3 %v2829_v46  ;;  %v2909_v46 = vmax.f32 %v7940_v42, 0.0 }
 0x537   : > { %3522 = vmatpush.msrb.mxu3 %v2827_v55  ;;  %v3285_v55 = vpop.f32.mrf.mxu3 }
 0x539   : > { %3523 = vmatpush.msrb.mxu3 %v2825_v15  ;;  %v2905_v15 = vmax.f32 %v10324_v30, 0.0 }
 0x53a   : > { %3524 = vmatmul.f32.vlgmr.msrb.gmra.mxu3 %v8147_v51  ;;  %v2907_v51 = vmax.f32 %v7948_v57, 0.0 }
 0x53b   : > { %3548 = vmatpush.msra.mxu3 %v2919_v27  ;;  %v3305_v27 = vpop.f32.mrf.mxu2 }
 0x53d   : > { %3549 = vmatpush.msra.mxu3 %v2917_v18  ;;  %v2903_v18 = vmax.f32 %v7960_v59, 0.0 }
 0x53f   : > { %3550 = vmatpush.msra.mxu3 %v2915_v13  ;;  %v2901_v13 = vmax.f32 %v7967_v14, 0.0  ;;  %v3325_v28 = vpop.f32.mrf.mxu3 }
 0x541   : > { %3551 = vmatpush.msra.mxu3 %v2913_v37  ;;  %v3286_v37 = vadd.f32 %v3285_v55, %v3265_v29  ;;  %v2889_v55 = vmax.f32 %v8009_v44, 0.0 }
 0x543   : > { %3552 = vmatpush.msra.mxu3 %v2911_v54  ;;  %v2899_v54 = vmax.f32 %v7974_v34, 0.0  ;;  %v3306_v43 = vadd.f32 %v3305_v27, %v3286_v37  ;;  %v3345_v40 = vpop.f32.mrf.mxu2 }
 0x545   : > { %3553 = vmatpush.msra.mxu3 %v2909_v46  ;;  %v2897_v46 = vmax.f32 %v7981_v6, 0.0  ;;  %v3326_v38 = vadd.f32 %v3325_v28, %v3306_v43 }
 0x547   : > { %3554 = vmatpush.msra.mxu3 %v2907_v51  ;;  %v2895_v51 = vmax.f32 %v7988_v41, 0.0  ;;  %v3365_v29 = vpop.f32.mrf.mxu3 }
 0x549   : > { %3555 = vmatpush.msra.mxu3 %v2905_v15  ;;  %v2893_v15 = vmax.f32 %v7995_v63, 0.0 }
 0x54b   : > { %3556 = vmatpush.msra.mxu3 %v2903_v18  ;;  %v2891_v18 = vmax.f32 %v8003_v7, 0.0  ;;  %v3385_v37 = vpop.f32.mrf.mxu2 }
 0x54d   : > { %3557 = vmatpush.msra.mxu3 %v2901_v13  ;;  %v3346_v13 = vadd.f32 %v3345_v40, %v3326_v38 }
 0x54f   : > { %3558 = vmatpush.msra.mxu3 %v2899_v54  ;;  %v3605_v54 = vmax.f32 %v8036_v50, 1e-24  ;;  %v3366_v27 = vadd.f32 %v3365_v29, %v3346_v13 }
 0x551   : > { %3559 = vmatpush.msra.mxu3 %v2897_v46  ;;  %v8256_v46 = vpop.permute.xlu2 %3571  ;;  %4588 = vrsqrt.f32 %v3605_v54  ;;  %vm3613_vm3 = vweird.f32 %v3605_v54 }
 0x552   : > { %v3574_v43 = vperm.slane %v8256_v46, 0 }
 0x553   : > { %3560 = vmatpush.msra.mxu3 %v2895_v51  ;;  %v3386_v51 = vadd.f32 %v3385_v37, %v3366_v27 }
 0x555   : > { %3561 = vmatpush.msra.mxu3 %v2893_v15 }
 0x557   : > { %3562 = vmatpush.msra.mxu3 %v2891_v18  ;;  %v4589_v62 = vpop.eup %4588 }
 0x558   : > { %vm3614_vm2 = vweird.f32 %v4589_v62 }
 0x559   : > { %3563 = vmatpush.msra.mxu3 %v2889_v55  ;;  %v3608_v55 = vmul.f32 %v4589_v62, %v3605_v54  ;;  %vm3615_vm5 = vmor %vm3613_vm3, %vm3614_vm2  ;;  %v10500_v54 = vld [vmem:[#allocation51_spill] sm:$0xff] }
 0x55a   : > { %3564 = vmatmul.f32.vlgmr.msra.gmra.mxu3 %v8182_v17 }
 0x55b   : > { %v3609_v50 = vmul.f32 %v4589_v62, %v3608_v55 }
 0x55d   : > { %v3405_v28 = vpop.f32.mrf.mxu3  ;;  %v3610_v17 = vmul.f32 0.5, %v3609_v50 }
 0x55e   : > { %v3406_v15 = vadd.f32 %v3405_v28, %v3386_v51 }
 0x55f   : > { %v3611_v27 = vsub.f32 1.5, %v3610_v17 }
 0x560   : > { %v3575_v18 = vadd.f32 %v3574_v43, %v3406_v15 }
 0x561   : > { %v3612_v51 = vmul.f32 %v4589_v62, %v3611_v27  ;;  %v10502_v27 = vld [vmem:[#allocation48_spill] sm:$0xff] }
 0x562   : > { %v3579_v40 = vmin.f32 %v3575_v18, 20.0  ;;  %vm3577_vm6 = vcmp.gt.f32.partialorder %v3575_v18, 20.0 }
 0x564   : > { %v3581_v38 = vmul.f32 1.442695, %v3579_v40 }
 0x566   : > { %4590 = vpow2.f32 %v3581_v38  ;;  %v3616_v38 = vsel %vm3615_vm5, %v4589_v62, %v3612_v51  ;;  %v10503_v51 = vld [vmem:[#allocation47_spill] sm:$0xff] }
 0x56c   : > { %v4591_v29 = vpop.eup %4590 }
 0x56d   : > { %v3585_v13 = vadd.f32 1.0, %v4591_v29  ;;  %v3588_v42 = vmul.f32 -0.5, %v4591_v29  ;;  %v3591_v57 = vand.u32 2147483647, %v4591_v29 }
 0x56f   : > { %4592 = vlog2.f32 %v3585_v13  ;;  %v3589_v37 = vadd.f32 1.0, %v3588_v42  ;;  %vm3592_vm4 = vcmp.lt.f32.partialorder %v3591_v57, 0.0004427343  ;;  %v10499_v42 = vld [vmem:[#allocation52_spill] sm:$0xff] }
 0x571   : > { %v3590_v15 = vmul.f32 %v4591_v29, %v3589_v37  ;;  %v10501_v29 = vld [vmem:[#allocation49_spill] sm:$0xff] }
 0x575   : > { %v4593_v30 = vpop.eup %4592 }
 0x576   : > { %v3587_v28 = vmul.f32 0.6931472, %v4593_v30  ;;  %v10498_v30 = vld [vmem:[#allocation53_spill] sm:$0xff] }
 0x578   : > { %v3593_v40 = vsel %vm3592_vm4, %v3590_v15, %v3587_v28  ;;  %v10504_v15 = vld [vmem:[#allocation46_spill] sm:$0xff] }
 0x579   : > { %v8261_v55 = vsel %vm3577_vm6, %v3575_v18, %v3593_v40 }
 0x57a   : > { %v3627_v50 = vmul.f32 %v3616_v38, %v8261_v55  ;;  %v10505_v38 = vld [vmem:[#allocation44_spill] sm:$0xff] }
 0x57c   : > { %v8265_v13 = vperm.slane %v3627_v50, 0 }
 0x57e   : > { %v3631_v62 = vmul.f32 %v8265_v13, %v10498_v30  ;;  %v3633_v57 = vmul.f32 %v8265_v13, %v10499_v42  ;;  %v3635_v18 = vmul.f32 %v8265_v13, %v10500_v54  ;;  %v3637_v17 = vmul.f32 %v8265_v13, %v10501_v29  ;;  %v10506_v30 = vld [vmem:[#allocation43_spill] sm:$0xff] }
 0x57f   : > { %v3639_v37 = vmul.f32 %v8265_v13, %v10502_v27  ;;  %v3641_v28 = vmul.f32 %v8265_v13, %v10503_v51  ;;  %v3643_v40 = vmul.f32 %v8265_v13, %v10504_v15  ;;  %v3645_v50 = vmul.f32 %v8265_v13, %v10505_v38 }
 0x580   : > { %3887 = vst [vmem:[%s8270_s14] sm:$0xff] %v3631_v62  ;;  %v3647_v42 = vmul.f32 %v8265_v13, %v10506_v30  ;;  %v10507_v62 = vld [vmem:[#allocation42_spill] sm:$0xff] }
 0x581   : > { %3889 = vst [vmem:[%s8270_s14 + $0x10] sm:$0xff] %v3633_v57  ;;  %v3649_v54 = vmul.f32 %v8265_v13, %v10507_v62  ;;  %v10508_v57 = vld [vmem:[#allocation41_spill] sm:$0xff]  ;;  %v3667_v62 = vmul.f32 %v8265_v13, %v10373_v52 }
 0x582   : > { %3891 = vst [vmem:[%s8270_s14 + $0x20] sm:$0xff] %v3635_v18  ;;  %v3651_v29 = vmul.f32 %v8265_v13, %v10508_v57  ;;  %v10509_v18 = vld [vmem:[#allocation39_spill] sm:$0xff] }
 0x583   : > { %3893 = vst [vmem:[%s8270_s14 + $0x30] sm:$0xff] %v3637_v17  ;;  %v3653_v27 = vmul.f32 %v8265_v13, %v10509_v18  ;;  %v10510_v17 = vld [vmem:[#allocation38_spill] sm:$0xff]  ;;  %v10516_v18 = vld [vmem:[#allocation113_spill] sm:$0xff] }
 0x584   : > { %3895 = vst [vmem:[%s8270_s14 + $0x40] sm:$0xff] %v3639_v37  ;;  %v3655_v51 = vmul.f32 %v8265_v13, %v10510_v17  ;;  %v10511_v37 = vld [vmem:[#allocation37_spill] sm:$0xff]  ;;  %v10518_v17 = vld [vmem:[#allocation110_spill] sm:$0xff] }
 0x585   : > { %3897 = vst [vmem:[%s8270_s14 + $0x50] sm:$0xff] %v3641_v28  ;;  %v3657_v15 = vmul.f32 %v8265_v13, %v10511_v37  ;;  %v10512_v28 = vld [vmem:[#allocation35_spill] sm:$0xff]  ;;  %v10519_v37 = vld [vmem:[#allocation108_spill] sm:$0xff] }
 0x586   : > { %3899 = vst [vmem:[%s8270_s14 + $0x60] sm:$0xff] %v3643_v40  ;;  %v3659_v38 = vmul.f32 %v8265_v13, %v10512_v28  ;;  %v10513_v40 = vld [vmem:[#allocation36_spill] sm:$0xff]  ;;  %v10520_v28 = vld [vmem:[#allocation106_spill] sm:$0xff] }
 0x587   : > { %3901 = vst [vmem:[%s8270_s14 + $0x70] sm:$0xff] %v3645_v50  ;;  %v3661_v30 = vmul.f32 %v8265_v13, %v10513_v40  ;;  %v3663_v50 = vmul.f32 %v8265_v13, %v10378_v49  ;;  %v10521_v40 = vld [vmem:[#allocation105_spill] sm:$0xff] }
 0x588   : > { %3903 = vst [vmem:[%s8270_s14 + $0x80] sm:$0xff] %v3647_v42  ;;  %v3665_v42 = vmul.f32 %v8265_v13, %v10376_v39  ;;  %v3673_v39 = vmul.f32 %v8265_v13, %v10516_v18 }
 0x589   : > { %3905 = vst [vmem:[%s8270_s14 + $0x90] sm:$0xff] %v3649_v54  ;;  %v10514_v54 = vld [vmem:[#allocation117_spill] sm:$0xff] }
 0x58a   : > { %3907 = vst [vmem:[%s8270_s14 + $0xa0] sm:$0xff] %v3651_v29  ;;  %v3669_v57 = vmul.f32 %v8265_v13, %v10514_v54  ;;  %v10515_v29 = vld [vmem:[#allocation115_spill] sm:$0xff] }
 0x58b   : > { %3909 = vst [vmem:[%s8270_s14 + $0xb0] sm:$0xff] %v3653_v27  ;;  %v3671_v49 = vmul.f32 %v8265_v13, %v10515_v29  ;;  %v10517_v27 = vld [vmem:[#allocation112_spill] sm:$0xff] }
 0x58c   : > { %3911 = vst [vmem:[%s8270_s14 + $0xc0] sm:$0xff] %v3655_v51  ;;  %v3675_v52 = vmul.f32 %v8265_v13, %v10517_v27  ;;  %v3677_v51 = vmul.f32 %v8265_v13, %v10518_v17 }
 0x58d   : > { %3913 = vst [vmem:[%s8270_s14 + $0xd0] sm:$0xff] %v3657_v15  ;;  %v3679_v15 = vmul.f32 %v8265_v13, %v10519_v37 }
 0x58e   : > { %3915 = vst [vmem:[%s8270_s14 + $0xe0] sm:$0xff] %v3659_v38  ;;  %v3681_v38 = vmul.f32 %v8265_v13, %v10520_v28 }
 0x58f   : > { %3917 = vst [vmem:[%s8270_s14 + $0xf0] sm:$0xff] %v3661_v30  ;;  %v3683_v30 = vmul.f32 %v8265_v13, %v10521_v40 }
 0x590   : > { %3919 = vst [vmem:[%s8270_s14 + $0x100] sm:$0xff] %v3663_v50  ;;  %v10522_v50 = vld [vmem:[#allocation103_spill] sm:$0xff] }
 0x591   : > { %3921 = vst [vmem:[%s8270_s14 + $0x110] sm:$0xff] %v3665_v42  ;;  %v3685_v42 = vmul.f32 %v8265_v13, %v10522_v50 }
 0x592   : > { %3923 = vst [vmem:[%s8270_s14 + $0x120] sm:$0xff] %v3667_v62  ;;  %v10523_v62 = vld [vmem:[#allocation101_spill] sm:$0xff] }
 0x593   : > { %3925 = vst [vmem:[%s8270_s14 + $0x130] sm:$0xff] %v3669_v57  ;;  %v3687_v54 = vmul.f32 %v8265_v13, %v10523_v62  ;;  %v10524_v57 = vld [vmem:[#allocation99_spill] sm:$0xff] }
 0x594   : > { %3927 = vst [vmem:[%s8270_s14 + $0x140] sm:$0xff] %v3671_v49  ;;  %v3689_v29 = vmul.f32 %v8265_v13, %v10524_v57  ;;  %v10525_v49 = vld [vmem:[#allocation96_spill] sm:$0xff] }
 0x595   : > { %3929 = vst [vmem:[%s8270_s14 + $0x150] sm:$0xff] %v3673_v39  ;;  %v3691_v18 = vmul.f32 %v8265_v13, %v10525_v49  ;;  %v10526_v39 = vld [vmem:[#allocation97_spill] sm:$0xff] }
 0x596   : > { %3931 = vst [vmem:[%s8270_s14 + $0x160] sm:$0xff] %v3675_v52  ;;  %v3693_v27 = vmul.f32 %v8265_v13, %v10526_v39  ;;  %v10527_v52 = vld [vmem:[#allocation194_spill] sm:$0xff] }
 0x597   : > { %3933 = vst [vmem:[%s8270_s14 + $0x170] sm:$0xff] %v3677_v51  ;;  %v3695_v17 = vmul.f32 %v8265_v13, %v10527_v52  ;;  %v10528_v51 = vld [vmem:[#allocation193_spill] sm:$0xff] }
 0x598   : > { %3935 = vst [vmem:[%s8270_s14 + $0x180] sm:$0xff] %v3679_v15  ;;  %v3697_v37 = vmul.f32 %v8265_v13, %v10528_v51  ;;  %v10529_v15 = vld [vmem:[#allocation192_spill] sm:$0xff] }
 0x599   : > { %3937 = vst [vmem:[%s8270_s14 + $0x190] sm:$0xff] %v3681_v38  ;;  %v3699_v28 = vmul.f32 %v8265_v13, %v10529_v15  ;;  %v10530_v38 = vld [vmem:[#allocation189_spill] sm:$0xff] }
 0x59a   : > { %3939 = vst [vmem:[%s8270_s14 + $0x1a0] sm:$0xff] %v3683_v30  ;;  %v3701_v40 = vmul.f32 %v8265_v13, %v10530_v38  ;;  %v10531_v30 = vld [vmem:[#allocation188_spill] sm:$0xff] }
 0x59b   : > { %3941 = vst [vmem:[%s8270_s14 + $0x1b0] sm:$0xff] %v3685_v42  ;;  %v3703_v50 = vmul.f32 %v8265_v13, %v10531_v30  ;;  %v10532_v42 = vld [vmem:[#allocation187_spill] sm:$0xff] }
 0x59c   : > { %3943 = vst [vmem:[%s8270_s14 + $0x1c0] sm:$0xff] %v3687_v54  ;;  %v3705_v62 = vmul.f32 %v8265_v13, %v10532_v42  ;;  %v10533_v54 = vld [vmem:[#allocation186_spill] sm:$0xff] }
 0x59d   : > { %3945 = vst [vmem:[%s8270_s14 + $0x1d0] sm:$0xff] %v3689_v29  ;;  %v3707_v57 = vmul.f32 %v8265_v13, %v10533_v54  ;;  %v10534_v29 = vld [vmem:[#allocation184_spill] sm:$0xff] }
 0x59e   : > { %3947 = vst [vmem:[%s8270_s14 + $0x1e0] sm:$0xff] %v3691_v18  ;;  %v3709_v49 = vmul.f32 %v8265_v13, %v10534_v29  ;;  %v10535_v18 = vld [vmem:[#allocation182_spill] sm:$0xff] }
 0x59f   : > { %3949 = vst [vmem:[%s8270_s14 + $0x1f0] sm:$0xff] %v3693_v27  ;;  %v3711_v39 = vmul.f32 %v8265_v13, %v10535_v18  ;;  %v10536_v27 = vld [vmem:[#allocation180_spill] sm:$0xff] }
 0x5a0   : > { %3951 = vst [vmem:[%s8270_s14 + $0x200] sm:$0xff] %v3695_v17  ;;  %v3713_v52 = vmul.f32 %v8265_v13, %v10536_v27  ;;  %v10537_v17 = vld [vmem:[#allocation178_spill] sm:$0xff] }
 0x5a1   : > { %3953 = vst [vmem:[%s8270_s14 + $0x210] sm:$0xff] %v3697_v37  ;;  %v3715_v51 = vmul.f32 %v8265_v13, %v10537_v17  ;;  %v10538_v37 = vld [vmem:[#allocation176_spill] sm:$0xff] }
 0x5a2   : > { %3955 = vst [vmem:[%s8270_s14 + $0x220] sm:$0xff] %v3699_v28  ;;  %v3717_v15 = vmul.f32 %v8265_v13, %v10538_v37  ;;  %v10539_v28 = vld [vmem:[#allocation175_spill] sm:$0xff] }
 0x5a3   : > { %3957 = vst [vmem:[%s8270_s14 + $0x230] sm:$0xff] %v3701_v40  ;;  %v3719_v38 = vmul.f32 %v8265_v13, %v10539_v28  ;;  %v10540_v40 = vld [vmem:[#allocation173_spill] sm:$0xff] }
 0x5a4   : > { %3959 = vst [vmem:[%s8270_s14 + $0x240] sm:$0xff] %v3703_v50  ;;  %v3721_v30 = vmul.f32 %v8265_v13, %v10540_v40  ;;  %v10541_v50 = vld [vmem:[#allocation169_spill] sm:$0xff] }
 0x5a5   : > { %3961 = vst [vmem:[%s8270_s14 + $0x250] sm:$0xff] %v3705_v62  ;;  %v3723_v42 = vmul.f32 %v8265_v13, %v10541_v50  ;;  %v10542_v62 = vld [vmem:[#allocation170_spill] sm:$0xff] }
 0x5a6   : > { %3963 = vst [vmem:[%s8270_s14 + $0x260] sm:$0xff] %v3707_v57  ;;  %v3725_v54 = vmul.f32 %v8265_v13, %v10542_v62  ;;  %v10543_v57 = vld [vmem:[#allocation236_spill] sm:$0xff] }
 0x5a7   : > { %3965 = vst [vmem:[%s8270_s14 + $0x270] sm:$0xff] %v3709_v49  ;;  %v3727_v29 = vmul.f32 %v8265_v13, %v10543_v57  ;;  %v10544_v49 = vld [vmem:[#allocation235_spill] sm:$0xff] }
 0x5a8   : > { %3967 = vst [vmem:[%s8270_s14 + $0x280] sm:$0xff] %v3711_v39  ;;  %v3729_v18 = vmul.f32 %v8265_v13, %v10544_v49  ;;  %v10545_v39 = vld [vmem:[#allocation233_spill] sm:$0xff] }
 0x5a9   : > { %3969 = vst [vmem:[%s8270_s14 + $0x290] sm:$0xff] %v3713_v52  ;;  %v3731_v27 = vmul.f32 %v8265_v13, %v10545_v39  ;;  %v10546_v52 = vld [vmem:[#allocation232_spill] sm:$0xff] }
 0x5aa   : > { %3971 = vst [vmem:[%s8270_s14 + $0x2a0] sm:$0xff] %v3715_v51  ;;  %v3733_v17 = vmul.f32 %v8265_v13, %v10546_v52  ;;  %v10547_v51 = vld [vmem:[#allocation230_spill] sm:$0xff] }
 0x5ab   : > { %3973 = vst [vmem:[%s8270_s14 + $0x2b0] sm:$0xff] %v3717_v15  ;;  %v3735_v37 = vmul.f32 %v8265_v13, %v10547_v51  ;;  %v10548_v15 = vld [vmem:[#allocation229_spill] sm:$0xff] }
 0x5ac   : > { %3975 = vst [vmem:[%s8270_s14 + $0x2c0] sm:$0xff] %v3719_v38  ;;  %v3737_v28 = vmul.f32 %v8265_v13, %v10548_v15  ;;  %v10549_v38 = vld [vmem:[#allocation228_spill] sm:$0xff] }
 0x5ad   : > { %3977 = vst [vmem:[%s8270_s14 + $0x2d0] sm:$0xff] %v3721_v30  ;;  %v3739_v40 = vmul.f32 %v8265_v13, %v10549_v38  ;;  %v10550_v30 = vld [vmem:[#allocation227_spill] sm:$0xff] }
 0x5ae   : > { %3979 = vst [vmem:[%s8270_s14 + $0x2e0] sm:$0xff] %v3723_v42  ;;  %v3741_v50 = vmul.f32 %v8265_v13, %v10550_v30  ;;  %v10551_v42 = vld [vmem:[#allocation226_spill] sm:$0xff] }
 0x5af   : > { %3981 = vst [vmem:[%s8270_s14 + $0x2f0] sm:$0xff] %v3725_v54  ;;  %v3743_v62 = vmul.f32 %v8265_v13, %v10551_v42  ;;  %v10552_v54 = vld [vmem:[#allocation224_spill] sm:$0xff] }
 0x5b0   : > { %3983 = vst [vmem:[%s8270_s14 + $0x300] sm:$0xff] %v3727_v29  ;;  %v3745_v57 = vmul.f32 %v8265_v13, %v10552_v54  ;;  %v10553_v29 = vld [vmem:[#allocation223_spill] sm:$0xff] }
 0x5b1   : > { %3985 = vst [vmem:[%s8270_s14 + $0x310] sm:$0xff] %v3729_v18  ;;  %v3747_v49 = vmul.f32 %v8265_v13, %v10553_v29  ;;  %v10554_v18 = vld [vmem:[#allocation222_spill] sm:$0xff] }
 0x5b2   : > { %3987 = vst [vmem:[%s8270_s14 + $0x320] sm:$0xff] %v3731_v27  ;;  %v3749_v39 = vmul.f32 %v8265_v13, %v10554_v18  ;;  %v10555_v27 = vld [vmem:[#allocation221_spill] sm:$0xff] }
 0x5b3   : > { %3989 = vst [vmem:[%s8270_s14 + $0x330] sm:$0xff] %v3733_v17  ;;  %v3751_v52 = vmul.f32 %v8265_v13, %v10555_v27  ;;  %v10556_v17 = vld [vmem:[#allocation220_spill] sm:$0xff] }
 0x5b4   : > { %3991 = vst [vmem:[%s8270_s14 + $0x340] sm:$0xff] %v3735_v37  ;;  %v3753_v51 = vmul.f32 %v8265_v13, %v10556_v17  ;;  %v10557_v37 = vld [vmem:[#allocation217_spill] sm:$0xff] }
 0x5b5   : > { %3993 = vst [vmem:[%s8270_s14 + $0x350] sm:$0xff] %v3737_v28  ;;  %v3755_v15 = vmul.f32 %v8265_v13, %v10557_v37  ;;  %v10558_v28 = vld [vmem:[#allocation218_spill] sm:$0xff] }
 0x5b6   : > { %3995 = vst [vmem:[%s8270_s14 + $0x360] sm:$0xff] %v3739_v40  ;;  %v3757_v38 = vmul.f32 %v8265_v13, %v10558_v28  ;;  %v10559_v40 = vld [vmem:[#allocation281_spill] sm:$0xff] }
 0x5b7   : > { %3997 = vst [vmem:[%s8270_s14 + $0x370] sm:$0xff] %v3741_v50  ;;  %v3759_v30 = vmul.f32 %v8265_v13, %v10559_v40  ;;  %v10560_v50 = vld [vmem:[#allocation279_spill] sm:$0xff] }
 0x5b8   : > { %3999 = vst [vmem:[%s8270_s14 + $0x380] sm:$0xff] %v3743_v62  ;;  %v3761_v42 = vmul.f32 %v8265_v13, %v10560_v50  ;;  %v10561_v62 = vld [vmem:[#allocation278_spill] sm:$0xff] }
 0x5b9   : > { %4001 = vst [vmem:[%s8270_s14 + $0x390] sm:$0xff] %v3745_v57  ;;  %v3763_v54 = vmul.f32 %v8265_v13, %v10561_v62  ;;  %v10562_v57 = vld [vmem:[#allocation276_spill] sm:$0xff] }
 0x5ba   : > { %4003 = vst [vmem:[%s8270_s14 + $0x3a0] sm:$0xff] %v3747_v49  ;;  %v3765_v29 = vmul.f32 %v8265_v13, %v10562_v57  ;;  %v10563_v49 = vld [vmem:[#allocation275_spill] sm:$0xff] }
 0x5bb   : > { %4005 = vst [vmem:[%s8270_s14 + $0x3b0] sm:$0xff] %v3749_v39  ;;  %v3767_v18 = vmul.f32 %v8265_v13, %v10563_v49  ;;  %v10564_v39 = vld [vmem:[#allocation274_spill] sm:$0xff] }
 0x5bc   : > { %4007 = vst [vmem:[%s8270_s14 + $0x3c0] sm:$0xff] %v3751_v52  ;;  %v3769_v27 = vmul.f32 %v8265_v13, %v10564_v39  ;;  %v10565_v52 = vld [vmem:[#allocation272_spill] sm:$0xff] }
 0x5bd   : > { %4009 = vst [vmem:[%s8270_s14 + $0x3d0] sm:$0xff] %v3753_v51  ;;  %v3771_v17 = vmul.f32 %v8265_v13, %v10565_v52  ;;  %v10566_v51 = vld [vmem:[#allocation271_spill] sm:$0xff] }
 0x5be   : > { %4011 = vst [vmem:[%s8270_s14 + $0x3e0] sm:$0xff] %v3755_v15  ;;  %v3773_v37 = vmul.f32 %v8265_v13, %v10566_v51  ;;  %v10567_v15 = vld [vmem:[#allocation269_spill] sm:$0xff] }
 0x5bf   : > { %4013 = vst [vmem:[%s8270_s14 + $0x3f0] sm:$0xff] %v3757_v38  ;;  %v3775_v28 = vmul.f32 %v8265_v13, %v10567_v15  ;;  %v10568_v38 = vld [vmem:[#allocation268_spill] sm:$0xff] }
 0x5c0   : > { %4015 = vst [vmem:[%s8270_s14 + $0x400] sm:$0xff] %v3759_v30  ;;  %v3777_v40 = vmul.f32 %v8265_v13, %v10568_v38  ;;  %v10569_v30 = vld [vmem:[#allocation267_spill] sm:$0xff] }
 0x5c1   : > { %4017 = vst [vmem:[%s8270_s14 + $0x410] sm:$0xff] %v3761_v42  ;;  %v3779_v50 = vmul.f32 %v8265_v13, %v10569_v30  ;;  %v10570_v42 = vld [vmem:[#allocation266_spill] sm:$0xff] }
 0x5c2   : > { %4019 = vst [vmem:[%s8270_s14 + $0x420] sm:$0xff] %v3763_v54  ;;  %v3781_v62 = vmul.f32 %v8265_v13, %v10570_v42  ;;  %v10571_v54 = vld [vmem:[#allocation264_spill] sm:$0xff] }
 0x5c3   : > { %4021 = vst [vmem:[%s8270_s14 + $0x430] sm:$0xff] %v3765_v29  ;;  %v3783_v57 = vmul.f32 %v8265_v13, %v10571_v54  ;;  %v10572_v29 = vld [vmem:[#allocation263_spill] sm:$0xff] }
 0x5c4   : > { %4023 = vst [vmem:[%s8270_s14 + $0x440] sm:$0xff] %v3767_v18  ;;  %v3785_v49 = vmul.f32 %v8265_v13, %v10572_v29  ;;  %v10573_v18 = vld [vmem:[#allocation261_spill] sm:$0xff] }
 0x5c5   : > { %4025 = vst [vmem:[%s8270_s14 + $0x450] sm:$0xff] %v3769_v27  ;;  %v3787_v39 = vmul.f32 %v8265_v13, %v10573_v18  ;;  %v10574_v27 = vld [vmem:[#allocation262_spill] sm:$0xff] }
 0x5c6   : > { %4027 = vst [vmem:[%s8270_s14 + $0x460] sm:$0xff] %v3771_v17  ;;  %v3789_v52 = vmul.f32 %v8265_v13, %v10574_v27  ;;  %v10575_v17 = vld [vmem:[#allocation256_spill] sm:$0xff] }
 0x5c7   : > { %4029 = vst [vmem:[%s8270_s14 + $0x470] sm:$0xff] %v3773_v37  ;;  %v3791_v51 = vmul.f32 %v8265_v13, %v10575_v17  ;;  %v10576_v37 = vld [vmem:[#allocation259_spill] sm:$0xff] }
 0x5c8   : > { %4031 = vst [vmem:[%s8270_s14 + $0x480] sm:$0xff] %v3775_v28  ;;  %v3793_v15 = vmul.f32 %v8265_v13, %v10576_v37  ;;  %v10577_v28 = vld [vmem:[#allocation238_spill] sm:$0xff] }
 0x5c9   : > { %4033 = vst [vmem:[%s8270_s14 + $0x490] sm:$0xff] %v3777_v40  ;;  %v3795_v38 = vmul.f32 %v8265_v13, %v10577_v28  ;;  %v10578_v40 = vld [vmem:[#allocation134_spill] sm:$0xff] }
 0x5ca   : > { %4035 = vst [vmem:[%s8270_s14 + $0x4a0] sm:$0xff] %v3779_v50  ;;  %v3797_v30 = vmul.f32 %v8265_v13, %v10578_v40  ;;  %v10579_v50 = vld [vmem:[#allocation104_spill] sm:$0xff] }
 0x5cb   : > { %4037 = vst [vmem:[%s8270_s14 + $0x4b0] sm:$0xff] %v3781_v62  ;;  %v3799_v42 = vmul.f32 %v8265_v13, %v10579_v50  ;;  %v10580_v62 = vld [vmem:[#allocation111_spill] sm:$0xff] }
 0x5cc   : > { %4039 = vst [vmem:[%s8270_s14 + $0x4c0] sm:$0xff] %v3783_v57  ;;  %v3801_v54 = vmul.f32 %v8265_v13, %v10580_v62  ;;  %v10581_v57 = vld [vmem:[#allocation118_spill] sm:$0xff] }
 0x5cd   : > { %4041 = vst [vmem:[%s8270_s14 + $0x4d0] sm:$0xff] %v3785_v49  ;;  %v3803_v29 = vmul.f32 %v8265_v13, %v10581_v57  ;;  %v10582_v49 = vld [vmem:[#allocation124_spill] sm:$0xff] }
 0x5ce   : > { %4043 = vst [vmem:[%s8270_s14 + $0x4e0] sm:$0xff] %v3787_v39  ;;  %v3805_v18 = vmul.f32 %v8265_v13, %v10582_v49  ;;  %v10583_v39 = vld [vmem:[#allocation127_spill] sm:$0xff] }
 0x5cf   : > { %4045 = vst [vmem:[%s8270_s14 + $0x4f0] sm:$0xff] %v3789_v52  ;;  %v3807_v27 = vmul.f32 %v8265_v13, %v10583_v39  ;;  %v10584_v52 = vld [vmem:[#allocation130_spill] sm:$0xff] }
 0x5d0   : > { %4047 = vst [vmem:[%s8270_s14 + $0x500] sm:$0xff] %v3791_v51  ;;  %v3809_v17 = vmul.f32 %v8265_v13, %v10584_v52  ;;  %v10585_v51 = vld [vmem:[#allocation132_spill] sm:$0xff] }
 0x5d1   : > { %4049 = vst [vmem:[%s8270_s14 + $0x510] sm:$0xff] %v3793_v15  ;;  %v3811_v37 = vmul.f32 %v8265_v13, %v10585_v51  ;;  %v10586_v15 = vld [vmem:[#allocation135_spill] sm:$0xff] }
 0x5d2   : > { %4051 = vst [vmem:[%s8270_s14 + $0x520] sm:$0xff] %v3795_v38  ;;  %v3813_v28 = vmul.f32 %v8265_v13, %v10586_v15  ;;  %v10587_v38 = vld [vmem:[#allocation140_spill] sm:$0xff]  ;;  %v3445_v15 = vpop.f32.mrf.mxu3 }
 0x5d3   : > { %4053 = vst [vmem:[%s8270_s14 + $0x530] sm:$0xff] %v3797_v30  ;;  %v3815_v40 = vmul.f32 %v8265_v13, %v10587_v38  ;;  %v10588_v30 = vld [vmem:[#allocation145_spill] sm:$0xff] }
 0x5d4   : > { %4055 = vst [vmem:[%s8270_s14 + $0x540] sm:$0xff] %v3799_v42  ;;  %v3817_v50 = vmul.f32 %v8265_v13, %v10588_v30  ;;  %v10589_v42 = vld [vmem:[#allocation83_spill] sm:$0xff] }
 0x5d5   : > { %4057 = vst [vmem:[%s8270_s14 + $0x550] sm:$0xff] %v3801_v54  ;;  %v3819_v62 = vmul.f32 %v8265_v13, %v10589_v42  ;;  %v10590_v54 = vld [vmem:[#allocation151_spill] sm:$0xff] }
 0x5d6   : > { %4059 = vst [vmem:[%s8270_s14 + $0x560] sm:$0xff] %v3803_v29  ;;  %v3821_v57 = vmul.f32 %v8265_v13, %v10590_v54  ;;  %v10591_v29 = vld [vmem:[#allocation71_spill] sm:$0xff] }
 0x5d7   : > { %4061 = vst [vmem:[%s8270_s14 + $0x570] sm:$0xff] %v3805_v18  ;;  %v3823_v49 = vmul.f32 %v8265_v13, %v10591_v29  ;;  %v10592_v18 = vld [vmem:[#allocation76_spill] sm:$0xff] }
 0x5d8   : > { %4063 = vst [vmem:[%s8270_s14 + $0x580] sm:$0xff] %v3807_v27  ;;  %v3825_v39 = vmul.f32 %v8265_v13, %v10592_v18  ;;  %v10593_v27 = vld [vmem:[#allocation300_spill] sm:$0xff] }
 0x5d9   : > { %4065 = vst [vmem:[%s8270_s14 + $0x590] sm:$0xff] %v3809_v17  ;;  %v3827_v52 = vmul.f32 %v8265_v13, %v10593_v27  ;;  %v10594_v17 = vld [vmem:[#allocation298_spill] sm:$0xff] }
 0x5da   : > { %4067 = vst [vmem:[%s8270_s14 + $0x5a0] sm:$0xff] %v3811_v37  ;;  %v3829_v51 = vmul.f32 %v8265_v13, %v10594_v17  ;;  %v3425_v37 = vpop.f32.mrf.mxu2  ;;  %v10602_v17 = vld [vmem:[#allocation287_spill] sm:$0xff] }
 0x5db   : > { %4069 = vst [vmem:[%s8270_s14 + $0x5b0] sm:$0xff] %v3813_v28  ;;  %v10595_v28 = vld [vmem:[#allocation297_spill] sm:$0xff] }
 0x5dc   : > { %4071 = vst [vmem:[%s8270_s14 + $0x5c0] sm:$0xff] %v3815_v40  ;;  %v3831_v38 = vmul.f32 %v8265_v13, %v10595_v28  ;;  %v10596_v40 = vld [vmem:[#allocation296_spill] sm:$0xff]  ;;  %v3845_v28 = vmul.f32 %v8265_v13, %v10602_v17 }
 0x5dd   : > { %4073 = vst [vmem:[%s8270_s14 + $0x5d0] sm:$0xff] %v3817_v50  ;;  %v3833_v30 = vmul.f32 %v8265_v13, %v10596_v40  ;;  %v10597_v50 = vld [vmem:[#allocation294_spill] sm:$0xff]  ;;  %v3485_v40 = vpop.f32.mrf.mxu3 }
 0x5de   : > { %4075 = vst [vmem:[%s8270_s14 + $0x5e0] sm:$0xff] %v3819_v62  ;;  %v3835_v42 = vmul.f32 %v8265_v13, %v10597_v50  ;;  %v10598_v62 = vld [vmem:[#allocation292_spill] sm:$0xff] }
 0x5df   : > { %4077 = vst [vmem:[%s8270_s14 + $0x5f0] sm:$0xff] %v3821_v57  ;;  %v3837_v54 = vmul.f32 %v8265_v13, %v10598_v62  ;;  %v10599_v57 = vld [vmem:[#allocation291_spill] sm:$0xff] }
 0x5e0   : > { %4079 = vst [vmem:[%s8270_s14 + $0x600] sm:$0xff] %v3823_v49  ;;  %v3839_v29 = vmul.f32 %v8265_v13, %v10599_v57  ;;  %v10600_v49 = vld [vmem:[#allocation290_spill] sm:$0xff] }
 0x5e1   : > { %4081 = vst [vmem:[%s8270_s14 + $0x610] sm:$0xff] %v3825_v39  ;;  %v3841_v18 = vmul.f32 %v8265_v13, %v10600_v49  ;;  %v10601_v39 = vld [vmem:[#allocation289_spill] sm:$0xff]  ;;  %v10606_v57 = vld [vmem:[#allocation282_spill] sm:$0xff]  ;;  %v3855_v49 = vmul.f32 %v8265_v13, %v10470_v10 }
 0x5e2   : > { %4083 = vst [vmem:[%s8270_s14 + $0x620] sm:$0xff] %v3827_v52  ;;  %v3843_v27 = vmul.f32 %v8265_v13, %v10601_v39  ;;  %v3446_v52 = vadd.f32 %v3445_v15, %v3425_v37 }
 0x5e3   : > { %4085 = vst [vmem:[%s8270_s14 + $0x630] sm:$0xff] %v3829_v51  ;;  %v3465_v51 = vpop.f32.mrf.mxu2 }
 0x5e4   : > { %4087 = vst [vmem:[%s8270_s14 + $0x640] sm:$0xff] %v3831_v38  ;;  %v10603_v38 = vld [vmem:[#allocation285_spill] sm:$0xff]  ;;  %v3466_v15 = vadd.f32 %v3465_v51, %v3446_v52 }
 0x5e5   : > { %4089 = vst [vmem:[%s8270_s14 + $0x650] sm:$0xff] %v3833_v30  ;;  %v3847_v50 = vmul.f32 %v8265_v13, %v10603_v38  ;;  %v10604_v30 = vld [vmem:[#allocation284_spill] sm:$0xff]  ;;  %v3525_v10 = vpop.f32.mrf.mxu3 }
 0x5e6   : > { %4091 = vst [vmem:[%s8270_s14 + $0x660] sm:$0xff] %v3835_v42  ;;  %v3849_v62 = vmul.f32 %v8265_v13, %v10604_v30  ;;  %v10605_v42 = vld [vmem:[#allocation283_spill] sm:$0xff]  ;;  %v3486_v39 = vadd.f32 %v3485_v40, %v3466_v15  ;;  %v10611_v30 = vld [vmem:[#allocation142_spill] sm:$0xff] }
 0x5e7   : > { %4093 = vst [vmem:[%s8270_s14 + $0x670] sm:$0xff] %v3837_v54  ;;  %v3851_v37 = vmul.f32 %v8265_v13, %v10605_v42  ;;  %v3853_v54 = vmul.f32 %v8265_v13, %v10606_v57  ;;  %v3606_v42 = vmax.f32 %v8189_v9, 1e-24 }
 0x5e8   : > { %4095 = vst [vmem:[%s8270_s14 + $0x680] sm:$0xff] %v3839_v29  ;;  %v3857_v29 = vmul.f32 %v8265_v13, %v10469_v45  ;;  %v10609_v45 = vld [vmem:[#allocation128_spill] sm:$0xff] }
 0x5e9   : > { %4097 = vst [vmem:[%s8270_s14 + $0x690] sm:$0xff] %v3841_v18  ;;  %v3859_v18 = vmul.f32 %v8265_v13, %v10468_v61  ;;  %v3865_v38 = vmul.f32 %v8265_v13, %v10609_v45  ;;  %v10610_v61 = vld [vmem:[#allocation242_spill] sm:$0xff]  ;;  %4594 = vrsqrt.f32 %v3606_v42  ;;  %vm3623_vm8 = vweird.f32 %v3606_v42 }
 0x5ea   : > { %4099 = vst [vmem:[%s8270_s14 + $0x6a0] sm:$0xff] %v3843_v27  ;;  %v10607_v27 = vld [vmem:[#allocation164_spill] sm:$0xff]  ;;  %v3867_v40 = vmul.f32 %v8265_v13, %v10610_v61 }
 0x5eb   : > { %4101 = vst [vmem:[%s8270_s14 + $0x6b0] sm:$0xff] %v3845_v28  ;;  %v3861_v52 = vmul.f32 %v8265_v13, %v10607_v27  ;;  %v3505_v17 = vpop.f32.mrf.mxu2  ;;  %v10608_v28 = vld [vmem:[#allocation172_spill] sm:$0xff] }
 0x5ec   : > { %4103 = vst [vmem:[%s8270_s14 + $0x6c0] sm:$0xff] %v3847_v50  ;;  %v3863_v51 = vmul.f32 %v8265_v13, %v10608_v28  ;;  %v3506_v50 = vadd.f32 %v3505_v17, %v3486_v39  ;;  %v10615_v39 = vld [vmem:[#allocation243_spill] sm:$0xff]  ;;  %v10616_v17 = vld [vmem:[#allocation246_spill] sm:$0xff] }
 0x5ed   : > { %4105 = vst [vmem:[%s8270_s14 + $0x6d0] sm:$0xff] %v3849_v62  ;;  %v3869_v62 = vmul.f32 %v8265_v13, %v10611_v30  ;;  %v3877_v9 = vmul.f32 %v8265_v13, %v10615_v39 }
 0x5ee   : > { %4107 = vst [vmem:[%s8270_s14 + $0x6e0] sm:$0xff] %v3851_v37  ;;  %v10612_v37 = vld [vmem:[#allocation196_spill] sm:$0xff]  ;;  %v3526_v57 = vadd.f32 %v3525_v10, %v3506_v50  ;;  %v3879_v10 = vmul.f32 %v8265_v13, %v10616_v17  ;;  %v10619_v50 = vld [vmem:[#allocation253_spill] sm:$0xff] }
 0x5ef   : > { %4109 = vst [vmem:[%s8270_s14 + $0x6f0] sm:$0xff] %v3853_v54  ;;  %v3871_v15 = vmul.f32 %v8265_v13, %v10612_v37  ;;  %v10613_v54 = vld [vmem:[#allocation234_spill] sm:$0xff]  ;;  %v3885_v30 = vmul.f32 %v8265_v13, %v10619_v50  ;;  %v4595_v37 = vpop.eup %4594 }
 0x5f0   : > { %4111 = vst [vmem:[%s8270_s14 + $0x700] sm:$0xff] %v3855_v49  ;;  %v3873_v49 = vmul.f32 %v8265_v13, %v10613_v54  ;;  %v3618_v54 = vmul.f32 %v4595_v37, %v3606_v42  ;;  %vm3624_vm7 = vweird.f32 %v4595_v37  ;;  %v10621_v42 = vld [vmem:[#allocation23_spill] sm:$0xff] }
 0x5f1   : > { %4113 = vst [vmem:[%s8270_s14 + $0x710] sm:$0xff] %v3857_v29  ;;  %v10614_v29 = vld [vmem:[#allocation138_spill] sm:$0xff]  ;;  %vm3625_vm10 = vmor %vm3623_vm8, %vm3624_vm7 }
 0x5f2   : > { %4115 = vst [vmem:[%s8270_s14 + $0x720] sm:$0xff] %v3859_v18  ;;  %v3875_v18 = vmul.f32 %v8265_v13, %v10614_v29 }
 0x5f3   : > { %4117 = vst [vmem:[%s8270_s14 + $0x730] sm:$0xff] %v3861_v52  ;;  %v3545_v27 = vpop.f32.mrf.mxu2  ;;  %v3565_v52 = vpop.f32.mrf.mxu3 }
 0x5f4   : > { %4119 = vst [vmem:[%s8270_s14 + $0x740] sm:$0xff] %v3863_v51  ;;  %v3546_v28 = vadd.f32 %v3545_v27, %v3526_v57  ;;  %v10617_v51 = vld [vmem:[#allocation249_spill] sm:$0xff] }
 0x5f5   : > { %4121 = vst [vmem:[%s8270_s14 + $0x750] sm:$0xff] %v3865_v38  ;;  %v3881_v45 = vmul.f32 %v8265_v13, %v10617_v51  ;;  %v10618_v38 = vld [vmem:[#allocation251_spill] sm:$0xff] }
 0x5f6   : > { %4123 = vst [vmem:[%s8270_s14 + $0x760] sm:$0xff] %v3867_v40  ;;  %v3883_v61 = vmul.f32 %v8265_v13, %v10618_v38  ;;  %v3566_v40 = vadd.f32 %v3565_v52, %v3546_v28 }
 0x5f7   : > { %4125 = vst [vmem:[%s8270_s14 + $0x770] sm:$0xff] %v3869_v62 }
 0x5f8   : > { %4127 = vst [vmem:[%s8270_s14 + $0x780] sm:$0xff] %v3871_v15  ;;  %v3576_v62 = vadd.f32 %v3574_v43, %v3566_v40  ;;  %v10620_v40 = vld [vmem:[#allocation11_spill] sm:$0xff] }
 0x5f9   : > { %4129 = vst [vmem:[%s8270_s14 + $0x790] sm:$0xff] %v3873_v49  ;;  %v3619_v49 = vmul.f32 %v4595_v37, %v3618_v54  ;;  %v10623_v54 = vld [vmem:[#allocation24_spill] sm:$0xff] }
 0x5fa   : > { %4131 = vst [vmem:[%s8270_s14 + $0x7a0] sm:$0xff] %v3875_v18  ;;  %v3580_v15 = vmin.f32 %v3576_v62, 20.0  ;;  %vm3578_vm11 = vcmp.gt.f32.partialorder %v3576_v62, 20.0 }
 0x5fb   : > { %4133 = vst [vmem:[%s8270_s14 + $0x7b0] sm:$0xff] %v3877_v9  ;;  %v3620_v18 = vmul.f32 0.5, %v3619_v49 }
 0x5fc   : > { %4135 = vst [vmem:[%s8270_s14 + $0x7c0] sm:$0xff] %v3879_v10  ;;  %v3583_v57 = vmul.f32 1.442695, %v3580_v15  ;;  %v10622_v15 = vld [vmem:[#allocation12_spill] sm:$0xff] }
 0x5fd   : > { %4137 = vst [vmem:[%s8270_s14 + $0x7d0] sm:$0xff] %v3881_v45  ;;  %v3621_v13 = vsub.f32 1.5, %v3620_v18 }
 0x5fe   : > { %4139 = vst [vmem:[%s8270_s14 + $0x7e0] sm:$0xff] %v3883_v61  ;;  %4596 = vpow2.f32 %v3583_v57 }
 0x5ff   : > { %4141 = vst [vmem:[%s8270_s14 + $0x7f0] sm:$0xff] %v3885_v30  ;;  %v3622_v46 = vmul.f32 %v4595_v37, %v3621_v13  ;;  %v10627_v13 = vld [vmem:[#allocation27_spill] sm:$0xff] }
 0x601   : > { %v3626_v51 = vsel %vm3625_vm10, %v4595_v37, %v3622_v46  ;;  %v10624_v37 = vld [vmem:[#allocation14_spill] sm:$0xff]  ;;  %v10629_v46 = vld [vmem:[#allocation28_spill] sm:$0xff] }
 0x604   : > { %v4597_v29 = vpop.eup %4596 }
 0x605   : > { %v3594_v39 = vadd.f32 1.0, %v4597_v29  ;;  %v3597_v27 = vmul.f32 -0.5, %v4597_v29  ;;  %v3600_v52 = vand.u32 2147483647, %v4597_v29 }
 0x607   : > { %4598 = vlog2.f32 %v3594_v39  ;;  %v3598_v9 = vadd.f32 1.0, %v3597_v27  ;;  %vm3601_vm9 = vcmp.lt.f32.partialorder %v3600_v52, 0.0004427343  ;;  %v10626_v39 = vld [vmem:[#allocation18_spill] sm:$0xff] }
 0x608   : > { %v10628_v52 = vld [vmem:[#allocation22_spill] sm:$0xff] }
 0x609   : > { %v3599_v10 = vmul.f32 %v4597_v29, %v3598_v9  ;;  %v10625_v29 = vld [vmem:[#allocation29_spill] sm:$0xff] }
 0x60d   : > { %v4599_v17 = vpop.eup %4598 }
 0x60e   : > { %v3596_v43 = vmul.f32 0.6931472, %v4599_v17 }
 0x610   : > { %v3602_v28 = vsel %vm3601_vm9, %v3599_v10, %v3596_v43  ;;  %v10630_v10 = vld [vmem:[#allocation26_spill] sm:$0xff] }
 0x611   : > { %v8659_v45 = vsel %vm3578_vm11, %v3576_v62, %v3602_v28 }
 0x612   : > { %v3628_v38 = vmul.f32 %v3626_v51, %v8659_v45  ;;  %v10631_v51 = vld [vmem:[#allocation33_spill] sm:$0xff] }
 0x614   : > { %v8662_v61 = vperm.slane %v3628_v38, 0 }
 0x616   : > { %v3632_v50 = vmul.f32 %v8662_v61, %v10620_v40  ;;  %v3634_v30 = vmul.f32 %v8662_v61, %v10621_v42  ;;  %v3636_v57 = vmul.f32 %v8662_v61, %v10622_v15  ;;  %v3638_v62 = vmul.f32 %v8662_v61, %v10623_v54  ;;  %v10632_v40 = vld [vmem:[#allocation30_spill] sm:$0xff]  ;;  %v10633_v42 = vld [vmem:[#allocation31_spill] sm:$0xff]  ;;  %v10635_v54 = vld [vmem:[#allocation32_spill] sm:$0xff] }
 0x617   : > { %v3640_v49 = vmul.f32 %v8662_v61, %v10624_v37  ;;  %v3642_v18 = vmul.f32 %v8662_v61, %v10625_v29  ;;  %v3644_v27 = vmul.f32 %v8662_v61, %v10626_v39  ;;  %v3646_v9 = vmul.f32 %v8662_v61, %v10627_v13  ;;  %v10634_v15 = vld [vmem:[#allocation34_spill] sm:$0xff]  ;;  %v10636_v29 = vld [vmem:[#allocation89_spill] sm:$0xff]  ;;  %v10637_v39 = vld [vmem:[#allocation288_spill] sm:$0xff] }
 0x618   : > { %3888 = vst [vmem:[%s8270_s14 + $0x8] sm:$0xff] %v3632_v50  ;;  %v3648_v17 = vmul.f32 %v8662_v61, %v10628_v52  ;;  %v3650_v43 = vmul.f32 %v8662_v61, %v10629_v46  ;;  %v3652_v28 = vmul.f32 %v8662_v61, %v10630_v10  ;;  %v3654_v38 = vmul.f32 %v8662_v61, %v10631_v51  ;;  %v10638_v13 = vld [vmem:[#allocation185_spill] sm:$0xff]  ;;  %v10640_v52 = vld [vmem:[#allocation280_spill] sm:$0xff]  ;;  %v10641_v46 = vld [vmem:[#allocation190_spill] sm:$0xff] }
 0x619   : > { %3890 = vst [vmem:[%s8270_s14 + $0x18] sm:$0xff] %v3634_v30  ;;  %v3656_v50 = vmul.f32 %v8662_v61, %v10632_v40  ;;  %v3658_v30 = vmul.f32 %v8662_v61, %v10633_v42  ;;  %v3664_v37 = vmul.f32 %v8662_v61, %v10486_v53  ;;  %v3672_v53 = vmul.f32 %v8662_v61, %v10638_v13  ;;  %v10642_v10 = vld [vmem:[#allocation270_spill] sm:$0xff]  ;;  %v10643_v51 = vld [vmem:[#allocation100_spill] sm:$0xff]  ;;  %v10644_v40 = vld [vmem:[#allocation277_spill] sm:$0xff] }
 0x61a   : > { %3892 = vst [vmem:[%s8270_s14 + $0x28] sm:$0xff] %v3636_v57  ;;  %v3660_v57 = vmul.f32 %v8662_v61, %v10634_v15  ;;  %v10645_v42 = vld [vmem:[#allocation107_spill] sm:$0xff]  ;;  %v10646_v15 = vld [vmem:[#allocation265_spill] sm:$0xff]  ;;  %v10651_v13 = vld [vmem:[#allocation88_spill] sm:$0xff] }
 0x61b   : > { %3894 = vst [vmem:[%s8270_s14 + $0x38] sm:$0xff] %v3638_v62  ;;  %v3662_v62 = vmul.f32 %v8662_v61, %v10635_v54  ;;  %v10647_v54 = vld [vmem:[#allocation9_spill] sm:$0xff] }
 0x61c   : > { %3896 = vst [vmem:[%s8270_s14 + $0x48] sm:$0xff] %v3640_v49  ;;  %v3666_v49 = vmul.f32 %v8662_v61, %v10485_v8 }
 0x61d   : > { %3898 = vst [vmem:[%s8270_s14 + $0x58] sm:$0xff] %v3642_v18  ;;  %v3668_v18 = vmul.f32 %v8662_v61, %v10636_v29  ;;  %v10649_v29 = vld [vmem:[#allocation114_spill] sm:$0xff] }
 0x61e   : > { %3900 = vst [vmem:[%s8270_s14 + $0x68] sm:$0xff] %v3644_v27  ;;  %v3670_v27 = vmul.f32 %v8662_v61, %v10637_v39  ;;  %v10650_v39 = vld [vmem:[#allocation168_spill] sm:$0xff] }
 0x61f   : > { %3902 = vst [vmem:[%s8270_s14 + $0x78] sm:$0xff] %v3646_v9  ;;  %v10639_v9 = vld [vmem:[#allocation92_spill] sm:$0xff] }
 0x620   : > { %3904 = vst [vmem:[%s8270_s14 + $0x88] sm:$0xff] %v3648_v17  ;;  %v3674_v8 = vmul.f32 %v8662_v61, %v10639_v9  ;;  %v3676_v17 = vmul.f32 %v8662_v61, %v10640_v52  ;;  %v10652_v9 = vld [vmem:[#allocation179_spill] sm:$0xff] }
 0x621   : > { %3906 = vst [vmem:[%s8270_s14 + $0x98] sm:$0xff] %v3650_v43  ;;  %v3678_v43 = vmul.f32 %v8662_v61, %v10641_v46  ;;  %v10653_v52 = vld [vmem:[#allocation3_spill] sm:$0xff]  ;;  %v10654_v46 = vld [vmem:[#allocation13_spill] sm:$0xff] }
 0x622   : > { %3908 = vst [vmem:[%s8270_s14 + $0xa8] sm:$0xff] %v3652_v28  ;;  %v3680_v28 = vmul.f32 %v8662_v61, %v10642_v10  ;;  %v10655_v10 = vld [vmem:[#allocation17_spill] sm:$0xff] }
 0x623   : > { %3910 = vst [vmem:[%s8270_s14 + $0xb8] sm:$0xff] %v3654_v38  ;;  %v3682_v38 = vmul.f32 %v8662_v61, %v10643_v51  ;;  %v10656_v51 = vld [vmem:[#allocation5_spill] sm:$0xff] }
 0x624   : > { %3912 = vst [vmem:[%s8270_s14 + $0xc8] sm:$0xff] %v3656_v50  ;;  %v3684_v50 = vmul.f32 %v8662_v61, %v10644_v40  ;;  %v10657_v40 = vld [vmem:[#allocation16_spill] sm:$0xff] }
 0x625   : > { %3914 = vst [vmem:[%s8270_s14 + $0xd8] sm:$0xff] %v3658_v30  ;;  %v3686_v30 = vmul.f32 %v8662_v61, %v10645_v42  ;;  %v10658_v42 = vld [vmem:[#allocation21_spill] sm:$0xff] }
 0x626   : > { %3916 = vst [vmem:[%s8270_s14 + $0xe8] sm:$0xff] %v3660_v57  ;;  %v3688_v57 = vmul.f32 %v8662_v61, %v10646_v15  ;;  %v10659_v15 = vld [vmem:[#allocation7_spill] sm:$0xff] }
 0x627   : > { %3918 = vst [vmem:[%s8270_s14 + $0xf8] sm:$0xff] %v3662_v62  ;;  %v3690_v62 = vmul.f32 %v8662_v61, %v10647_v54  ;;  %v10660_v54 = vld [vmem:[#allocation15_spill] sm:$0xff] }
 0x628   : > { %3920 = vst [vmem:[%s8270_s14 + $0x108] sm:$0xff] %v3664_v37  ;;  %v10648_v37 = vld [vmem:[#allocation254_spill] sm:$0xff] }
 0x629   : > { %3922 = vst [vmem:[%s8270_s14 + $0x118] sm:$0xff] %v3666_v49  ;;  %v3692_v49 = vmul.f32 %v8662_v61, %v10648_v37  ;;  %v10661_v37 = vld [vmem:[#allocation8_spill] sm:$0xff] }
 0x62a   : > { %3924 = vst [vmem:[%s8270_s14 + $0x128] sm:$0xff] %v3668_v18  ;;  %v3694_v18 = vmul.f32 %v8662_v61, %v10649_v29  ;;  %v10662_v29 = vld [vmem:[#allocation19_spill] sm:$0xff] }
 0x62b   : > { %3926 = vst [vmem:[%s8270_s14 + $0x138] sm:$0xff] %v3670_v27  ;;  %v3696_v27 = vmul.f32 %v8662_v61, %v10650_v39  ;;  %v10663_v39 = vld [vmem:[#allocation20_spill] sm:$0xff] }
 0x62c   : > { %3928 = vst [vmem:[%s8270_s14 + $0x148] sm:$0xff] %v3672_v53  ;;  %v3698_v53 = vmul.f32 %v8662_v61, %v10651_v13  ;;  %v10664_v13 = vld [vmem:[#allocation10_spill] sm:$0xff] }
 0x62d   : > { %3930 = vst [vmem:[%s8270_s14 + $0x158] sm:$0xff] %v3674_v8  ;;  %v3700_v8 = vmul.f32 %v8662_v61, %v10652_v9  ;;  %v10665_v9 = vld [vmem:[#allocation25_spill] sm:$0xff] }
 0x62e   : > { %3932 = vst [vmem:[%s8270_s14 + $0x168] sm:$0xff] %v3676_v17  ;;  %v3702_v17 = vmul.f32 %v8662_v61, %v10653_v52  ;;  %v3728_v52 = vmul.f32 %v8662_v61, %v7774_v23  ;;  %v3736_v23 = vmul.f32 %v8662_v61, %v7745_v26  ;;  %v3744_v26 = vmul.f32 %v8662_v61, %v10494_v1 }
 0x62f   : > { %3934 = vst [vmem:[%s8270_s14 + $0x178] sm:$0xff] %v3678_v43  ;;  %v3704_v43 = vmul.f32 %v8662_v61, %v10654_v46  ;;  %v3732_v46 = vmul.f32 %v8662_v61, %v7759_v24  ;;  %v3740_v24 = vmul.f32 %v8662_v61, %v10496_v25  ;;  %v3748_v25 = vmul.f32 %v8662_v61, %v10492_v32 }
 0x630   : > { %3936 = vst [vmem:[%s8270_s14 + $0x188] sm:$0xff] %v3680_v28  ;;  %v3706_v28 = vmul.f32 %v8662_v61, %v10655_v10  ;;  %v10666_v10 = vld [vmem:[#allocation302_spill] sm:$0xff] }
 0x631   : > { %3938 = vst [vmem:[%s8270_s14 + $0x198] sm:$0xff] %v3682_v38  ;;  %v3708_v38 = vmul.f32 %v8662_v61, %v10656_v51  ;;  %v10668_v51 = vld [vmem:[#allocation79_spill] sm:$0xff] }
 0x632   : > { %3940 = vst [vmem:[%s8270_s14 + $0x1a8] sm:$0xff] %v3684_v50  ;;  %v3710_v50 = vmul.f32 %v8662_v61, %v10657_v40  ;;  %v10670_v40 = vld [vmem:[#allocation84_spill] sm:$0xff] }
 0x633   : > { %3942 = vst [vmem:[%s8270_s14 + $0x1b8] sm:$0xff] %v3686_v30  ;;  %v3712_v30 = vmul.f32 %v8662_v61, %v10658_v42  ;;  %v10671_v42 = vld [vmem:[#allocation137_spill] sm:$0xff] }
 0x634   : > { %3944 = vst [vmem:[%s8270_s14 + $0x1c8] sm:$0xff] %v3688_v57  ;;  %v3714_v57 = vmul.f32 %v8662_v61, %v10659_v15  ;;  %v10672_v15 = vld [vmem:[#allocation129_spill] sm:$0xff] }
 0x635   : > { %3946 = vst [vmem:[%s8270_s14 + $0x1d8] sm:$0xff] %v3690_v62  ;;  %v3716_v62 = vmul.f32 %v8662_v61, %v10660_v54  ;;  %v10673_v54 = vld [vmem:[#allocation139_spill] sm:$0xff] }
 0x636   : > { %3948 = vst [vmem:[%s8270_s14 + $0x1e8] sm:$0xff] %v3692_v49  ;;  %v3718_v49 = vmul.f32 %v8662_v61, %v10661_v37  ;;  %v10674_v37 = vld [vmem:[#allocation66_spill] sm:$0xff] }
 0x637   : > { %3950 = vst [vmem:[%s8270_s14 + $0x1f8] sm:$0xff] %v3694_v18  ;;  %v3720_v18 = vmul.f32 %v8662_v61, %v10662_v29  ;;  %v10675_v29 = vld [vmem:[#allocation143_spill] sm:$0xff] }
 0x638   : > { %3952 = vst [vmem:[%s8270_s14 + $0x208] sm:$0xff] %v3696_v27  ;;  %v3722_v27 = vmul.f32 %v8662_v61, %v10663_v39  ;;  %v10676_v39 = vld [vmem:[#allocation144_spill] sm:$0xff] }
 0x639   : > { %3954 = vst [vmem:[%s8270_s14 + $0x218] sm:$0xff] %v3698_v53  ;;  %v3724_v53 = vmul.f32 %v8662_v61, %v10664_v13  ;;  %v10677_v13 = vld [vmem:[#allocation70_spill] sm:$0xff] }
 0x63a   : > { %3956 = vst [vmem:[%s8270_s14 + $0x228] sm:$0xff] %v3700_v8  ;;  %v3726_v8 = vmul.f32 %v8662_v61, %v10665_v9  ;;  %v10678_v9 = vld [vmem:[#allocation148_spill] sm:$0xff] }
 0x63b   : > { %3958 = vst [vmem:[%s8270_s14 + $0x238] sm:$0xff] %v3702_v17  ;;  %v3730_v17 = vmul.f32 %v8662_v61, %v7766_v31  ;;  %v3738_v31 = vmul.f32 %v8662_v61, %v10497_v33  ;;  %v3746_v33 = vmul.f32 %v8662_v61, %v10493_v2  ;;  %v3754_v2 = vmul.f32 %v8662_v61, %v10668_v51 }
 0x63c   : > { %3960 = vst [vmem:[%s8270_s14 + $0x248] sm:$0xff] %v3704_v43  ;;  %v3734_v43 = vmul.f32 %v8662_v61, %v7752_v48  ;;  %v3742_v48 = vmul.f32 %v8662_v61, %v10495_v11  ;;  %v3750_v11 = vmul.f32 %v8662_v61, %v10666_v10 }
 0x63d   : > { %3962 = vst [vmem:[%s8270_s14 + $0x258] sm:$0xff] %v3706_v28  ;;  %v10667_v28 = vld [vmem:[#allocation165_spill] sm:$0xff] }
 0x63e   : > { %3964 = vst [vmem:[%s8270_s14 + $0x268] sm:$0xff] %v3708_v38  ;;  %v3752_v1 = vmul.f32 %v8662_v61, %v10667_v28  ;;  %v10669_v38 = vld [vmem:[#allocation301_spill] sm:$0xff] }
 0x63f   : > { %3966 = vst [vmem:[%s8270_s14 + $0x278] sm:$0xff] %v3710_v50  ;;  %v3756_v32 = vmul.f32 %v8662_v61, %v10669_v38  ;;  %v3758_v50 = vmul.f32 %v8662_v61, %v10670_v40  ;;  %v3794_v38 = vmul.f32 %v8662_v61, %v7883_v58  ;;  %v3798_v40 = vmul.f32 %v8662_v61, %v7869_v21 }
 0x640   : > { %3968 = vst [vmem:[%s8270_s14 + $0x288] sm:$0xff] %v3712_v30  ;;  %v3760_v30 = vmul.f32 %v8662_v61, %v10671_v42  ;;  %v3802_v58 = vmul.f32 %v8662_v61, %v7855_v5  ;;  %v3806_v21 = vmul.f32 %v8662_v61, %v7841_v56  ;;  %v3810_v5 = vmul.f32 %v8662_v61, %v7827_v60  ;;  %v10688_v42 = vld [vmem:[#allocation125_spill] sm:$0xff] }
 0x641   : > { %3970 = vst [vmem:[%s8270_s14 + $0x298] sm:$0xff] %v3714_v57  ;;  %v3762_v57 = vmul.f32 %v8662_v61, %v10672_v15  ;;  %v3814_v56 = vmul.f32 %v8662_v61, %v7813_v20  ;;  %v3818_v60 = vmul.f32 %v8662_v61, %v7800_v19  ;;  %v3822_v20 = vmul.f32 %v8662_v61, %v7780_v16  ;;  %v10690_v15 = vld [vmem:[#allocation247_spill] sm:$0xff] }
 0x642   : > { %3972 = vst [vmem:[%s8270_s14 + $0x2a8] sm:$0xff] %v3716_v62  ;;  %v3764_v62 = vmul.f32 %v8662_v61, %v10673_v54  ;;  %v3826_v19 = vmul.f32 %v8662_v61, %v10688_v42  ;;  %v3830_v16 = vmul.f32 %v8662_v61, %v10690_v15 }
 0x643   : > { %3974 = vst [vmem:[%s8270_s14 + $0x2b8] sm:$0xff] %v3718_v49  ;;  %v3766_v49 = vmul.f32 %v8662_v61, %v10674_v37 }
 0x644   : > { %3976 = vst [vmem:[%s8270_s14 + $0x2c8] sm:$0xff] %v3720_v18  ;;  %v3768_v18 = vmul.f32 %v8662_v61, %v10675_v29 }
 0x645   : > { %3978 = vst [vmem:[%s8270_s14 + $0x2d8] sm:$0xff] %v3722_v27  ;;  %v3770_v27 = vmul.f32 %v8662_v61, %v10676_v39 }
 0x646   : > { %3980 = vst [vmem:[%s8270_s14 + $0x2e8] sm:$0xff] %v3724_v53  ;;  %v3772_v53 = vmul.f32 %v8662_v61, %v10677_v13 }
 0x647   : > { %3982 = vst [vmem:[%s8270_s14 + $0x2f8] sm:$0xff] %v3726_v8  ;;  %v3774_v8 = vmul.f32 %v8662_v61, %v10678_v9 }
 0x648   : > { %3984 = vst [vmem:[%s8270_s14 + $0x308] sm:$0xff] %v3728_v52  ;;  %v10679_v52 = vld [vmem:[#allocation150_spill] sm:$0xff] }
 0x649   : > { %3986 = vst [vmem:[%s8270_s14 + $0x318] sm:$0xff] %v3730_v17  ;;  %v3776_v17 = vmul.f32 %v8662_v61, %v10679_v52 }
 0x64a   : > { %3988 = vst [vmem:[%s8270_s14 + $0x328] sm:$0xff] %v3732_v46  ;;  %v10680_v46 = vld [vmem:[#allocation78_spill] sm:$0xff] }
 0x64b   : > { %3990 = vst [vmem:[%s8270_s14 + $0x338] sm:$0xff] %v3734_v43  ;;  %v3778_v43 = vmul.f32 %v8662_v61, %v10680_v46 }
 0x64c   : > { %3992 = vst [vmem:[%s8270_s14 + $0x348] sm:$0xff] %v3736_v23  ;;  %v10681_v23 = vld [vmem:[#allocation155_spill] sm:$0xff] }
 0x64d   : > { %3994 = vst [vmem:[%s8270_s14 + $0x358] sm:$0xff] %v3738_v31  ;;  %v3780_v31 = vmul.f32 %v8662_v61, %v10681_v23 }
 0x64e   : > { %3996 = vst [vmem:[%s8270_s14 + $0x368] sm:$0xff] %v3740_v24  ;;  %v10682_v24 = vld [vmem:[#allocation156_spill] sm:$0xff] }
 0x64f   : > { %3998 = vst [vmem:[%s8270_s14 + $0x378] sm:$0xff] %v3742_v48  ;;  %v3782_v48 = vmul.f32 %v8662_v61, %v10682_v24 }
 0x650   : > { %4000 = vst [vmem:[%s8270_s14 + $0x388] sm:$0xff] %v3744_v26  ;;  %v10683_v26 = vld [vmem:[#allocation157_spill] sm:$0xff] }
 0x651   : > { %4002 = vst [vmem:[%s8270_s14 + $0x398] sm:$0xff] %v3746_v33  ;;  %v3784_v33 = vmul.f32 %v8662_v61, %v10683_v26 }
 0x652   : > { %4004 = vst [vmem:[%s8270_s14 + $0x3a8] sm:$0xff] %v3748_v25  ;;  %v10684_v25 = vld [vmem:[#allocation160_spill] sm:$0xff] }
 0x653   : > { %4006 = vst [vmem:[%s8270_s14 + $0x3b8] sm:$0xff] %v3750_v11  ;;  %v3786_v10 = vmul.f32 %v8662_v61, %v10684_v25  ;;  %v10685_v11 = vld [vmem:[#allocation163_spill] sm:$0xff] }
 0x654   : > { %4008 = vst [vmem:[%s8270_s14 + $0x3c8] sm:$0xff] %v3752_v1  ;;  %v3788_v28 = vmul.f32 %v8662_v61, %v10685_v11  ;;  %v10686_v1 = vld [vmem:[#allocation162_spill] sm:$0xff]  ;;  %v3858_v11 = vmul.f32 %v8662_v61, %v8003_v7  ;;  %v3866_v7 = vmul.f32 %v8662_v61, %v7974_v34  ;;  %v10705_v34 = vld [vmem:[#allocation80_spill] sm:$0xff] }
 0x655   : > { %4010 = vst [vmem:[%s8270_s14 + $0x3d8] sm:$0xff] %v3754_v2  ;;  %v3790_v51 = vmul.f32 %v8662_v61, %v10686_v1  ;;  %v3792_v2 = vmul.f32 %v8662_v61, %v7891_v35  ;;  %v3800_v35 = vmul.f32 %v8662_v61, %v7862_v3  ;;  %v3808_v3 = vmul.f32 %v8662_v61, %v7834_v36 }
 0x656   : > { %4012 = vst [vmem:[%s8270_s14 + $0x3e8] sm:$0xff] %v3756_v32  ;;  %v3796_v32 = vmul.f32 %v8662_v61, %v7876_v47  ;;  %v3804_v47 = vmul.f32 %v8662_v61, %v7848_v22  ;;  %v3812_v22 = vmul.f32 %v8662_v61, %v7820_v4  ;;  %v3816_v36 = vmul.f32 %v8662_v61, %v7805_v12 }
 0x657   : > { %4014 = vst [vmem:[%s8270_s14 + $0x3f8] sm:$0xff] %v3758_v50  ;;  %v3820_v4 = vmul.f32 %v8662_v61, %v7792_v0  ;;  %v10687_v50 = vld [vmem:[#allocation167_spill] sm:$0xff]  ;;  %v3862_v1 = vmul.f32 %v8662_v61, %v7988_v41  ;;  %v10703_v41 = vld [vmem:[#allocation197_spill] sm:$0xff] }
 0x658   : > { %4016 = vst [vmem:[%s8270_s14 + $0x408] sm:$0xff] %v3760_v30  ;;  %v3824_v12 = vmul.f32 %v8662_v61, %v10687_v50  ;;  %v10689_v30 = vld [vmem:[#allocation244_spill] sm:$0xff] }
 0x659   : > { %4018 = vst [vmem:[%s8270_s14 + $0x418] sm:$0xff] %v3762_v57  ;;  %v3828_v0 = vmul.f32 %v8662_v61, %v10689_v30  ;;  %v10691_v57 = vld [vmem:[#allocation245_spill] sm:$0xff] }
 0x65a   : > { %4020 = vst [vmem:[%s8270_s14 + $0x428] sm:$0xff] %v3764_v62  ;;  %v3832_v54 = vmul.f32 %v8662_v61, %v10691_v57  ;;  %v10692_v62 = vld [vmem:[#allocation133_spill] sm:$0xff] }
 0x65b   : > { %4022 = vst [vmem:[%s8270_s14 + $0x438] sm:$0xff] %v3766_v49  ;;  %v3834_v37 = vmul.f32 %v8662_v61, %v10692_v62  ;;  %v10693_v49 = vld [vmem:[#allocation147_spill] sm:$0xff] }
 0x65c   : > { %4024 = vst [vmem:[%s8270_s14 + $0x448] sm:$0xff] %v3768_v18  ;;  %v3836_v29 = vmul.f32 %v8662_v61, %v10693_v49  ;;  %v10694_v18 = vld [vmem:[#allocation136_spill] sm:$0xff] }
 0x65d   : > { %4026 = vst [vmem:[%s8270_s14 + $0x458] sm:$0xff] %v3770_v27  ;;  %v3838_v39 = vmul.f32 %v8662_v61, %v10694_v18  ;;  %v10695_v27 = vld [vmem:[#allocation141_spill] sm:$0xff] }
 0x65e   : > { %4028 = vst [vmem:[%s8270_s14 + $0x468] sm:$0xff] %v3772_v53  ;;  %v3840_v13 = vmul.f32 %v8662_v61, %v10695_v27  ;;  %v10696_v53 = vld [vmem:[#allocation260_spill] sm:$0xff] }
 0x65f   : > { %4030 = vst [vmem:[%s8270_s14 + $0x478] sm:$0xff] %v3774_v8  ;;  %v3842_v9 = vmul.f32 %v8662_v61, %v10696_v53  ;;  %v10697_v8 = vld [vmem:[#allocation258_spill] sm:$0xff] }
 0x660   : > { %4032 = vst [vmem:[%s8270_s14 + $0x488] sm:$0xff] %v3776_v17  ;;  %v3844_v52 = vmul.f32 %v8662_v61, %v10697_v8  ;;  %v10698_v17 = vld [vmem:[#allocation181_spill] sm:$0xff] }
 0x661   : > { %4034 = vst [vmem:[%s8270_s14 + $0x498] sm:$0xff] %v3778_v43  ;;  %v3846_v46 = vmul.f32 %v8662_v61, %v10698_v17  ;;  %v10699_v43 = vld [vmem:[#allocation250_spill] sm:$0xff] }
 0x662   : > { %4036 = vst [vmem:[%s8270_s14 + $0x4a8] sm:$0xff] %v3780_v31  ;;  %v3848_v23 = vmul.f32 %v8662_v61, %v10699_v43  ;;  %v10700_v31 = vld [vmem:[#allocation248_spill] sm:$0xff] }
 0x663   : > { %4038 = vst [vmem:[%s8270_s14 + $0x4b8] sm:$0xff] %v3782_v48  ;;  %v3850_v24 = vmul.f32 %v8662_v61, %v10700_v31  ;;  %v10701_v48 = vld [vmem:[#allocation153_spill] sm:$0xff] }
 0x664   : > { %4040 = vst [vmem:[%s8270_s14 + $0x4c8] sm:$0xff] %v3784_v33  ;;  %v3852_v26 = vmul.f32 %v8662_v61, %v10701_v48  ;;  %v10702_v33 = vld [vmem:[#allocation240_spill] sm:$0xff] }
 0x665   : > { %4042 = vst [vmem:[%s8270_s14 + $0x4d8] sm:$0xff] %v3786_v10  ;;  %v3854_v25 = vmul.f32 %v8662_v61, %v10702_v33  ;;  %v3856_v10 = vmul.f32 %v8662_v61, %v8009_v44  ;;  %v3864_v44 = vmul.f32 %v8662_v61, %v7981_v6  ;;  %v10704_v6 = vld [vmem:[#allocation62_spill] sm:$0xff] }
 0x666   : > { %4044 = vst [vmem:[%s8270_s14 + $0x4e8] sm:$0xff] %v3788_v28  ;;  %v3860_v28 = vmul.f32 %v8662_v61, %v7995_v63  ;;  %v3868_v63 = vmul.f32 %v8662_v61, %v7967_v14  ;;  %v10706_v14 = vld [vmem:[#allocation87_spill] sm:$0xff] }
 0x667   : > { %4046 = vst [vmem:[%s8270_s14 + $0x4f8] sm:$0xff] %v3790_v51  ;;  %v3870_v51 = vmul.f32 %v8662_v61, %v7960_v59  ;;  %v3878_v59 = vmul.f32 %v8662_v61, %v10706_v14 }
 0x668   : > { %4048 = vst [vmem:[%s8270_s14 + $0x508] sm:$0xff] %v3792_v2  ;;  %v3872_v2 = vmul.f32 %v8662_v61, %v10703_v41 }
 0x669   : > { %4050 = vst [vmem:[%s8270_s14 + $0x518] sm:$0xff] %v3794_v38  ;;  %v3874_v38 = vmul.f32 %v8662_v61, %v10704_v6 }
 0x66a   : > { %4052 = vst [vmem:[%s8270_s14 + $0x528] sm:$0xff] %v3796_v32  ;;  %v3876_v32 = vmul.f32 %v8662_v61, %v10705_v34 }
 0x66b   : > { %4054 = vst [vmem:[%s8270_s14 + $0x538] sm:$0xff] %v3798_v40  ;;  %v10707_v40 = vld [vmem:[#allocation85_spill] sm:$0xff] }
 0x66c   : > { %4056 = vst [vmem:[%s8270_s14 + $0x548] sm:$0xff] %v3800_v35  ;;  %v3880_v35 = vmul.f32 %v8662_v61, %v10707_v40 }
 0x66d   : > { %4058 = vst [vmem:[%s8270_s14 + $0x558] sm:$0xff] %v3802_v58  ;;  %v10708_v58 = vld [vmem:[#allocation98_spill] sm:$0xff] }
 0x66e   : > { %4060 = vst [vmem:[%s8270_s14 + $0x568] sm:$0xff] %v3804_v47  ;;  %v3882_v47 = vmul.f32 %v8662_v61, %v10708_v58 }
 0x66f   : > { %4062 = vst [vmem:[%s8270_s14 + $0x578] sm:$0xff] %v3806_v21  ;;  %v4145_v21 = vrot.slane %v8659_v45, 7 }
 0x670   : > { %4064 = vst [vmem:[%s8270_s14 + $0x588] sm:$0xff] %v3808_v3  ;;  %v4149_v3 = vlaneseq }
 0x671   : > { %4066 = vst [vmem:[%s8270_s14 + $0x598] sm:$0xff] %v3810_v5  ;;  %v10709_v5 = vld [vmem:[#allocation90_spill] sm:$0xff] }
 0x672   : > { %4068 = vst [vmem:[%s8270_s14 + $0x5a8] sm:$0xff] %v3812_v22  ;;  %v3884_v22 = vmul.f32 %v8662_v61, %v10709_v5  ;;  %vm4151_vm13 = vcmp.lt.s32.totalorder %v4149_v3, 256 }
 0x673   : > { %4070 = vst [vmem:[%s8270_s14 + $0x5b8] sm:$0xff] %v3814_v56  ;;  %v10710_v56 = vld [vmem:[#allocation64_spill] sm:$0xff] }
 0x674   : > { %4072 = vst [vmem:[%s8270_s14 + $0x5c8] sm:$0xff] %v3816_v36  ;;  %v3886_v36 = vmul.f32 %v8662_v61, %v10710_v56 }
 0x675   : > { %4074 = vst [vmem:[%s8270_s14 + $0x5d8] sm:$0xff] %v3818_v60  ;;  %v4147_v60 = vsel %vm4146_vm12, %v8261_v55, %v4145_v21 }
 0x676   : > { %4076 = vst [vmem:[%s8270_s14 + $0x5e8] sm:$0xff] %v3820_v4 }
 0x677   : > { %4078 = vst [vmem:[%s8270_s14 + $0x5f8] sm:$0xff] %v3822_v20 }
 0x678   : > { %4080 = vst [vmem:[%s8270_s14 + $0x608] sm:$0xff] %v3824_v12 }
 0x679   : > { %4082 = vst [vmem:[%s8270_s14 + $0x618] sm:$0xff] %v3826_v19 }
 0x67a   : > { %4084 = vst [vmem:[%s8270_s14 + $0x628] sm:$0xff] %v3828_v0 }
 0x67b   : > { %4086 = vst [vmem:[%s8270_s14 + $0x638] sm:$0xff] %v3830_v16 }
 0x67c   : > { %4088 = vst [vmem:[%s8270_s14 + $0x648] sm:$0xff] %v3832_v54 }
 0x67d   : > { %4090 = vst [vmem:[%s8270_s14 + $0x658] sm:$0xff] %v3834_v37 }
 0x67e   : > { %4092 = vst [vmem:[%s8270_s14 + $0x668] sm:$0xff] %v3836_v29 }
 0x67f   : > { %4094 = vst [vmem:[%s8270_s14 + $0x678] sm:$0xff] %v3838_v39 }
 0x680   : > { %4096 = vst [vmem:[%s8270_s14 + $0x688] sm:$0xff] %v3840_v13 }
 0x681   : > { %4098 = vst [vmem:[%s8270_s14 + $0x698] sm:$0xff] %v3842_v9 }
 0x682   : > { %4100 = vst [vmem:[%s8270_s14 + $0x6a8] sm:$0xff] %v3844_v52 }
 0x683   : > { %4102 = vst [vmem:[%s8270_s14 + $0x6b8] sm:$0xff] %v3846_v46 }
 0x684   : > { %4104 = vst [vmem:[%s8270_s14 + $0x6c8] sm:$0xff] %v3848_v23 }
 0x685   : > { %4106 = vst [vmem:[%s8270_s14 + $0x6d8] sm:$0xff] %v3850_v24 }
 0x686   : > { %4108 = vst [vmem:[%s8270_s14 + $0x6e8] sm:$0xff] %v3852_v26 }
 0x687   : > { %4110 = vst [vmem:[%s8270_s14 + $0x6f8] sm:$0xff] %v3854_v25 }
 0x688   : > { %4112 = vst [vmem:[%s8270_s14 + $0x708] sm:$0xff] %v3856_v10 }
 0x689   : > { %4114 = vst [vmem:[%s8270_s14 + $0x718] sm:$0xff] %v3858_v11 }
 0x68a   : > { %4116 = vst [vmem:[%s8270_s14 + $0x728] sm:$0xff] %v3860_v28 }
 0x68b   : > { %4118 = vst [vmem:[%s8270_s14 + $0x738] sm:$0xff] %v3862_v1 }
 0x68c   : > { %4120 = vst [vmem:[%s8270_s14 + $0x748] sm:$0xff] %v3864_v44 }
 0x68d   : > { %4122 = vst [vmem:[%s8270_s14 + $0x758] sm:$0xff] %v3866_v7 }
 0x68e   : > { %4124 = vst [vmem:[%s8270_s14 + $0x768] sm:$0xff] %v3868_v63 }
 0x68f   : > { %4126 = vst [vmem:[%s8270_s14 + $0x778] sm:$0xff] %v3870_v51 }
 0x690   : > { %4128 = vst [vmem:[%s8270_s14 + $0x788] sm:$0xff] %v3872_v2 }
 0x691   : > { %4130 = vst [vmem:[%s8270_s14 + $0x798] sm:$0xff] %v3874_v38 }
 0x692   : > { %4132 = vst [vmem:[%s8270_s14 + $0x7a8] sm:$0xff] %v3876_v32 }
 0x693   : > { %4134 = vst [vmem:[%s8270_s14 + $0x7b8] sm:$0xff] %v3878_v59 }
 0x694   : > { %4136 = vst [vmem:[%s8270_s14 + $0x7c8] sm:$0xff] %v3880_v35 }
 0x695   : > { %4138 = vst [vmem:[%s8270_s14 + $0x7d8] sm:$0xff] %v3882_v47 }
 0x696   : > { %4140 = vst [vmem:[%s8270_s14 + $0x7e8] sm:$0xff] %v3884_v22 }
 0x697   : > { %4142 = vst [vmem:[%s8270_s14 + $0x7f8] sm:$0xff] %v3886_v36 }
 0x698   : > { %4153 = vst.msk [vmem:[%s313_s18] sm:$0x3] %vm4151_vm13, %v4147_v60 }
 0x699 PF: > { %s19_s25 = sadd.s32 1, %s4623_s25   ;;  %s10711_s23 = smov %s4619_s24 }
 0x69a   : > { %p16_p5 = scmp.ge.s32.totalorder %s19_s25, 4   ;;  %s10712_s24 = smov %s10714_s4 }
 0x69c   :  { %18 = sbr.rel (!%p16_p5) target bundleno = 3 (0x3), region = 82 }

</bundles_post_ra>
